<compile_context>
chip_gen: v5e
topology: v5e:2x2
jax: 0.10.0
libtpu: 0.0.40
codegen_flags: <defaults>
</compile_context>

<pallas_src>
import functools

import numpy as np
import jax
import jax.numpy as jnp
from jax import lax
from jax.experimental import pallas as pl
from jax.experimental.pallas import tpu as pltpu

EPS = 1e-3                       # BatchNorm eps from the module
OUT_C = 320 + 768 + 768 + 192    # = 2048 output channels after concat


# ------------------------------- fused kernel ------------------------------- #

def _inception_e_kernel(x_ref,
                        w1, sb1, w31, sb31, w32, sb32,
                        w3d1, sb3d1, w3d2, sb3d2, w3d3, sb3d3,
                        wp, sbp,
                        o_ref, *, L, TL, is_maxpool):
    # x_ref : (1, L + 4, Cp)  zero-padded input (2-row halo each side, channels padded to Cp)
    # w*    : 1x1 weights (Cp, C_out); 3-tap weights reshaped to (3*C_in, C_out) for im2col
    # sb*   : (2, C_out) f32: row 0 = folded BN scale, row 1 = folded BN bias
    # o_ref : (1, TL, 2048) output tile (concat of the 4 branches)
    l = pl.program_id(1)
    base = pl.multiple_of(l * TL, TL)          # row offset of this tile in the padded input
    cdt = x_ref.dtype                          # compute dtype (f32 or bf16)

    xw = x_ref[0, pl.ds(base, TL + 4), :]      # (TL+4, Cp) window incl. 2-row halo each side

    def bn_relu(acc, sb_ref):
        sb = sb_ref[...]                       # (2, C) f32; epilogue stays in f32
        return jnp.maximum(acc * sb[0:1, :] + sb[1:2, :], 0.0)

    def conv1x1(t, w_ref, sb_ref):
        acc = jnp.dot(t, w_ref[...], preferred_element_type=jnp.float32)
        return bn_relu(acc, sb_ref)

    def conv3(t, w_ref, sb_ref):
        # t: (M+2, C) -> im2col lhs (M, 3*C), single MXU push with contraction 3*C.
        m = t.shape[0] - 2
        lhs = jnp.concatenate([t[0:m], t[1:m + 1], t[2:m + 2]], axis=-1)
        acc = jnp.dot(lhs, w_ref[...], preferred_element_type=jnp.float32)
        return bn_relu(acc, sb_ref)

    def valid_rows(first, m):
        # mask of rows whose *original* index (first + j) lies inside [0, L)
        r = lax.broadcasted_iota(jnp.int32, (m, 1), 0) + first
        return (r >= 0) & (r < L)

    v4 = valid_rows(base - 2, TL + 4)
    v2 = valid_rows(base - 1, TL + 2)

    # ---- branch1: 1x1 conv on the central TL rows --------------------------------------
    b1 = conv1x1(xw[2:2 + TL], w1, sb1)                       # (TL, 320)

    # ---- branch3: 1x1 -> 3-tap ----------------------------------------------------------
    t3 = conv1x1(xw[1:TL + 3], w31, sb31)                     # (TL+2, 384)
    t3 = jnp.where(v2, t3, 0.0).astype(cdt)                   # torch zero-pads this activation
    b3 = conv3(t3, w32, sb32)                                 # (TL, 768)

    # ---- branch3dbl: 1x1 -> 3-tap -> 3-tap ----------------------------------------------
    t3d = conv1x1(xw, w3d1, sb3d1)                            # (TL+4, 448)
    t3d = jnp.where(v4, t3d, 0.0).astype(cdt)
    t3d = conv3(t3d, w3d2, sb3d2)                             # (TL+2, 384)
    t3d = jnp.where(v2, t3d, 0.0).astype(cdt)
    b3d = conv3(t3d, w3d3, sb3d3)                             # (TL, 768)

    # ---- pool branch: k=3/s=1/p=1 pool fused with the 1x1 conv --------------------------
    left = xw[1:TL + 1].astype(jnp.float32)
    mid = xw[2:TL + 2].astype(jnp.float32)
    right = xw[3:TL + 3].astype(jnp.float32)
    rows = lax.broadcasted_iota(jnp.int32, (TL, 1), 0) + base  # original row indices
    if is_maxpool:
        left = jnp.where(rows == 0, -jnp.inf, left)            # exclude out-of-range neighbors
        right = jnp.where(rows == L - 1, -jnp.inf, right)
        pooled = jnp.maximum(jnp.maximum(left, mid), right)
    else:
        cnt = (3.0 - (rows == 0).astype(jnp.float32)
                   - (rows == L - 1).astype(jnp.float32))      # count_include_pad=False
        pooled = (left + mid + right) / cnt
    bp = conv1x1(pooled.astype(cdt), wp, sbp)                  # (TL, 192)

    # ---- channel concat (torch.cat dim=1 in NCL == axis -1 here), one lane-dense store --
    o_ref[0] = jnp.concatenate([b1, b3, b3d, bp], axis=-1).astype(o_ref.dtype)


# ----------------------------- params / BN folding ---------------------------- #

def init_basic_conv(key, c_in, c_out, k):
    kw, kg, kb, km, kv = jax.random.split(key, 5)
    return dict(
        w=jax.random.normal(kw, (c_out, c_in, k), jnp.float32) / np.sqrt(c_in * k),
        gamma=jax.random.uniform(kg, (c_out,), jnp.float32, 0.5, 1.5),
        beta=jax.random.normal(kb, (c_out,), jnp.float32) * 0.1,
        mean=jax.random.normal(km, (c_out,), jnp.float32) * 0.1,
        var=jax.random.uniform(kv, (c_out,), jnp.float32, 0.5, 1.5),
    )


def init_inception_e(key, in_channels):
    keys = jax.random.split(key, 7)
    return dict(
        branch1=init_basic_conv(keys[0], in_channels, 320, 1),
        branch3_1=init_basic_conv(keys[1], in_channels, 384, 1),
        branch3_2=init_basic_conv(keys[2], 384, 768, 3),
        branch3dbl_1=init_basic_conv(keys[3], in_channels, 448, 1),
        branch3dbl_2=init_basic_conv(keys[4], 448, 384, 3),
        branch3dbl_3=init_basic_conv(keys[5], 384, 768, 3),
        branch_pool=init_basic_conv(keys[6], in_channels, 192, 1),
    )


def _round_up(x, m):
    return ((x + m - 1) // m) * m


def _fold_bn_affine(p):
    scale = p["gamma"] / jnp.sqrt(p["var"] + EPS)
    bias = p["beta"] - p["mean"] * scale
    return jnp.stack([scale, bias], axis=0)                   # (2, C_out), kept in f32


def _fold_conv1x1(p, c_in_padded, dtype):
    w = p["w"][:, :, 0].T                                      # (C_in, C_out)
    w = jnp.pad(w, ((0, c_in_padded - w.shape[0]), (0, 0)))    # zero rows for padded channels
    return w.astype(dtype)


def _fold_conv3(p, dtype):
    w = jnp.transpose(p["w"], (2, 1, 0))                       # (3, C_in, C_out)
    return w.reshape(-1, w.shape[-1]).astype(dtype)            # (3*C_in, C_out), tap-major


def fold_inception_params(params, compute_dtype=jnp.float32):
    """Done ONCE (hoisted out of the forward): BN fold + weight reshape/pad/cast."""
    c_in = params["branch1"]["w"].shape[1]
    cp = _round_up(c_in, 128)                                  # lane-dense / MXU-friendly C_in
    ops = [
        _fold_conv1x1(params["branch1"], cp, compute_dtype),      _fold_bn_affine(params["branch1"]),
        _fold_conv1x1(params["branch3_1"], cp, compute_dtype),    _fold_bn_affine(params["branch3_1"]),
        _fold_conv3(params["branch3_2"], compute_dtype),          _fold_bn_affine(params["branch3_2"]),
        _fold_conv1x1(params["branch3dbl_1"], cp, compute_dtype), _fold_bn_affine(params["branch3dbl_1"]),
        _fold_conv3(params["branch3dbl_2"], compute_dtype),       _fold_bn_affine(params["branch3dbl_2"]),
        _fold_conv3(params["branch3dbl_3"], compute_dtype),       _fold_bn_affine(params["branch3dbl_3"]),
        _fold_conv1x1(params["branch_pool"], cp, compute_dtype),  _fold_bn_affine(params["branch_pool"]),
    ]
    return dict(c_in=c_in, c_in_padded=cp, dtype=compute_dtype, ops=ops)


# ------------------------------- forward wrapper ------------------------------ #

def _pick_tile(L):
    # Prefer multiples of 8 (sublane-aligned dynamic-slice starts); biggest that divides L.
    for cand in (512, 256, 128, 64, 32, 16, 8):
        if L % cand == 0:
            return cand
    return L


def inception_e_forward(x_nlc, folded, is_maxpool=False, tl=None):
    """x_nlc: (N, L, C_in) channels-last. Returns (N, L, 2048) channels-last."""
    N, L, C_in = x_nlc.shape
    assert C_in == folded["c_in"]
    cp = folded["c_in_padded"]
    cdt = folded["dtype"]
    TL = tl if tl is not None else _pick_tile(L)
    if L % TL != 0:
        TL = L

    # Single pad of the input: 2-row halo for the chained 3-tap convs + channel pad to Cp.
    x_p = jnp.pad(x_nlc, ((0, 0), (2, 2), (0, cp - C_in))).astype(cdt)

    kern = functools.partial(_inception_e_kernel, L=L, TL=TL, is_maxpool=is_maxpool)
    ops = folded["ops"]
    # Weights/BN stay resident in VMEM across all grid steps (index_map constant).
    w_specs = [pl.BlockSpec(op.shape, lambda n, l: (0, 0)) for op in ops]

    return pl.pallas_call(
        kern,
        out_shape=jax.ShapeDtypeStruct((N, L, OUT_C), cdt),
        grid=(N, L // TL),
        in_specs=[pl.BlockSpec((1, L + 4, cp), lambda n, l: (n, 0, 0))] + w_specs,
        out_specs=pl.BlockSpec((1, TL, OUT_C), lambda n, l: (n, l, 0)),
        compiler_params=pltpu.CompilerParams(
            dimension_semantics=("parallel", "parallel"),   # shards across v7x's 2 TCs
            vmem_limit_bytes=48 * 1024 * 1024),
    )(x_p, *ops)


# ----------------------------- pure-JAX reference ----------------------------- #

def _ref_basic_conv(x, p, padding):
    w_kio = jnp.transpose(p["w"], (2, 1, 0))
    y = lax.conv_general_dilated(x, w_kio, (1,), [(padding, padding)],
                                 dimension_numbers=("NWC", "WIO", "NWC"))
    y = (y - p["mean"]) / jnp.sqrt(p["var"] + EPS) * p["gamma"] + p["beta"]
    return jnp.maximum(y, 0.0)


def _ref_pool(x, is_maxpool):
    if is_maxpool:
        return lax.reduce_window(x, -jnp.inf, lax.max, (1, 3, 1), (1, 1, 1),
                                 [(0, 0), (1, 1), (0, 0)])
    s = lax.reduce_window(x, 0.0, lax.add, (1, 3, 1), (1, 1, 1),
                          [(0, 0), (1, 1), (0, 0)])
    c = lax.reduce_window(jnp.ones_like(x), 0.0, lax.add, (1, 3, 1), (1, 1, 1),
                          [(0, 0), (1, 1), (0, 0)])
    return s / c


def inception_e_reference(x_nlc, params, is_maxpool=False):
    b1 = _ref_basic_conv(x_nlc, params["branch1"], 0)
    b3 = _ref_basic_conv(x_nlc, params["branch3_1"], 0)
    b3 = _ref_basic_conv(b3, params["branch3_2"], 1)
    b3d = _ref_basic_conv(x_nlc, params["branch3dbl_1"], 0)
    b3d = _ref_basic_conv(b3d, params["branch3dbl_2"], 1)
    b3d = _ref_basic_conv(b3d, params["branch3dbl_3"], 1)
    bp = _ref_basic_conv(_ref_pool(x_nlc, is_maxpool), params["branch_pool"], 0)
    return jnp.concatenate([b1, b3, b3d, bp], axis=-1)


# ------------------------------------ main ------------------------------------ #

if __name__ == "__main__":
    N, C_in, L = 2, 4, 16
    key = jax.random.PRNGKey(0)
    k_x, k_p = jax.random.split(key)

    # Build the input in the PyTorch NCL layout, then transpose to the kernel's NLC layout.
    x_ncl = jax.random.normal(k_x, (N, C_in, L), jnp.float32)
    x_nlc = jnp.transpose(x_ncl, (0, 2, 1))

    params = init_inception_e(k_p, C_in)

    # f32 path, L tiled (TL=8 -> grid (2, 2)), avg-pool variant.
    folded_f32 = fold_inception_params(params, compute_dtype=jnp.float32)
    out = jax.block_until_ready(inception_e_forward(x_nlc, folded_f32, is_maxpool=False, tl=8))
    assert out.shape == (N, L, OUT_C)
    ref = jax.block_until_ready(inception_e_reference(x_nlc, params, is_maxpool=False))
    np.testing.assert_allclose(np.asarray(out), np.asarray(ref), rtol=1e-4, atol=1e-4)

    # max-pool variant.
    out_max = jax.block_until_ready(inception_e_forward(x_nlc, folded_f32, is_maxpool=True, tl=8))
    ref_max = jax.block_until_ready(inception_e_reference(x_nlc, params, is_maxpool=True))
    np.testing.assert_allclose(np.asarray(out_max), np.asarray(ref_max), rtol=1e-4, atol=1e-4)

    # bf16 compute path (f32 accumulation + f32 BN/ReLU epilogue), looser tolerance.
    folded_bf16 = fold_inception_params(params, compute_dtype=jnp.bfloat16)
    out_bf16 = jax.block_until_ready(inception_e_forward(x_nlc, folded_bf16, is_maxpool=False, tl=8))
    np.testing.assert_allclose(np.asarray(out_bf16, dtype=np.float32), np.asarray(ref),
                               rtol=1e-1, atol=1e-1)

    print("KERNEL_OK")
</pallas_src>

<mosaic_0001>
module attributes {stable_mosaic.version = 11 : i64} {
  func.func @_inception_e_kernel(%arg0: i32, %arg1: i32, %arg2: memref<1x20x128xf32, #tpu.memory_space<vmem>>, %arg3: memref<128x320xf32, #tpu.memory_space<vmem>>, %arg4: memref<2x320xf32, #tpu.memory_space<vmem>>, %arg5: memref<128x384xf32, #tpu.memory_space<vmem>>, %arg6: memref<2x384xf32, #tpu.memory_space<vmem>>, %arg7: memref<1152x768xf32, #tpu.memory_space<vmem>>, %arg8: memref<2x768xf32, #tpu.memory_space<vmem>>, %arg9: memref<128x448xf32, #tpu.memory_space<vmem>>, %arg10: memref<2x448xf32, #tpu.memory_space<vmem>>, %arg11: memref<1344x384xf32, #tpu.memory_space<vmem>>, %arg12: memref<2x384xf32, #tpu.memory_space<vmem>>, %arg13: memref<1152x768xf32, #tpu.memory_space<vmem>>, %arg14: memref<2x768xf32, #tpu.memory_space<vmem>>, %arg15: memref<128x192xf32, #tpu.memory_space<vmem>>, %arg16: memref<2x192xf32, #tpu.memory_space<vmem>>, %arg17: memref<1x8x2048xf32, #tpu.memory_space<vmem>>) attributes {dimension_semantics = [#tpu.dimension_semantics<parallel>, #tpu.dimension_semantics<parallel>], iteration_bounds = array<i64: 2, 2>, scalar_prefetch = 0 : i64, scratch_operands = 0 : i64, tpu.core_type = #tpu.core_type<tc>, window_params = [{transform_indices = @transform_0, window_bounds = array<i64: 1, 20, 128>}, {pipeline_mode = #tpu.pipeline_mode<synchronous>, transform_indices = @transform_1, window_bounds = array<i64: 128, 320>}, {pipeline_mode = #tpu.pipeline_mode<synchronous>, transform_indices = @transform_2, window_bounds = array<i64: 2, 320>}, {pipeline_mode = #tpu.pipeline_mode<synchronous>, transform_indices = @transform_3, window_bounds = array<i64: 128, 384>}, {pipeline_mode = #tpu.pipeline_mode<synchronous>, transform_indices = @transform_4, window_bounds = array<i64: 2, 384>}, {pipeline_mode = #tpu.pipeline_mode<synchronous>, transform_indices = @transform_5, window_bounds = array<i64: 1152, 768>}, {pipeline_mode = #tpu.pipeline_mode<synchronous>, transform_indices = @transform_6, window_bounds = array<i64: 2, 768>}, {pipeline_mode = #tpu.pipeline_mode<synchronous>, transform_indices = @transform_7, window_bounds = array<i64: 128, 448>}, {pipeline_mode = #tpu.pipeline_mode<synchronous>, transform_indices = @transform_8, window_bounds = array<i64: 2, 448>}, {pipeline_mode = #tpu.pipeline_mode<synchronous>, transform_indices = @transform_9, window_bounds = array<i64: 1344, 384>}, {pipeline_mode = #tpu.pipeline_mode<synchronous>, transform_indices = @transform_10, window_bounds = array<i64: 2, 384>}, {pipeline_mode = #tpu.pipeline_mode<synchronous>, transform_indices = @transform_11, window_bounds = array<i64: 1152, 768>}, {pipeline_mode = #tpu.pipeline_mode<synchronous>, transform_indices = @transform_12, window_bounds = array<i64: 2, 768>}, {pipeline_mode = #tpu.pipeline_mode<synchronous>, transform_indices = @transform_13, window_bounds = array<i64: 128, 192>}, {pipeline_mode = #tpu.pipeline_mode<synchronous>, transform_indices = @transform_14, window_bounds = array<i64: 2, 192>}, {transform_indices = @transform_15, window_bounds = array<i64: 1, 8, 2048>}]} {
    %c8_i32 = arith.constant 8 : i32
    %0 = arith.muli %arg1, %c8_i32 : i32
    %1 = tpu.assume_multiple %0, 8 : i32
    %c0 = arith.constant 0 : index
    %2 = arith.index_cast %1 : i32 to index
    %c0_0 = arith.constant 0 : index
    %3 = vector.load %arg2[%c0, %2, %c0_0] : memref<1x20x128xf32, #tpu.memory_space<vmem>>, vector<1x12x128xf32>
    %4 = vector.shape_cast %3 : vector<1x12x128xf32> to vector<12x128xf32>
    %c2_i32 = arith.constant 2 : i32
    %5 = arith.subi %1, %c2_i32 : i32
    %6 = tpu.iota {dimensions = array<i32: 0>} : vector<12x1xi32>
    %7 = vector.broadcast %5 : i32 to vector<12x1xi32>
    %8 = arith.addi %6, %7 : vector<12x1xi32>
    %c0_i32 = arith.constant 0 : i32
    %9 = vector.broadcast %c0_i32 : i32 to vector<12x1xi32>
    %10 = arith.cmpi sge, %8, %9 : vector<12x1xi32>
    %c16_i32 = arith.constant 16 : i32
    %11 = vector.broadcast %c16_i32 : i32 to vector<12x1xi32>
    %12 = arith.cmpi slt, %8, %11 : vector<12x1xi32>
    %13 = arith.andi %10, %12 : vector<12x1xi1>
    %c1_i32 = arith.constant 1 : i32
    %14 = arith.subi %1, %c1_i32 : i32
    %15 = tpu.iota {dimensions = array<i32: 0>} : vector<10x1xi32>
    %16 = vector.broadcast %14 : i32 to vector<10x1xi32>
    %17 = arith.addi %15, %16 : vector<10x1xi32>
    %c0_i32_1 = arith.constant 0 : i32
    %18 = vector.broadcast %c0_i32_1 : i32 to vector<10x1xi32>
    %19 = arith.cmpi sge, %17, %18 : vector<10x1xi32>
    %c16_i32_2 = arith.constant 16 : i32
    %20 = vector.broadcast %c16_i32_2 : i32 to vector<10x1xi32>
    %21 = arith.cmpi slt, %17, %20 : vector<10x1xi32>
    %22 = arith.andi %19, %21 : vector<10x1xi1>
    %23 = vector.extract_strided_slice %4 {offsets = [2, 0], sizes = [8, 128], strides = [1, 1]} : vector<12x128xf32> to vector<8x128xf32>
    %c0_3 = arith.constant 0 : index
    %c0_4 = arith.constant 0 : index
    %24 = vector.load %arg3[%c0_3, %c0_4] : memref<128x320xf32, #tpu.memory_space<vmem>>, vector<128x320xf32>
    %cst = arith.constant dense<0.000000e+00> : vector<8x320xf32>
    %25 = tpu.matmul %23, %24, %cst {dimension_numbers = #tpu.dot_dimension_numbers<[1], [0], [0], [1], [0, 0, 1, 1], [], []>} : vector<8x128xf32>, vector<128x320xf32>, vector<8x320xf32> -> vector<8x320xf32>
    %c0_5 = arith.constant 0 : index
    %c0_6 = arith.constant 0 : index
    %26 = vector.load %arg4[%c0_5, %c0_6] : memref<2x320xf32, #tpu.memory_space<vmem>>, vector<2x320xf32>
    %27 = vector.extract_strided_slice %26 {offsets = [0, 0], sizes = [1, 320], strides = [1, 1]} : vector<2x320xf32> to vector<1x320xf32>
    %28 = vector.broadcast %27 : vector<1x320xf32> to vector<8x320xf32>
    %29 = arith.mulf %25, %28 : vector<8x320xf32>
    %30 = vector.extract_strided_slice %26 {offsets = [1, 0], sizes = [1, 320], strides = [1, 1]} : vector<2x320xf32> to vector<1x320xf32>
    %31 = vector.broadcast %30 : vector<1x320xf32> to vector<8x320xf32>
    %32 = arith.addf %29, %31 : vector<8x320xf32>
    %cst_7 = arith.constant 0.000000e+00 : f32
    %33 = vector.broadcast %cst_7 : f32 to vector<8x320xf32>
    %34 = arith.maximumf %32, %33 : vector<8x320xf32>
    %35 = vector.extract_strided_slice %4 {offsets = [1, 0], sizes = [10, 128], strides = [1, 1]} : vector<12x128xf32> to vector<10x128xf32>
    %c0_8 = arith.constant 0 : index
    %c0_9 = arith.constant 0 : index
    %36 = vector.load %arg5[%c0_8, %c0_9] : memref<128x384xf32, #tpu.memory_space<vmem>>, vector<128x384xf32>
    %cst_10 = arith.constant dense<0.000000e+00> : vector<10x384xf32>
    %37 = tpu.matmul %35, %36, %cst_10 {dimension_numbers = #tpu.dot_dimension_numbers<[1], [0], [0], [1], [0, 0, 1, 1], [], []>} : vector<10x128xf32>, vector<128x384xf32>, vector<10x384xf32> -> vector<10x384xf32>
    %c0_11 = arith.constant 0 : index
    %c0_12 = arith.constant 0 : index
    %38 = vector.load %arg6[%c0_11, %c0_12] : memref<2x384xf32, #tpu.memory_space<vmem>>, vector<2x384xf32>
    %39 = vector.extract_strided_slice %38 {offsets = [0, 0], sizes = [1, 384], strides = [1, 1]} : vector<2x384xf32> to vector<1x384xf32>
    %40 = vector.broadcast %39 : vector<1x384xf32> to vector<10x384xf32>
    %41 = arith.mulf %37, %40 : vector<10x384xf32>
    %42 = vector.extract_strided_slice %38 {offsets = [1, 0], sizes = [1, 384], strides = [1, 1]} : vector<2x384xf32> to vector<1x384xf32>
    %43 = vector.broadcast %42 : vector<1x384xf32> to vector<10x384xf32>
    %44 = arith.addf %41, %43 : vector<10x384xf32>
    %cst_13 = arith.constant 0.000000e+00 : f32
    %45 = vector.broadcast %cst_13 : f32 to vector<10x384xf32>
    %46 = arith.maximumf %44, %45 : vector<10x384xf32>
    %cst_14 = arith.constant 0.000000e+00 : f32
    %47 = vector.shape_cast %22 : vector<10x1xi1> to vector<10x1xi1>
    %48 = vector.broadcast %47 : vector<10x1xi1> to vector<10x384xi1>
    %49 = vector.broadcast %cst_14 : f32 to vector<10x384xf32>
    %50 = arith.select %48, %46, %49 : vector<10x384xi1>, vector<10x384xf32>
    %51 = vector.extract_strided_slice %50 {offsets = [0, 0], sizes = [8, 384], strides = [1, 1]} : vector<10x384xf32> to vector<8x384xf32>
    %52 = vector.extract_strided_slice %50 {offsets = [1, 0], sizes = [8, 384], strides = [1, 1]} : vector<10x384xf32> to vector<8x384xf32>
    %53 = vector.extract_strided_slice %50 {offsets = [2, 0], sizes = [8, 384], strides = [1, 1]} : vector<10x384xf32> to vector<8x384xf32>
    %54 = tpu.concatenate %51, %52, %53 in 1 : vector<8x384xf32>, vector<8x384xf32>, vector<8x384xf32> -> vector<8x1152xf32>
    %c0_15 = arith.constant 0 : index
    %c0_16 = arith.constant 0 : index
    %55 = vector.load %arg7[%c0_15, %c0_16] : memref<1152x768xf32, #tpu.memory_space<vmem>>, vector<1152x768xf32>
    %cst_17 = arith.constant dense<0.000000e+00> : vector<8x768xf32>
    %56 = tpu.matmul %54, %55, %cst_17 {dimension_numbers = #tpu.dot_dimension_numbers<[1], [0], [0], [1], [0, 0, 1, 1], [], []>} : vector<8x1152xf32>, vector<1152x768xf32>, vector<8x768xf32> -> vector<8x768xf32>
    %c0_18 = arith.constant 0 : index
    %c0_19 = arith.constant 0 : index
    %57 = vector.load %arg8[%c0_18, %c0_19] : memref<2x768xf32, #tpu.memory_space<vmem>>, vector<2x768xf32>
    %58 = vector.extract_strided_slice %57 {offsets = [0, 0], sizes = [1, 768], strides = [1, 1]} : vector<2x768xf32> to vector<1x768xf32>
    %59 = vector.broadcast %58 : vector<1x768xf32> to vector<8x768xf32>
    %60 = arith.mulf %56, %59 : vector<8x768xf32>
    %61 = vector.extract_strided_slice %57 {offsets = [1, 0], sizes = [1, 768], strides = [1, 1]} : vector<2x768xf32> to vector<1x768xf32>
    %62 = vector.broadcast %61 : vector<1x768xf32> to vector<8x768xf32>
    %63 = arith.addf %60, %62 : vector<8x768xf32>
    %cst_20 = arith.constant 0.000000e+00 : f32
    %64 = vector.broadcast %cst_20 : f32 to vector<8x768xf32>
    %65 = arith.maximumf %63, %64 : vector<8x768xf32>
    %c0_21 = arith.constant 0 : index
    %c0_22 = arith.constant 0 : index
    %66 = vector.load %arg9[%c0_21, %c0_22] : memref<128x448xf32, #tpu.memory_space<vmem>>, vector<128x448xf32>
    %cst_23 = arith.constant dense<0.000000e+00> : vector<12x448xf32>
    %67 = tpu.matmul %4, %66, %cst_23 {dimension_numbers = #tpu.dot_dimension_numbers<[1], [0], [0], [1], [0, 0, 1, 1], [], []>} : vector<12x128xf32>, vector<128x448xf32>, vector<12x448xf32> -> vector<12x448xf32>
    %c0_24 = arith.constant 0 : index
    %c0_25 = arith.constant 0 : index
    %68 = vector.load %arg10[%c0_24, %c0_25] : memref<2x448xf32, #tpu.memory_space<vmem>>, vector<2x448xf32>
    %69 = vector.extract_strided_slice %68 {offsets = [0, 0], sizes = [1, 448], strides = [1, 1]} : vector<2x448xf32> to vector<1x448xf32>
    %70 = vector.broadcast %69 : vector<1x448xf32> to vector<12x448xf32>
    %71 = arith.mulf %67, %70 : vector<12x448xf32>
    %72 = vector.extract_strided_slice %68 {offsets = [1, 0], sizes = [1, 448], strides = [1, 1]} : vector<2x448xf32> to vector<1x448xf32>
    %73 = vector.broadcast %72 : vector<1x448xf32> to vector<12x448xf32>
    %74 = arith.addf %71, %73 : vector<12x448xf32>
    %cst_26 = arith.constant 0.000000e+00 : f32
    %75 = vector.broadcast %cst_26 : f32 to vector<12x448xf32>
    %76 = arith.maximumf %74, %75 : vector<12x448xf32>
    %cst_27 = arith.constant 0.000000e+00 : f32
    %77 = vector.shape_cast %13 : vector<12x1xi1> to vector<12x1xi1>
    %78 = vector.broadcast %77 : vector<12x1xi1> to vector<12x448xi1>
    %79 = vector.broadcast %cst_27 : f32 to vector<12x448xf32>
    %80 = arith.select %78, %76, %79 : vector<12x448xi1>, vector<12x448xf32>
    %81 = vector.extract_strided_slice %80 {offsets = [0, 0], sizes = [10, 448], strides = [1, 1]} : vector<12x448xf32> to vector<10x448xf32>
    %82 = vector.extract_strided_slice %80 {offsets = [1, 0], sizes = [10, 448], strides = [1, 1]} : vector<12x448xf32> to vector<10x448xf32>
    %83 = vector.extract_strided_slice %80 {offsets = [2, 0], sizes = [10, 448], strides = [1, 1]} : vector<12x448xf32> to vector<10x448xf32>
    %84 = tpu.concatenate %81, %82, %83 in 1 : vector<10x448xf32>, vector<10x448xf32>, vector<10x448xf32> -> vector<10x1344xf32>
    %c0_28 = arith.constant 0 : index
    %c0_29 = arith.constant 0 : index
    %85 = vector.load %arg11[%c0_28, %c0_29] : memref<1344x384xf32, #tpu.memory_space<vmem>>, vector<1344x384xf32>
    %cst_30 = arith.constant dense<0.000000e+00> : vector<10x384xf32>
    %86 = tpu.matmul %84, %85, %cst_30 {dimension_numbers = #tpu.dot_dimension_numbers<[1], [0], [0], [1], [0, 0, 1, 1], [], []>} : vector<10x1344xf32>, vector<1344x384xf32>, vector<10x384xf32> -> vector<10x384xf32>
    %c0_31 = arith.constant 0 : index
    %c0_32 = arith.constant 0 : index
    %87 = vector.load %arg12[%c0_31, %c0_32] : memref<2x384xf32, #tpu.memory_space<vmem>>, vector<2x384xf32>
    %88 = vector.extract_strided_slice %87 {offsets = [0, 0], sizes = [1, 384], strides = [1, 1]} : vector<2x384xf32> to vector<1x384xf32>
    %89 = vector.broadcast %88 : vector<1x384xf32> to vector<10x384xf32>
    %90 = arith.mulf %86, %89 : vector<10x384xf32>
    %91 = vector.extract_strided_slice %87 {offsets = [1, 0], sizes = [1, 384], strides = [1, 1]} : vector<2x384xf32> to vector<1x384xf32>
    %92 = vector.broadcast %91 : vector<1x384xf32> to vector<10x384xf32>
    %93 = arith.addf %90, %92 : vector<10x384xf32>
    %cst_33 = arith.constant 0.000000e+00 : f32
    %94 = vector.broadcast %cst_33 : f32 to vector<10x384xf32>
    %95 = arith.maximumf %93, %94 : vector<10x384xf32>
    %cst_34 = arith.constant 0.000000e+00 : f32
    %96 = vector.shape_cast %22 : vector<10x1xi1> to vector<10x1xi1>
    %97 = vector.broadcast %96 : vector<10x1xi1> to vector<10x384xi1>
    %98 = vector.broadcast %cst_34 : f32 to vector<10x384xf32>
    %99 = arith.select %97, %95, %98 : vector<10x384xi1>, vector<10x384xf32>
    %100 = vector.extract_strided_slice %99 {offsets = [0, 0], sizes = [8, 384], strides = [1, 1]} : vector<10x384xf32> to vector<8x384xf32>
    %101 = vector.extract_strided_slice %99 {offsets = [1, 0], sizes = [8, 384], strides = [1, 1]} : vector<10x384xf32> to vector<8x384xf32>
    %102 = vector.extract_strided_slice %99 {offsets = [2, 0], sizes = [8, 384], strides = [1, 1]} : vector<10x384xf32> to vector<8x384xf32>
    %103 = tpu.concatenate %100, %101, %102 in 1 : vector<8x384xf32>, vector<8x384xf32>, vector<8x384xf32> -> vector<8x1152xf32>
    %c0_35 = arith.constant 0 : index
    %c0_36 = arith.constant 0 : index
    %104 = vector.load %arg13[%c0_35, %c0_36] : memref<1152x768xf32, #tpu.memory_space<vmem>>, vector<1152x768xf32>
    %cst_37 = arith.constant dense<0.000000e+00> : vector<8x768xf32>
    %105 = tpu.matmul %103, %104, %cst_37 {dimension_numbers = #tpu.dot_dimension_numbers<[1], [0], [0], [1], [0, 0, 1, 1], [], []>} : vector<8x1152xf32>, vector<1152x768xf32>, vector<8x768xf32> -> vector<8x768xf32>
    %c0_38 = arith.constant 0 : index
    %c0_39 = arith.constant 0 : index
    %106 = vector.load %arg14[%c0_38, %c0_39] : memref<2x768xf32, #tpu.memory_space<vmem>>, vector<2x768xf32>
    %107 = vector.extract_strided_slice %106 {offsets = [0, 0], sizes = [1, 768], strides = [1, 1]} : vector<2x768xf32> to vector<1x768xf32>
    %108 = vector.broadcast %107 : vector<1x768xf32> to vector<8x768xf32>
    %109 = arith.mulf %105, %108 : vector<8x768xf32>
    %110 = vector.extract_strided_slice %106 {offsets = [1, 0], sizes = [1, 768], strides = [1, 1]} : vector<2x768xf32> to vector<1x768xf32>
    %111 = vector.broadcast %110 : vector<1x768xf32> to vector<8x768xf32>
    %112 = arith.addf %109, %111 : vector<8x768xf32>
    %cst_40 = arith.constant 0.000000e+00 : f32
    %113 = vector.broadcast %cst_40 : f32 to vector<8x768xf32>
    %114 = arith.maximumf %112, %113 : vector<8x768xf32>
    %115 = vector.extract_strided_slice %4 {offsets = [1, 0], sizes = [8, 128], strides = [1, 1]} : vector<12x128xf32> to vector<8x128xf32>
    %116 = vector.extract_strided_slice %4 {offsets = [2, 0], sizes = [8, 128], strides = [1, 1]} : vector<12x128xf32> to vector<8x128xf32>
    %117 = vector.extract_strided_slice %4 {offsets = [3, 0], sizes = [8, 128], strides = [1, 1]} : vector<12x128xf32> to vector<8x128xf32>
    %118 = tpu.iota {dimensions = array<i32: 0>} : vector<8x1xi32>
    %119 = vector.broadcast %1 : i32 to vector<8x1xi32>
    %120 = arith.addi %118, %119 : vector<8x1xi32>
    %c0_i32_41 = arith.constant 0 : i32
    %121 = vector.broadcast %c0_i32_41 : i32 to vector<8x1xi32>
    %122 = arith.cmpi eq, %120, %121 : vector<8x1xi32>
    %123 = arith.extui %122 : vector<8x1xi1> to vector<8x1xi32>
    %124 = arith.sitofp %123 : vector<8x1xi32> to vector<8x1xf32>
    %cst_42 = arith.constant 3.000000e+00 : f32
    %125 = vector.broadcast %cst_42 : f32 to vector<8x1xf32>
    %126 = arith.subf %125, %124 : vector<8x1xf32>
    %c15_i32 = arith.constant 15 : i32
    %127 = vector.broadcast %c15_i32 : i32 to vector<8x1xi32>
    %128 = arith.cmpi eq, %120, %127 : vector<8x1xi32>
    %129 = arith.extui %128 : vector<8x1xi1> to vector<8x1xi32>
    %130 = arith.sitofp %129 : vector<8x1xi32> to vector<8x1xf32>
    %131 = arith.subf %126, %130 : vector<8x1xf32>
    %132 = arith.addf %115, %116 : vector<8x128xf32>
    %133 = arith.addf %132, %117 : vector<8x128xf32>
    %134 = vector.broadcast %131 : vector<8x1xf32> to vector<8x128xf32>
    %135 = arith.divf %133, %134 : vector<8x128xf32>
    %c0_43 = arith.constant 0 : index
    %c0_44 = arith.constant 0 : index
    %136 = vector.load %arg15[%c0_43, %c0_44] : memref<128x192xf32, #tpu.memory_space<vmem>>, vector<128x192xf32>
    %cst_45 = arith.constant dense<0.000000e+00> : vector<8x192xf32>
    %137 = tpu.matmul %135, %136, %cst_45 {dimension_numbers = #tpu.dot_dimension_numbers<[1], [0], [0], [1], [0, 0, 1, 1], [], []>} : vector<8x128xf32>, vector<128x192xf32>, vector<8x192xf32> -> vector<8x192xf32>
    %c0_46 = arith.constant 0 : index
    %c0_47 = arith.constant 0 : index
    %138 = vector.load %arg16[%c0_46, %c0_47] : memref<2x192xf32, #tpu.memory_space<vmem>>, vector<2x192xf32>
    %139 = vector.extract_strided_slice %138 {offsets = [0, 0], sizes = [1, 192], strides = [1, 1]} : vector<2x192xf32> to vector<1x192xf32>
    %140 = vector.broadcast %139 : vector<1x192xf32> to vector<8x192xf32>
    %141 = arith.mulf %137, %140 : vector<8x192xf32>
    %142 = vector.extract_strided_slice %138 {offsets = [1, 0], sizes = [1, 192], strides = [1, 1]} : vector<2x192xf32> to vector<1x192xf32>
    %143 = vector.broadcast %142 : vector<1x192xf32> to vector<8x192xf32>
    %144 = arith.addf %141, %143 : vector<8x192xf32>
    %cst_48 = arith.constant 0.000000e+00 : f32
    %145 = vector.broadcast %cst_48 : f32 to vector<8x192xf32>
    %146 = arith.maximumf %144, %145 : vector<8x192xf32>
    %147 = tpu.concatenate %34, %65, %114, %146 in 1 : vector<8x320xf32>, vector<8x768xf32>, vector<8x768xf32>, vector<8x192xf32> -> vector<8x2048xf32>
    %c0_49 = arith.constant 0 : index
    %c0_50 = arith.constant 0 : index
    %c0_51 = arith.constant 0 : index
    %148 = vector.load %arg17[%c0_49, %c0_50, %c0_51] : memref<1x8x2048xf32, #tpu.memory_space<vmem>>, vector<1x8x2048xf32>
    %149 = vector.shape_cast %148 : vector<1x8x2048xf32> to vector<8x2048xf32>
    %150 = vector.shape_cast %147 : vector<8x2048xf32> to vector<1x8x2048xf32>
    tpu.vector_store %arg17[%c0_49, %c0_50, %c0_51], %150 {strides = array<i32>} : memref<1x8x2048xf32, #tpu.memory_space<vmem>>, vector<1x8x2048xf32>,
    return
  }
  func.func @transform_0(%arg0: i32, %arg1: i32) -> (i32, i32, i32) {
    %c0_i32 = arith.constant 0 : i32
    %c0_i32_0 = arith.constant 0 : i32
    %c0_i32_1 = arith.constant 0 : i32
    return %arg0, %c0_i32, %c0_i32_0 : i32, i32, i32
  }
  func.func @transform_1(%arg0: i32, %arg1: i32) -> (i32, i32) {
    %c0_i32 = arith.constant 0 : i32
    %c0_i32_0 = arith.constant 0 : i32
    %c0_i32_1 = arith.constant 0 : i32
    return %c0_i32, %c0_i32_0 : i32, i32
  }
  func.func @transform_2(%arg0: i32, %arg1: i32) -> (i32, i32) {
    %c0_i32 = arith.constant 0 : i32
    %c0_i32_0 = arith.constant 0 : i32
    %c0_i32_1 = arith.constant 0 : i32
    return %c0_i32, %c0_i32_0 : i32, i32
  }
  func.func @transform_3(%arg0: i32, %arg1: i32) -> (i32, i32) {
    %c0_i32 = arith.constant 0 : i32
    %c0_i32_0 = arith.constant 0 : i32
    %c0_i32_1 = arith.constant 0 : i32
    return %c0_i32, %c0_i32_0 : i32, i32
  }
  func.func @transform_4(%arg0: i32, %arg1: i32) -> (i32, i32) {
    %c0_i32 = arith.constant 0 : i32
    %c0_i32_0 = arith.constant 0 : i32
    %c0_i32_1 = arith.constant 0 : i32
    return %c0_i32, %c0_i32_0 : i32, i32
  }
  func.func @transform_5(%arg0: i32, %arg1: i32) -> (i32, i32) {
    %c0_i32 = arith.constant 0 : i32
    %c0_i32_0 = arith.constant 0 : i32
    %c0_i32_1 = arith.constant 0 : i32
    return %c0_i32, %c0_i32_0 : i32, i32
  }
  func.func @transform_6(%arg0: i32, %arg1: i32) -> (i32, i32) {
    %c0_i32 = arith.constant 0 : i32
    %c0_i32_0 = arith.constant 0 : i32
    %c0_i32_1 = arith.constant 0 : i32
    return %c0_i32, %c0_i32_0 : i32, i32
  }
  func.func @transform_7(%arg0: i32, %arg1: i32) -> (i32, i32) {
    %c0_i32 = arith.constant 0 : i32
    %c0_i32_0 = arith.constant 0 : i32
    %c0_i32_1 = arith.constant 0 : i32
    return %c0_i32, %c0_i32_0 : i32, i32
  }
  func.func @transform_8(%arg0: i32, %arg1: i32) -> (i32, i32) {
    %c0_i32 = arith.constant 0 : i32
    %c0_i32_0 = arith.constant 0 : i32
    %c0_i32_1 = arith.constant 0 : i32
    return %c0_i32, %c0_i32_0 : i32, i32
  }
  func.func @transform_9(%arg0: i32, %arg1: i32) -> (i32, i32) {
    %c0_i32 = arith.constant 0 : i32
    %c0_i32_0 = arith.constant 0 : i32
    %c0_i32_1 = arith.constant 0 : i32
    return %c0_i32, %c0_i32_0 : i32, i32
  }
  func.func @transform_10(%arg0: i32, %arg1: i32) -> (i32, i32) {
    %c0_i32 = arith.constant 0 : i32
    %c0_i32_0 = arith.constant 0 : i32
    %c0_i32_1 = arith.constant 0 : i32
    return %c0_i32, %c0_i32_0 : i32, i32
  }
  func.func @transform_11(%arg0: i32, %arg1: i32) -> (i32, i32) {
    %c0_i32 = arith.constant 0 : i32
    %c0_i32_0 = arith.constant 0 : i32
    %c0_i32_1 = arith.constant 0 : i32
    return %c0_i32, %c0_i32_0 : i32, i32
  }
  func.func @transform_12(%arg0: i32, %arg1: i32) -> (i32, i32) {
    %c0_i32 = arith.constant 0 : i32
    %c0_i32_0 = arith.constant 0 : i32
    %c0_i32_1 = arith.constant 0 : i32
    return %c0_i32, %c0_i32_0 : i32, i32
  }
  func.func @transform_13(%arg0: i32, %arg1: i32) -> (i32, i32) {
    %c0_i32 = arith.constant 0 : i32
    %c0_i32_0 = arith.constant 0 : i32
    %c0_i32_1 = arith.constant 0 : i32
    return %c0_i32, %c0_i32_0 : i32, i32
  }
  func.func @transform_14(%arg0: i32, %arg1: i32) -> (i32, i32) {
    %c0_i32 = arith.constant 0 : i32
    %c0_i32_0 = arith.constant 0 : i32
    %c0_i32_1 = arith.constant 0 : i32
    return %c0_i32, %c0_i32_0 : i32, i32
  }
  func.func @transform_15(%arg0: i32, %arg1: i32) -> (i32, i32, i32) {
    %c0_i32 = arith.constant 0 : i32
    %c0_i32_0 = arith.constant 0 : i32
    return %arg0, %arg1, %c0_i32 : i32, i32, i32
  }
}

</mosaic_0001>

<bundles_post_ra>
// kernel: tpu_custom_call.1
= control target key start
LH: loop header
LB: loop body
LE: loop exit
PB: predicated region body
PF: predicated region fallthrough
CT: control target
= control target key end

     0   :  { %s9499_s0 = inlined_call_operand.vmem [shape: f32[2,20,128], index: 0, kind: input, shape index: {}]   ;;  %s9500_s1 = inlined_call_operand.vmem [shape: f32[128,320], index: 1, kind: input, shape index: {}]   ;;  %s9501_s2 = inlined_call_operand.hbm [shape: f32[2,320], index: 2, kind: input, shape index: {}]   ;;  %s9502_s3 = inlined_call_operand.hbm [shape: f32[128,384], index: 3, kind: input, shape index: {}]   ;;  %s9503_s4 = inlined_call_operand.hbm [shape: f32[2,384], index: 4, kind: input, shape index: {}]   ;;  %s9504_s5 = inlined_call_operand.hbm [shape: f32[1152,768], index: 5, kind: input, shape index: {}]   ;;  %s9505_s6 = inlined_call_operand.hbm [shape: f32[2,768], index: 6, kind: input, shape index: {}]   ;;  %s9506_s7 = inlined_call_operand.vmem [shape: f32[128,448], index: 7, kind: input, shape index: {}]   ;;  %s9507_s8 = inlined_call_operand.hbm [shape: f32[2,448], index: 8, kind: input, shape index: {}]   ;;  %s9508_s9 = inlined_call_operand.hbm [shape: f32[1344,384], index: 9, kind: input, shape index: {}]   ;;  %s9509_s10 = inlined_call_operand.hbm [shape: f32[2,384], index: 10, kind: input, shape index: {}]   ;;  %s9510_s11 = inlined_call_operand.hbm [shape: f32[1152,768], index: 11, kind: input, shape index: {}]   ;;  %s9511_s12 = inlined_call_operand.hbm [shape: f32[2,768], index: 12, kind: input, shape index: {}]   ;;  %s9512_s13 = inlined_call_operand.vmem [shape: f32[128,192], index: 13, kind: input, shape index: {}]   ;;  %s9513_s14 = inlined_call_operand.hbm [shape: f32[2,192], index: 14, kind: input, shape index: {}]   ;;  %s9514_s15 = inlined_call_operand.hbm [shape: f32[2,16,2048], index: 15, kind: output, shape index: {}]  }
   0x1   :  { %9534 = sst [smem:[#allocation39_spill]] %s9502_s3 }
   0x2   :  { %9535 = sst [smem:[#allocation40_spill]] %s9504_s5 }
   0x3   :  { %9536 = sst [smem:[#allocation41_spill]] %s9506_s7 }
   0x4   :  { %9537 = sst [smem:[#allocation42_spill]] %s9512_s13 }
   0x5   :  { %9538 = sst [smem:[#allocation43_spill]] %s9514_s15 }
   0x6   :  { %20 = vsyncpa [#allocation3], 0 }
   0x7   :  { %21 = vsyncpa [#allocation6], 0 }
   0x8   :  { %22 = vsyncpa [#allocation9], 0 }
   0x9   :  { %23 = vsyncpa [#allocation12], 0 }
   0xa   :  { %24 = vsyncpa [#allocation15], 0 }
   0xb   :  { %25 = vsyncpa [#allocation18], 0 }
   0xc   :  { %26 = vsyncpa [#allocation4], 0 }
   0xd   :  { %28 = vsyncpa [#allocation4 + $0x1], 0  ;;  %s7966_s18 = smov 0   ;;  %s7968_s19 = smov 0  }
   0xe   :  { %s7970_s20 = smov 0   ;;  %s7972_s21 = smov 0  }
   0xf   :  { %s7974_s22 = smov 0   ;;  %s7976_s23 = smov 0  }
  0x10   :  { %s7978_s24 = smov 0   ;;  %s7980_s25 = smov 0  }
  0x11 LB: > { %9539 = sst [smem:[#allocation28_spill]] %s7839_s18  ;;  %s7102_s26 = sadd.s32 4294967295, %s7867_s25   ;;  %s7867_s25 = sphi %s7980_s25, %s34_s25   ;;  %s7863_s24 = sphi %s7978_s24, %s9585_s24   ;;  %s7859_s23 = sphi %s7976_s23, %s9584_s23   ;;  %s7855_s22 = sphi %s7974_s22, %s9583_s22   ;;  %s7851_s21 = sphi %s7972_s21, %s9582_s21   ;;  %s7847_s20 = sphi %s7970_s20, %s9581_s20   ;;  %s7843_s19 = sphi %s7968_s19, %s9580_s19   ;;  %s7839_s18 = sphi %s7966_s18, %s9579_s18  }
  0x12   : > { %9540 = sst [smem:[#allocation29_spill]] %s7843_s19  ;;  %s7103_s27 = sadd.s32 4294967294, %s7867_s25  }
  0x13   : > { %9541 = sst [smem:[#allocation30_spill]] %s7847_s20  ;;  %s43_s28 = sadd.s32 1, %s7859_s23 }
  0x14   : > { %9542 = sst [smem:[#allocation31_spill]] %s7859_s23  ;;  %s46_s29 = sadd.s32 1, %s7863_s24 }
  0x15   : > { %9543 = sst [smem:[#allocation32_spill]] %s7863_s24  ;;  %p44_p0 = scmp.ge.s32.totalorder %s43_s28, 2 }
  0x16   : > { %9544 = sst [smem:[#allocation33_spill]] %s7867_s25  ;;  %s375_s30 = sadd.s32 1, %s7847_s20 }
  0x17   : > { %p385_p1 = scmp.ne.s32.totalorder %s7847_s20, %s7843_s19  ;;  %p386_p2 = scmp.eq.s32.totalorder %s7102_s26, 3 }
  0x18   : > { %s9587_s28 = smov (%p44_p0, %s43_s28), 0  ;;  %s9589_s29 = smov (!%p44_p0, %s46_s29), %s7863_s24 }
  0x19   : > { %9545 = sst [smem:[#allocation34_spill]] %s9587_s28  ;;  %s371_s16 = ssub.s32 %s7859_s23, %s9587_s28 }
  0x1a   : > { %p8018_p3 = por %p386_p2, %p385_p1  ;;  %p48_p4 = scmp.ge.s32.totalorder %s9589_s29, 2 }
  0x1b   : > { %p391_p5 = scmp.ne.s32.totalorder %s7843_s19, %s7839_s18  ;;  %p392_p6 = scmp.eq.s32.totalorder %s7103_s27, 3 }
  0x1c   : > { %s9546_s17 = scalar_select %p8018_p3, 1, 0 }
  0x1d   : > { %p7104_p7 = scmp.ge.s32.totalorder %s7867_s25, 1  ;;  %s9591_s29 = smov (%p48_p4, %s9589_s29), 0 }
  0x1e   : > { %9547 = sst [smem:[#allocation35_spill]] %s9546_s17  ;;  %p8027_p8 = por %p392_p6, %p391_p5 }
  0x1f   : > { %9548 = sst [smem:[#allocation36_spill]] %s9591_s29  ;;  %p399_p9 = scmp.lt.s32.totalorder %s7867_s25, 5 }
  0x20   : > { %s9549_s15 = scalar_select %p8027_p8, 1, 0 }
  0x21   : > { %s370_s13 = ssub.s32 %s7863_s24, %s9591_s29  ;;  %p8034_p10 = pnand %p7104_p7, %p399_p9 }
  0x22   : > { %9550 = sst [smem:[#allocation37_spill]] %s9549_s15  ;;  %s372_s7 = sor.u32 %s371_s16, %s370_s13 }
  0x23   : > { %p373_p11 = scmp.eq.s32.totalorder %s372_s7, 0  ;;  %p8038_p12 = scmp.eq.s32.totalorder %s7102_s26, 0 }
  0x24   : > { %p7249_p13 = pneg %p8034_p10  ;;  %s9553_s3 = sld [smem:[#allocation39_spill]] }
  0x25   : > { %s8048_s25 = scalar_select %p373_p11, %s7847_s20, %s375_s30  }
  0x26   : > { %p8052_p0 = pnand %p8038_p12, %p7249_p13  ;;  %s7869_s7 = smov [#allocation5]  }
  0x27   : > { %9554 = sst [smem:[#allocation38_spill]] %s8048_s25  ;;  %s427_s26 = sshll.u32 %s7869_s7, 4  ;;  %s428_s26 = int_to_ptr.vmem [resolvable:$true] %s427_s26 }
  0x28   : > { %s9531_s16 = smov 384   ;;  %s9532_s29 = smov 24  }
  0x29   : > { %s9556_s5 = sld [smem:[#allocation40_spill]]  ;;  %s481_s7 = sshll.u32 %s9507_s8, 4  ;;  %s482_s7 = int_to_ptr.hbm [resolvable:$true] %s481_s7 }
  0x2a   : > { %s425_s15 = sshll.u32 %s9553_s3, 4  ;;  %s7872_s3 = smov [#allocation8]   ;;  %s426_s15 = int_to_ptr.hbm [resolvable:$true] %s425_s15 }
  0x2b   : > { %7255 = dma.hbm_to_vmem [thread:$0]  (!%p8052_p0), %s426_s15, 6144, %s428_s26, [#allocation6], %s9531_s16, %s9531_s16, %s9532_s29  }
  0x2c   : > { %s453_s24 = sshll.u32 %s7872_s3, 4  ;;  %s9533_s17 = smov 768   ;;  %s454_s24 = int_to_ptr.vmem [resolvable:$true] %s453_s24 }
  0x2d   : > { %s7874_s19 = smov 48   ;;  %s7875_s15 = smov [#allocation11]  }
  0x2e   : > { %s483_s26 = sshll.u32 %s7875_s15, 4  ;;  %s507_s3 = sshll.u32 %s9509_s10, 4  ;;  %s484_s26 = int_to_ptr.vmem [resolvable:$true] %s483_s26  ;;  %s508_s3 = int_to_ptr.hbm [resolvable:$true] %s507_s3 }
  0x2f   : > { %s451_s27 = sshll.u32 %s9556_s5, 4  ;;  %s533_s16 = sshll.u32 %s9511_s12, 4  ;;  %s452_s27 = int_to_ptr.hbm [resolvable:$true] %s451_s27  ;;  %s534_s16 = int_to_ptr.hbm [resolvable:$true] %s533_s16 }
  0x30   : > { %7261 = dma.hbm_to_vmem [thread:$0]  (!%p8052_p0), %s452_s27, 110592, %s454_s24, [#allocation9], %s9533_s17, %s9533_s17, %s7874_s19  }
  0x31   : > { %7267 = dma.hbm_to_vmem [thread:$0]  (!%p8052_p0), %s482_s7, 128, %s484_s26, [#allocation12]  }
  0x32   : > { %s7876_s29 = smov [#allocation14]   ;;  %s7877_s24 = smov [#allocation17]  }
  0x33   : > { %s509_s5 = sshll.u32 %s7876_s29, 4  ;;  %s535_s27 = sshll.u32 %s7877_s24, 4  ;;  %s510_s5 = int_to_ptr.vmem [resolvable:$true] %s509_s5  ;;  %s536_s27 = int_to_ptr.vmem [resolvable:$true] %s535_s27 }
  0x34   : > { %7273 = dma.hbm_to_vmem [thread:$0]  (!%p8052_p0), %s508_s3, 96, %s510_s5, [#allocation15]  }
  0x35   : > { %7279 = dma.hbm_to_vmem [thread:$0]  (!%p8052_p0), %s534_s16, 192, %s536_s27, [#allocation18]  }
  0x36   : > { %s414_s7 = sshll.u32 %s9501_s2, 4  ;;  %s7878_s26 = smov [#allocation2]   ;;  %s415_s7 = int_to_ptr.hbm [resolvable:$true] %s414_s7 }
  0x37   : > { %s416_s30 = sshll.u32 %s7878_s26, 4  ;;  %s440_s25 = sshll.u32 %s9503_s4, 4  ;;  %s417_s30 = int_to_ptr.vmem [resolvable:$true] %s416_s30  ;;  %s441_s25 = int_to_ptr.hbm [resolvable:$true] %s440_s25 }
  0x38   : > { %7252 = dma.hbm_to_vmem [thread:$0]  (!%p8052_p0), %s415_s7, 96, %s417_s30, [#allocation3]  }
  0x39   : > { %s7879_s5 = smov [#allocation7]   ;;  %s466_s27 = sshll.u32 %s9505_s6, 4  ;;  %s467_s27 = int_to_ptr.hbm [resolvable:$true] %s466_s27 }
  0x3a   : > { %s442_s3 = sshll.u32 %s7879_s5, 4  ;;  %s492_s26 = sshll.u32 %s9508_s9, 4  ;;  %s443_s3 = int_to_ptr.vmem [resolvable:$true] %s442_s3  ;;  %s493_s26 = int_to_ptr.hbm [resolvable:$true] %s492_s26 }
  0x3b   : > { %7258 = dma.hbm_to_vmem [thread:$0]  (!%p8052_p0), %s441_s25, 96, %s443_s3, [#allocation6]  }
  0x3c   : > { %s7880_s29 = smov [#allocation10]   ;;  %s7881_s7 = smov [#allocation13]  }
  0x3d   : > { %s468_s20 = sshll.u32 %s7880_s29, 4  ;;  %s494_s30 = sshll.u32 %s7881_s7, 4  ;;  %s469_s20 = int_to_ptr.vmem [resolvable:$true] %s468_s20  ;;  %s495_s30 = int_to_ptr.vmem [resolvable:$true] %s494_s30 }
  0x3e   : > { %7264 = dma.hbm_to_vmem [thread:$0]  (!%p8052_p0), %s467_s27, 192, %s469_s20, [#allocation9]  }
  0x3f   : > { %s518_s16 = sshll.u32 %s9510_s11, 4  ;;  %s9557_s25 = smov 24   ;;  %s519_s16 = int_to_ptr.hbm [resolvable:$true] %s518_s16 }
  0x40   : > { %s9558_s3 = smov 384   ;;  %s548_s29 = sshll.u32 %s9513_s14, 4  ;;  %s549_s29 = int_to_ptr.hbm [resolvable:$true] %s548_s29 }
  0x41   : > { %7270 = dma.hbm_to_vmem [thread:$0]  (!%p8052_p0), %s493_s26, 64512, %s495_s30, [#allocation12], %s9558_s3, %s9558_s3, %s9557_s25  }
  0x42   : > { %s7882_s17 = smov [#allocation16]   ;;  %s9559_s20 = smov 768  }
  0x43   : > { %s520_s27 = sshll.u32 %s7882_s17, 4  ;;  %s7883_s7 = smov [#allocation19]   ;;  %s521_s27 = int_to_ptr.vmem [resolvable:$true] %s520_s27 }
  0x44   : > { %7276 = dma.hbm_to_vmem [thread:$0]  (!%p8052_p0), %s519_s16, 110592, %s521_s27, [#allocation15], %s9559_s20, %s9559_s20, %s7874_s19  }
  0x45   : > { %s550_s5 = sshll.u32 %s7883_s7, 4  ;;  %571 = sbr.rel (%p8034_p10) target bundleno = 1974 (0x7b6), region = 80  ;;  %s551_s5 = int_to_ptr.vmem [resolvable:$true] %s550_s5 }
  0x46   : > { %7282 = dma.hbm_to_vmem [thread:$0]  (!%p8052_p0), %s549_s29, 64, %s551_s5, [#allocation18]  }
  0x4a   : > { %7810 = dma.done.wait (%p8038_p12), [#allocation3], 96  }
  0x4b   : > { %7812 = vsyncadd (%p8038_p12), [#allocation3], 4294967200 }
  0x4c   : > { %7814 = dma.done.wait (%p8038_p12), [#allocation6], 6240  }
  0x4d   : > { %7816 = vsyncadd (%p8038_p12), [#allocation6], 4294961056 }
  0x4e   : > { %7818 = dma.done.wait (%p8038_p12), [#allocation9], 110784  }
  0x4f   : > { %7820 = vsyncadd (%p8038_p12), [#allocation9], 4294856512 }
  0x50   : > { %7822 = dma.done.wait (%p8038_p12), [#allocation12], 64640  }
  0x51   : > { %7824 = vsyncadd (%p8038_p12), [#allocation12], 4294902656 }
  0x52   : > { %7826 = dma.done.wait (%p8038_p12), [#allocation15], 110688  }
  0x53   : > { %7828 = vsyncadd (%p8038_p12), [#allocation15], 4294856608 }
  0x54   : > { %7830 = dma.done.wait (%p8038_p12), [#allocation18], 256  }
  0x55   : > { %7832 = vsyncadd (%p8038_p12), [#allocation18], 4294967040  ;;  %p670_p1 = scmp.lt.s32.totalorder %s7855_s22, 1  ;;  %v747_v0 = vld [vmem:[%s9500_s1 + $0x168] sm:$0xff]  ;;  %v748_v1 = vld [vmem:[%s9500_s1 + $0x170] sm:$0xff]  ;;  %s8194_s20 = sshll.u32 %s7851_s21, 3  ;;  %v680_v47 = vlaneseq }
  0x56   : > { %v891_v2 = vld [vmem:[#allocation5 + $0x168] sm:$0xff]  ;;  %757 = vmatpush.msra.mxu0 %v747_v0  ;;  %777 = vmatpush.msra.mxu1 %v748_v1  ;;  %v745_v4 = vld [vmem:[%s9500_s1 + $0x158] sm:$0xff]  ;;  %v742_v7 = vld [vmem:[%s9500_s1 + $0x140] sm:$0xff]  ;;  %vm894_vm0 = vcmask 1046528   ;;  %vm752_vm1 = vcmask 1045504   ;;  %v6681_v52 = vstv %s8194_s20  ;;  %s9562_s26 = sld [smem:[#allocation29_spill]] }
  0x57   : > { %v744_v3 = vld [vmem:[%s9500_s1 + $0x150] sm:$0xff]  ;;  %900 = vmatpush.msra.mxu3 %v891_v2  ;;  %v741_v6 = vld [vmem:[%s9500_s1 + $0x138] sm:$0xff]  ;;  %s671_s18 = scalar_select %p670_p1, %s7855_s22, 1  ;;  %v738_v9 = vld [vmem:[%s9500_s1 + $0x120] sm:$0xff]  ;;  %v8258_v55 = vshrl.u32 %v680_v47, 7  ;;  %v7884_v2 = vmov 0.0  }
  0x58   : > { %v888_v5 = vld [vmem:[#allocation5 + $0x150] sm:$0xff]  ;;  %758 = vmatpush.msra.mxu0 %v744_v3  ;;  %778 = vmatpush.msra.mxu1 %v745_v4  ;;  %v885_v8 = vld [vmem:[#allocation5 + $0x138] sm:$0xff]  ;;  %v739_v10 = vld [vmem:[%s9500_s1 + $0x128] sm:$0xff]  ;;  %s7133_s30 = sadd.s32 4294967295, %s8194_s20  ;;  %s7885_s16 = smov 64   ;;  %vm3303_vm14 = vcmask 523264  }
  0x59   : > { %901 = vmatpush.msra.mxu3 %v888_v5  ;;  %v882_v11 = vld [vmem:[#allocation5 + $0x120] sm:$0xff]  ;;  %v736_v13 = vld [vmem:[%s9500_s1 + $0x110] sm:$0xff]  ;;  %s7202_s13 = smul.u32 24, %s671_s18  ;;  %v733_v16 = vld [vmem:[%s9500_s1 + $0xf8] sm:$0xff]  ;;  %v6682_v60 = vadd.s32 %v6681_v52, %v8258_v55  ;;  %s9567_s15 = sld [smem:[#allocation41_spill]] }
  0x5a   : > { %759 = vmatpush.msra.mxu0 %v741_v6  ;;  %779 = vmatpush.msra.mxu1 %v742_v7  ;;  %v735_v12 = vld [vmem:[%s9500_s1 + $0x108] sm:$0xff]  ;;  %v732_v15 = vld [vmem:[%s9500_s1 + $0xf0] sm:$0xff]  ;;  %v729_v18 = vld [vmem:[%s9500_s1 + $0xd8] sm:$0xff]  ;;  %s9572_s19 = sld [smem:[#allocation42_spill]]  ;;  %s7198_s25 = sshll.u32 %s7855_s22, 5 }
  0x5b   : > { %902 = vmatpush.msra.mxu3 %v885_v8  ;;  %v879_v14 = vld [vmem:[#allocation5 + $0x108] sm:$0xff]  ;;  %v876_v17 = vld [vmem:[#allocation5 + $0xf0] sm:$0xff]  ;;  %v730_v19 = vld [vmem:[%s9500_s1 + $0xe0] sm:$0xff]  ;;  %s674_s27 = scalar_lea.vmem %s9499_s0, %s7202_s13  ;;  %vm6683_vm2 = vcmp.eq.s32.totalorder %v6682_v60, 0  ;;  %vm6687_vm3 = vcmp.eq.s32.totalorder %v6682_v60, 15  ;;  %s7132_s13 = sadd.s32 4294967294, %s8194_s20 }
  0x5c   : > { %760 = vmatpush.msra.mxu0 %v738_v9  ;;  %780 = vmatpush.msra.mxu1 %v739_v10  ;;  %v873_v20 = vld [vmem:[#allocation5 + $0xd8] sm:$0xff]  ;;  %v727_v22 = vld [vmem:[%s9500_s1 + $0xc8] sm:$0xff]  ;;  %s8203_s17 = scalar_lea.vmem %s674_s27, %s8194_s20  ;;  %v724_v25 = vld [vmem:[%s9500_s1 + $0xb0] sm:$0xff]  ;;  %v7194_v3 = vsel %vm6683_vm2, 1.0, %v7884_v2  ;;  %v7195_v4 = vsel %vm6687_vm3, 1.0, %v7884_v2  ;;  %s667_s23 = sand.u32 1, %s9562_s26  }
  0x5d   : > { %903 = vmatpush.msra.mxu3 %v882_v11  ;;  %v726_v21 = vld [vmem:[%s9500_s1 + $0xc0] sm:$0xff]  ;;  %v723_v24 = vld [vmem:[%s9500_s1 + $0xa8] sm:$0xff]  ;;  %v720_v27 = vld [vmem:[%s9500_s1 + $0x90] sm:$0xff]  ;;  %v6686_v6 = vsub.f32 3.0, %v7194_v3  ;;  %s7129_s20 = sshll.u32 %s667_s23, 7  ;;  %s9574_s27 = sld [smem:[#allocation43_spill]] }
  0x5e   : > { %761 = vmatpush.msra.mxu0 %v735_v12  ;;  %781 = vmatpush.msra.mxu1 %v736_v13  ;;  %v870_v23 = vld [vmem:[#allocation5 + $0xc0] sm:$0xff]  ;;  %v867_v26 = vld [vmem:[#allocation5 + $0xa8] sm:$0xff]  ;;  %v721_v28 = vld [vmem:[%s9500_s1 + $0x98] sm:$0xff]  ;;  %s8363_s24 = scalar_lea.vmem [#allocation20], %s7129_s20  ;;  %s7197_s20 = sshll.u32 %s7851_s21, 4 }
  0x5f   : > { %904 = vmatpush.msra.mxu3 %v879_v14  ;;  %v677_v29 = vld [vmem:[%s8203_s17] sm:$0xff]  ;;  %v678_v30 = vld [vmem:[%s8203_s17 + $0x8] sm:$0xf]  ;;  %v864_v31 = vld [vmem:[#allocation5 + $0x90] sm:$0xff]  ;;  %v6690_v9 = vsub.f32 %v6686_v6, %v7195_v4  ;;  %s6913_s3 = sadd.s32 %s7198_s25, %s7197_s20  ;;  %s6902_s21 = scalar_lea.sflag [#allocation4], %s667_s23 }
  0x60   : > { %762 = vmatpush.msra.mxu0 %v732_v15  ;;  %782 = vmatpush.msra.mxu1 %v733_v16  ;;  %v895_v32 = vrot.slane %v677_v29, 1  ;;  %v8219_v33 = vrot.slane %v678_v30, 1  ;;  %v717_v34 = vld [vmem:[%s9500_s1 + $0x78] sm:$0xff]  ;;  %v718_v35 = vld [vmem:[%s9500_s1 + $0x80] sm:$0xff]  ;;  %v715_v39 = vld [vmem:[%s9500_s1 + $0x68] sm:$0xff]  ;;  %v753_v42 = vrot.slane %v677_v29, 2  ;;  %s9573_s28 = smov %s9572_s19 }
  0x61   : > { %905 = vmatpush.msra.mxu3 %v876_v17  ;;  %v861_v36 = vld [vmem:[#allocation5 + $0x78] sm:$0xff]  ;;  %v858_v41 = vld [vmem:[#allocation5 + $0x60] sm:$0xff]  ;;  %v754_v43 = vrot.slane %v678_v30, 2  ;;  %v712_v45 = vld [vmem:[%s9500_s1 + $0x50] sm:$0xff]  ;;  %v6697_v12 = vrot.slane %v6690_v9, 7  ;;  %s7199_s18 = sshll.u32 %s6913_s3, 3 }
  0x62   : > { %763 = vmatpush.msra.mxu0 %v729_v18  ;;  %783 = vmatpush.msra.mxu1 %v730_v19  ;;  %v8229_v37 = vsel %vm894_vm0, %v895_v32, %v8219_v33  ;;  %v714_v38 = vld [vmem:[%s9500_s1 + $0x60] sm:$0xff]  ;;  %v711_v44 = vld [vmem:[%s9500_s1 + $0x48] sm:$0xff]  ;;  %v6692_v49 = vadd.f32 %v8219_v33, %v678_v30  ;;  %v708_v50 = vld [vmem:[%s9500_s1 + $0x30] sm:$0xff] }
  0x63   : > { %906 = vmatpush.msra.mxu3 %v873_v20  ;;  %v6691_v40 = vadd.f32 %v8229_v37, %v677_v29  ;;  %v855_v46 = vld [vmem:[#allocation5 + $0x48] sm:$0xff]  ;;  %v8245_v48 = vsel %vm752_vm1, %v753_v42, %v754_v43  ;;  %v709_v51 = vld [vmem:[%s9500_s1 + $0x38] sm:$0xff]  ;;  %v706_v58 = vld [vmem:[%s9500_s1 + $0x20] sm:$0xff]  ;;  %7411 = vrcp.f32 %v6697_v12  ;;  %vm6704_vm4 = vweird.f32 %v6697_v12  ;;  %s6915_s7 = scalar_lea.hbm %s9574_s27, %s7199_s18  ;;  %s7769_s25 = scalar_lea.hbm %s9574_s27, 512 }
  0x64   : > { %764 = vmatpush.msra.mxu0 %v726_v21  ;;  %784 = vmatpush.msra.mxu1 %v727_v22  ;;  %v852_v54 = vld [vmem:[#allocation5 + $0x30] sm:$0xff]  ;;  %v8260_v56 = vadd.f32 %v6692_v49, %v754_v43  ;;  %v849_v59 = vld [vmem:[#allocation5 + $0x18] sm:$0xff]  ;;  %v703_v62 = vld [vmem:[%s9500_s1 + $0x8] sm:$0xff]  ;;  %v6708_v32 = vand.u32 2147483647, %v6697_v12 }
  0x65   : > { %907 = vmatpush.msra.mxu3 %v870_v23  ;;  %v8256_v53 = vadd.f32 %v6691_v40, %v8245_v48  ;;  %v705_v57 = vld [vmem:[%s9500_s1 + $0x18] sm:$0xff]  ;;  %v702_v61 = vld [vmem:[%s9500_s1] sm:$0xff]  ;;  %v887_v10 = vld [vmem:[#allocation5 + $0x148] sm:$0xff] }
  0x66   : > { %765 = vmatpush.msra.mxu0 %v723_v24  ;;  %785 = vmatpush.msra.mxu1 %v724_v25  ;;  %v846_v63 = vld [vmem:[#allocation5] sm:$0xff]  ;;  %v892_v0 = vld [vmem:[#allocation5 + $0x170] sm:$0xff]  ;;  %v893_v1 = vld [vmem:[#allocation5 + $0x178] sm:$0xff]  ;;  %vm6709_vm7 = vcmp.eq.f32.partialorder %v6708_v32, 8.507059e+37 }
  0x67   : > { %908 = vmatpush.msra.mxu3 %v867_v26  ;;  %v889_v5 = vld [vmem:[#allocation5 + $0x158] sm:$0xff]  ;;  %v890_v7 = vld [vmem:[#allocation5 + $0x160] sm:$0xff]  ;;  %v883_v11 = vld [vmem:[#allocation5 + $0x128] sm:$0xff] }
  0x68   : > { %766 = vmatpush.msra.mxu0 %v720_v27  ;;  %786 = vmatpush.msra.mxu1 %v721_v28  ;;  %v886_v8 = vld [vmem:[#allocation5 + $0x140] sm:$0xff]  ;;  %v884_v13 = vld [vmem:[#allocation5 + $0x130] sm:$0xff]  ;;  %v881_v15 = vld [vmem:[#allocation5 + $0x118] sm:$0xff]  ;;  %v6710_v28 = vand.u32 2147483648, %v6697_v12 }
  0x69   : > { %909 = vmatpush.msra.mxu3 %v864_v31  ;;  %v880_v14 = vld [vmem:[#allocation5 + $0x110] sm:$0xff]  ;;  %v877_v16 = vld [vmem:[#allocation5 + $0xf8] sm:$0xff]  ;;  %v878_v17 = vld [vmem:[#allocation5 + $0x100] sm:$0xff]  ;;  %v7412_v22 = vpop.eup %7411 }
  0x6a   : > { %767 = vmatpush.msra.mxu0 %v717_v34  ;;  %787 = vmatpush.msra.mxu1 %v718_v35  ;;  %v749_v18 = vld [vmem:[%s9500_s1 + $0x178] sm:$0xff]  ;;  %v874_v19 = vld [vmem:[#allocation5 + $0xe0] sm:$0xff]  ;;  %v875_v21 = vld [vmem:[#allocation5 + $0xe8] sm:$0xff]  ;;  %v6700_v26 = vmul.f32 %v7412_v22, %v6697_v12  ;;  %vm6705_vm5 = vweird.f32 %v7412_v22 }
  0x6b   : > { %910 = vmatpush.msra.mxu3 %v861_v36  ;;  %v746_v20 = vld [vmem:[%s9500_s1 + $0x160] sm:$0xff]  ;;  %797 = vmatpush.msra.mxu2 %v749_v18  ;;  %v871_v23 = vld [vmem:[#allocation5 + $0xc8] sm:$0xff]  ;;  %v872_v25 = vld [vmem:[#allocation5 + $0xd0] sm:$0xff] }
  0x6c   : > { %768 = vmatpush.msra.mxu0 %v714_v38  ;;  %788 = vmatpush.msra.mxu1 %v715_v39  ;;  %v743_v24 = vld [vmem:[%s9500_s1 + $0x148] sm:$0xff]  ;;  %v868_v27 = vld [vmem:[#allocation5 + $0xb0] sm:$0xff]  ;;  %v869_v30 = vld [vmem:[#allocation5 + $0xb8] sm:$0xff]  ;;  %v6701_v31 = vsub.f32 1.0, %v6700_v26 }
  0x6d   : > { %911 = vmatpush.msra.mxu3 %v858_v41  ;;  %798 = vmatpush.msra.mxu2 %v746_v20  ;;  %v740_v29 = vld [vmem:[%s9500_s1 + $0x130] sm:$0xff]  ;;  %v865_v34 = vld [vmem:[#allocation5 + $0x98] sm:$0xff]  ;;  %v866_v36 = vld [vmem:[#allocation5 + $0xa0] sm:$0xff]  ;;  %v6711_v41 = vor.u32 1.1754944e-38, %v6710_v28 }
  0x6e   : > { %769 = vmatpush.msra.mxu0 %v711_v44  ;;  %789 = vmatpush.msra.mxu1 %v712_v45  ;;  %v737_v35 = vld [vmem:[%s9500_s1 + $0x118] sm:$0xff]  ;;  %v6702_v38 = vmul.f32 %v7412_v22, %v6701_v31  ;;  %v862_v39 = vld [vmem:[#allocation5 + $0x80] sm:$0xff]  ;;  %vm8294_vm6 = vmor %vm6704_vm4, %vm6705_vm5 }
  0x6f   : > { %912 = vmatpush.msra.mxu3 %v855_v46  ;;  %799 = vmatpush.msra.mxu2 %v743_v24  ;;  %v734_v42 = vld [vmem:[%s9500_s1 + $0x100] sm:$0xff]  ;;  %v863_v43 = vld [vmem:[#allocation5 + $0x88] sm:$0xff]  ;;  %v860_v47 = vld [vmem:[#allocation5 + $0x70] sm:$0xff] }
  0x70   : > { %770 = vmatpush.msra.mxu0 %v708_v50  ;;  %790 = vmatpush.msra.mxu1 %v709_v51  ;;  %v6703_v44 = vadd.f32 %v7412_v22, %v6702_v38  ;;  %v859_v45 = vld [vmem:[#allocation5 + $0x68] sm:$0xff]  ;;  %v856_v51 = vld [vmem:[#allocation5 + $0x50] sm:$0xff]  ;;  %v854_v60 = vld [vmem:[#allocation5 + $0x40] sm:$0xff] }
  0x71   : > { %913 = vmatpush.msra.mxu3 %v852_v54  ;;  %800 = vmatpush.msra.mxu2 %v740_v29  ;;  %v731_v46 = vld [vmem:[%s9500_s1 + $0xe8] sm:$0xff]  ;;  %v728_v52 = vld [vmem:[%s9500_s1 + $0xd0] sm:$0xff]  ;;  %v1425_v4 = vld [vmem:[#allocation8 + $0xbd0] sm:$0xff] }
  0x72   : > { %771 = vmatpush.msra.mxu0 %v705_v57  ;;  %791 = vmatpush.msra.mxu1 %v706_v58  ;;  %v6707_v49 = vsel %vm8294_vm6, %v7412_v22, %v6703_v44  ;;  %v857_v57 = vld [vmem:[#allocation5 + $0x58] sm:$0xff]  ;;  %v848_v2 = vld [vmem:[#allocation5 + $0x10] sm:$0xff]  ;;  %v1323_v9 = vld [vmem:[#allocation8 + $0x8a0] sm:$0xff] }
  0x73   : > { %914 = vmatpush.msra.mxu3 %v849_v59  ;;  %801 = vmatpush.msra.mxu2 %v737_v35  ;;  %v8306_v50 = vsel %vm6709_vm7, %v6711_v41, %v6707_v49  ;;  %v853_v58 = vld [vmem:[#allocation5 + $0x38] sm:$0xff]  ;;  %v716_v3 = vld [vmem:[%s9500_s1 + $0x70] sm:$0xff] }
  0x74   : > { %772 = vmatpush.msra.mxu0 %v702_v61  ;;  %792 = vmatpush.msra.mxu1 %v703_v62  ;;  %v8313_v54 = vmul.f32 %v8306_v50, %v8256_v53  ;;  %v725_v59 = vld [vmem:[%s9500_s1 + $0xb8] sm:$0xff]  ;;  %v850_v61 = vld [vmem:[#allocation5 + $0x20] sm:$0xff]  ;;  %v851_v53 = vld [vmem:[#allocation5 + $0x28] sm:$0xff] }
  0x75   : > { %915 = vmatpush.msra.mxu3 %v846_v63  ;;  %793 = vmatmul.f32.vlgmr.msra.gmra.mxu1 %v8245_v48  ;;  %v722_v62 = vld [vmem:[%s9500_s1 + $0xa0] sm:$0xff]  ;;  %v847_v63 = vld [vmem:[#allocation5 + $0x8] sm:$0xff]  ;;  %v713_v6 = vld [vmem:[%s9500_s1 + $0x58] sm:$0xff] }
  0x76   : > { %923 = vmatpush.msrb.mxu0 %v892_v0  ;;  %916 = vmatmul.f32.vlgmr.msra.gmra.mxu3 %v8229_v37  ;;  %v719_v0 = vld [vmem:[%s9500_s1 + $0x88] sm:$0xff]  ;;  %v1413_v12 = vld [vmem:[#allocation8 + $0xb70] sm:$0xff] }
  0x77   : > { %946 = vmatpush.msrb.mxu1 %v893_v1  ;;  %773 = vmatmul.f32.vlgmr.msra.gmra.mxu0 %v8245_v48  ;;  %v1233_v1 = vld [vmem:[#allocation8 + $0x5d0] sm:$0xff]  ;;  %v1395_v22 = vld [vmem:[#allocation8 + $0xae0] sm:$0xff] }
  0x78   : > { %924 = vmatpush.msrb.mxu0 %v889_v5  ;;  %802 = vmatpush.msra.mxu2 %v734_v42  ;;  %v1329_v5 = vld [vmem:[#allocation8 + $0x8d0] sm:$0xff]  ;;  %v1203_v24 = vld [vmem:[#allocation8 + $0x4e0] sm:$0xff] }
  0x79   : > { %947 = vmatpush.msrb.mxu1 %v890_v7  ;;  %1931 = vmatpush.msrb.mxu3 %v1233_v1  ;;  %v1227_v7 = vld [vmem:[#allocation8 + $0x5a0] sm:$0xff]  ;;  %v1401_v18 = vld [vmem:[#allocation8 + $0xb10] sm:$0xff] }
  0x7a   : > { %925 = vmatpush.msrb.mxu0 %v886_v8  ;;  %803 = vmatpush.msra.mxu2 %v731_v46  ;;  %v1419_v8 = vld [vmem:[#allocation8 + $0xba0] sm:$0xff]  ;;  %v1209_v20 = vld [vmem:[#allocation8 + $0x510] sm:$0xff] }
  0x7b   : > { %948 = vmatpush.msrb.mxu1 %v887_v10  ;;  %v710_v10 = vld [vmem:[%s9500_s1 + $0x40] sm:$0xff]  ;;  %1932 = vmatpush.msrb.mxu3 %v1227_v7  ;;  %v1119_v28 = vld [vmem:[#allocation8 + $0x240] sm:$0xff] }
  0x7c   : > { %926 = vmatpush.msrb.mxu0 %v883_v11  ;;  %804 = vmatpush.msra.mxu2 %v728_v52  ;;  %v1221_v11 = vld [vmem:[#allocation8 + $0x570] sm:$0xff]  ;;  %v1383_v29 = vld [vmem:[#allocation8 + $0xa80] sm:$0xff] }
  0x7d   : > { %949 = vmatpush.msrb.mxu1 %v884_v13  ;;  %v1317_v13 = vld [vmem:[#allocation8 + $0x870] sm:$0xff]  ;;  %1933 = vmatpush.msrb.mxu3 %v1221_v11  ;;  %v1287_v35 = vld [vmem:[#allocation8 + $0x780] sm:$0xff] }
  0x7e   : > { %927 = vmatpush.msrb.mxu0 %v880_v14  ;;  %919 = vmatmul.f32.gmra.mxu3 %v8219_v33  ;;  %v707_v14 = vld [vmem:[%s9500_s1 + $0x28] sm:$0xff]  ;;  %v1389_v26 = vld [vmem:[#allocation8 + $0xab0] sm:$0xff] }
  0x7f   : > { %950 = vmatpush.msrb.mxu1 %v881_v15  ;;  %805 = vmatpush.msra.mxu2 %v725_v59  ;;  %v1407_v15 = vld [vmem:[#allocation8 + $0xb40] sm:$0xff]  ;;  %v1113_v31 = vld [vmem:[#allocation8 + $0x210] sm:$0xff] }
  0x80   : > { %928 = vmatpush.msrb.mxu0 %v877_v16  ;;  %v704_v16 = vld [vmem:[%s9500_s1 + $0x10] sm:$0xff]  ;;  %v1377_v32 = vld [vmem:[#allocation8 + $0xa50] sm:$0xff] }
  0x81   : > { %951 = vmatpush.msrb.mxu1 %v878_v17  ;;  %806 = vmatpush.msra.mxu2 %v722_v62  ;;  %v1137_v17 = vld [vmem:[#allocation8 + $0x2d0] sm:$0xff]  ;;  %v1371_v38 = vld [vmem:[#allocation8 + $0xa20] sm:$0xff] }
  0x82   : > { %929 = vmatpush.msrb.mxu0 %v874_v19  ;;  %v1311_v19 = vld [vmem:[#allocation8 + $0x840] sm:$0xff]  ;;  %v1281_v40 = vld [vmem:[#allocation8 + $0x750] sm:$0xff] }
  0x83   : > { %952 = vmatpush.msrb.mxu1 %v875_v21  ;;  %807 = vmatpush.msra.mxu2 %v719_v0  ;;  %v1131_v21 = vld [vmem:[#allocation8 + $0x2a0] sm:$0xff]  ;;  %v1101_v41 = vld [vmem:[#allocation8 + $0x1b0] sm:$0xff] }
  0x84   : > { %930 = vmatpush.msrb.mxu0 %v871_v23  ;;  %v1305_v23 = vld [vmem:[#allocation8 + $0x810] sm:$0xff]  ;;  %v1095_v44 = vld [vmem:[#allocation8 + $0x180] sm:$0xff] }
  0x85   : > { %953 = vmatpush.msrb.mxu1 %v872_v25  ;;  %808 = vmatpush.msra.mxu2 %v716_v3  ;;  %v1125_v25 = vld [vmem:[#allocation8 + $0x270] sm:$0xff]  ;;  %v1167_v52 = vld [vmem:[#allocation8 + $0x3c0] sm:$0xff] }
  0x86   : > { %931 = vmatpush.msrb.mxu0 %v868_v27  ;;  %v1299_v27 = vld [vmem:[#allocation8 + $0x7e0] sm:$0xff]  ;;  %v1365_v42 = vld [vmem:[#allocation8 + $0x9f0] sm:$0xff] }
  0x87   : > { %954 = vmatpush.msrb.mxu1 %v869_v30  ;;  %809 = vmatpush.msra.mxu2 %v713_v6  ;;  %v1293_v30 = vld [vmem:[#allocation8 + $0x7b0] sm:$0xff]  ;;  %v1347_v59 = vld [vmem:[#allocation8 + $0x960] sm:$0xff] }
  0x88   : > { %932 = vmatpush.msrb.mxu0 %v865_v34  ;;  %v1191_v34 = vld [vmem:[#allocation8 + $0x480] sm:$0xff]  ;;  %v1173_v46 = vld [vmem:[#allocation8 + $0x3f0] sm:$0xff] }
  0x89   : > { %955 = vmatpush.msrb.mxu1 %v866_v36  ;;  %810 = vmatpush.msra.mxu2 %v710_v10  ;;  %v1107_v36 = vld [vmem:[#allocation8 + $0x1e0] sm:$0xff]  ;;  %v1089_v49 = vld [vmem:[#allocation8 + $0x150] sm:$0xff] }
  0x8a   : > { %933 = vmatpush.msrb.mxu0 %v862_v39  ;;  %v1185_v39 = vld [vmem:[#allocation8 + $0x450] sm:$0xff]  ;;  %v1251_v0 = vld [vmem:[#allocation8 + $0x660] sm:$0xff] }
  0x8b   : > { %956 = vmatpush.msrb.mxu1 %v863_v43  ;;  %811 = vmatpush.msra.mxu2 %v707_v14  ;;  %v1179_v43 = vld [vmem:[#allocation8 + $0x420] sm:$0xff]  ;;  %v1077_v62 = vld [vmem:[#allocation8 + $0xf0] sm:$0xff] }
  0x8c   : > { %934 = vmatpush.msrb.mxu0 %v859_v45  ;;  %v1359_v45 = vld [vmem:[#allocation8 + $0x9c0] sm:$0xff]  ;;  %v1809_v3 = vld [vmem:[#allocation8 + $0x17d0] sm:$0xff] }
  0x8d   : > { %957 = vmatpush.msrb.mxu1 %v860_v47  ;;  %812 = vmatpush.msra.mxu2 %v704_v16  ;;  %v1269_v47 = vld [vmem:[#allocation8 + $0x6f0] sm:$0xff]  ;;  %v1071_v1 = vld [vmem:[#allocation8 + $0xc0] sm:$0xff] }
  0x8e   : > { %935 = vmatpush.msrb.mxu0 %v856_v51  ;;  %813 = vmatmul.f32.vlgmr.msra.gmra.mxu2 %v8245_v48  ;;  %v1275_v48 = vld [vmem:[#allocation8 + $0x720] sm:$0xff]  ;;  %v1353_v51 = vld [vmem:[#allocation8 + $0x990] sm:$0xff] }
  0x8f   : > { %958 = vmatpush.msrb.mxu1 %v857_v57  ;;  %1911 = vmatpush.msrb.mxu2 %v1137_v17  ;;  %v1263_v57 = vld [vmem:[#allocation8 + $0x6c0] sm:$0xff]  ;;  %v1245_v6 = vld [vmem:[#allocation8 + $0x630] sm:$0xff] }
  0x90   : > { %936 = vmatpush.msrb.mxu0 %v853_v58  ;;  %v1083_v58 = vld [vmem:[#allocation8 + $0x120] sm:$0xff]  ;;  %v1053_v10 = vld [vmem:[#allocation8 + $0x30] sm:$0xff] }
  0x91   : > { %959 = vmatpush.msrb.mxu1 %v854_v60  ;;  %1912 = vmatpush.msrb.mxu2 %v1131_v21  ;;  %v1161_v60 = vld [vmem:[#allocation8 + $0x390] sm:$0xff]  ;;  %v1803_v7 = vld [vmem:[#allocation8 + $0x17a0] sm:$0xff] }
  0x92   : > { %937 = vmatpush.msrb.mxu0 %v850_v61  ;;  %v1257_v61 = vld [vmem:[#allocation8 + $0x690] sm:$0xff]  ;;  %v1791_v11 = vld [vmem:[#allocation8 + $0x1740] sm:$0xff] }
  0x93   : > { %960 = vmatpush.msrb.mxu1 %v851_v53  ;;  %1913 = vmatpush.msrb.mxu2 %v1125_v25  ;;  %v1341_v53 = vld [vmem:[#allocation8 + $0x930] sm:$0xff]  ;;  %v1503_v17 = vld [vmem:[#allocation8 + $0xe40] sm:$0xff] }
  0x94   : > { %938 = vmatpush.msrb.mxu0 %v847_v63  ;;  %v1155_v63 = vld [vmem:[#allocation8 + $0x360] sm:$0xff]  ;;  %v1785_v14 = vld [vmem:[#allocation8 + $0x1710] sm:$0xff] }
  0x95   : > { %961 = vmatpush.msrb.mxu1 %v848_v2  ;;  %939 = vmatmul.f32.vlgmr.msrb.gmra.mxu0 %v8229_v37  ;;  %v1335_v2 = vld [vmem:[#allocation8 + $0x900] sm:$0xff]  ;;  %v1509_v16 = vld [vmem:[#allocation8 + $0xe70] sm:$0xff] }
  0x96   : > { %962 = vmatmul.f32.vlgmr.msrb.gmra.mxu1 %v8229_v37  ;;  %1951 = vmatpush.msra.mxu0 %v1329_v5  ;;  %v1215_v37 = vld [vmem:[#allocation8 + $0x540] sm:$0xff]  ;;  %v1065_v5 = vld [vmem:[#allocation8 + $0x90] sm:$0xff] }
  0x97   : > { %1971 = vmatpush.msra.mxu1 %v1425_v4  ;;  %1934 = vmatpush.msrb.mxu3 %v1215_v37  ;;  %v1149_v4 = vld [vmem:[#allocation8 + $0x330] sm:$0xff]  ;;  %v1515_v37 = vld [vmem:[#allocation8 + $0xea0] sm:$0xff] }
  0x98   : > { %1952 = vmatpush.msra.mxu0 %v1323_v9  ;;  %1914 = vmatpush.msrb.mxu2 %v1119_v28  ;;  %v1797_v9 = vld [vmem:[#allocation8 + $0x1770] sm:$0xff]  ;;  %v1479_v21 = vld [vmem:[#allocation8 + $0xd80] sm:$0xff] }
  0x99   : > { %1972 = vmatpush.msra.mxu1 %v1419_v8  ;;  %1935 = vmatpush.msrb.mxu3 %v1209_v20  ;;  %v1059_v8 = vld [vmem:[#allocation8 + $0x60] sm:$0xff]  ;;  %v1485_v20 = vld [vmem:[#allocation8 + $0xdb0] sm:$0xff] }
  0x9a   : > { %1953 = vmatpush.msra.mxu0 %v1317_v13  ;;  %1915 = vmatpush.msrb.mxu2 %v1113_v31  ;;  %v1521_v13 = vld [vmem:[#allocation8 + $0xed0] sm:$0xff]  ;;  %v1467_v25 = vld [vmem:[#allocation8 + $0xd20] sm:$0xff] }
  0x9b   : > { %1973 = vmatpush.msra.mxu1 %v1413_v12  ;;  %1936 = vmatpush.msrb.mxu3 %v1203_v24  ;;  %v1047_v12 = vld [vmem:[#allocation8] sm:$0xff]  ;;  %v1713_v28 = vld [vmem:[#allocation8 + $0x14d0] sm:$0xff] }
  0x9c   : > { %1954 = vmatpush.msra.mxu0 %v1311_v19  ;;  %1916 = vmatpush.msrb.mxu2 %v1107_v36  ;;  %v1491_v19 = vld [vmem:[#allocation8 + $0xde0] sm:$0xff]  ;;  %v1701_v36 = vld [vmem:[#allocation8 + $0x1470] sm:$0xff] }
  0x9d   : > { %942 = vmatmul.f32.gmra.mxu0 %v8219_v33  ;;  %1974 = vmatpush.msra.mxu1 %v1407_v15  ;;  %v1779_v15 = vld [vmem:[#allocation8 + $0x16e0] sm:$0xff] }
  0x9e   : > { %965 = vmatmul.f32.gmra.mxu1 %v8219_v33  ;;  %1955 = vmatpush.msra.mxu0 %v1305_v23  ;;  %v1197_v33 = vld [vmem:[#allocation8 + $0x4b0] sm:$0xff]  ;;  %v1143_v23 = vld [vmem:[#allocation8 + $0x300] sm:$0xff] }
  0x9f   : > { %1975 = vmatpush.msra.mxu1 %v1401_v18  ;;  %1937 = vmatpush.msrb.mxu3 %v1197_v33  ;;  %v1497_v18 = vld [vmem:[#allocation8 + $0xe10] sm:$0xff]  ;;  %v1239_v24 = vld [vmem:[#allocation8 + $0x600] sm:$0xff] }
  0xa0   : > { %1956 = vmatpush.msra.mxu0 %v1299_v27  ;;  %1917 = vmatpush.msrb.mxu2 %v1101_v41  ;;  %v1617_v27 = vld [vmem:[#allocation8 + $0x11d0] sm:$0xff]  ;;  %v1767_v33 = vld [vmem:[#allocation8 + $0x1680] sm:$0xff]  ;;  %v8346_v41 = vadd.s32 8, %v8258_v55 }
  0xa1   : > { %1976 = vmatpush.msra.mxu1 %v1395_v22  ;;  %1938 = vmatpush.msrb.mxu3 %v1191_v34  ;;  %v1473_v22 = vld [vmem:[#allocation8 + $0xd50] sm:$0xff]  ;;  %v1707_v31 = vld [vmem:[#allocation8 + $0x14a0] sm:$0xff] }
  0xa2   : > { %1957 = vmatpush.msra.mxu0 %v1293_v30  ;;  %1918 = vmatpush.msrb.mxu2 %v1095_v44  ;;  %v1611_v30 = vld [vmem:[#allocation8 + $0x11a0] sm:$0xff]  ;;  %v1761_v34 = vld [vmem:[#allocation8 + $0x1650] sm:$0xff] }
  0xa3   : > { %1977 = vmatpush.msra.mxu1 %v1389_v26  ;;  %1939 = vmatpush.msrb.mxu3 %v1185_v39  ;;  %v1773_v26 = vld [vmem:[#allocation8 + $0x16b0] sm:$0xff]  ;;  %v1755_v39 = vld [vmem:[#allocation8 + $0x1620] sm:$0xff] }
  0xa4   : > { %1958 = vmatpush.msra.mxu0 %v1287_v35  ;;  %1919 = vmatpush.msrb.mxu2 %v1089_v49  ;;  %v1605_v35 = vld [vmem:[#allocation8 + $0x1170] sm:$0xff]  ;;  %v1443_v44 = vld [vmem:[#allocation8 + $0xc60] sm:$0xff] }
  0xa5   : > { %1978 = vmatpush.msra.mxu1 %v1383_v29  ;;  %1940 = vmatpush.msrb.mxu3 %v1179_v43  ;;  %v1461_v29 = vld [vmem:[#allocation8 + $0xcf0] sm:$0xff]  ;;  %v1695_v43 = vld [vmem:[#allocation8 + $0x1440] sm:$0xff] }
  0xa6   : > { %1959 = vmatpush.msra.mxu0 %v1281_v40  ;;  %1920 = vmatpush.msrb.mxu2 %v1083_v58  ;;  %v1599_v40 = vld [vmem:[#allocation8 + $0x1140] sm:$0xff]  ;;  %v1437_v49 = vld [vmem:[#allocation8 + $0xc30] sm:$0xff] }
  0xa7   : > { %1979 = vmatpush.msra.mxu1 %v1377_v32  ;;  %1941 = vmatpush.msrb.mxu3 %v1173_v46  ;;  %v1455_v32 = vld [vmem:[#allocation8 + $0xcc0] sm:$0xff]  ;;  %v1593_v46 = vld [vmem:[#allocation8 + $0x1110] sm:$0xff] }
  0xa8   : > { %1960 = vmatpush.msra.mxu0 %v1275_v48  ;;  %1921 = vmatpush.msrb.mxu2 %v1077_v62  ;;  %v1431_v58 = vld [vmem:[#allocation8 + $0xc00] sm:$0xff] }
  0xa9   : > { %1980 = vmatpush.msra.mxu1 %v1371_v38  ;;  %1942 = vmatpush.msrb.mxu3 %v1167_v52  ;;  %v1449_v38 = vld [vmem:[#allocation8 + $0xc90] sm:$0xff]  ;;  %v1587_v52 = vld [vmem:[#allocation8 + $0x10e0] sm:$0xff] }
  0xaa   : > { %1961 = vmatpush.msra.mxu0 %v1269_v47  ;;  %1922 = vmatpush.msrb.mxu2 %v1071_v1  ;;  %v1689_v47 = vld [vmem:[#allocation8 + $0x1410] sm:$0xff]  ;;  %v1731_v62 = vld [vmem:[#allocation8 + $0x1560] sm:$0xff] }
  0xab   : > { %1981 = vmatpush.msra.mxu1 %v1365_v42  ;;  %1943 = vmatpush.msrb.mxu3 %v1161_v60  ;;  %v8348_v42 = vstv %s7132_s13  ;;  %v1581_v60 = vld [vmem:[#allocation8 + $0x10b0] sm:$0xff] }
  0xac   : > { %1962 = vmatpush.msra.mxu0 %v1263_v57  ;;  %1923 = vmatpush.msrb.mxu2 %v1065_v5  ;;  %v8352_v48 = vadd.s32 %v8348_v42, %v8346_v41  ;;  %v1683_v57 = vld [vmem:[#allocation8 + $0x13e0] sm:$0xff]  ;;  %v1569_v1 = vld [vmem:[#allocation8 + $0x1050] sm:$0xff] }
  0xad   : > { %1982 = vmatpush.msra.mxu1 %v1359_v45  ;;  %1944 = vmatpush.msrb.mxu3 %v1155_v63  ;;  %v1749_v45 = vld [vmem:[#allocation8 + $0x15f0] sm:$0xff]  ;;  %v1671_v63 = vld [vmem:[#allocation8 + $0x1380] sm:$0xff] }
  0xae   : > { %1963 = vmatpush.msra.mxu0 %v1257_v61  ;;  %1924 = vmatpush.msrb.mxu2 %v1059_v8  ;;  %v1677_v61 = vld [vmem:[#allocation8 + $0x13b0] sm:$0xff]  ;;  %v1563_v5 = vld [vmem:[#allocation8 + $0x1020] sm:$0xff]  ;;  %vm687_vm4 = vcmp.ge.s32.totalorder %v8352_v48, 0  ;;  %vm689_vm5 = vcmp.lt.s32.totalorder %v8352_v48, 16 }
  0xaf   : > { %1983 = vmatpush.msra.mxu1 %v1353_v51  ;;  %1945 = vmatpush.msrb.mxu3 %v1149_v4  ;;  %v1743_v51 = vld [vmem:[#allocation8 + $0x15c0] sm:$0xff]  ;;  %v817_v4 = vld [vmem:[#allocation2] sm:$0x3f]  ;;  %vm8819_vm6 = vmand %vm687_vm4, %vm689_vm5 }
  0xb0   : > { %1964 = vmatpush.msra.mxu0 %v1251_v0  ;;  %1925 = vmatpush.msrb.mxu2 %v1053_v10  ;;  %v1725_v0 = vld [vmem:[#allocation8 + $0x1530] sm:$0xff]  ;;  %v819_v10 = vperm.slane %v817_v4, 0 }
  0xb1   : > { %1984 = vmatpush.msra.mxu1 %v1347_v59  ;;  %1946 = vmatpush.msrb.mxu3 %v1143_v23  ;;  %v1737_v59 = vld [vmem:[#allocation8 + $0x1590] sm:$0xff] }
  0xb2   : > { %1965 = vmatpush.msra.mxu0 %v1245_v6  ;;  %1926 = vmatpush.msrb.mxu2 %v1047_v12  ;;  %v1659_v6 = vld [vmem:[#allocation8 + $0x1320] sm:$0xff]  ;;  %v1557_v8 = vld [vmem:[#allocation8 + $0xff0] sm:$0xff]  ;;  %v832_v12 = vperm.slane %v817_v4, 3 }
  0xb3   : > { %1985 = vmatpush.msra.mxu1 %v1341_v53  ;;  %2011 = vmatpush.msra.mxu3 %v1617_v27  ;;  %v1575_v53 = vld [vmem:[#allocation8 + $0x1080] sm:$0xff] }
  0xb4   : > { %1991 = vmatpush.msra.mxu2 %v1521_v13  ;;  %1966 = vmatpush.msra.mxu0 %v1239_v24  ;;  %v1551_v13 = vld [vmem:[#allocation8 + $0xfc0] sm:$0xff] }
  0xb5   : > { %1986 = vmatpush.msra.mxu1 %v1335_v2  ;;  %2012 = vmatpush.msra.mxu3 %v1611_v30  ;;  %v1665_v2 = vld [vmem:[#allocation8 + $0x1350] sm:$0xff] }
  0xb6   : > { %1992 = vmatpush.msra.mxu2 %v1515_v37  ;;  %2031 = vmatpush.msrb.mxu0 %v1713_v28  ;;  %v831_v37 = vperm.slane %v817_v4, 1 }
  0xb7   : > { %2051 = vmatpush.msrb.mxu1 %v1809_v3  ;;  %2013 = vmatpush.msra.mxu3 %v1605_v35  ;;  %v1719_v3 = vld [vmem:[#allocation8 + $0x1500] sm:$0xff] }
  0xb8   : > { %1993 = vmatpush.msra.mxu2 %v1509_v16  ;;  %2032 = vmatpush.msrb.mxu0 %v1707_v31  ;;  %v837_v23 = vperm.slane %v831_v37, 1  ;;  %v1533_v31 = vld [vmem:[#allocation8 + $0xf30] sm:$0xff]  ;;  %v1527_v35 = vld [vmem:[#allocation8 + $0xf00] sm:$0xff]  ;;  %v1318_v37 = vld [vmem:[#allocation8 + $0x878] sm:$0xff] }
  0xb9   : > { %2052 = vmatpush.msrb.mxu1 %v1803_v7  ;;  %2014 = vmatpush.msra.mxu3 %v1599_v40  ;;  %v820_v7 = vperm.slane %v817_v4, 2 }
  0xba   : > { %1994 = vmatpush.msra.mxu2 %v1503_v17  ;;  %2033 = vmatpush.msrb.mxu0 %v1701_v36  ;;  %v825_v17 = vperm.slane %v819_v10, 0  ;;  %v1623_v36 = vld [vmem:[#allocation8 + $0x1200] sm:$0xff]  ;;  %v1324_v10 = vld [vmem:[#allocation8 + $0x8a8] sm:$0xff] }
  0xbb   : > { %2053 = vmatpush.msrb.mxu1 %v1797_v9  ;;  %2015 = vmatpush.msra.mxu3 %v1593_v46  ;;  %v1653_v9 = vld [vmem:[#allocation8 + $0x12f0] sm:$0xff] }
  0xbc   : > { %1995 = vmatpush.msra.mxu2 %v1497_v18  ;;  %2034 = vmatpush.msrb.mxu0 %v1695_v43  ;;  %v1545_v18 = vld [vmem:[#allocation8 + $0xf90] sm:$0xff] }
  0xbd   : > { %2054 = vmatpush.msrb.mxu1 %v1791_v11  ;;  %2016 = vmatpush.msra.mxu3 %v1587_v52  ;;  %v8354_v11 = vld [vmem:[#allocation7] sm:$0x3f]  ;;  %v1905_v52 = vld [vmem:[#allocation8 + $0x1ad0] sm:$0xff] }
  0xbe   : > { %1996 = vmatpush.msra.mxu2 %v1491_v19  ;;  %2035 = vmatpush.msrb.mxu0 %v1689_v47  ;;  %v971_v16 = vperm.slane %v8354_v11, 0  ;;  %v1641_v19 = vld [vmem:[#allocation8 + $0x1290] sm:$0xff] }
  0xbf   : > { %2055 = vmatpush.msrb.mxu1 %v1785_v14  ;;  %2017 = vmatpush.msra.mxu3 %v1581_v60  ;;  %v1647_v14 = vld [vmem:[#allocation8 + $0x12c0] sm:$0xff]  ;;  %v1893_v60 = vld [vmem:[#allocation8 + $0x1a70] sm:$0xff] }
  0xc0   : > { %1997 = vmatpush.msra.mxu2 %v1485_v20  ;;  %2036 = vmatpush.msrb.mxu0 %v1683_v57  ;;  %v693_v20 = vstv %s7133_s30  ;;  %v1899_v57 = vld [vmem:[#allocation8 + $0x1aa0] sm:$0xff]  ;;  %v5230_v47 = vld [vmem:[#allocation16 + $0x1138] sm:$0xff] }
  0xc1   : > { %2056 = vmatpush.msrb.mxu1 %v1779_v15  ;;  %2018 = vmatpush.msra.mxu3 %v1575_v53  ;;  %v826_v15 = vperm.slane %v820_v7, 0  ;;  %v1869_v7 = vld [vmem:[#allocation8 + $0x19b0] sm:$0xff] }
  0xc2   : > { %1998 = vmatpush.msra.mxu2 %v1479_v21  ;;  %2037 = vmatpush.msrb.mxu0 %v1677_v61  ;;  %v838_v21 = vperm.slane %v832_v12, 1  ;;  %v987_v12 = vperm.slane %v8354_v11, 3 }
  0xc3   : > { %2057 = vmatpush.msrb.mxu1 %v1773_v26  ;;  %2019 = vmatpush.msra.mxu3 %v1569_v1  ;;  %v1635_v26 = vld [vmem:[#allocation8 + $0x1260] sm:$0xff] }
  0xc4   : > { %1999 = vmatpush.msra.mxu2 %v1473_v22  ;;  %2038 = vmatpush.msrb.mxu0 %v1671_v63  ;;  %v986_v22 = vperm.slane %v8354_v11, 1 }
  0xc5   : > { %2058 = vmatpush.msrb.mxu1 %v1767_v33  ;;  %2020 = vmatpush.msra.mxu3 %v1563_v5  ;;  %v694_v33 = vadd.s32 %v693_v20, %v8258_v55  ;;  %v1330_v5 = vld [vmem:[#allocation8 + $0x8d8] sm:$0xff] }
  0xc6   : > { %2000 = vmatpush.msra.mxu2 %v1467_v25  ;;  %2039 = vmatpush.msrb.mxu0 %v1665_v2  ;;  %v1539_v25 = vld [vmem:[#allocation8 + $0xf60] sm:$0xff] }
  0xc7   : > { %2059 = vmatpush.msrb.mxu1 %v1761_v34  ;;  %2021 = vmatpush.msra.mxu3 %v1557_v8  ;;  %vm696_vm8 = vcmp.ge.s32.totalorder %v694_v33, 0  ;;  %vm698_vm9 = vcmp.lt.s32.totalorder %v694_v33, 16 }
  0xc8   : > { %2001 = vmatpush.msra.mxu2 %v1461_v29  ;;  %2040 = vmatpush.msrb.mxu0 %v1659_v6  ;;  %v977_v29 = vperm.slane %v971_v16, 0  ;;  %vm8367_vm10 = vmand %vm696_vm8, %vm698_vm9  ;;  %v972_v6 = vperm.slane %v8354_v11, 2  ;;  %v1857_v16 = vld [vmem:[#allocation8 + $0x1950] sm:$0xff] }
  0xc9   : > { %2060 = vmatpush.msrb.mxu1 %v1755_v39  ;;  %2022 = vmatpush.msra.mxu3 %v1551_v13  ;;  %v1863_v13 = vld [vmem:[#allocation8 + $0x1980] sm:$0xff] }
  0xca   : > { %2002 = vmatpush.msra.mxu2 %v1455_v32  ;;  %2041 = vmatpush.msrb.mxu0 %v1653_v9  ;;  %v1629_v32 = vld [vmem:[#allocation8 + $0x1230] sm:$0xff]  ;;  %v973_v9 = vperm.slane %v8354_v11, 4 }
  0xcb   : > { %2061 = vmatpush.msrb.mxu1 %v1749_v45  ;;  %2023 = vmatpush.msra.mxu3 %v1545_v18  ;;  %v993_v18 = vperm.slane %v987_v12, 1 }
  0xcc   : > { %2003 = vmatpush.msra.mxu2 %v1449_v38  ;;  %2042 = vmatpush.msrb.mxu0 %v1647_v14  ;;  %v992_v38 = vperm.slane %v986_v22, 1  ;;  %v988_v14 = vperm.slane %v8354_v11, 5 }
  0xcd   : > { %2062 = vmatpush.msrb.mxu1 %v1743_v51  ;;  %2024 = vmatpush.msra.mxu3 %v1539_v25  ;;  %v695_v51 = vadd.s32 %v693_v20, %v8346_v41  ;;  %v1887_v41 = vld [vmem:[#allocation8 + $0x1a40] sm:$0xff]  ;;  %v1306_v25 = vld [vmem:[#allocation8 + $0x818] sm:$0xff] }
  0xce   : > { %2004 = vmatpush.msra.mxu2 %v1443_v44  ;;  %2043 = vmatpush.msrb.mxu0 %v1641_v19  ;;  %v1312_v19 = vld [vmem:[#allocation8 + $0x848] sm:$0xff]  ;;  %v1851_v20 = vld [vmem:[#allocation8 + $0x1920] sm:$0xff]  ;;  %v994_v22 = vperm.slane %v988_v14, 1 }
  0xcf   : > { %2063 = vmatpush.msrb.mxu1 %v1737_v59  ;;  %2025 = vmatpush.msra.mxu3 %v1533_v31  ;;  %vm697_vm11 = vcmp.ge.s32.totalorder %v695_v51, 0  ;;  %vm699_vm12 = vcmp.lt.s32.totalorder %v695_v51, 16  ;;  %v1294_v31 = vld [vmem:[#allocation8 + $0x7b8] sm:$0xff]  ;;  %v1827_v51 = vld [vmem:[#allocation8 + $0x1860] sm:$0xff] }
  0xd0   : > { %2005 = vmatpush.msra.mxu2 %v1437_v49  ;;  %2044 = vmatpush.msrb.mxu0 %v1635_v26  ;;  %vm8382_vm13 = vmand %vm697_vm11, %vm699_vm12  ;;  %v1845_v26 = vld [vmem:[#allocation8 + $0x18f0] sm:$0xff]  ;;  %v1815_v14 = vld [vmem:[#allocation8 + $0x1800] sm:$0xff] }
  0xd1   : > { %2064 = vmatpush.msrb.mxu1 %v1731_v62  ;;  %2026 = vmatpush.msra.mxu3 %v1527_v35  ;;  %v1234_v35 = vld [vmem:[#allocation8 + $0x5d8] sm:$0xff] }
  0xd2   : > { %2006 = vmatpush.msra.mxu2 %v1431_v58  ;;  %2045 = vmatpush.msrb.mxu0 %v1629_v32 }
  0xd3   : > { %2065 = vmatpush.msrb.mxu1 %v1725_v0  ;;  %v1881_v0 = vld [vmem:[#allocation8 + $0x1a10] sm:$0xff] }
  0xd4   : > { %2046 = vmatpush.msrb.mxu0 %v1623_v36  ;;  %v1288_v36 = vld [vmem:[#allocation8 + $0x788] sm:$0xff] }
  0xd5   : > { %2066 = vmatpush.msrb.mxu1 %v1719_v3  ;;  %v1875_v3 = vld [vmem:[#allocation8 + $0x19e0] sm:$0xff] }
  0xf2   : > { %v794_v24 = vpop.f32.mrf.mxu1 }
  0xf3   : > { %v829_v28 = vmul.f32 %v826_v15, %v794_v24  ;;  %v978_v15 = vperm.slane %v972_v6, 0 }
  0xf4   : > { %v774_v27 = vpop.f32.mrf.mxu0 }
  0xf5   : > { %v828_v30 = vmul.f32 %v825_v17, %v774_v27  ;;  %v841_v34 = vadd.f32 %v838_v21, %v829_v28  ;;  %v979_v17 = vperm.slane %v973_v9, 0  ;;  %v1300_v28 = vld [vmem:[#allocation8 + $0x7e8] sm:$0xff]  ;;  %v1210_v9 = vld [vmem:[#allocation8 + $0x518] sm:$0xff] }
  0xf7   : > { %v840_v39 = vadd.f32 %v837_v23, %v828_v30  ;;  %v844_v43 = vmax.f32 %v841_v34, 0.0  ;;  %v1138_v34 = vld [vmem:[#allocation8 + $0x2d8] sm:$0xff] }
  0xf9   : > { %v917_v40 = vpop.f32.mrf.mxu3  ;;  %v843_v45 = vmax.f32 %v840_v39, 0.0  ;;  %6886 = vst [vmem:[%s8363_s24 + $0x8] sm:$0xff] %v844_v43  ;;  %v1228_v43 = vld [vmem:[#allocation8 + $0x5a8] sm:$0xff] }
  0xfa   : > { %v980_v44 = vmul.f32 %v977_v29, %v917_v40  ;;  %v1132_v40 = vld [vmem:[#allocation8 + $0x2a8] sm:$0xff] }
  0xfb   : > { %6885 = vst [vmem:[%s8363_s24] sm:$0xff] %v843_v45 }
  0xfc   : > { %v995_v46 = vadd.f32 %v992_v38, %v980_v44 }
  0xfe   : > { %v8371_v49 = vmax.f32 %v995_v46, 0.0  ;;  %v1282_v46 = vld [vmem:[#allocation8 + $0x758] sm:$0xff] }
 0x100   : > { %7134 = vmatmul.msk.f32.vlgmr.msrb.gmra.mxu2 %vm8367_vm10, %v8371_v49  ;;  %v8380_v62 = vsel %vm8367_vm10, %v8371_v49, 0.0 }
 0x101   : > { %v920_v58 = vpop.f32.mrf.mxu3  ;;  %2071 = vmatpush.msrb.mxu2 %v1905_v52  ;;  %v1023_v1 = vrot.slane %v8380_v62, 1 }
 0x102   : > { %v983_v59 = vmul.f32 %v977_v29, %v920_v58  ;;  %v1839_v29 = vld [vmem:[#allocation8 + $0x18c0] sm:$0xff]  ;;  %v1222_v58 = vld [vmem:[#allocation8 + $0x578] sm:$0xff] }
 0x103   : > { %2072 = vmatpush.msrb.mxu2 %v1899_v57  ;;  %v1126_v57 = vld [vmem:[#allocation8 + $0x278] sm:$0xff] }
 0x104   : > { %v998_v61 = vadd.f32 %v992_v38, %v983_v59  ;;  %v1833_v38 = vld [vmem:[#allocation8 + $0x1890] sm:$0xff] }
 0x105   : > { %2073 = vmatpush.msrb.mxu2 %v1893_v60 }
 0x106   : > { %v1004_v63 = vmax.f32 %v998_v61, 0.0  ;;  %v1276_v61 = vld [vmem:[#allocation8 + $0x728] sm:$0xff] }
 0x107   : > { %2074 = vmatpush.msrb.mxu2 %v1887_v41  ;;  %v1035_v41 = vrot.slane %v8380_v62, 2 }
 0x108   : > { %v8389_v2 = vsel %vm8382_vm13, %v1004_v63, 0.0  ;;  %v1821_v63 = vld [vmem:[#allocation8 + $0x1830] sm:$0xff] }
 0x109   : > { %v1024_v4 = vrot.slane %v8389_v2, 1  ;;  %2075 = vmatpush.msrb.mxu2 %v1881_v0  ;;  %v1036_v59 = vrot.slane %v8389_v2, 2  ;;  %v1270_v2 = vld [vmem:[#allocation8 + $0x6f8] sm:$0xff] }
 0x10b   : > { %v8394_v8 = vsel %vm894_vm0, %v1023_v1, %v1024_v4  ;;  %2076 = vmatpush.msrb.mxu2 %v1875_v3  ;;  %v1120_v1 = vld [vmem:[#allocation8 + $0x248] sm:$0xff]  ;;  %v8423_v12 = vsel %vm752_vm1, %v1035_v41, %v1036_v59 }
 0x10c   : > { %1987 = vmatmul.f32.vlgmr.msra.gmra.mxu1 %v8394_v8  ;;  %v1216_v3 = vld [vmem:[#allocation8 + $0x548] sm:$0xff] }
 0x10d   : > { %2131 = vmatpush.msra.mxu1 %v1330_v5  ;;  %2077 = vmatpush.msrb.mxu2 %v1869_v7  ;;  %v1114_v7 = vld [vmem:[#allocation8 + $0x218] sm:$0xff]  ;;  %v1072_v41 = vld [vmem:[#allocation8 + $0xc8] sm:$0xff] }
 0x10f   : > { %2132 = vmatpush.msra.mxu1 %v1324_v10  ;;  %2078 = vmatpush.msrb.mxu2 %v1863_v13  ;;  %v1264_v13 = vld [vmem:[#allocation8 + $0x6c8] sm:$0xff] }
 0x111   : > { %2133 = vmatpush.msra.mxu1 %v1318_v37  ;;  %2079 = vmatpush.msrb.mxu2 %v1857_v16 }
 0x112   : > { %v940_v21 = vpop.f32.mrf.mxu0 }
 0x113   : > { %v981_v23 = vmul.f32 %v978_v15, %v940_v21  ;;  %v963_v24 = vpop.f32.mrf.mxu1  ;;  %2134 = vmatpush.msra.mxu1 %v1312_v19  ;;  %2080 = vmatpush.msrb.mxu2 %v1851_v20  ;;  %v1108_v19 = vld [vmem:[#allocation8 + $0x1e8] sm:$0xff] }
 0x114   : > { %v982_v27 = vmul.f32 %v979_v17, %v963_v24  ;;  %v1204_v20 = vld [vmem:[#allocation8 + $0x4e8] sm:$0xff] }
 0x115   : > { %v996_v11 = vadd.f32 %v993_v18, %v981_v23  ;;  %2135 = vmatpush.msra.mxu1 %v1306_v25  ;;  %2081 = vmatpush.msrb.mxu2 %v1845_v26  ;;  %v1258_v23 = vld [vmem:[#allocation8 + $0x698] sm:$0xff] }
 0x116   : > { %v997_v33 = vadd.f32 %v994_v22, %v982_v27  ;;  %v1102_v26 = vld [vmem:[#allocation8 + $0x1b8] sm:$0xff] }
 0x117   : > { %v8400_v30 = vmax.f32 %v996_v11, 0.0  ;;  %2136 = vmatpush.msra.mxu1 %v1300_v28  ;;  %2082 = vmatpush.msrb.mxu2 %v1839_v29  ;;  %v1198_v27 = vld [vmem:[#allocation8 + $0x4b8] sm:$0xff]  ;;  %v1252_v28 = vld [vmem:[#allocation8 + $0x668] sm:$0xff] }
 0x118   : > { %v8402_v32 = vmax.f32 %v997_v33, 0.0  ;;  %v1426_v11 = vld [vmem:[#allocation8 + $0xbd8] sm:$0xff]  ;;  %v1096_v33 = vld [vmem:[#allocation8 + $0x188] sm:$0xff] }
 0x119   : > { %7135 = vmatmul.msk.f32.vlgmr.msrb.gmra.mxu3 %vm8367_vm10, %v8400_v30  ;;  %2137 = vmatpush.msra.mxu1 %v1294_v31  ;;  %v1012_v4 = vsel %vm8367_vm10, %v8400_v30, 0.0  ;;  %v1192_v31 = vld [vmem:[#allocation8 + $0x488] sm:$0xff] }
 0x11a   : > { %7136 = vmatmul.msk.f32.vlgmr.msra.gmra.mxu0 %vm8367_vm10, %v8402_v32  ;;  %v943_v39 = vpop.f32.mrf.mxu0  ;;  %2091 = vmatpush.msrb.mxu3 %v1138_v34  ;;  %v8418_v6 = vsel %vm8367_vm10, %v8402_v32, 0.0  ;;  %v1026_v37 = vrot.slane %v1012_v4, 1  ;;  %v1420_v34 = vld [vmem:[#allocation8 + $0xba8] sm:$0xff] }
 0x11b   : > { %2111 = vmatpush.msra.mxu0 %v1234_v35  ;;  %v984_v44 = vmul.f32 %v978_v15, %v943_v39  ;;  %v966_v45 = vpop.f32.mrf.mxu1  ;;  %2138 = vmatpush.msra.mxu1 %v1288_v36  ;;  %v1038_v15 = vrot.slane %v1012_v4, 2  ;;  %v1029_v21 = vrot.slane %v8418_v6, 1  ;;  %v1246_v35 = vld [vmem:[#allocation8 + $0x638] sm:$0xff] }
 0x11c   : > { %v985_v52 = vmul.f32 %v979_v17, %v966_v45  ;;  %2083 = vmatpush.msrb.mxu2 %v1833_v38  ;;  %2092 = vmatpush.msrb.mxu3 %v1132_v40  ;;  %v1090_v36 = vld [vmem:[#allocation8 + $0x158] sm:$0xff]  ;;  %v1240_v40 = vld [vmem:[#allocation8 + $0x608] sm:$0xff] }
 0x11d   : > { %v999_v60 = vadd.f32 %v993_v18, %v984_v44  ;;  %2112 = vmatpush.msra.mxu0 %v1228_v43  ;;  %2139 = vmatpush.msra.mxu1 %v1282_v46  ;;  %v1186_v38 = vld [vmem:[#allocation8 + $0x458] sm:$0xff]  ;;  %v1084_v44 = vld [vmem:[#allocation8 + $0x128] sm:$0xff]  ;;  %v1041_v46 = vrot.slane %v8418_v6, 2 }
 0x11e   : > { %v1000_v0 = vadd.f32 %v994_v22, %v985_v52  ;;  %2084 = vmatpush.msrb.mxu2 %v1827_v51  ;;  %2093 = vmatpush.msrb.mxu3 %v1126_v57  ;;  %v1414_v39 = vld [vmem:[#allocation8 + $0xb78] sm:$0xff]  ;;  %v1180_v45 = vld [vmem:[#allocation8 + $0x428] sm:$0xff] }
 0x11f   : > { %v1005_v5 = vmax.f32 %v999_v60, 0.0  ;;  %2113 = vmatpush.msra.mxu0 %v1222_v58  ;;  %2140 = vmatpush.msra.mxu1 %v1276_v61  ;;  %v1408_v51 = vld [vmem:[#allocation8 + $0xb48] sm:$0xff]  ;;  %v1714_v52 = vld [vmem:[#allocation8 + $0x14d8] sm:$0xff] }
 0x120   : > { %v1006_v62 = vmax.f32 %v1000_v0, 0.0  ;;  %2085 = vmatpush.msrb.mxu2 %v1821_v63  ;;  %2094 = vmatpush.msrb.mxu3 %v1120_v1  ;;  %v1078_v57 = vld [vmem:[#allocation8 + $0xf8] sm:$0xff]  ;;  %v1708_v61 = vld [vmem:[#allocation8 + $0x14a8] sm:$0xff] }
 0x121   : > { %v1015_v10 = vsel %vm8382_vm13, %v1005_v5, 0.0  ;;  %2114 = vmatpush.msra.mxu0 %v1216_v3  ;;  %2141 = vmatpush.msra.mxu1 %v1270_v2  ;;  %v1174_v58 = vld [vmem:[#allocation8 + $0x3f8] sm:$0xff]  ;;  %v1168_v63 = vld [vmem:[#allocation8 + $0x3c8] sm:$0xff] }
 0x122   : > { %v1027_v16 = vrot.slane %v1015_v10, 1  ;;  %v1039_v17 = vrot.slane %v1015_v10, 2  ;;  %v1016_v18 = vsel %vm8382_vm13, %v1006_v62, 0.0  ;;  %2047 = vmatmul.f32.vlgmr.msrb.gmra.mxu0 %v8423_v12  ;;  %2095 = vmatpush.msrb.mxu3 %v1114_v7  ;;  %v1402_v60 = vld [vmem:[#allocation8 + $0xb18] sm:$0xff]  ;;  %v1396_v0 = vld [vmem:[#allocation8 + $0xae8] sm:$0xff] }
 0x123   : > { %v1030_v22 = vrot.slane %v1016_v18, 1  ;;  %2115 = vmatpush.msra.mxu0 %v1210_v9  ;;  %2142 = vmatpush.msra.mxu1 %v1264_v13  ;;  %v1042_v43 = vrot.slane %v1016_v18, 2  ;;  %v1702_v1 = vld [vmem:[#allocation8 + $0x1478] sm:$0xff]  ;;  %v1696_v2 = vld [vmem:[#allocation8 + $0x1448] sm:$0xff] }
 0x124   : > { %2086 = vmatpush.msrb.mxu2 %v1815_v14  ;;  %v8430_v24 = vsel %vm894_vm0, %v1026_v37, %v1027_v16  ;;  %v8433_v25 = vsel %vm752_vm1, %v1038_v15, %v1039_v17  ;;  %2096 = vmatpush.msrb.mxu3 %v1108_v19  ;;  %v1066_v3 = vld [vmem:[#allocation8 + $0x98] sm:$0xff]  ;;  %v1060_v6 = vld [vmem:[#allocation8 + $0x68] sm:$0xff] }
 0x125   : > { %2116 = vmatpush.msra.mxu0 %v1204_v20  ;;  %2143 = vmatpush.msra.mxu1 %v1258_v23  ;;  %v8437_v29 = vsel %vm894_vm0, %v1029_v21, %v1030_v22  ;;  %v8443_v59 = vsel %vm752_vm1, %v1041_v46, %v1042_v43  ;;  %v1162_v4 = vld [vmem:[#allocation8 + $0x398] sm:$0xff]  ;;  %v1156_v62 = vld [vmem:[#allocation8 + $0x368] sm:$0xff] }
 0x126   : > { %2007 = vmatmul.f32.vlgmr.msra.gmra.mxu2 %v8430_v24  ;;  %2067 = vmatmul.f32.vlgmr.msrb.gmra.mxu1 %v8433_v25  ;;  %v1390_v5 = vld [vmem:[#allocation8 + $0xab8] sm:$0xff]  ;;  %v1384_v7 = vld [vmem:[#allocation8 + $0xa88] sm:$0xff] }
 0x127   : > { %2097 = vmatpush.msrb.mxu3 %v1102_v26  ;;  %2117 = vmatpush.msra.mxu0 %v1198_v27  ;;  %v1690_v9 = vld [vmem:[#allocation8 + $0x1418] sm:$0xff]  ;;  %v1684_v37 = vld [vmem:[#allocation8 + $0x13e8] sm:$0xff] }
 0x128   : > { %2151 = vmatpush.msra.mxu2 %v1426_v11  ;;  %2144 = vmatpush.msra.mxu1 %v1252_v28  ;;  %v1054_v10 = vld [vmem:[#allocation8 + $0x38] sm:$0xff]  ;;  %v1048_v15 = vld [vmem:[#allocation8 + $0x8] sm:$0xff] }
 0x129   : > { %2027 = vmatmul.f32.vlgmr.msra.gmra.mxu3 %v8437_v29  ;;  %2118 = vmatpush.msra.mxu0 %v1192_v31  ;;  %v1150_v13 = vld [vmem:[#allocation8 + $0x338] sm:$0xff]  ;;  %v1144_v16 = vld [vmem:[#allocation8 + $0x308] sm:$0xff] }
 0x12a   : > { %2098 = vmatpush.msrb.mxu3 %v1096_v33  ;;  %2152 = vmatpush.msra.mxu2 %v1420_v34  ;;  %v1378_v14 = vld [vmem:[#allocation8 + $0xa58] sm:$0xff]  ;;  %v1372_v17 = vld [vmem:[#allocation8 + $0xa28] sm:$0xff] }
 0x12b   : > { %2145 = vmatpush.msra.mxu1 %v1246_v35  ;;  %2119 = vmatpush.msra.mxu0 %v1186_v38  ;;  %v1678_v18 = vld [vmem:[#allocation8 + $0x13b8] sm:$0xff]  ;;  %v1672_v22 = vld [vmem:[#allocation8 + $0x1388] sm:$0xff] }
 0x12c   : > { %2099 = vmatpush.msrb.mxu3 %v1090_v36  ;;  %2153 = vmatpush.msra.mxu2 %v1414_v39  ;;  %v1522_v19 = vld [vmem:[#allocation8 + $0xed8] sm:$0xff]  ;;  %v1516_v23 = vld [vmem:[#allocation8 + $0xea8] sm:$0xff] }
 0x12d   : > { %2146 = vmatpush.msra.mxu1 %v1240_v40  ;;  %2120 = vmatpush.msra.mxu0 %v1180_v45  ;;  %v1618_v20 = vld [vmem:[#allocation8 + $0x11d8] sm:$0xff]  ;;  %v1612_v26 = vld [vmem:[#allocation8 + $0x11a8] sm:$0xff] }
 0x12e   : > { %2100 = vmatpush.msrb.mxu3 %v1084_v44  ;;  %2154 = vmatpush.msra.mxu2 %v1408_v51  ;;  %v1366_v21 = vld [vmem:[#allocation8 + $0x9f8] sm:$0xff]  ;;  %v1360_v27 = vld [vmem:[#allocation8 + $0x9c8] sm:$0xff] }
 0x12f   : > { %2211 = vmatpush.msrb.mxu1 %v1714_v52  ;;  %2087 = vmatmul.f32.vlgmr.msrb.gmra.mxu2 %v8443_v59  ;;  %v1666_v11 = vld [vmem:[#allocation8 + $0x1358] sm:$0xff]  ;;  %v1660_v34 = vld [vmem:[#allocation8 + $0x1328] sm:$0xff] }
 0x130   : > { %2101 = vmatpush.msrb.mxu3 %v1078_v57  ;;  %2121 = vmatpush.msra.mxu0 %v1174_v58  ;;  %v1510_v28 = vld [vmem:[#allocation8 + $0xe78] sm:$0xff]  ;;  %v1504_v35 = vld [vmem:[#allocation8 + $0xe48] sm:$0xff] }
 0x131   : > { %7139 = vmatmul.msk.f32.vlgmr.msra.gmra.mxu1 %vm8367_vm10, %v8402_v32  ;;  %2155 = vmatpush.msra.mxu2 %v1402_v60  ;;  %v1606_v33 = vld [vmem:[#allocation8 + $0x1178] sm:$0xff]  ;;  %v1600_v36 = vld [vmem:[#allocation8 + $0x1148] sm:$0xff] }
 0x132   : > { %2212 = vmatpush.msrb.mxu1 %v1708_v61  ;;  %2102 = vmatpush.msrb.mxu3 %v1072_v41  ;;  %v1354_v31 = vld [vmem:[#allocation8 + $0x998] sm:$0xff]  ;;  %v1348_v38 = vld [vmem:[#allocation8 + $0x968] sm:$0xff] }
 0x133   : > { %2122 = vmatpush.msra.mxu0 %v1168_v63  ;;  %2156 = vmatpush.msra.mxu2 %v1396_v0  ;;  %v1654_v39 = vld [vmem:[#allocation8 + $0x12f8] sm:$0xff]  ;;  %v1648_v45 = vld [vmem:[#allocation8 + $0x12c8] sm:$0xff] }
 0x134   : > { %2213 = vmatpush.msrb.mxu1 %v1702_v1  ;;  %2103 = vmatpush.msrb.mxu3 %v1066_v3  ;;  %v1498_v40 = vld [vmem:[#allocation8 + $0xe18] sm:$0xff]  ;;  %v1492_v46 = vld [vmem:[#allocation8 + $0xde8] sm:$0xff] }
 0x135   : > { %2123 = vmatpush.msra.mxu0 %v1162_v4  ;;  %2157 = vmatpush.msra.mxu2 %v1390_v5  ;;  %v1594_v43 = vld [vmem:[#allocation8 + $0x1118] sm:$0xff]  ;;  %v1588_v51 = vld [vmem:[#allocation8 + $0x10e8] sm:$0xff] }
 0x136   : > { %2214 = vmatpush.msrb.mxu1 %v1696_v2  ;;  %2104 = vmatpush.msrb.mxu3 %v1060_v6  ;;  %v1342_v44 = vld [vmem:[#allocation8 + $0x938] sm:$0xff]  ;;  %v1336_v52 = vld [vmem:[#allocation8 + $0x908] sm:$0xff] }
 0x137   : > { %2124 = vmatpush.msra.mxu0 %v1156_v62  ;;  %2158 = vmatpush.msra.mxu2 %v1384_v7  ;;  %v1642_v57 = vld [vmem:[#allocation8 + $0x1298] sm:$0xff]  ;;  %v1636_v41 = vld [vmem:[#allocation8 + $0x1268] sm:$0xff] }
 0x138   : > { %2215 = vmatpush.msrb.mxu1 %v1690_v9  ;;  %2105 = vmatpush.msrb.mxu3 %v1054_v10  ;;  %v1486_v58 = vld [vmem:[#allocation8 + $0xdb8] sm:$0xff]  ;;  %v1480_v63 = vld [vmem:[#allocation8 + $0xd88] sm:$0xff]  ;;  %v1235_v10 = vld [vmem:[#allocation8 + $0x5e0] sm:$0xff] }
 0x139   : > { %2125 = vmatpush.msra.mxu0 %v1150_v13  ;;  %2159 = vmatpush.msra.mxu2 %v1378_v14  ;;  %v1582_v60 = vld [vmem:[#allocation8 + $0x10b8] sm:$0xff]  ;;  %v1576_v0 = vld [vmem:[#allocation8 + $0x1088] sm:$0xff] }
 0x13a   : > { %2216 = vmatpush.msrb.mxu1 %v1684_v37  ;;  %2106 = vmatpush.msrb.mxu3 %v1048_v15  ;;  %v1810_v61 = vld [vmem:[#allocation8 + $0x17d8] sm:$0xff]  ;;  %v1804_v1 = vld [vmem:[#allocation8 + $0x17a8] sm:$0xff]  ;;  %v1229_v15 = vld [vmem:[#allocation8 + $0x5b0] sm:$0xff] }
 0x13b   : > { %2126 = vmatpush.msra.mxu0 %v1144_v16  ;;  %2160 = vmatpush.msra.mxu2 %v1372_v17  ;;  %v1630_v3 = vld [vmem:[#allocation8 + $0x1238] sm:$0xff]  ;;  %v1624_v6 = vld [vmem:[#allocation8 + $0x1208] sm:$0xff] }
 0x13c   : > { %2217 = vmatpush.msrb.mxu1 %v1678_v18  ;;  %7137 = vmatmul.msk.f32.vlgmr.msrb.gmra.mxu3 %vm8367_vm10, %v8371_v49  ;;  %v1474_v4 = vld [vmem:[#allocation8 + $0xd58] sm:$0xff]  ;;  %v1468_v62 = vld [vmem:[#allocation8 + $0xd28] sm:$0xff] }
 0x13d   : > { %7138 = vmatmul.msk.f32.vlgmr.msra.gmra.mxu0 %vm8367_vm10, %v8400_v30  ;;  %2171 = vmatpush.msra.mxu3 %v1522_v19  ;;  %v1570_v5 = vld [vmem:[#allocation8 + $0x1058] sm:$0xff]  ;;  %v1564_v7 = vld [vmem:[#allocation8 + $0x1028] sm:$0xff]  ;;  %v1223_v19 = vld [vmem:[#allocation8 + $0x580] sm:$0xff] }
 0x13e   : > { %2191 = vmatpush.msrb.mxu0 %v1618_v20  ;;  %2161 = vmatpush.msra.mxu2 %v1366_v21  ;;  %v1798_v2 = vld [vmem:[#allocation8 + $0x1778] sm:$0xff]  ;;  %v1792_v9 = vld [vmem:[#allocation8 + $0x1748] sm:$0xff] }
 0x13f   : > { %2218 = vmatpush.msrb.mxu1 %v1672_v22  ;;  %2172 = vmatpush.msra.mxu3 %v1516_v23  ;;  %v1462_v13 = vld [vmem:[#allocation8 + $0xcf8] sm:$0xff]  ;;  %v1456_v16 = vld [vmem:[#allocation8 + $0xcc8] sm:$0xff]  ;;  %v1217_v23 = vld [vmem:[#allocation8 + $0x550] sm:$0xff] }
 0x140   : > { %2192 = vmatpush.msrb.mxu0 %v1612_v26  ;;  %2162 = vmatpush.msra.mxu2 %v1360_v27  ;;  %v1558_v14 = vld [vmem:[#allocation8 + $0xff8] sm:$0xff]  ;;  %v1552_v17 = vld [vmem:[#allocation8 + $0xfc8] sm:$0xff] }
 0x141   : > { %2219 = vmatpush.msrb.mxu1 %v1666_v11  ;;  %2173 = vmatpush.msra.mxu3 %v1510_v28  ;;  %v1786_v37 = vld [vmem:[#allocation8 + $0x1718] sm:$0xff]  ;;  %v1780_v18 = vld [vmem:[#allocation8 + $0x16e8] sm:$0xff]  ;;  %v1211_v28 = vld [vmem:[#allocation8 + $0x520] sm:$0xff] }
 0x142   : > { %2193 = vmatpush.msrb.mxu0 %v1606_v33  ;;  %2163 = vmatpush.msra.mxu2 %v1354_v31  ;;  %v1450_v20 = vld [vmem:[#allocation8 + $0xc98] sm:$0xff]  ;;  %v1444_v26 = vld [vmem:[#allocation8 + $0xc68] sm:$0xff] }
 0x143   : > { %2220 = vmatpush.msrb.mxu1 %v1660_v34  ;;  %2174 = vmatpush.msra.mxu3 %v1504_v35  ;;  %v1546_v21 = vld [vmem:[#allocation8 + $0xf98] sm:$0xff]  ;;  %v1540_v27 = vld [vmem:[#allocation8 + $0xf68] sm:$0xff]  ;;  %v1205_v35 = vld [vmem:[#allocation8 + $0x4f0] sm:$0xff] }
 0x144   : > { %2194 = vmatpush.msrb.mxu0 %v1600_v36  ;;  %2164 = vmatpush.msra.mxu2 %v1348_v38  ;;  %v1774_v22 = vld [vmem:[#allocation8 + $0x16b8] sm:$0xff]  ;;  %v1768_v11 = vld [vmem:[#allocation8 + $0x1688] sm:$0xff] }
 0x145   : > { %2221 = vmatpush.msrb.mxu1 %v1654_v39  ;;  %2175 = vmatpush.msra.mxu3 %v1498_v40  ;;  %v1438_v33 = vld [vmem:[#allocation8 + $0xc38] sm:$0xff]  ;;  %v1432_v36 = vld [vmem:[#allocation8 + $0xc08] sm:$0xff]  ;;  %v1199_v40 = vld [vmem:[#allocation8 + $0x4c0] sm:$0xff] }
 0x146   : > { %2195 = vmatpush.msrb.mxu0 %v1594_v43  ;;  %2165 = vmatpush.msra.mxu2 %v1342_v44  ;;  %v1534_v31 = vld [vmem:[#allocation8 + $0xf38] sm:$0xff]  ;;  %v1528_v38 = vld [vmem:[#allocation8 + $0xf08] sm:$0xff]  ;;  %v1139_v44 = vld [vmem:[#allocation8 + $0x2e0] sm:$0xff] }
 0x147   : > { %2222 = vmatpush.msrb.mxu1 %v1648_v45  ;;  %2176 = vmatpush.msra.mxu3 %v1492_v46  ;;  %v1762_v34 = vld [vmem:[#allocation8 + $0x1658] sm:$0xff]  ;;  %v1756_v39 = vld [vmem:[#allocation8 + $0x1628] sm:$0xff]  ;;  %v1193_v46 = vld [vmem:[#allocation8 + $0x490] sm:$0xff] }
 0x148   : > { %2196 = vmatpush.msrb.mxu0 %v1588_v51  ;;  %2166 = vmatpush.msra.mxu2 %v1336_v52  ;;  %v1906_v43 = vld [vmem:[#allocation8 + $0x1ad8] sm:$0xff]  ;;  %v1900_v51 = vld [vmem:[#allocation8 + $0x1aa8] sm:$0xff]  ;;  %v1133_v52 = vld [vmem:[#allocation8 + $0x2b0] sm:$0xff] }
 0x149   : > { %2223 = vmatpush.msrb.mxu1 %v1642_v57  ;;  %2167 = vmatmul.f32.vlgmr.msra.gmra.mxu2 %v8394_v8  ;;  %v1750_v45 = vld [vmem:[#allocation8 + $0x15f8] sm:$0xff]  ;;  %v1744_v57 = vld [vmem:[#allocation8 + $0x15c8] sm:$0xff] }
 0x14a   : > { %2177 = vmatpush.msra.mxu3 %v1486_v58  ;;  %2197 = vmatpush.msrb.mxu0 %v1582_v60  ;;  %v1187_v58 = vld [vmem:[#allocation8 + $0x460] sm:$0xff]  ;;  %v1894_v60 = vld [vmem:[#allocation8 + $0x1a78] sm:$0xff] }
 0x14b   : > { %2231 = vmatpush.msrb.mxu2 %v1810_v61  ;;  %2224 = vmatpush.msrb.mxu1 %v1636_v41  ;;  %v1127_v61 = vld [vmem:[#allocation8 + $0x280] sm:$0xff]  ;;  %v1738_v41 = vld [vmem:[#allocation8 + $0x1598] sm:$0xff] }
 0x14c   : > { %2178 = vmatpush.msra.mxu3 %v1480_v63  ;;  %2198 = vmatpush.msrb.mxu0 %v1576_v0  ;;  %v1181_v63 = vld [vmem:[#allocation8 + $0x430] sm:$0xff]  ;;  %v1888_v0 = vld [vmem:[#allocation8 + $0x1a48] sm:$0xff] }
 0x14d   : > { %2232 = vmatpush.msrb.mxu2 %v1804_v1  ;;  %2225 = vmatpush.msrb.mxu1 %v1630_v3  ;;  %v1121_v1 = vld [vmem:[#allocation8 + $0x250] sm:$0xff]  ;;  %v1732_v3 = vld [vmem:[#allocation8 + $0x1568] sm:$0xff] }
 0x14e   : > { %2179 = vmatpush.msra.mxu3 %v1474_v4  ;;  %2199 = vmatpush.msrb.mxu0 %v1570_v5  ;;  %v1175_v4 = vld [vmem:[#allocation8 + $0x400] sm:$0xff]  ;;  %v1882_v5 = vld [vmem:[#allocation8 + $0x1a18] sm:$0xff] }
 0x14f   : > { %2233 = vmatpush.msrb.mxu2 %v1798_v2  ;;  %2226 = vmatpush.msrb.mxu1 %v1624_v6  ;;  %v1115_v2 = vld [vmem:[#allocation8 + $0x220] sm:$0xff]  ;;  %v1726_v6 = vld [vmem:[#allocation8 + $0x1538] sm:$0xff] }
 0x150   : > { %2180 = vmatpush.msra.mxu3 %v1468_v62  ;;  %2200 = vmatpush.msrb.mxu0 %v1564_v7  ;;  %v1169_v62 = vld [vmem:[#allocation8 + $0x3d0] sm:$0xff]  ;;  %v1876_v7 = vld [vmem:[#allocation8 + $0x19e8] sm:$0xff] }
 0x151   : > { %2227 = vmatmul.f32.vlgmr.msrb.gmra.mxu1 %v8423_v12  ;;  %2234 = vmatpush.msrb.mxu2 %v1792_v9  ;;  %v1109_v9 = vld [vmem:[#allocation8 + $0x1f0] sm:$0xff] }
 0x152   : > { %2291 = vmatpush.msra.mxu1 %v1235_v10  ;;  %2181 = vmatpush.msra.mxu3 %v1462_v13  ;;  %v1720_v10 = vld [vmem:[#allocation8 + $0x1508] sm:$0xff]  ;;  %v1163_v13 = vld [vmem:[#allocation8 + $0x3a0] sm:$0xff] }
 0x153   : > { %2201 = vmatpush.msrb.mxu0 %v1558_v14  ;;  %2235 = vmatpush.msrb.mxu2 %v1786_v37  ;;  %v1870_v14 = vld [vmem:[#allocation8 + $0x19b8] sm:$0xff]  ;;  %v1103_v37 = vld [vmem:[#allocation8 + $0x1c0] sm:$0xff] }
 0x154   : > { %2292 = vmatpush.msra.mxu1 %v1229_v15  ;;  %2182 = vmatpush.msra.mxu3 %v1456_v16  ;;  %v1331_v15 = vld [vmem:[#allocation8 + $0x8e0] sm:$0xff]  ;;  %v1157_v16 = vld [vmem:[#allocation8 + $0x370] sm:$0xff] }
 0x155   : > { %2202 = vmatpush.msrb.mxu0 %v1552_v17  ;;  %2236 = vmatpush.msrb.mxu2 %v1780_v18  ;;  %v1864_v17 = vld [vmem:[#allocation8 + $0x1988] sm:$0xff]  ;;  %v1097_v18 = vld [vmem:[#allocation8 + $0x190] sm:$0xff] }
 0x156   : > { %2293 = vmatpush.msra.mxu1 %v1223_v19  ;;  %2183 = vmatpush.msra.mxu3 %v1450_v20  ;;  %v1325_v19 = vld [vmem:[#allocation8 + $0x8b0] sm:$0xff]  ;;  %v1151_v20 = vld [vmem:[#allocation8 + $0x340] sm:$0xff] }
 0x157   : > { %2203 = vmatpush.msrb.mxu0 %v1546_v21  ;;  %2237 = vmatpush.msrb.mxu2 %v1774_v22  ;;  %v1858_v21 = vld [vmem:[#allocation8 + $0x1958] sm:$0xff]  ;;  %v1091_v22 = vld [vmem:[#allocation8 + $0x160] sm:$0xff] }
 0x158   : > { %2294 = vmatpush.msra.mxu1 %v1217_v23  ;;  %2184 = vmatpush.msra.mxu3 %v1444_v26  ;;  %v1319_v23 = vld [vmem:[#allocation8 + $0x880] sm:$0xff]  ;;  %v1145_v26 = vld [vmem:[#allocation8 + $0x310] sm:$0xff] }
 0x159   : > { %2204 = vmatpush.msrb.mxu0 %v1540_v27  ;;  %2238 = vmatpush.msrb.mxu2 %v1768_v11  ;;  %v1852_v27 = vld [vmem:[#allocation8 + $0x1928] sm:$0xff]  ;;  %v1085_v11 = vld [vmem:[#allocation8 + $0x130] sm:$0xff] }
 0x15a   : > { %2295 = vmatpush.msra.mxu1 %v1211_v28  ;;  %2185 = vmatpush.msra.mxu3 %v1438_v33  ;;  %v1313_v28 = vld [vmem:[#allocation8 + $0x850] sm:$0xff]  ;;  %v1619_v33 = vld [vmem:[#allocation8 + $0x11e0] sm:$0xff] }
 0x15b   : > { %2205 = vmatpush.msrb.mxu0 %v1534_v31  ;;  %2239 = vmatpush.msrb.mxu2 %v1762_v34  ;;  %v1846_v31 = vld [vmem:[#allocation8 + $0x18f8] sm:$0xff]  ;;  %v1079_v34 = vld [vmem:[#allocation8 + $0x100] sm:$0xff] }
 0x15c   : > { %2296 = vmatpush.msra.mxu1 %v1205_v35  ;;  %2186 = vmatpush.msra.mxu3 %v1432_v36  ;;  %v1307_v35 = vld [vmem:[#allocation8 + $0x820] sm:$0xff]  ;;  %v1613_v36 = vld [vmem:[#allocation8 + $0x11b0] sm:$0xff] }
 0x15d   : > { %2206 = vmatpush.msrb.mxu0 %v1528_v38  ;;  %2240 = vmatpush.msrb.mxu2 %v1756_v39  ;;  %v1840_v38 = vld [vmem:[#allocation8 + $0x18c8] sm:$0xff]  ;;  %v1073_v39 = vld [vmem:[#allocation8 + $0xd0] sm:$0xff] }
 0x15e   : > { %2297 = vmatpush.msra.mxu1 %v1199_v40  ;;  %2187 = vmatmul.f32.vlgmr.msra.gmra.mxu3 %v8430_v24  ;;  %v1301_v40 = vld [vmem:[#allocation8 + $0x7f0] sm:$0xff] }
 0x15f   : > { %2207 = vmatmul.f32.vlgmr.msrb.gmra.mxu0 %v8437_v29  ;;  %2251 = vmatpush.msrb.mxu3 %v1906_v43  ;;  %v1607_v43 = vld [vmem:[#allocation8 + $0x1180] sm:$0xff] }
 0x160   : > { %2271 = vmatpush.msra.mxu0 %v1139_v44  ;;  %2241 = vmatpush.msrb.mxu2 %v1750_v45  ;;  %v1834_v44 = vld [vmem:[#allocation8 + $0x1898] sm:$0xff]  ;;  %v1067_v45 = vld [vmem:[#allocation8 + $0xa0] sm:$0xff] }
 0x161   : > { %2298 = vmatpush.msra.mxu1 %v1193_v46  ;;  %2252 = vmatpush.msrb.mxu3 %v1900_v51  ;;  %v1295_v46 = vld [vmem:[#allocation8 + $0x7c0] sm:$0xff]  ;;  %v1601_v51 = vld [vmem:[#allocation8 + $0x1150] sm:$0xff] }
 0x162   : > { %2272 = vmatpush.msra.mxu0 %v1133_v52  ;;  %2242 = vmatpush.msrb.mxu2 %v1744_v57  ;;  %v1828_v52 = vld [vmem:[#allocation8 + $0x1868] sm:$0xff]  ;;  %v1061_v57 = vld [vmem:[#allocation8 + $0x70] sm:$0xff] }
 0x163   : > { %2299 = vmatpush.msra.mxu1 %v1187_v58  ;;  %2253 = vmatpush.msrb.mxu3 %v1894_v60  ;;  %v1289_v58 = vld [vmem:[#allocation8 + $0x790] sm:$0xff]  ;;  %v1595_v60 = vld [vmem:[#allocation8 + $0x1120] sm:$0xff] }
 0x164   : > { %2273 = vmatpush.msra.mxu0 %v1127_v61  ;;  %2243 = vmatpush.msrb.mxu2 %v1738_v41  ;;  %v1822_v61 = vld [vmem:[#allocation8 + $0x1838] sm:$0xff]  ;;  %v1055_v41 = vld [vmem:[#allocation8 + $0x40] sm:$0xff] }
 0x165   : > { %2300 = vmatpush.msra.mxu1 %v1181_v63  ;;  %2254 = vmatpush.msrb.mxu3 %v1888_v0  ;;  %v1283_v63 = vld [vmem:[#allocation8 + $0x760] sm:$0xff]  ;;  %v1589_v0 = vld [vmem:[#allocation8 + $0x10f0] sm:$0xff] }
 0x166   : > { %2274 = vmatpush.msra.mxu0 %v1121_v1  ;;  %2244 = vmatpush.msrb.mxu2 %v1732_v3  ;;  %v1816_v1 = vld [vmem:[#allocation8 + $0x1808] sm:$0xff]  ;;  %v1049_v3 = vld [vmem:[#allocation8 + $0x10] sm:$0xff] }
 0x167   : > { %2301 = vmatpush.msra.mxu1 %v1175_v4  ;;  %2255 = vmatpush.msrb.mxu3 %v1882_v5  ;;  %v1277_v4 = vld [vmem:[#allocation8 + $0x730] sm:$0xff]  ;;  %v1583_v5 = vld [vmem:[#allocation8 + $0x10c0] sm:$0xff] }
 0x168   : > { %2275 = vmatpush.msra.mxu0 %v1115_v2  ;;  %2245 = vmatpush.msrb.mxu2 %v1726_v6  ;;  %v1427_v2 = vld [vmem:[#allocation8 + $0xbe0] sm:$0xff] }
 0x169   : > { %2302 = vmatpush.msra.mxu1 %v1169_v62  ;;  %2256 = vmatpush.msrb.mxu3 %v1876_v7  ;;  %v1523_v6 = vld [vmem:[#allocation8 + $0xee0] sm:$0xff]  ;;  %v1577_v7 = vld [vmem:[#allocation8 + $0x1090] sm:$0xff] }
 0x16a   : > { %2276 = vmatpush.msra.mxu0 %v1109_v9  ;;  %2246 = vmatpush.msrb.mxu2 %v1720_v10  ;;  %v1271_v62 = vld [vmem:[#allocation8 + $0x700] sm:$0xff]  ;;  %v1421_v9 = vld [vmem:[#allocation8 + $0xbb0] sm:$0xff] }
 0x16b   : > { %2303 = vmatpush.msra.mxu1 %v1163_v13  ;;  %2247 = vmatmul.f32.vlgmr.msrb.gmra.mxu2 %v8433_v25  ;;  %v1517_v10 = vld [vmem:[#allocation8 + $0xeb0] sm:$0xff] }
 0x16c   : > { %2257 = vmatpush.msrb.mxu3 %v1870_v14  ;;  %2277 = vmatpush.msra.mxu0 %v1103_v37  ;;  %v1265_v13 = vld [vmem:[#allocation8 + $0x6d0] sm:$0xff]  ;;  %v1571_v14 = vld [vmem:[#allocation8 + $0x1060] sm:$0xff] }
 0x16d   : > { %2311 = vmatpush.msra.mxu2 %v1331_v15  ;;  %2304 = vmatpush.msra.mxu1 %v1157_v16  ;;  %v1415_v37 = vld [vmem:[#allocation8 + $0xb80] sm:$0xff] }
 0x16e   : > { %2258 = vmatpush.msrb.mxu3 %v1864_v17  ;;  %2278 = vmatpush.msra.mxu0 %v1097_v18  ;;  %v1511_v15 = vld [vmem:[#allocation8 + $0xe80] sm:$0xff]  ;;  %v1565_v17 = vld [vmem:[#allocation8 + $0x1030] sm:$0xff] }
 0x16f   : > { %2312 = vmatpush.msra.mxu2 %v1325_v19  ;;  %2305 = vmatpush.msra.mxu1 %v1151_v20  ;;  %v1259_v16 = vld [vmem:[#allocation8 + $0x6a0] sm:$0xff]  ;;  %v1409_v18 = vld [vmem:[#allocation8 + $0xb50] sm:$0xff] }
 0x170   : > { %2259 = vmatpush.msrb.mxu3 %v1858_v21  ;;  %2279 = vmatpush.msra.mxu0 %v1091_v22  ;;  %v1505_v19 = vld [vmem:[#allocation8 + $0xe50] sm:$0xff]  ;;  %v1559_v21 = vld [vmem:[#allocation8 + $0x1000] sm:$0xff] }
 0x171   : > { %2313 = vmatpush.msra.mxu2 %v1319_v23  ;;  %2306 = vmatpush.msra.mxu1 %v1145_v26  ;;  %v1253_v20 = vld [vmem:[#allocation8 + $0x670] sm:$0xff]  ;;  %v1403_v22 = vld [vmem:[#allocation8 + $0xb20] sm:$0xff] }
 0x172   : > { %2260 = vmatpush.msrb.mxu3 %v1852_v27  ;;  %2280 = vmatpush.msra.mxu0 %v1085_v11  ;;  %v1499_v23 = vld [vmem:[#allocation8 + $0xe20] sm:$0xff]  ;;  %v1553_v27 = vld [vmem:[#allocation8 + $0xfd0] sm:$0xff] }
 0x173   : > { %7141 = vmatmul.msk.f32.vlgmr.msra.gmra.mxu1 %vm8367_vm10, %v8400_v30  ;;  %2314 = vmatpush.msra.mxu2 %v1313_v28  ;;  %v1247_v26 = vld [vmem:[#allocation8 + $0x640] sm:$0xff]  ;;  %v1397_v11 = vld [vmem:[#allocation8 + $0xaf0] sm:$0xff] }
 0x174   : > { %2371 = vmatpush.msrb.mxu1 %v1619_v33  ;;  %2261 = vmatpush.msrb.mxu3 %v1846_v31  ;;  %v1493_v28 = vld [vmem:[#allocation8 + $0xdf0] sm:$0xff]  ;;  %v1547_v31 = vld [vmem:[#allocation8 + $0xfa0] sm:$0xff] }
 0x175   : > { %2281 = vmatpush.msra.mxu0 %v1079_v34  ;;  %2315 = vmatpush.msra.mxu2 %v1307_v35  ;;  %v1241_v33 = vld [vmem:[#allocation8 + $0x610] sm:$0xff]  ;;  %v1391_v34 = vld [vmem:[#allocation8 + $0xac0] sm:$0xff] }
 0x176   : > { %2372 = vmatpush.msrb.mxu1 %v1613_v36  ;;  %2262 = vmatpush.msrb.mxu3 %v1840_v38  ;;  %v1487_v35 = vld [vmem:[#allocation8 + $0xdc0] sm:$0xff]  ;;  %v1541_v38 = vld [vmem:[#allocation8 + $0xf70] sm:$0xff] }
 0x177   : > { %2282 = vmatpush.msra.mxu0 %v1073_v39  ;;  %2316 = vmatpush.msra.mxu2 %v1301_v40  ;;  %v1715_v36 = vld [vmem:[#allocation8 + $0x14e0] sm:$0xff]  ;;  %v1385_v39 = vld [vmem:[#allocation8 + $0xa90] sm:$0xff] }
 0x178   : > { %2373 = vmatpush.msrb.mxu1 %v1607_v43  ;;  %2263 = vmatpush.msrb.mxu3 %v1834_v44  ;;  %v1481_v40 = vld [vmem:[#allocation8 + $0xd90] sm:$0xff]  ;;  %v1535_v44 = vld [vmem:[#allocation8 + $0xf40] sm:$0xff] }
 0x179   : > { %2283 = vmatpush.msra.mxu0 %v1067_v45  ;;  %2317 = vmatpush.msra.mxu2 %v1295_v46  ;;  %v1709_v43 = vld [vmem:[#allocation8 + $0x14b0] sm:$0xff]  ;;  %v1379_v45 = vld [vmem:[#allocation8 + $0xa60] sm:$0xff] }
 0x17a   : > { %2374 = vmatpush.msrb.mxu1 %v1601_v51  ;;  %2264 = vmatpush.msrb.mxu3 %v1828_v52  ;;  %v1475_v46 = vld [vmem:[#allocation8 + $0xd60] sm:$0xff]  ;;  %v1529_v52 = vld [vmem:[#allocation8 + $0xf10] sm:$0xff] }
 0x17b   : > { %2284 = vmatpush.msra.mxu0 %v1061_v57  ;;  %2318 = vmatpush.msra.mxu2 %v1289_v58  ;;  %v1703_v51 = vld [vmem:[#allocation8 + $0x1480] sm:$0xff]  ;;  %v1373_v57 = vld [vmem:[#allocation8 + $0xa30] sm:$0xff] }
 0x17c   : > { %2375 = vmatpush.msrb.mxu1 %v1595_v60  ;;  %2265 = vmatpush.msrb.mxu3 %v1822_v61  ;;  %v1469_v58 = vld [vmem:[#allocation8 + $0xd30] sm:$0xff]  ;;  %v1140_v61 = vld [vmem:[#allocation8 + $0x2e8] sm:$0xff] }
 0x17d   : > { %2285 = vmatpush.msra.mxu0 %v1055_v41  ;;  %2319 = vmatpush.msra.mxu2 %v1283_v63  ;;  %v1697_v60 = vld [vmem:[#allocation8 + $0x1450] sm:$0xff]  ;;  %v1367_v41 = vld [vmem:[#allocation8 + $0xa00] sm:$0xff] }
 0x17e   : > { %2376 = vmatpush.msrb.mxu1 %v1589_v0  ;;  %2266 = vmatpush.msrb.mxu3 %v1816_v1  ;;  %v1463_v63 = vld [vmem:[#allocation8 + $0xd00] sm:$0xff]  ;;  %v1134_v1 = vld [vmem:[#allocation8 + $0x2b8] sm:$0xff] }
 0x17f   : > { %2286 = vmatpush.msra.mxu0 %v1049_v3  ;;  %2320 = vmatpush.msra.mxu2 %v1277_v4  ;;  %v1691_v0 = vld [vmem:[#allocation8 + $0x1420] sm:$0xff]  ;;  %v1361_v3 = vld [vmem:[#allocation8 + $0x9d0] sm:$0xff] }
 0x180   : > { %2377 = vmatpush.msrb.mxu1 %v1583_v5  ;;  %2267 = vmatmul.f32.vlgmr.msrb.gmra.mxu3 %v8443_v59  ;;  %v1457_v4 = vld [vmem:[#allocation8 + $0xcd0] sm:$0xff] }
 0x181   : > { %7140 = vmatmul.msk.f32.vlgmr.msra.gmra.mxu0 %vm8367_vm10, %v8371_v49  ;;  %2331 = vmatpush.msra.mxu3 %v1427_v2  ;;  %v1685_v5 = vld [vmem:[#allocation8 + $0x13f0] sm:$0xff]  ;;  %v1128_v2 = vld [vmem:[#allocation8 + $0x288] sm:$0xff] }
 0x182   : > { %2351 = vmatpush.msrb.mxu0 %v1523_v6  ;;  %2321 = vmatpush.msra.mxu2 %v1271_v62  ;;  %v1355_v6 = vld [vmem:[#allocation8 + $0x9a0] sm:$0xff] }
 0x183   : > { %2378 = vmatpush.msrb.mxu1 %v1577_v7  ;;  %2332 = vmatpush.msra.mxu3 %v1421_v9  ;;  %v1451_v62 = vld [vmem:[#allocation8 + $0xca0] sm:$0xff]  ;;  %v8471_v7 = vpop.f32.mrf.mxu2 }
 0x184   : > { %2352 = vmatpush.msrb.mxu0 %v1517_v10  ;;  %2322 = vmatpush.msra.mxu2 %v1265_v13  ;;  %v1679_v9 = vld [vmem:[#allocation8 + $0x13c0] sm:$0xff]  ;;  %v1122_v10 = vld [vmem:[#allocation8 + $0x258] sm:$0xff]  ;;  %v1349_v13 = vld [vmem:[#allocation8 + $0x970] sm:$0xff] }
 0x185   : > { %2379 = vmatpush.msrb.mxu1 %v1571_v14  ;;  %2333 = vmatpush.msra.mxu3 %v1415_v37  ;;  %v1445_v14 = vld [vmem:[#allocation8 + $0xc70] sm:$0xff] }
 0x186   : > { %2353 = vmatpush.msrb.mxu0 %v1511_v15  ;;  %2323 = vmatpush.msra.mxu2 %v1259_v16  ;;  %v1673_v37 = vld [vmem:[#allocation8 + $0x1390] sm:$0xff]  ;;  %v1116_v15 = vld [vmem:[#allocation8 + $0x228] sm:$0xff]  ;;  %v1343_v16 = vld [vmem:[#allocation8 + $0x940] sm:$0xff] }
 0x187   : > { %2380 = vmatpush.msrb.mxu1 %v1565_v17  ;;  %2334 = vmatpush.msra.mxu3 %v1409_v18  ;;  %v1439_v17 = vld [vmem:[#allocation8 + $0xc40] sm:$0xff] }
 0x188   : > { %2354 = vmatpush.msrb.mxu0 %v1505_v19  ;;  %2324 = vmatpush.msra.mxu2 %v1253_v20  ;;  %v1667_v18 = vld [vmem:[#allocation8 + $0x1360] sm:$0xff]  ;;  %v1110_v19 = vld [vmem:[#allocation8 + $0x1f8] sm:$0xff]  ;;  %v1337_v20 = vld [vmem:[#allocation8 + $0x910] sm:$0xff] }
 0x189   : > { %2381 = vmatpush.msrb.mxu1 %v1559_v21  ;;  %2335 = vmatpush.msra.mxu3 %v1403_v22  ;;  %v1433_v21 = vld [vmem:[#allocation8 + $0xc10] sm:$0xff] }
 0x18a   : > { %2355 = vmatpush.msrb.mxu0 %v1499_v23  ;;  %2325 = vmatpush.msra.mxu2 %v1247_v26  ;;  %v1661_v22 = vld [vmem:[#allocation8 + $0x1330] sm:$0xff]  ;;  %v1104_v23 = vld [vmem:[#allocation8 + $0x1c8] sm:$0xff] }
 0x18b   : > { %2382 = vmatpush.msrb.mxu1 %v1553_v27  ;;  %2336 = vmatpush.msra.mxu3 %v1397_v11  ;;  %v1811_v27 = vld [vmem:[#allocation8 + $0x17e0] sm:$0xff] }
 0x18c   : > { %2356 = vmatpush.msrb.mxu0 %v1493_v28  ;;  %2326 = vmatpush.msra.mxu2 %v1241_v33  ;;  %v1907_v11 = vld [vmem:[#allocation8 + $0x1ae0] sm:$0xff]  ;;  %v1928_v28 = vpop.f32.mrf.mxu2 }
 0x18d   : > { %2383 = vmatpush.msrb.mxu1 %v1547_v31  ;;  %7142 = vmatmul.msk.f32.vlgmr.msra.gmra.mxu2 %vm8367_vm10, %v8402_v32  ;;  %v1655_v33 = vld [vmem:[#allocation8 + $0x1300] sm:$0xff]  ;;  %v1098_v31 = vld [vmem:[#allocation8 + $0x198] sm:$0xff] }
 0x18e   : > { %2337 = vmatpush.msra.mxu3 %v1391_v34  ;;  %2357 = vmatpush.msrb.mxu0 %v1487_v35  ;;  %v1805_v35 = vld [vmem:[#allocation8 + $0x17b0] sm:$0xff] }
 0x18f   : > { %2391 = vmatpush.msrb.mxu2 %v1715_v36  ;;  %2384 = vmatpush.msrb.mxu1 %v1541_v38  ;;  %v1901_v36 = vld [vmem:[#allocation8 + $0x1ab0] sm:$0xff] }
 0x190   : > { %2338 = vmatpush.msra.mxu3 %v1385_v39  ;;  %2358 = vmatpush.msrb.mxu0 %v1481_v40  ;;  %v1649_v38 = vld [vmem:[#allocation8 + $0x12d0] sm:$0xff]  ;;  %v1092_v39 = vld [vmem:[#allocation8 + $0x168] sm:$0xff] }
 0x191   : > { %2392 = vmatpush.msrb.mxu2 %v1709_v43  ;;  %2385 = vmatpush.msrb.mxu1 %v1535_v44  ;;  %v1799_v43 = vld [vmem:[#allocation8 + $0x1780] sm:$0xff] }
 0x192   : > { %2339 = vmatpush.msra.mxu3 %v1379_v45  ;;  %2359 = vmatpush.msrb.mxu0 %v1475_v46  ;;  %v1895_v44 = vld [vmem:[#allocation8 + $0x1a80] sm:$0xff]  ;;  %v1086_v46 = vld [vmem:[#allocation8 + $0x138] sm:$0xff] }
 0x193   : > { %2393 = vmatpush.msrb.mxu2 %v1703_v51  ;;  %2386 = vmatpush.msrb.mxu1 %v1529_v52  ;;  %v1643_v45 = vld [vmem:[#allocation8 + $0x12a0] sm:$0xff]  ;;  %v1793_v52 = vld [vmem:[#allocation8 + $0x1750] sm:$0xff] }
 0x194   : > { %2340 = vmatpush.msra.mxu3 %v1373_v57  ;;  %2360 = vmatpush.msrb.mxu0 %v1469_v58  ;;  %v1889_v57 = vld [vmem:[#allocation8 + $0x1a50] sm:$0xff] }
 0x195   : > { %2387 = vmatmul.f32.vlgmr.msrb.gmra.mxu1 %v8437_v29  ;;  %2394 = vmatpush.msrb.mxu2 %v1697_v60  ;;  %v1637_v58 = vld [vmem:[#allocation8 + $0x1270] sm:$0xff]  ;;  %v1080_v60 = vld [vmem:[#allocation8 + $0x108] sm:$0xff] }
 0x196   : > { %2451 = vmatpush.msra.mxu1 %v1140_v61  ;;  %2341 = vmatpush.msra.mxu3 %v1367_v41  ;;  %v1988_v61 = vpop.f32.mrf.mxu1  ;;  %v1787_v41 = vld [vmem:[#allocation8 + $0x1720] sm:$0xff] }
 0x197   : > { %2361 = vmatpush.msrb.mxu0 %v1463_v63  ;;  %2395 = vmatpush.msrb.mxu2 %v1691_v0  ;;  %v1968_v40 = vpop.f32.mrf.mxu0  ;;  %v1883_v63 = vld [vmem:[#allocation8 + $0x1a20] sm:$0xff] }
 0x198   : > { %2452 = vmatpush.msra.mxu1 %v1134_v1  ;;  %2342 = vmatpush.msra.mxu3 %v1361_v3  ;;  %v1631_v1 = vld [vmem:[#allocation8 + $0x1240] sm:$0xff]  ;;  %v1074_v3 = vld [vmem:[#allocation8 + $0xd8] sm:$0xff] }
 0x199   : > { %2362 = vmatpush.msrb.mxu0 %v1457_v4  ;;  %2396 = vmatpush.msrb.mxu2 %v1685_v5  ;;  %v1781_v5 = vld [vmem:[#allocation8 + $0x16f0] sm:$0xff] }
 0x19a   : > { %2453 = vmatpush.msra.mxu1 %v1128_v2  ;;  %2343 = vmatpush.msra.mxu3 %v1355_v6  ;;  %v1877_v2 = vld [vmem:[#allocation8 + $0x19f0] sm:$0xff] }
 0x19b   : > { %2363 = vmatpush.msrb.mxu0 %v1451_v62  ;;  %2397 = vmatpush.msrb.mxu2 %v1679_v9  ;;  %v1625_v6 = vld [vmem:[#allocation8 + $0x1210] sm:$0xff]  ;;  %v1068_v62 = vld [vmem:[#allocation8 + $0xa8] sm:$0xff] }
 0x19c   : > { %2454 = vmatpush.msra.mxu1 %v1122_v10  ;;  %2344 = vmatpush.msra.mxu3 %v1349_v13  ;;  %v1948_v26 = vpop.f32.mrf.mxu3  ;;  %v1775_v10 = vld [vmem:[#allocation8 + $0x16c0] sm:$0xff] }
 0x19d   : > { %2364 = vmatpush.msrb.mxu0 %v1445_v14  ;;  %2398 = vmatpush.msrb.mxu2 %v1673_v37  ;;  %v1949_v34 = vadd.f32 %v1948_v26, %v1928_v28  ;;  %v1871_v14 = vld [vmem:[#allocation8 + $0x19c0] sm:$0xff]  ;;  %v1236_v37 = vld [vmem:[#allocation8 + $0x5e8] sm:$0xff]  ;;  %v1853_v28 = vld [vmem:[#allocation8 + $0x1930] sm:$0xff] }
 0x19e   : > { %2455 = vmatpush.msra.mxu1 %v1116_v15  ;;  %2345 = vmatpush.msra.mxu3 %v1343_v16  ;;  %v1062_v15 = vld [vmem:[#allocation8 + $0x78] sm:$0xff]  ;;  %v1769_v16 = vld [vmem:[#allocation8 + $0x1690] sm:$0xff] }
 0x19f   : > { %2365 = vmatpush.msrb.mxu0 %v1439_v17  ;;  %2399 = vmatpush.msrb.mxu2 %v1667_v18  ;;  %v1969_v51 = vadd.f32 %v1968_v40, %v1949_v34  ;;  %v1865_v17 = vld [vmem:[#allocation8 + $0x1990] sm:$0xff]  ;;  %v1230_v18 = vld [vmem:[#allocation8 + $0x5b8] sm:$0xff]  ;;  %v2048_v26 = vpop.f32.mrf.mxu0  ;;  %v1524_v34 = vld [vmem:[#allocation8 + $0xee8] sm:$0xff] }
 0x1a0   : > { %2456 = vmatpush.msra.mxu1 %v1110_v19  ;;  %2346 = vmatpush.msra.mxu3 %v1337_v20  ;;  %v1056_v20 = vld [vmem:[#allocation8 + $0x48] sm:$0xff] }
 0x1a1   : > { %2366 = vmatpush.msrb.mxu0 %v1433_v21  ;;  %2400 = vmatpush.msrb.mxu2 %v1661_v22  ;;  %v1989_v4 = vadd.f32 %v1988_v61, %v1969_v51  ;;  %v1763_v21 = vld [vmem:[#allocation8 + $0x1660] sm:$0xff]  ;;  %v1212_v40 = vld [vmem:[#allocation8 + $0x528] sm:$0xff] }
 0x1a2   : > { %2457 = vmatpush.msra.mxu1 %v1104_v23  ;;  %2347 = vmatmul.f32.vlgmr.msra.gmra.mxu3 %v8394_v8  ;;  %v1859_v22 = vld [vmem:[#allocation8 + $0x1960] sm:$0xff]  ;;  %v1224_v23 = vld [vmem:[#allocation8 + $0x588] sm:$0xff] }
 0x1a3   : > { %2367 = vmatmul.f32.vlgmr.msrb.gmra.mxu0 %v8430_v24  ;;  %2411 = vmatpush.msrb.mxu3 %v1811_v27  ;;  %v1050_v27 = vld [vmem:[#allocation8 + $0x18] sm:$0xff]  ;;  %v1835_v61 = vld [vmem:[#allocation8 + $0x18a0] sm:$0xff] }
 0x1a4   : > { %2431 = vmatpush.msra.mxu0 %v1907_v11  ;;  %2401 = vmatpush.msrb.mxu2 %v1655_v33  ;;  %v1757_v11 = vld [vmem:[#allocation8 + $0x1630] sm:$0xff] }
 0x1a5   : > { %2458 = vmatpush.msra.mxu1 %v1098_v31  ;;  %2412 = vmatpush.msrb.mxu3 %v1805_v35  ;;  %v1218_v31 = vld [vmem:[#allocation8 + $0x558] sm:$0xff]  ;;  %v8476_v35 = vld [vmem:[#allocation10] sm:$0xff] }
 0x1a6   : > { %2432 = vmatpush.msra.mxu0 %v1901_v36  ;;  %2402 = vmatpush.msrb.mxu2 %v1649_v38  ;;  %v1751_v36 = vld [vmem:[#allocation8 + $0x1600] sm:$0xff]  ;;  %v2995_v51 = vperm.slane %v8476_v35, 0 }
 0x1a7   : > { %2459 = vmatpush.msra.mxu1 %v1092_v39  ;;  %2413 = vmatpush.msrb.mxu3 %v1799_v43  ;;  %v1847_v38 = vld [vmem:[#allocation8 + $0x1900] sm:$0xff]  ;;  %v2068_v39 = vpop.f32.mrf.mxu1  ;;  %v1518_v43 = vld [vmem:[#allocation8 + $0xeb8] sm:$0xff] }
 0x1a8   : > { %2433 = vmatpush.msra.mxu0 %v1895_v44  ;;  %2403 = vmatpush.msrb.mxu2 %v1643_v45  ;;  %v1745_v44 = vld [vmem:[#allocation8 + $0x15d0] sm:$0xff] }
 0x1a9   : > { %2460 = vmatpush.msra.mxu1 %v1086_v46  ;;  %v2008_v0 = vpop.f32.mrf.mxu2  ;;  %2414 = vmatpush.msrb.mxu3 %v1793_v52  ;;  %v1841_v45 = vld [vmem:[#allocation8 + $0x18d0] sm:$0xff]  ;;  %v1206_v52 = vld [vmem:[#allocation8 + $0x4f8] sm:$0xff] }
 0x1aa   : > { %2434 = vmatpush.msra.mxu0 %v1889_v57  ;;  %2404 = vmatpush.msrb.mxu2 %v1637_v58  ;;  %v2009_v9 = vadd.f32 %v2008_v0, %v1989_v4  ;;  %v1512_v57 = vld [vmem:[#allocation8 + $0xe88] sm:$0xff]  ;;  %v1733_v0 = vld [vmem:[#allocation8 + $0x1570] sm:$0xff]  ;;  %v3007_v4 = vperm.slane %v2995_v51, 0 }
 0x1ab   : > { %2461 = vmatpush.msra.mxu1 %v1080_v60  ;;  %2415 = vmatpush.msrb.mxu3 %v1787_v41  ;;  %v1739_v60 = vld [vmem:[#allocation8 + $0x15a0] sm:$0xff]  ;;  %v1200_v41 = vld [vmem:[#allocation8 + $0x4c8] sm:$0xff] }
 0x1ac   : > { %2435 = vmatpush.msra.mxu0 %v1883_v63  ;;  %2405 = vmatpush.msrb.mxu2 %v1631_v1  ;;  %v2028_v13 = vpop.f32.mrf.mxu3  ;;  %v1506_v63 = vld [vmem:[#allocation8 + $0xe58] sm:$0xff]  ;;  %v1829_v1 = vld [vmem:[#allocation8 + $0x1870] sm:$0xff]  ;;  %v1152_v51 = vld [vmem:[#allocation8 + $0x348] sm:$0xff] }
 0x1ad   : > { %2462 = vmatpush.msra.mxu1 %v1074_v3  ;;  %2416 = vmatpush.msrb.mxu3 %v1781_v5  ;;  %v2029_v19 = vadd.f32 %v2028_v13, %v2009_v9  ;;  %v3019_v5 = vperm.slane %v8476_v35, 1  ;;  %v1823_v9 = vld [vmem:[#allocation8 + $0x1840] sm:$0xff]  ;;  %v1494_v13 = vld [vmem:[#allocation8 + $0xdf8] sm:$0xff] }
 0x1ae   : > { %2436 = vmatpush.msra.mxu0 %v1877_v2  ;;  %2406 = vmatpush.msrb.mxu2 %v1625_v6  ;;  %v1194_v2 = vld [vmem:[#allocation8 + $0x498] sm:$0xff]  ;;  %v1500_v6 = vld [vmem:[#allocation8 + $0xe28] sm:$0xff] }
 0x1af   : > { %2463 = vmatpush.msra.mxu1 %v1068_v62  ;;  %2407 = vmatmul.f32.vlgmr.msrb.gmra.mxu2 %v8423_v12  ;;  %v2049_v33 = vadd.f32 %v2048_v26, %v2029_v19  ;;  %v1727_v62 = vld [vmem:[#allocation8 + $0x1540] sm:$0xff]  ;;  %v1332_v19 = vld [vmem:[#allocation8 + $0x8e8] sm:$0xff]  ;;  %v1326_v26 = vld [vmem:[#allocation8 + $0x8b8] sm:$0xff] }
 0x1b0   : > { %2417 = vmatpush.msrb.mxu3 %v1775_v10  ;;  %2437 = vmatpush.msra.mxu0 %v1871_v14  ;;  %v1188_v10 = vld [vmem:[#allocation8 + $0x468] sm:$0xff] }
 0x1b1   : > { %2471 = vmatpush.msra.mxu2 %v1236_v37  ;;  %2464 = vmatpush.msra.mxu1 %v1062_v15  ;;  %v2069_v46 = vadd.f32 %v2068_v39, %v2049_v33  ;;  %v1721_v37 = vld [vmem:[#allocation8 + $0x1510] sm:$0xff]  ;;  %v1320_v33 = vld [vmem:[#allocation8 + $0x888] sm:$0xff]  ;;  %v1314_v39 = vld [vmem:[#allocation8 + $0x858] sm:$0xff] }
 0x1b2   : > { %2418 = vmatpush.msrb.mxu3 %v1769_v16  ;;  %2438 = vmatpush.msra.mxu0 %v1865_v17  ;;  %v2088_v58 = vpop.f32.mrf.mxu2  ;;  %v1817_v15 = vld [vmem:[#allocation8 + $0x1810] sm:$0xff]  ;;  %v3031_v16 = vperm.slane %v3019_v5, 1  ;;  %v1182_v17 = vld [vmem:[#allocation8 + $0x438] sm:$0xff] }
 0x1b3   : > { %2472 = vmatpush.msra.mxu2 %v1230_v18  ;;  %2465 = vmatpush.msra.mxu1 %v1056_v20  ;;  %v2089_v3 = vadd.f32 %v2088_v58, %v2069_v46  ;;  %v1488_v18 = vld [vmem:[#allocation8 + $0xdc8] sm:$0xff]  ;;  %v1398_v58 = vld [vmem:[#allocation8 + $0xaf8] sm:$0xff] }
 0x1b4   : > { %2419 = vmatpush.msrb.mxu3 %v1763_v21  ;;  %2439 = vmatpush.msra.mxu0 %v1859_v22  ;;  %v1428_v20 = vld [vmem:[#allocation8 + $0xbe8] sm:$0xff]  ;;  %v1482_v22 = vld [vmem:[#allocation8 + $0xd98] sm:$0xff] }
 0x1b5   : > { %2473 = vmatpush.msra.mxu2 %v1224_v23  ;;  %2466 = vmatpush.msra.mxu1 %v1050_v27  ;;  %v3013_v14 = vmul.f32 %v3007_v4, %v2089_v3  ;;  %v1176_v21 = vld [vmem:[#allocation8 + $0x408] sm:$0xff]  ;;  %v1422_v27 = vld [vmem:[#allocation8 + $0xbb8] sm:$0xff] }
 0x1b6   : > { %2420 = vmatpush.msrb.mxu3 %v1757_v11  ;;  %2440 = vmatpush.msra.mxu0 %v1853_v28  ;;  %v1170_v11 = vld [vmem:[#allocation8 + $0x3d8] sm:$0xff]  ;;  %v1476_v28 = vld [vmem:[#allocation8 + $0xd68] sm:$0xff] }
 0x1b7   : > { %7143 = vmatmul.msk.f32.vlgmr.msra.gmra.mxu1 %vm8367_vm10, %v8371_v49  ;;  %2474 = vmatpush.msra.mxu2 %v1218_v31  ;;  %v3037_v23 = vadd.f32 %v3031_v16, %v3013_v14  ;;  %v1416_v31 = vld [vmem:[#allocation8 + $0xb88] sm:$0xff]  ;;  %v1290_v3 = vld [vmem:[#allocation8 + $0x798] sm:$0xff] }
 0x1b8   : > { %2531 = vmatpush.msrb.mxu1 %v1524_v34  ;;  %2421 = vmatpush.msrb.mxu3 %v1751_v36  ;;  %v1164_v34 = vld [vmem:[#allocation8 + $0x3a8] sm:$0xff]  ;;  %v1470_v36 = vld [vmem:[#allocation8 + $0xd38] sm:$0xff] }
 0x1b9   : > { %2441 = vmatpush.msra.mxu0 %v1847_v38  ;;  %2475 = vmatpush.msra.mxu2 %v1212_v40  ;;  %v3043_v38 = vmax.f32 %v3037_v23, 0.0  ;;  %v1410_v40 = vld [vmem:[#allocation8 + $0xb58] sm:$0xff]  ;;  %v1404_v46 = vld [vmem:[#allocation8 + $0xb28] sm:$0xff] }
 0x1ba   : > { %2532 = vmatpush.msrb.mxu1 %v1518_v43  ;;  %2422 = vmatpush.msrb.mxu3 %v1745_v44  ;;  %v1158_v43 = vld [vmem:[#allocation8 + $0x378] sm:$0xff]  ;;  %v1464_v44 = vld [vmem:[#allocation8 + $0xd08] sm:$0xff] }
 0x1bb   : > { %2442 = vmatpush.msra.mxu0 %v1841_v45  ;;  %2476 = vmatpush.msra.mxu2 %v1206_v52  ;;  %v1308_v45 = vld [vmem:[#allocation8 + $0x828] sm:$0xff]  ;;  %v1458_v52 = vld [vmem:[#allocation8 + $0xcd8] sm:$0xff] }
 0x1bc   : > { %2533 = vmatpush.msrb.mxu1 %v1512_v57  ;;  %2423 = vmatpush.msrb.mxu3 %v1739_v60  ;;  %v1302_v57 = vld [vmem:[#allocation8 + $0x7f8] sm:$0xff]  ;;  %v1272_v16 = vld [vmem:[#allocation8 + $0x708] sm:$0xff] }
 0x1bd   : > { %2443 = vmatpush.msra.mxu0 %v1835_v61  ;;  %2477 = vmatpush.msra.mxu2 %v1200_v41  ;;  %v1146_v60 = vld [vmem:[#allocation8 + $0x318] sm:$0xff]  ;;  %v1452_v61 = vld [vmem:[#allocation8 + $0xca8] sm:$0xff] }
 0x1be   : > { %2534 = vmatpush.msrb.mxu1 %v1506_v63  ;;  %2424 = vmatpush.msrb.mxu3 %v1733_v0  ;;  %v1296_v41 = vld [vmem:[#allocation8 + $0x7c8] sm:$0xff]  ;;  %v1386_v4 = vld [vmem:[#allocation8 + $0xa98] sm:$0xff] }
 0x1bf   : > { %2444 = vmatpush.msra.mxu0 %v1829_v1  ;;  %2478 = vmatpush.msra.mxu2 %v1194_v2  ;;  %v1392_v63 = vld [vmem:[#allocation8 + $0xac8] sm:$0xff]  ;;  %v1446_v1 = vld [vmem:[#allocation8 + $0xc78] sm:$0xff] }
 0x1c0   : > { %2535 = vmatpush.msrb.mxu1 %v1500_v6  ;;  %2425 = vmatpush.msrb.mxu3 %v1727_v62  ;;  %v1620_v0 = vld [vmem:[#allocation8 + $0x11e8] sm:$0xff]  ;;  %v1614_v5 = vld [vmem:[#allocation8 + $0x11b8] sm:$0xff] }
 0x1c1   : > { %2445 = vmatpush.msra.mxu0 %v1823_v9  ;;  %2479 = vmatpush.msra.mxu2 %v1188_v10  ;;  %v1440_v2 = vld [vmem:[#allocation8 + $0xc48] sm:$0xff]  ;;  %v1434_v10 = vld [vmem:[#allocation8 + $0xc18] sm:$0xff] }
 0x1c2   : > { %2536 = vmatpush.msrb.mxu1 %v1494_v13  ;;  %2426 = vmatpush.msrb.mxu3 %v1721_v37  ;;  %v1284_v6 = vld [vmem:[#allocation8 + $0x768] sm:$0xff]  ;;  %v1278_v13 = vld [vmem:[#allocation8 + $0x738] sm:$0xff] }
 0x1c3   : > { %2446 = vmatpush.msra.mxu0 %v1817_v15  ;;  %2480 = vmatpush.msra.mxu2 %v1182_v17  ;;  %v1380_v62 = vld [vmem:[#allocation8 + $0xa68] sm:$0xff]  ;;  %v1374_v14 = vld [vmem:[#allocation8 + $0xa38] sm:$0xff] }
 0x1c4   : > { %2537 = vmatpush.msrb.mxu1 %v1488_v18  ;;  %2427 = vmatmul.f32.vlgmr.msrb.gmra.mxu3 %v8433_v25  ;;  %v1608_v9 = vld [vmem:[#allocation8 + $0x1188] sm:$0xff]  ;;  %v1602_v37 = vld [vmem:[#allocation8 + $0x1158] sm:$0xff] }
 0x1c5   : > { %2447 = vmatmul.f32.vlgmr.msra.gmra.mxu0 %v8443_v59  ;;  %2491 = vmatpush.msra.mxu3 %v1332_v19  ;;  %v1908_v15 = vld [vmem:[#allocation8 + $0x1ae8] sm:$0xff]  ;;  %v1902_v19 = vld [vmem:[#allocation8 + $0x1ab8] sm:$0xff] }
 0x1c6   : > { %2511 = vmatpush.msrb.mxu0 %v1428_v20  ;;  %2481 = vmatpush.msra.mxu2 %v1176_v21  ;;  %v1368_v17 = vld [vmem:[#allocation8 + $0xa08] sm:$0xff]  ;;  %v1266_v20 = vld [vmem:[#allocation8 + $0x6d8] sm:$0xff] }
 0x1c7   : > { %2538 = vmatpush.msrb.mxu1 %v1482_v22  ;;  %2492 = vmatpush.msra.mxu3 %v1326_v26  ;;  %v1596_v18 = vld [vmem:[#allocation8 + $0x1128] sm:$0xff]  ;;  %v1362_v21 = vld [vmem:[#allocation8 + $0x9d8] sm:$0xff] }
 0x1c8   : > { %2512 = vmatpush.msrb.mxu0 %v1422_v27  ;;  %2482 = vmatpush.msra.mxu2 %v1170_v11  ;;  %v1590_v22 = vld [vmem:[#allocation8 + $0x10f8] sm:$0xff]  ;;  %v1896_v23 = vld [vmem:[#allocation8 + $0x1a88] sm:$0xff] }
 0x1c9   : > { %2539 = vmatpush.msrb.mxu1 %v1476_v28  ;;  %2493 = vmatpush.msra.mxu3 %v1320_v33  ;;  %v1260_v26 = vld [vmem:[#allocation8 + $0x6a8] sm:$0xff]  ;;  %v1890_v28 = vld [vmem:[#allocation8 + $0x1a58] sm:$0xff] }
 0x1ca   : > { %2513 = vmatpush.msrb.mxu0 %v1416_v31  ;;  %2483 = vmatpush.msra.mxu2 %v1164_v34  ;;  %v1356_v27 = vld [vmem:[#allocation8 + $0x9a8] sm:$0xff]  ;;  %v1254_v33 = vld [vmem:[#allocation8 + $0x678] sm:$0xff] }
 0x1cb   : > { %2540 = vmatpush.msrb.mxu1 %v1470_v36  ;;  %6819 = vrot.lane.b32.xlu2 %v3043_v38, %s7885_s16  ;;  %v1584_v11 = vld [vmem:[#allocation8 + $0x10c8] sm:$0xff]  ;;  %v1350_v31 = vld [vmem:[#allocation8 + $0x978] sm:$0xff] }
 0x1cc   : > { %2494 = vmatpush.msra.mxu3 %v1314_v39  ;;  %2514 = vmatpush.msrb.mxu0 %v1410_v40  ;;  %v1578_v34 = vld [vmem:[#allocation8 + $0x1098] sm:$0xff]  ;;  %v1884_v36 = vld [vmem:[#allocation8 + $0x1a28] sm:$0xff] }
 0x1cd   : > { %2484 = vmatpush.msra.mxu2 %v1158_v43  ;;  %2541 = vmatpush.msrb.mxu1 %v1464_v44  ;;  %v1248_v38 = vld [vmem:[#allocation8 + $0x648] sm:$0xff]  ;;  %v1878_v43 = vld [vmem:[#allocation8 + $0x19f8] sm:$0xff] }
 0x1ce   : > { %2495 = vmatpush.msra.mxu3 %v1308_v45  ;;  %2515 = vmatpush.msrb.mxu0 %v1404_v46  ;;  %v1344_v39 = vld [vmem:[#allocation8 + $0x948] sm:$0xff]  ;;  %v1242_v44 = vld [vmem:[#allocation8 + $0x618] sm:$0xff] }
 0x1cf   : > { %2485 = vmatpush.msra.mxu2 %v1152_v51  ;;  %2542 = vmatpush.msrb.mxu1 %v1458_v52  ;;  %v1572_v40 = vld [vmem:[#allocation8 + $0x1068] sm:$0xff]  ;;  %v1338_v45 = vld [vmem:[#allocation8 + $0x918] sm:$0xff] }
 0x1d0   : > { %2496 = vmatpush.msra.mxu3 %v1302_v57  ;;  %2516 = vmatpush.msrb.mxu0 %v1398_v58  ;;  %v1566_v46 = vld [vmem:[#allocation8 + $0x1038] sm:$0xff]  ;;  %v1872_v51 = vld [vmem:[#allocation8 + $0x19c8] sm:$0xff] }
 0x1d1   : > { %2486 = vmatpush.msra.mxu2 %v1146_v60  ;;  %2543 = vmatpush.msrb.mxu1 %v1452_v61  ;;  %v1716_v52 = vld [vmem:[#allocation8 + $0x14e8] sm:$0xff]  ;;  %v1866_v60 = vld [vmem:[#allocation8 + $0x1998] sm:$0xff] }
 0x1d2   : > { %7144 = vmatmul.msk.f32.vlgmr.msra.gmra.mxu2 %vm8367_vm10, %v8400_v30  ;;  %2497 = vmatpush.msra.mxu3 %v1296_v41  ;;  %v1812_v57 = vld [vmem:[#allocation8 + $0x17e8] sm:$0xff]  ;;  %v1710_v61 = vld [vmem:[#allocation8 + $0x14b8] sm:$0xff] }
 0x1d3   : > { %2517 = vmatpush.msrb.mxu0 %v1392_v63  ;;  %2551 = vmatpush.msrb.mxu2 %v1620_v0  ;;  %v1560_v58 = vld [vmem:[#allocation8 + $0x1008] sm:$0xff]  ;;  %v1806_v41 = vld [vmem:[#allocation8 + $0x17b8] sm:$0xff] }
 0x1d4   : > { %2544 = vmatpush.msrb.mxu1 %v1446_v1  ;;  %2498 = vmatpush.msra.mxu3 %v1290_v3  ;;  %v1554_v63 = vld [vmem:[#allocation8 + $0xfd8] sm:$0xff]  ;;  %v1860_v0 = vld [vmem:[#allocation8 + $0x1968] sm:$0xff] }
 0x1d5   : > { %2518 = vmatpush.msrb.mxu0 %v1386_v4  ;;  %2552 = vmatpush.msrb.mxu2 %v1614_v5  ;;  %v1704_v1 = vld [vmem:[#allocation8 + $0x1488] sm:$0xff]  ;;  %v1854_v5 = vld [vmem:[#allocation8 + $0x1938] sm:$0xff] }
 0x1d6   : > { %2545 = vmatpush.msrb.mxu1 %v1440_v2  ;;  %2499 = vmatpush.msra.mxu3 %v1284_v6  ;;  %v1800_v3 = vld [vmem:[#allocation8 + $0x1788] sm:$0xff]  ;;  %v1698_v2 = vld [vmem:[#allocation8 + $0x1458] sm:$0xff] }
 0x1d7   : > { %2519 = vmatpush.msrb.mxu0 %v1380_v62  ;;  %2553 = vmatpush.msrb.mxu2 %v1608_v9  ;;  %v1548_v4 = vld [vmem:[#allocation8 + $0xfa8] sm:$0xff]  ;;  %v1794_v6 = vld [vmem:[#allocation8 + $0x1758] sm:$0xff] }
 0x1d8   : > { %2546 = vmatpush.msrb.mxu1 %v1434_v10  ;;  %2500 = vmatpush.msra.mxu3 %v1278_v13  ;;  %v1542_v62 = vld [vmem:[#allocation8 + $0xf78] sm:$0xff]  ;;  %v1848_v9 = vld [vmem:[#allocation8 + $0x1908] sm:$0xff] }
 0x1d9   : > { %2520 = vmatpush.msrb.mxu0 %v1374_v14  ;;  %2547 = vmatmul.f32.vlgmr.msrb.gmra.mxu1 %v8430_v24  ;;  %v1692_v10 = vld [vmem:[#allocation8 + $0x1428] sm:$0xff] }
 0x1da   : > { %2554 = vmatpush.msrb.mxu2 %v1602_v37  ;;  %2611 = vmatpush.msra.mxu1 %v1908_v15  ;;  %v1788_v13 = vld [vmem:[#allocation8 + $0x1728] sm:$0xff]  ;;  %v1842_v37 = vld [vmem:[#allocation8 + $0x18d8] sm:$0xff] }
 0x1db   : > { %2501 = vmatpush.msra.mxu3 %v1272_v16  ;;  %2521 = vmatpush.msrb.mxu0 %v1368_v17  ;;  %v1536_v14 = vld [vmem:[#allocation8 + $0xf48] sm:$0xff]  ;;  %v1686_v15 = vld [vmem:[#allocation8 + $0x13f8] sm:$0xff] }
 0x1dc   : > { %2555 = vmatpush.msrb.mxu2 %v1596_v18  ;;  %2612 = vmatpush.msra.mxu1 %v1902_v19  ;;  %v1782_v16 = vld [vmem:[#allocation8 + $0x16f8] sm:$0xff]  ;;  %v1836_v18 = vld [vmem:[#allocation8 + $0x18a8] sm:$0xff] }
 0x1dd   : > { %2502 = vmatpush.msra.mxu3 %v1266_v20  ;;  %2522 = vmatpush.msrb.mxu0 %v1362_v21  ;;  %v1530_v17 = vld [vmem:[#allocation8 + $0xf18] sm:$0xff]  ;;  %v1680_v19 = vld [vmem:[#allocation8 + $0x13c8] sm:$0xff]  ;;  %v1141_v21 = vld [vmem:[#allocation8 + $0x2f0] sm:$0xff] }
 0x1de   : > { %2556 = vmatpush.msrb.mxu2 %v1590_v22  ;;  %2613 = vmatpush.msra.mxu1 %v1896_v23  ;;  %v1776_v20 = vld [vmem:[#allocation8 + $0x16c8] sm:$0xff]  ;;  %v1830_v22 = vld [vmem:[#allocation8 + $0x1878] sm:$0xff] }
 0x1df   : > { %2503 = vmatpush.msra.mxu3 %v1260_v26  ;;  %2523 = vmatpush.msrb.mxu0 %v1356_v27  ;;  %v1674_v23 = vld [vmem:[#allocation8 + $0x1398] sm:$0xff]  ;;  %v2108_v27 = vpop.f32.mrf.mxu3 }
 0x1e0   : > { %2557 = vmatpush.msrb.mxu2 %v1584_v11  ;;  %2614 = vmatpush.msra.mxu1 %v1890_v28  ;;  %v1770_v26 = vld [vmem:[#allocation8 + $0x1698] sm:$0xff]  ;;  %v1135_v11 = vld [vmem:[#allocation8 + $0x2c0] sm:$0xff]  ;;  %v1824_v28 = vld [vmem:[#allocation8 + $0x1848] sm:$0xff] }
 0x1e1   : > { %2504 = vmatpush.msra.mxu3 %v1254_v33  ;;  %2524 = vmatpush.msrb.mxu0 %v1350_v31  ;;  %v1668_v33 = vld [vmem:[#allocation8 + $0x1368] sm:$0xff] }
 0x1e2   : > { %2558 = vmatpush.msrb.mxu2 %v1578_v34  ;;  %2615 = vmatpush.msra.mxu1 %v1884_v36  ;;  %v1764_v31 = vld [vmem:[#allocation8 + $0x1668] sm:$0xff]  ;;  %v2128_v34 = vpop.f32.mrf.mxu0  ;;  %v1129_v36 = vld [vmem:[#allocation8 + $0x290] sm:$0xff] }
 0x1e3   : > { %2505 = vmatpush.msra.mxu3 %v1248_v38  ;;  %2525 = vmatpush.msrb.mxu0 %v1344_v39  ;;  %v1818_v38 = vld [vmem:[#allocation8 + $0x1818] sm:$0xff]  ;;  %v2129_v39 = vadd.f32 %v2128_v34, %v2108_v27  ;;  %v1081_v34 = vld [vmem:[#allocation8 + $0x110] sm:$0xff] }
 0x1e4   : > { %2559 = vmatpush.msrb.mxu2 %v1572_v40  ;;  %2616 = vmatpush.msra.mxu1 %v1878_v43  ;;  %v1662_v40 = vld [vmem:[#allocation8 + $0x1338] sm:$0xff] }
 0x1e5   : > { %2506 = vmatpush.msra.mxu3 %v1242_v44  ;;  %2526 = vmatpush.msrb.mxu0 %v1338_v45  ;;  %v1758_v43 = vld [vmem:[#allocation8 + $0x1638] sm:$0xff]  ;;  %v1123_v44 = vld [vmem:[#allocation8 + $0x260] sm:$0xff]  ;;  %v1429_v45 = vld [vmem:[#allocation8 + $0xbf0] sm:$0xff] }
 0x1e6   : > { %2560 = vmatpush.msrb.mxu2 %v1566_v46  ;;  %2617 = vmatpush.msra.mxu1 %v1872_v51  ;;  %v1656_v46 = vld [vmem:[#allocation8 + $0x1308] sm:$0xff]  ;;  %v2148_v51 = vpop.f32.mrf.mxu1 }
 0x1e7   : > { %7145 = vmatmul.msk.f32.vlgmr.msra.gmra.mxu3 %vm8367_vm10, %v8402_v32  ;;  %2527 = vmatmul.f32.vlgmr.msrb.gmra.mxu0 %v8394_v8 }
 0x1e8   : > { %2571 = vmatpush.msrb.mxu3 %v1716_v52  ;;  %2591 = vmatpush.msra.mxu0 %v1812_v57  ;;  %v2168_v52 = vpop.f32.mrf.mxu2  ;;  %v1752_v57 = vld [vmem:[#allocation8 + $0x1608] sm:$0xff] }
 0x1e9   : > { %2561 = vmatpush.msrb.mxu2 %v1560_v58  ;;  %2618 = vmatpush.msra.mxu1 %v1866_v60  ;;  %v1117_v58 = vld [vmem:[#allocation8 + $0x230] sm:$0xff]  ;;  %v2149_v60 = vadd.f32 %v2148_v51, %v2129_v39  ;;  %v1231_v39 = vld [vmem:[#allocation8 + $0x5c0] sm:$0xff] }
 0x1ea   : > { %2572 = vmatpush.msrb.mxu3 %v1710_v61  ;;  %2592 = vmatpush.msra.mxu0 %v1806_v41  ;;  %v1423_v61 = vld [vmem:[#allocation8 + $0xbc0] sm:$0xff]  ;;  %v1650_v41 = vld [vmem:[#allocation8 + $0x12d8] sm:$0xff]  ;;  %v1225_v51 = vld [vmem:[#allocation8 + $0x590] sm:$0xff] }
 0x1eb   : > { %2562 = vmatpush.msrb.mxu2 %v1554_v63  ;;  %2619 = vmatpush.msra.mxu1 %v1860_v0  ;;  %v2188_v63 = vpop.f32.mrf.mxu3  ;;  %v1746_v0 = vld [vmem:[#allocation8 + $0x15d8] sm:$0xff] }
 0x1ec   : > { %2573 = vmatpush.msrb.mxu3 %v1704_v1  ;;  %2593 = vmatpush.msra.mxu0 %v1800_v3  ;;  %v1111_v1 = vld [vmem:[#allocation8 + $0x200] sm:$0xff]  ;;  %v2169_v3 = vadd.f32 %v2168_v52, %v2149_v60  ;;  %v1321_v52 = vld [vmem:[#allocation8 + $0x890] sm:$0xff] }
 0x1ed   : > { %2563 = vmatpush.msrb.mxu2 %v1548_v4  ;;  %2620 = vmatpush.msra.mxu1 %v1854_v5  ;;  %v1417_v4 = vld [vmem:[#allocation8 + $0xb90] sm:$0xff]  ;;  %v1644_v5 = vld [vmem:[#allocation8 + $0x12a8] sm:$0xff] }
 0x1ee   : > { %2574 = vmatpush.msrb.mxu3 %v1698_v2  ;;  %2594 = vmatpush.msra.mxu0 %v1794_v6  ;;  %v1740_v2 = vld [vmem:[#allocation8 + $0x15a8] sm:$0xff]  ;;  %v1105_v6 = vld [vmem:[#allocation8 + $0x1d0] sm:$0xff]  ;;  %v2228_v27 = vpop.f32.mrf.mxu1 }
 0x1ef   : > { %2564 = vmatpush.msrb.mxu2 %v1542_v62  ;;  %2621 = vmatpush.msra.mxu1 %v1848_v9  ;;  %v2189_v62 = vadd.f32 %v2188_v63, %v2169_v3  ;;  %v1411_v9 = vld [vmem:[#allocation8 + $0xb60] sm:$0xff]  ;;  %v1369_v3 = vld [vmem:[#allocation8 + $0xa10] sm:$0xff] }
 0x1f0   : > { %2575 = vmatpush.msrb.mxu3 %v1692_v10  ;;  %2595 = vmatpush.msra.mxu0 %v1788_v13  ;;  %v1638_v10 = vld [vmem:[#allocation8 + $0x1278] sm:$0xff]  ;;  %v1219_v63 = vld [vmem:[#allocation8 + $0x560] sm:$0xff] }
 0x1f1   : > { %2565 = vmatpush.msrb.mxu2 %v1536_v14  ;;  %2622 = vmatpush.msra.mxu1 %v1842_v37  ;;  %v1734_v13 = vld [vmem:[#allocation8 + $0x1578] sm:$0xff]  ;;  %v1099_v14 = vld [vmem:[#allocation8 + $0x1a0] sm:$0xff]  ;;  %v1405_v37 = vld [vmem:[#allocation8 + $0xb30] sm:$0xff] }
 0x1f2   : > { %2576 = vmatpush.msrb.mxu3 %v1686_v15  ;;  %2596 = vmatpush.msra.mxu0 %v1782_v16  ;;  %v1632_v15 = vld [vmem:[#allocation8 + $0x1248] sm:$0xff]  ;;  %v2208_v16 = vpop.f32.mrf.mxu0 }
 0x1f3   : > { %2566 = vmatpush.msrb.mxu2 %v1530_v17  ;;  %2623 = vmatpush.msra.mxu1 %v1836_v18  ;;  %v1728_v17 = vld [vmem:[#allocation8 + $0x1548] sm:$0xff]  ;;  %v1093_v18 = vld [vmem:[#allocation8 + $0x170] sm:$0xff] }
 0x1f4   : > { %2567 = vmatmul.f32.vlgmr.msrb.gmra.mxu2 %v8437_v29  ;;  %2577 = vmatpush.msrb.mxu3 %v1680_v19  ;;  %v2209_v19 = vadd.f32 %v2208_v16, %v2189_v62 }
 0x1f5   : > { %2597 = vmatpush.msra.mxu0 %v1776_v20  ;;  %2631 = vmatpush.msra.mxu2 %v1141_v21  ;;  %v1399_v20 = vld [vmem:[#allocation8 + $0xb00] sm:$0xff]  ;;  %v1626_v21 = vld [vmem:[#allocation8 + $0x1218] sm:$0xff] }
 0x1f6   : > { %2624 = vmatpush.msra.mxu1 %v1830_v22  ;;  %2578 = vmatpush.msrb.mxu3 %v1674_v23  ;;  %v1722_v22 = vld [vmem:[#allocation8 + $0x1518] sm:$0xff]  ;;  %v1087_v23 = vld [vmem:[#allocation8 + $0x140] sm:$0xff] }
 0x1f7   : > { %2598 = vmatpush.msra.mxu0 %v1770_v26  ;;  %2632 = vmatpush.msra.mxu2 %v1135_v11  ;;  %v1393_v26 = vld [vmem:[#allocation8 + $0xad0] sm:$0xff]  ;;  %v2248_v11 = vpop.f32.mrf.mxu2 }
 0x1f8   : > { %2625 = vmatpush.msra.mxu1 %v1824_v28  ;;  %2579 = vmatpush.msrb.mxu3 %v1668_v33  ;;  %v1237_v28 = vld [vmem:[#allocation8 + $0x5f0] sm:$0xff]  ;;  %v2229_v33 = vadd.f32 %v2228_v27, %v2209_v19 }
 0x1f9   : > { %2599 = vmatpush.msra.mxu0 %v1764_v31  ;;  %2633 = vmatpush.msra.mxu2 %v1129_v36  ;;  %v1333_v31 = vld [vmem:[#allocation8 + $0x8f0] sm:$0xff]  ;;  %v2996_v36 = vperm.slane %v8476_v35, 2 }
 0x1fa   : > { %2626 = vmatpush.msra.mxu1 %v1818_v38  ;;  %2580 = vmatpush.msrb.mxu3 %v1662_v40  ;;  %v1387_v38 = vld [vmem:[#allocation8 + $0xaa0] sm:$0xff]  ;;  %v1525_v19 = vld [vmem:[#allocation8 + $0xef0] sm:$0xff] }
 0x1fb   : > { %2600 = vmatpush.msra.mxu0 %v1758_v43  ;;  %2627 = vmatmul.f32.vlgmr.msra.gmra.mxu1 %v8443_v59  ;;  %v2249_v43 = vadd.f32 %v2248_v11, %v2229_v33  ;;  %v3008_v60 = vperm.slane %v2996_v36, 0  ;;  %v1189_v27 = vld [vmem:[#allocation8 + $0x470] sm:$0xff]  ;;  %v1339_v36 = vld [vmem:[#allocation8 + $0x920] sm:$0xff] }
 0x1fc   : > { %2634 = vmatpush.msra.mxu2 %v1123_v44  ;;  %2691 = vmatpush.msrb.mxu1 %v1429_v45  ;;  %v1327_v44 = vld [vmem:[#allocation8 + $0x8c0] sm:$0xff]  ;;  %v1285_v11 = vld [vmem:[#allocation8 + $0x770] sm:$0xff] }
 0x1fd   : > { %2581 = vmatpush.msrb.mxu3 %v1656_v46  ;;  %2601 = vmatpush.msra.mxu0 %v1752_v57  ;;  %v1075_v45 = vld [vmem:[#allocation8 + $0xe0] sm:$0xff]  ;;  %v1381_v46 = vld [vmem:[#allocation8 + $0xa70] sm:$0xff] }
 0x1fe   : > { %2635 = vmatpush.msra.mxu2 %v1117_v58  ;;  %2692 = vmatpush.msrb.mxu1 %v1423_v61  ;;  %v1069_v57 = vld [vmem:[#allocation8 + $0xb0] sm:$0xff]  ;;  %v3020_v61 = vperm.slane %v8476_v35, 3  ;;  %v1363_v35 = vld [vmem:[#allocation8 + $0x9e0] sm:$0xff] }
 0x1ff   : > { %2582 = vmatpush.msrb.mxu3 %v1650_v41  ;;  %2602 = vmatpush.msra.mxu0 %v1746_v0  ;;  %v1375_v41 = vld [vmem:[#allocation8 + $0xa40] sm:$0xff] }
 0x200   : > { %2636 = vmatpush.msra.mxu2 %v1111_v1  ;;  %2693 = vmatpush.msrb.mxu1 %v1417_v4  ;;  %v1315_v0 = vld [vmem:[#allocation8 + $0x860] sm:$0xff]  ;;  %v1213_v4 = vld [vmem:[#allocation8 + $0x530] sm:$0xff]  ;;  %v3032_v62 = vperm.slane %v3020_v61, 1 }
 0x201   : > { %2583 = vmatpush.msrb.mxu3 %v1644_v5  ;;  %2603 = vmatpush.msra.mxu0 %v1740_v2  ;;  %v1063_v1 = vld [vmem:[#allocation8 + $0x80] sm:$0xff]  ;;  %v1309_v2 = vld [vmem:[#allocation8 + $0x830] sm:$0xff] }
 0x202   : > { %2637 = vmatpush.msra.mxu2 %v1105_v6  ;;  %2694 = vmatpush.msrb.mxu1 %v1411_v9  ;;  %v1057_v6 = vld [vmem:[#allocation8 + $0x50] sm:$0xff]  ;;  %v1207_v9 = vld [vmem:[#allocation8 + $0x500] sm:$0xff] }
 0x203   : > { %2584 = vmatpush.msrb.mxu3 %v1638_v10  ;;  %2604 = vmatpush.msra.mxu0 %v1734_v13  ;;  %v2268_v40 = vpop.f32.mrf.mxu3  ;;  %v1303_v10 = vld [vmem:[#allocation8 + $0x800] sm:$0xff] }
 0x204   : > { %2638 = vmatpush.msra.mxu2 %v1099_v14  ;;  %2695 = vmatpush.msrb.mxu1 %v1405_v37  ;;  %v2269_v58 = vadd.f32 %v2268_v40, %v2249_v43  ;;  %v1051_v13 = vld [vmem:[#allocation8 + $0x20] sm:$0xff]  ;;  %v1357_v14 = vld [vmem:[#allocation8 + $0x9b0] sm:$0xff] }
 0x205   : > { %2585 = vmatpush.msrb.mxu3 %v1632_v15  ;;  %2605 = vmatpush.msra.mxu0 %v1728_v17  ;;  %v1201_v37 = vld [vmem:[#allocation8 + $0x4d0] sm:$0xff]  ;;  %v1507_v40 = vld [vmem:[#allocation8 + $0xe60] sm:$0xff] }
 0x206   : > { %2639 = vmatpush.msra.mxu2 %v1093_v18  ;;  %2696 = vmatpush.msrb.mxu1 %v1399_v20  ;;  %v3014_v5 = vmul.f32 %v3008_v60, %v2269_v58  ;;  %v1297_v15 = vld [vmem:[#allocation8 + $0x7d0] sm:$0xff]  ;;  %v1351_v20 = vld [vmem:[#allocation8 + $0x980] sm:$0xff] }
 0x207   : > { %2586 = vmatpush.msrb.mxu3 %v1626_v21  ;;  %2606 = vmatpush.msra.mxu0 %v1722_v22  ;;  %v7413_v17 = vld [vmem:[#allocation2] sm:$0x3f]  ;;  %v1195_v21 = vld [vmem:[#allocation8 + $0x4a0] sm:$0xff] }
 0x208   : > { %2640 = vmatpush.msra.mxu2 %v1087_v23  ;;  %2697 = vmatpush.msrb.mxu1 %v1393_v26  ;;  %v3038_v16 = vadd.f32 %v3032_v62, %v3014_v5  ;;  %v821_v18 = vperm.slane %v7413_v17, 4  ;;  %v1291_v22 = vld [vmem:[#allocation8 + $0x7a0] sm:$0xff]  ;;  %v1345_v26 = vld [vmem:[#allocation8 + $0x950] sm:$0xff] }
 0x209   : > { %2587 = vmatmul.f32.vlgmr.msrb.gmra.mxu3 %v8423_v12  ;;  %2607 = vmatmul.f32.vlgmr.msra.gmra.mxu0 %v8433_v25  ;;  %v1519_v23 = vld [vmem:[#allocation8 + $0xec0] sm:$0xff]  ;;  %v1813_v43 = vld [vmem:[#allocation8 + $0x17f0] sm:$0xff] }
 0x20a   : > { %2651 = vmatpush.msra.mxu3 %v1237_v28  ;;  %2671 = vmatpush.msrb.mxu0 %v1333_v31  ;;  %v3044_v28 = vmax.f32 %v3038_v16, 0.0  ;;  %v827_v33 = vperm.slane %v821_v18, 0  ;;  %v833_v31 = vperm.slane %v7413_v17, 5  ;;  %v1171_v58 = vld [vmem:[#allocation8 + $0x3e0] sm:$0xff]  ;;  %v1777_v18 = vld [vmem:[#allocation8 + $0x16d0] sm:$0xff] }
 0x20b   : > { %2641 = vmatpush.msra.mxu2 %v1081_v34  ;;  %2698 = vmatpush.msrb.mxu1 %v1387_v38  ;;  %v1513_v34 = vld [vmem:[#allocation8 + $0xe90] sm:$0xff]  ;;  %v1183_v38 = vld [vmem:[#allocation8 + $0x440] sm:$0xff] }
 0x20c   : > { %2652 = vmatpush.msra.mxu3 %v1231_v39  ;;  %2672 = vmatpush.msrb.mxu0 %v1327_v44  ;;  %v1279_v39 = vld [vmem:[#allocation8 + $0x740] sm:$0xff]  ;;  %v830_v44 = vmul.f32 %v827_v33, %v8471_v7  ;;  %v1165_v7 = vld [vmem:[#allocation8 + $0x3b0] sm:$0xff] }
 0x20d   : > { %2642 = vmatpush.msra.mxu2 %v1075_v45  ;;  %2699 = vmatpush.msrb.mxu1 %v1381_v46  ;;  %v839_v45 = vperm.slane %v833_v31, 1  ;;  %v1177_v46 = vld [vmem:[#allocation8 + $0x410] sm:$0xff]  ;;  %v1267_v60 = vld [vmem:[#allocation8 + $0x6e0] sm:$0xff] }
 0x20e   : > { %2653 = vmatpush.msra.mxu3 %v1225_v51  ;;  %2673 = vmatpush.msrb.mxu0 %v1321_v52  ;;  %v1273_v51 = vld [vmem:[#allocation8 + $0x710] sm:$0xff]  ;;  %v1495_v61 = vld [vmem:[#allocation8 + $0xe00] sm:$0xff] }
 0x20f   : > { %2643 = vmatpush.msra.mxu2 %v1069_v57  ;;  %2700 = vmatpush.msrb.mxu1 %v1375_v41  ;;  %v1501_v52 = vld [vmem:[#allocation8 + $0xe30] sm:$0xff]  ;;  %v1807_v57 = vld [vmem:[#allocation8 + $0x17c0] sm:$0xff] }
 0x210   : > { %2654 = vmatpush.msra.mxu3 %v1219_v63  ;;  %2674 = vmatpush.msrb.mxu0 %v1315_v0  ;;  %v1801_v41 = vld [vmem:[#allocation8 + $0x1790] sm:$0xff]  ;;  %v842_v63 = vadd.f32 %v839_v45, %v830_v44  ;;  %v1255_v5 = vld [vmem:[#allocation8 + $0x680] sm:$0xff] }
 0x211   : > { %2644 = vmatpush.msra.mxu2 %v1063_v1  ;;  %2701 = vmatpush.msrb.mxu1 %v1369_v3  ;;  %v1261_v0 = vld [vmem:[#allocation8 + $0x6b0] sm:$0xff]  ;;  %v1795_v3 = vld [vmem:[#allocation8 + $0x1760] sm:$0xff] }
 0x212   : > { %2655 = vmatpush.msra.mxu3 %v1213_v4  ;;  %2675 = vmatpush.msrb.mxu0 %v1309_v2  ;;  %v1489_v1 = vld [vmem:[#allocation8 + $0xdd0] sm:$0xff]  ;;  %v1159_v4 = vld [vmem:[#allocation8 + $0x380] sm:$0xff]  ;;  %v845_v62 = vmax.f32 %v842_v63, 0.0 }
 0x213   : > { %2645 = vmatpush.msra.mxu2 %v1057_v6  ;;  %2702 = vmatpush.msrb.mxu1 %v1363_v35  ;;  %v1483_v2 = vld [vmem:[#allocation8 + $0xda0] sm:$0xff]  ;;  %v1789_v6 = vld [vmem:[#allocation8 + $0x1730] sm:$0xff] }
 0x214   : > { %2656 = vmatpush.msra.mxu3 %v1207_v9  ;;  %2676 = vmatpush.msrb.mxu0 %v1303_v10  ;;  %v1153_v35 = vld [vmem:[#allocation8 + $0x350] sm:$0xff]  ;;  %v1471_v17 = vld [vmem:[#allocation8 + $0xd40] sm:$0xff] }
 0x215   : > { %2646 = vmatpush.msra.mxu2 %v1051_v13  ;;  %2703 = vmatpush.msrb.mxu1 %v1357_v14  ;;  %v1249_v9 = vld [vmem:[#allocation8 + $0x650] sm:$0xff]  ;;  %v1783_v13 = vld [vmem:[#allocation8 + $0x1700] sm:$0xff] }
 0x216   : > { %7146 = vmatmul.msk.f32.vlgmr.msra.gmra.mxu2 %vm8367_vm10, %v8371_v49  ;;  %2657 = vmatpush.msra.mxu3 %v1201_v37  ;;  %v1477_v10 = vld [vmem:[#allocation8 + $0xd70] sm:$0xff]  ;;  %v1147_v37 = vld [vmem:[#allocation8 + $0x320] sm:$0xff] }
 0x217   : > { %2677 = vmatpush.msrb.mxu0 %v1297_v15  ;;  %2711 = vmatpush.msrb.mxu2 %v1525_v19  ;;  %v1243_v15 = vld [vmem:[#allocation8 + $0x620] sm:$0xff]  ;;  %v1621_v19 = vld [vmem:[#allocation8 + $0x11f0] sm:$0xff] }
 0x218   : > { %2704 = vmatpush.msrb.mxu1 %v1351_v20  ;;  %2658 = vmatpush.msra.mxu3 %v1195_v21  ;;  %v1717_v20 = vld [vmem:[#allocation8 + $0x14f0] sm:$0xff]  ;;  %v1735_v63 = vld [vmem:[#allocation8 + $0x1580] sm:$0xff] }
 0x219   : > { %2678 = vmatpush.msrb.mxu0 %v1291_v22  ;;  %2712 = vmatpush.msrb.mxu2 %v1519_v23  ;;  %v1465_v21 = vld [vmem:[#allocation8 + $0xd10] sm:$0xff]  ;;  %v1771_v22 = vld [vmem:[#allocation8 + $0x16a0] sm:$0xff] }
 0x21a   : > { %2705 = vmatpush.msrb.mxu1 %v1345_v26  ;;  %2659 = vmatpush.msra.mxu3 %v1189_v27  ;;  %v1615_v23 = vld [vmem:[#allocation8 + $0x11c0] sm:$0xff]  ;;  %v1705_v33 = vld [vmem:[#allocation8 + $0x1490] sm:$0xff] }
 0x21b   : > { %2679 = vmatpush.msrb.mxu0 %v1285_v11  ;;  %2713 = vmatpush.msrb.mxu2 %v1513_v34  ;;  %v1711_v26 = vld [vmem:[#allocation8 + $0x14c0] sm:$0xff]  ;;  %v1765_v11 = vld [vmem:[#allocation8 + $0x1670] sm:$0xff] }
 0x21c   : > { %6821 = vrot.lane.b32.xlu2 %v3044_v28, %s7885_s16  ;;  %2706 = vmatpush.msrb.mxu1 %v1339_v36  ;;  %v1459_v27 = vld [vmem:[#allocation8 + $0xce0] sm:$0xff]  ;;  %v1609_v28 = vld [vmem:[#allocation8 + $0x1190] sm:$0xff] }
 0x21d   : > { %2660 = vmatpush.msra.mxu3 %v1183_v38  ;;  %2680 = vmatpush.msrb.mxu0 %v1279_v39  ;;  %v1453_v31 = vld [vmem:[#allocation8 + $0xcb0] sm:$0xff]  ;;  %v1759_v34 = vld [vmem:[#allocation8 + $0x1640] sm:$0xff] }
 0x21e   : > { %2707 = vmatmul.f32.vlgmr.msrb.gmra.mxu1 %v8394_v8  ;;  %2714 = vmatpush.msrb.mxu2 %v1507_v40  ;;  %v1603_v36 = vld [vmem:[#allocation8 + $0x1160] sm:$0xff]  ;;  %v1753_v40 = vld [vmem:[#allocation8 + $0x1610] sm:$0xff] }
 0x21f   : > { %2771 = vmatpush.msra.mxu1 %v1813_v43  ;;  %2661 = vmatpush.msra.mxu3 %v1177_v46  ;;  %v1699_v38 = vld [vmem:[#allocation8 + $0x1460] sm:$0xff]  ;;  %v1597_v43 = vld [vmem:[#allocation8 + $0x1130] sm:$0xff] }
 0x220   : > { %2681 = vmatpush.msrb.mxu0 %v1273_v51  ;;  %2715 = vmatpush.msrb.mxu2 %v1501_v52  ;;  %v1447_v39 = vld [vmem:[#allocation8 + $0xc80] sm:$0xff]  ;;  %v1693_v44 = vld [vmem:[#allocation8 + $0x1430] sm:$0xff] }
 0x221   : > { %2772 = vmatpush.msra.mxu1 %v1807_v57  ;;  %2662 = vmatpush.msra.mxu3 %v1171_v58  ;;  %v1441_v45 = vld [vmem:[#allocation8 + $0xc50] sm:$0xff]  ;;  %v1747_v46 = vld [vmem:[#allocation8 + $0x15e0] sm:$0xff] }
 0x222   : > { %2682 = vmatpush.msrb.mxu0 %v1267_v60  ;;  %2716 = vmatpush.msrb.mxu2 %v1495_v61  ;;  %v1591_v51 = vld [vmem:[#allocation8 + $0x1100] sm:$0xff]  ;;  %v1741_v58 = vld [vmem:[#allocation8 + $0x15b0] sm:$0xff] }
 0x223   : > { %2773 = vmatpush.msra.mxu1 %v1801_v41  ;;  %2663 = vmatpush.msra.mxu3 %v1165_v7  ;;  %v1687_v52 = vld [vmem:[#allocation8 + $0x1400] sm:$0xff]  ;;  %v1585_v60 = vld [vmem:[#allocation8 + $0x10d0] sm:$0xff] }
 0x224   : > { %2683 = vmatpush.msrb.mxu0 %v1261_v0  ;;  %2717 = vmatpush.msrb.mxu2 %v1489_v1  ;;  %v1435_v57 = vld [vmem:[#allocation8 + $0xc20] sm:$0xff]  ;;  %v1681_v61 = vld [vmem:[#allocation8 + $0x13d0] sm:$0xff] }
 0x225   : > { %2774 = vmatpush.msra.mxu1 %v1795_v3  ;;  %2664 = vmatpush.msra.mxu3 %v1159_v4  ;;  %v8506_v14 = vpop.permute.xlu2 %6819  ;;  %v1909_v41 = vld [vmem:[#allocation8 + $0x1af0] sm:$0xff]  ;;  %v1579_v7 = vld [vmem:[#allocation8 + $0x10a0] sm:$0xff] }
 0x226   : > { %2684 = vmatpush.msrb.mxu0 %v1255_v5  ;;  %2718 = vmatpush.msrb.mxu2 %v1483_v2  ;;  %v6882_v16 = vsel %vm3303_vm14, %v845_v62, %v8506_v14  ;;  %v1675_v0 = vld [vmem:[#allocation8 + $0x13a0] sm:$0xff]  ;;  %v1729_v3 = vld [vmem:[#allocation8 + $0x1550] sm:$0xff] }
 0x227   : > { %2775 = vmatpush.msra.mxu1 %v1789_v6  ;;  %2665 = vmatpush.msra.mxu3 %v1153_v35  ;;  %6887 = vst [vmem:[%s8363_s24 + $0x10] sm:$0xff] %v6882_v16  ;;  %v1903_v1 = vld [vmem:[#allocation8 + $0x1ac0] sm:$0xff]  ;;  %v1573_v4 = vld [vmem:[#allocation8 + $0x1070] sm:$0xff]  ;;  %v1328_v16 = vld [vmem:[#allocation8 + $0x8c8] sm:$0xff] }
 0x228   : > { %2685 = vmatpush.msrb.mxu0 %v1249_v9  ;;  %2719 = vmatpush.msrb.mxu2 %v1477_v10  ;;  %v1669_v5 = vld [vmem:[#allocation8 + $0x1370] sm:$0xff]  ;;  %v1723_v6 = vld [vmem:[#allocation8 + $0x1520] sm:$0xff]  ;;  %v1334_v10 = vld [vmem:[#allocation8 + $0x8f8] sm:$0xff] }
 0x229   : > { %2776 = vmatpush.msra.mxu1 %v1783_v13  ;;  %2666 = vmatpush.msra.mxu3 %v1147_v37  ;;  %v1897_v2 = vld [vmem:[#allocation8 + $0x1a90] sm:$0xff]  ;;  %v1567_v62 = vld [vmem:[#allocation8 + $0x1040] sm:$0xff] }
 0x22a   : > { %2686 = vmatpush.msrb.mxu0 %v1243_v15  ;;  %2720 = vmatpush.msrb.mxu2 %v1471_v17  ;;  %v1663_v35 = vld [vmem:[#allocation8 + $0x1340] sm:$0xff]  ;;  %v1561_v13 = vld [vmem:[#allocation8 + $0x1010] sm:$0xff] }
 0x22b   : > { %2777 = vmatpush.msra.mxu1 %v1777_v18  ;;  %7147 = vmatmul.msk.f32.vlgmr.msra.gmra.mxu3 %vm8367_vm10, %v8400_v30  ;;  %v1891_v9 = vld [vmem:[#allocation8 + $0x1a60] sm:$0xff]  ;;  %v1657_v37 = vld [vmem:[#allocation8 + $0x1310] sm:$0xff] }
 0x22c   : > { %7148 = vmatmul.msk.f32.vlgmr.msrb.gmra.mxu0 %vm8367_vm10, %v8402_v32  ;;  %2731 = vmatpush.msrb.mxu3 %v1621_v19  ;;  %v1885_v15 = vld [vmem:[#allocation8 + $0x1a30] sm:$0xff]  ;;  %v1555_v17 = vld [vmem:[#allocation8 + $0xfe0] sm:$0xff] }
 0x22d   : > { %2751 = vmatpush.msra.mxu0 %v1717_v20  ;;  %2721 = vmatpush.msrb.mxu2 %v1465_v21  ;;  %v1651_v18 = vld [vmem:[#allocation8 + $0x12e0] sm:$0xff]  ;;  %v1322_v20 = vld [vmem:[#allocation8 + $0x898] sm:$0xff]  ;;  %v1549_v21 = vld [vmem:[#allocation8 + $0xfb0] sm:$0xff] }
 0x22e   : > { %2778 = vmatpush.msra.mxu1 %v1771_v22  ;;  %2732 = vmatpush.msrb.mxu3 %v1615_v23  ;;  %v1879_v19 = vld [vmem:[#allocation8 + $0x1a00] sm:$0xff]  ;;  %v1645_v22 = vld [vmem:[#allocation8 + $0x12b0] sm:$0xff] }
 0x22f   : > { %2752 = vmatpush.msra.mxu0 %v1711_v26  ;;  %2722 = vmatpush.msrb.mxu2 %v1459_v27  ;;  %v1873_v23 = vld [vmem:[#allocation8 + $0x19d0] sm:$0xff]  ;;  %v1316_v26 = vld [vmem:[#allocation8 + $0x868] sm:$0xff]  ;;  %v1543_v27 = vld [vmem:[#allocation8 + $0xf80] sm:$0xff] }
 0x230   : > { %2779 = vmatpush.msra.mxu1 %v1765_v11  ;;  %2733 = vmatpush.msrb.mxu3 %v1609_v28  ;;  %v1639_v11 = vld [vmem:[#allocation8 + $0x1280] sm:$0xff] }
 0x231   : > { %2753 = vmatpush.msra.mxu0 %v1705_v33  ;;  %2723 = vmatpush.msrb.mxu2 %v1453_v31  ;;  %v1867_v28 = vld [vmem:[#allocation8 + $0x19a0] sm:$0xff]  ;;  %v1310_v33 = vld [vmem:[#allocation8 + $0x838] sm:$0xff]  ;;  %v1537_v31 = vld [vmem:[#allocation8 + $0xf50] sm:$0xff] }
 0x232   : > { %2780 = vmatpush.msra.mxu1 %v1759_v34  ;;  %2734 = vmatpush.msrb.mxu3 %v1603_v36  ;;  %v1633_v34 = vld [vmem:[#allocation8 + $0x1250] sm:$0xff] }
 0x233   : > { %2754 = vmatpush.msra.mxu0 %v1699_v38  ;;  %2724 = vmatpush.msrb.mxu2 %v1447_v39  ;;  %v1861_v36 = vld [vmem:[#allocation8 + $0x1970] sm:$0xff]  ;;  %v1304_v38 = vld [vmem:[#allocation8 + $0x808] sm:$0xff]  ;;  %v1531_v39 = vld [vmem:[#allocation8 + $0xf20] sm:$0xff] }
 0x234   : > { %2781 = vmatpush.msra.mxu1 %v1753_v40  ;;  %2735 = vmatpush.msrb.mxu3 %v1597_v43  ;;  %v1627_v40 = vld [vmem:[#allocation8 + $0x1220] sm:$0xff] }
 0x235   : > { %2755 = vmatpush.msra.mxu0 %v1693_v44  ;;  %2725 = vmatpush.msrb.mxu2 %v1441_v45  ;;  %v1855_v43 = vld [vmem:[#allocation8 + $0x1940] sm:$0xff]  ;;  %v1298_v44 = vld [vmem:[#allocation8 + $0x7d8] sm:$0xff] }
 0x236   : > { %2782 = vmatpush.msra.mxu1 %v1747_v46  ;;  %2736 = vmatpush.msrb.mxu3 %v1591_v51  ;;  %v1142_v45 = vld [vmem:[#allocation8 + $0x2f8] sm:$0xff]  ;;  %v1849_v51 = vld [vmem:[#allocation8 + $0x1910] sm:$0xff] }
 0x237   : > { %2756 = vmatpush.msra.mxu0 %v1687_v52  ;;  %2726 = vmatpush.msrb.mxu2 %v1435_v57  ;;  %v1238_v46 = vld [vmem:[#allocation8 + $0x5f8] sm:$0xff]  ;;  %v1292_v52 = vld [vmem:[#allocation8 + $0x7a8] sm:$0xff] }
 0x238   : > { %2783 = vmatpush.msra.mxu1 %v1741_v58  ;;  %2727 = vmatmul.f32.vlgmr.msrb.gmra.mxu2 %v8430_v24  ;;  %v1136_v57 = vld [vmem:[#allocation8 + $0x2c8] sm:$0xff] }
 0x239   : > { %2737 = vmatpush.msrb.mxu3 %v1585_v60  ;;  %2757 = vmatpush.msra.mxu0 %v1681_v61  ;;  %v1232_v58 = vld [vmem:[#allocation8 + $0x5c8] sm:$0xff]  ;;  %v1843_v60 = vld [vmem:[#allocation8 + $0x18e0] sm:$0xff]  ;;  %v1286_v61 = vld [vmem:[#allocation8 + $0x778] sm:$0xff] }
 0x23a   : > { %2791 = vmatpush.msra.mxu2 %v1909_v41  ;;  %2784 = vmatpush.msra.mxu1 %v1735_v63  ;;  %v1130_v41 = vld [vmem:[#allocation8 + $0x298] sm:$0xff] }
 0x23b   : > { %2738 = vmatpush.msrb.mxu3 %v1579_v7  ;;  %2758 = vmatpush.msra.mxu0 %v1675_v0  ;;  %v1226_v63 = vld [vmem:[#allocation8 + $0x598] sm:$0xff]  ;;  %v1837_v7 = vld [vmem:[#allocation8 + $0x18b0] sm:$0xff]  ;;  %v1280_v0 = vld [vmem:[#allocation8 + $0x748] sm:$0xff] }
 0x23c   : > { %2792 = vmatpush.msra.mxu2 %v1903_v1  ;;  %2785 = vmatpush.msra.mxu1 %v1729_v3  ;;  %v1124_v1 = vld [vmem:[#allocation8 + $0x268] sm:$0xff] }
 0x23d   : > { %2739 = vmatpush.msrb.mxu3 %v1573_v4  ;;  %2759 = vmatpush.msra.mxu0 %v1669_v5  ;;  %v1220_v3 = vld [vmem:[#allocation8 + $0x568] sm:$0xff]  ;;  %v1831_v4 = vld [vmem:[#allocation8 + $0x1880] sm:$0xff]  ;;  %v1274_v5 = vld [vmem:[#allocation8 + $0x718] sm:$0xff] }
 0x23e   : > { %2793 = vmatpush.msra.mxu2 %v1897_v2  ;;  %2786 = vmatpush.msra.mxu1 %v1723_v6  ;;  %v1118_v2 = vld [vmem:[#allocation8 + $0x238] sm:$0xff] }
 0x23f   : > { %2740 = vmatpush.msrb.mxu3 %v1567_v62  ;;  %2760 = vmatpush.msra.mxu0 %v1663_v35  ;;  %v1214_v6 = vld [vmem:[#allocation8 + $0x538] sm:$0xff]  ;;  %v1825_v62 = vld [vmem:[#allocation8 + $0x1850] sm:$0xff]  ;;  %v1268_v35 = vld [vmem:[#allocation8 + $0x6e8] sm:$0xff] }
 0x240   : > { %2787 = vmatmul.f32.vlgmr.msra.gmra.mxu1 %v8433_v25  ;;  %2794 = vmatpush.msra.mxu2 %v1891_v9  ;;  %v1112_v9 = vld [vmem:[#allocation8 + $0x208] sm:$0xff] }
 0x241   : > { %2851 = vmatpush.msrb.mxu1 %v1334_v10  ;;  %2741 = vmatpush.msrb.mxu3 %v1561_v13  ;;  %v1208_v10 = vld [vmem:[#allocation8 + $0x508] sm:$0xff]  ;;  %v1819_v13 = vld [vmem:[#allocation8 + $0x1820] sm:$0xff] }
 0x242   : > { %2761 = vmatpush.msra.mxu0 %v1657_v37  ;;  %2795 = vmatpush.msra.mxu2 %v1885_v15  ;;  %v1262_v37 = vld [vmem:[#allocation8 + $0x6b8] sm:$0xff] }
 0x243   : > { %2852 = vmatpush.msrb.mxu1 %v1328_v16  ;;  %2742 = vmatpush.msrb.mxu3 %v1555_v17  ;;  %v1106_v15 = vld [vmem:[#allocation8 + $0x1d8] sm:$0xff] }
 0x244   : > { %2762 = vmatpush.msra.mxu0 %v1651_v18  ;;  %2796 = vmatpush.msra.mxu2 %v1879_v19  ;;  %v1202_v16 = vld [vmem:[#allocation8 + $0x4d8] sm:$0xff]  ;;  %v1256_v18 = vld [vmem:[#allocation8 + $0x688] sm:$0xff] }
 0x245   : > { %2853 = vmatpush.msrb.mxu1 %v1322_v20  ;;  %2743 = vmatpush.msrb.mxu3 %v1549_v21  ;;  %v1430_v17 = vld [vmem:[#allocation8 + $0xbf8] sm:$0xff]  ;;  %v1100_v19 = vld [vmem:[#allocation8 + $0x1a8] sm:$0xff] }
 0x246   : > { %2763 = vmatpush.msra.mxu0 %v1645_v22  ;;  %2797 = vmatpush.msra.mxu2 %v1873_v23  ;;  %v1196_v20 = vld [vmem:[#allocation8 + $0x4a8] sm:$0xff]  ;;  %v1250_v22 = vld [vmem:[#allocation8 + $0x658] sm:$0xff] }
 0x247   : > { %2854 = vmatpush.msrb.mxu1 %v1316_v26  ;;  %2744 = vmatpush.msrb.mxu3 %v1543_v27  ;;  %v1424_v21 = vld [vmem:[#allocation8 + $0xbc8] sm:$0xff]  ;;  %v1094_v23 = vld [vmem:[#allocation8 + $0x178] sm:$0xff] }
 0x248   : > { %2764 = vmatpush.msra.mxu0 %v1639_v11  ;;  %2798 = vmatpush.msra.mxu2 %v1867_v28  ;;  %v1190_v26 = vld [vmem:[#allocation8 + $0x478] sm:$0xff]  ;;  %v1244_v11 = vld [vmem:[#allocation8 + $0x628] sm:$0xff] }
 0x249   : > { %2855 = vmatpush.msrb.mxu1 %v1310_v33  ;;  %2745 = vmatpush.msrb.mxu3 %v1537_v31  ;;  %v1418_v27 = vld [vmem:[#allocation8 + $0xb98] sm:$0xff]  ;;  %v1088_v28 = vld [vmem:[#allocation8 + $0x148] sm:$0xff] }
 0x24a   : > { %2765 = vmatpush.msra.mxu0 %v1633_v34  ;;  %2799 = vmatpush.msra.mxu2 %v1861_v36  ;;  %v1184_v33 = vld [vmem:[#allocation8 + $0x448] sm:$0xff]  ;;  %v1718_v34 = vld [vmem:[#allocation8 + $0x14f8] sm:$0xff] }
 0x24b   : > { %2856 = vmatpush.msrb.mxu1 %v1304_v38  ;;  %2746 = vmatpush.msrb.mxu3 %v1531_v39  ;;  %v1412_v31 = vld [vmem:[#allocation8 + $0xb68] sm:$0xff]  ;;  %v1082_v36 = vld [vmem:[#allocation8 + $0x118] sm:$0xff] }
 0x24c   : > { %2766 = vmatpush.msra.mxu0 %v1627_v40  ;;  %2800 = vmatpush.msra.mxu2 %v1855_v43  ;;  %v1178_v38 = vld [vmem:[#allocation8 + $0x418] sm:$0xff]  ;;  %v1712_v40 = vld [vmem:[#allocation8 + $0x14c8] sm:$0xff] }
 0x24d   : > { %2857 = vmatpush.msrb.mxu1 %v1298_v44  ;;  %2747 = vmatmul.f32.vlgmr.msrb.gmra.mxu3 %v8437_v29  ;;  %v1406_v39 = vld [vmem:[#allocation8 + $0xb38] sm:$0xff]  ;;  %v1076_v43 = vld [vmem:[#allocation8 + $0xe8] sm:$0xff] }
 0x24e   : > { %2767 = vmatmul.f32.vlgmr.msra.gmra.mxu0 %v8423_v12  ;;  %2811 = vmatpush.msra.mxu3 %v1142_v45  ;;  %v1172_v44 = vld [vmem:[#allocation8 + $0x3e8] sm:$0xff] }
 0x24f   : > { %2831 = vmatpush.msrb.mxu0 %v1238_v46  ;;  %2801 = vmatpush.msra.mxu2 %v1849_v51  ;;  %v1400_v45 = vld [vmem:[#allocation8 + $0xb08] sm:$0xff]  ;;  %v1706_v46 = vld [vmem:[#allocation8 + $0x1498] sm:$0xff] }
 0x250   : > { %2858 = vmatpush.msrb.mxu1 %v1292_v52  ;;  %2812 = vmatpush.msra.mxu3 %v1136_v57  ;;  %v1070_v51 = vld [vmem:[#allocation8 + $0xb8] sm:$0xff] }
 0x251   : > { %2832 = vmatpush.msrb.mxu0 %v1232_v58  ;;  %2802 = vmatpush.msra.mxu2 %v1843_v60  ;;  %v1166_v52 = vld [vmem:[#allocation8 + $0x3b8] sm:$0xff]  ;;  %v1700_v58 = vld [vmem:[#allocation8 + $0x1468] sm:$0xff] }
 0x252   : > { %2859 = vmatpush.msrb.mxu1 %v1286_v61  ;;  %2813 = vmatpush.msra.mxu3 %v1130_v41  ;;  %v1394_v57 = vld [vmem:[#allocation8 + $0xad8] sm:$0xff]  ;;  %v1160_v60 = vld [vmem:[#allocation8 + $0x388] sm:$0xff] }
 0x253   : > { %2833 = vmatpush.msrb.mxu0 %v1226_v63  ;;  %2803 = vmatpush.msra.mxu2 %v1837_v7  ;;  %v1388_v61 = vld [vmem:[#allocation8 + $0xaa8] sm:$0xff]  ;;  %v1694_v41 = vld [vmem:[#allocation8 + $0x1438] sm:$0xff] }
 0x254   : > { %2860 = vmatpush.msrb.mxu1 %v1280_v0  ;;  %2814 = vmatpush.msra.mxu3 %v1124_v1  ;;  %v1058_v63 = vld [vmem:[#allocation8 + $0x58] sm:$0xff]  ;;  %v1688_v1 = vld [vmem:[#allocation8 + $0x1408] sm:$0xff] }
 0x255   : > { %2834 = vmatpush.msrb.mxu0 %v1220_v3  ;;  %2804 = vmatpush.msra.mxu2 %v1831_v4  ;;  %v1154_v7 = vld [vmem:[#allocation8 + $0x358] sm:$0xff]  ;;  %v1052_v3 = vld [vmem:[#allocation8 + $0x28] sm:$0xff] }
 0x256   : > { %2861 = vmatpush.msrb.mxu1 %v1274_v5  ;;  %2815 = vmatpush.msra.mxu3 %v1118_v2  ;;  %v1382_v0 = vld [vmem:[#allocation8 + $0xa78] sm:$0xff]  ;;  %v1148_v4 = vld [vmem:[#allocation8 + $0x328] sm:$0xff] }
 0x257   : > { %2835 = vmatpush.msrb.mxu0 %v1214_v6  ;;  %2805 = vmatpush.msra.mxu2 %v1825_v62  ;;  %v1376_v5 = vld [vmem:[#allocation8 + $0xa48] sm:$0xff]  ;;  %v1682_v2 = vld [vmem:[#allocation8 + $0x13d8] sm:$0xff] }
 0x258   : > { %2862 = vmatpush.msrb.mxu1 %v1268_v35  ;;  %2816 = vmatpush.msra.mxu3 %v1112_v9  ;;  %v1526_v6 = vld [vmem:[#allocation8 + $0xef8] sm:$0xff]  ;;  %v1676_v9 = vld [vmem:[#allocation8 + $0x13a8] sm:$0xff] }
 0x259   : > { %2836 = vmatpush.msrb.mxu0 %v1208_v10  ;;  %2806 = vmatpush.msra.mxu2 %v1819_v13  ;;  %v1622_v62 = vld [vmem:[#allocation8 + $0x11f8] sm:$0xff]  ;;  %v1520_v10 = vld [vmem:[#allocation8 + $0xec8] sm:$0xff] }
 0x25a   : > { %2863 = vmatpush.msrb.mxu1 %v1262_v37  ;;  %2807 = vmatmul.f32.vlgmr.msra.gmra.mxu2 %v8443_v59  ;;  %v1370_v35 = vld [vmem:[#allocation8 + $0xa18] sm:$0xff]  ;;  %v1616_v13 = vld [vmem:[#allocation8 + $0x11c8] sm:$0xff] }
 0x25b   : > { %2817 = vmatpush.msra.mxu3 %v1106_v15  ;;  %2837 = vmatpush.msrb.mxu0 %v1202_v16  ;;  %v1364_v37 = vld [vmem:[#allocation8 + $0x9e8] sm:$0xff]  ;;  %v1670_v15 = vld [vmem:[#allocation8 + $0x1378] sm:$0xff] }
 0x25c   : > { %2871 = vmatpush.msrb.mxu2 %v1430_v17  ;;  %2864 = vmatpush.msrb.mxu1 %v1256_v18  ;;  %v1514_v16 = vld [vmem:[#allocation8 + $0xe98] sm:$0xff] }
 0x25d   : > { %2818 = vmatpush.msra.mxu3 %v1100_v19  ;;  %2838 = vmatpush.msrb.mxu0 %v1196_v20  ;;  %v1610_v17 = vld [vmem:[#allocation8 + $0x1198] sm:$0xff]  ;;  %v1664_v19 = vld [vmem:[#allocation8 + $0x1348] sm:$0xff] }
 0x25e   : > { %2872 = vmatpush.msrb.mxu2 %v1424_v21  ;;  %2865 = vmatpush.msrb.mxu1 %v1250_v22  ;;  %v1358_v18 = vld [vmem:[#allocation8 + $0x9b8] sm:$0xff]  ;;  %v1604_v20 = vld [vmem:[#allocation8 + $0x1168] sm:$0xff] }
 0x25f   : > { %2819 = vmatpush.msra.mxu3 %v1094_v23  ;;  %2839 = vmatpush.msrb.mxu0 %v1190_v26  ;;  %v1658_v21 = vld [vmem:[#allocation8 + $0x1318] sm:$0xff] }
 0x260   : > { %2873 = vmatpush.msrb.mxu2 %v1418_v27  ;;  %2866 = vmatpush.msrb.mxu1 %v1244_v11  ;;  %v1502_v22 = vld [vmem:[#allocation8 + $0xe38] sm:$0xff]  ;;  %v1652_v11 = vld [vmem:[#allocation8 + $0x12e8] sm:$0xff] }
 0x261   : > { %2820 = vmatpush.msra.mxu3 %v1088_v28  ;;  %2840 = vmatpush.msrb.mxu0 %v1184_v33  ;;  %v1598_v23 = vld [vmem:[#allocation8 + $0x1138] sm:$0xff]  ;;  %v1496_v33 = vld [vmem:[#allocation8 + $0xe08] sm:$0xff] }
 0x262   : > { %7151 = vmatmul.msk.f32.vlgmr.msrb.gmra.mxu1 %vm8367_vm10, %v8402_v32  ;;  %2874 = vmatpush.msrb.mxu2 %v1412_v31  ;;  %v1064_v32 = vld [vmem:[#allocation8 + $0x88] sm:$0xff]  ;;  %v1346_v27 = vld [vmem:[#allocation8 + $0x958] sm:$0xff] }
 0x263   : > { %2931 = vmatpush.msra.mxu1 %v1718_v34  ;;  %2821 = vmatpush.msra.mxu3 %v1082_v36  ;;  %v1592_v31 = vld [vmem:[#allocation8 + $0x1108] sm:$0xff]  ;;  %v1646_v36 = vld [vmem:[#allocation8 + $0x12b8] sm:$0xff] }
 0x264   : > { %2841 = vmatpush.msrb.mxu0 %v1178_v38  ;;  %2875 = vmatpush.msrb.mxu2 %v1406_v39  ;;  %v1340_v34 = vld [vmem:[#allocation8 + $0x928] sm:$0xff]  ;;  %v1490_v38 = vld [vmem:[#allocation8 + $0xdd8] sm:$0xff] }
 0x265   : > { %2932 = vmatpush.msra.mxu1 %v1712_v40  ;;  %2822 = vmatpush.msra.mxu3 %v1076_v43  ;;  %v1586_v39 = vld [vmem:[#allocation8 + $0x10d8] sm:$0xff]  ;;  %v1640_v43 = vld [vmem:[#allocation8 + $0x1288] sm:$0xff] }
 0x266   : > { %2842 = vmatpush.msrb.mxu0 %v1172_v44  ;;  %2876 = vmatpush.msrb.mxu2 %v1400_v45  ;;  %v1814_v40 = vld [vmem:[#allocation8 + $0x17f8] sm:$0xff]  ;;  %v1580_v44 = vld [vmem:[#allocation8 + $0x10a8] sm:$0xff] }
 0x267   : > { %2933 = vmatpush.msra.mxu1 %v1706_v46  ;;  %2823 = vmatpush.msra.mxu3 %v1070_v51  ;;  %v1808_v45 = vld [vmem:[#allocation8 + $0x17c8] sm:$0xff]  ;;  %v1634_v46 = vld [vmem:[#allocation8 + $0x1258] sm:$0xff] }
 0x268   : > { %2843 = vmatpush.msrb.mxu0 %v1166_v52  ;;  %2877 = vmatpush.msrb.mxu2 %v1394_v57  ;;  %v1478_v51 = vld [vmem:[#allocation8 + $0xd78] sm:$0xff] }
 0x269   : > { %2934 = vmatpush.msra.mxu1 %v1700_v58  ;;  %2824 = vmatpush.msra.mxu3 %v1064_v32  ;;  %v1574_v52 = vld [vmem:[#allocation8 + $0x1078] sm:$0xff]  ;;  %v1628_v58 = vld [vmem:[#allocation8 + $0x1228] sm:$0xff] }
 0x26a   : > { %2844 = vmatpush.msrb.mxu0 %v1160_v60  ;;  %2878 = vmatpush.msrb.mxu2 %v1388_v61  ;;  %v1802_v57 = vld [vmem:[#allocation8 + $0x1798] sm:$0xff]  ;;  %v1472_v32 = vld [vmem:[#allocation8 + $0xd48] sm:$0xff] }
 0x26b   : > { %2935 = vmatpush.msra.mxu1 %v1694_v41  ;;  %2825 = vmatpush.msra.mxu3 %v1058_v63  ;;  %v1568_v60 = vld [vmem:[#allocation8 + $0x1048] sm:$0xff]  ;;  %v1466_v61 = vld [vmem:[#allocation8 + $0xd18] sm:$0xff] }
 0x26c   : > { %2845 = vmatpush.msrb.mxu0 %v1154_v7  ;;  %2879 = vmatpush.msrb.mxu2 %v1382_v0  ;;  %v1562_v41 = vld [vmem:[#allocation8 + $0x1018] sm:$0xff]  ;;  %v1460_v0 = vld [vmem:[#allocation8 + $0xce8] sm:$0xff] }
 0x26d   : > { %2936 = vmatpush.msra.mxu1 %v1688_v1  ;;  %2826 = vmatpush.msra.mxu3 %v1052_v3  ;;  %v3110_v63 = vld [vmem:[%s9567_s15 + $0x1e8] sm:$0xff]  ;;  %v1556_v1 = vld [vmem:[#allocation8 + $0xfe8] sm:$0xff] }
 0x26e   : > { %2846 = vmatpush.msrb.mxu0 %v1148_v4  ;;  %2880 = vmatpush.msrb.mxu2 %v1376_v5  ;;  %v1790_v7 = vld [vmem:[#allocation8 + $0x1738] sm:$0xff]  ;;  %v1784_v4 = vld [vmem:[#allocation8 + $0x1708] sm:$0xff] }
 0x26f   : > { %2937 = vmatpush.msra.mxu1 %v1682_v2  ;;  %7149 = vmatmul.msk.f32.vlgmr.msra.gmra.mxu3 %vm8367_vm10, %v8371_v49  ;;  %v1508_v49 = vld [vmem:[#allocation8 + $0xe68] sm:$0xff]  ;;  %v3106_v3 = vld [vmem:[%s9567_s15 + $0x1c8] sm:$0xff] }
 0x270   : > { %7150 = vmatmul.msk.f32.vlgmr.msrb.gmra.mxu0 %vm8367_vm10, %v8400_v30  ;;  %2891 = vmatpush.msrb.mxu3 %v1526_v6  ;;  %v1352_v30 = vld [vmem:[#allocation8 + $0x988] sm:$0xff]  ;;  %v1454_v5 = vld [vmem:[#allocation8 + $0xcb8] sm:$0xff] }
 0x271   : > { %2911 = vmatpush.msra.mxu0 %v1622_v62  ;;  %2881 = vmatpush.msrb.mxu2 %v1370_v35  ;;  %v1550_v2 = vld [vmem:[#allocation8 + $0xfb8] sm:$0xff]  ;;  %v1448_v62 = vld [vmem:[#allocation8 + $0xc88] sm:$0xff] }
 0x272   : > { %2938 = vmatpush.msra.mxu1 %v1676_v9  ;;  %2892 = vmatpush.msrb.mxu3 %v1520_v10  ;;  %v1778_v6 = vld [vmem:[#allocation8 + $0x16d8] sm:$0xff]  ;;  %v1544_v35 = vld [vmem:[#allocation8 + $0xf88] sm:$0xff] }
 0x273   : > { %2912 = vmatpush.msra.mxu0 %v1616_v13  ;;  %2882 = vmatpush.msrb.mxu2 %v1364_v37  ;;  %v3098_v9 = vld [vmem:[%s9567_s15 + $0x188] sm:$0xff]  ;;  %v1772_v10 = vld [vmem:[#allocation8 + $0x16a8] sm:$0xff] }
 0x274   : > { %2939 = vmatpush.msra.mxu1 %v1670_v15  ;;  %2893 = vmatpush.msrb.mxu3 %v1514_v16  ;;  %v1442_v13 = vld [vmem:[#allocation8 + $0xc58] sm:$0xff] }
 0x275   : > { %2913 = vmatpush.msra.mxu0 %v1610_v17  ;;  %2883 = vmatpush.msrb.mxu2 %v1358_v18  ;;  %v1538_v37 = vld [vmem:[#allocation8 + $0xf58] sm:$0xff]  ;;  %v1436_v17 = vld [vmem:[#allocation8 + $0xc28] sm:$0xff] }
 0x276   : > { %2940 = vmatpush.msra.mxu1 %v1664_v19  ;;  %v8531_v26 = vpop.permute.xlu2 %6821  ;;  %2894 = vmatpush.msrb.mxu3 %v1508_v49  ;;  %v3094_v15 = vld [vmem:[%s9567_s15 + $0x168] sm:$0xff]  ;;  %v1532_v18 = vld [vmem:[#allocation8 + $0xf28] sm:$0xff] }
 0x277   : > { %2914 = vmatpush.msra.mxu0 %v1604_v20  ;;  %v6831_v28 = vsel %vm3303_vm14, %v8506_v14, %v8531_v26  ;;  %2884 = vmatpush.msrb.mxu2 %v1352_v30  ;;  %v1484_v14 = vld [vmem:[#allocation8 + $0xda8] sm:$0xff]  ;;  %v1766_v16 = vld [vmem:[#allocation8 + $0x1678] sm:$0xff] }
 0x278   : > { %2941 = vmatpush.msra.mxu1 %v1658_v21  ;;  %6888 = vst [vmem:[%s8363_s24 + $0x18] sm:$0xff] %v6831_v28  ;;  %2895 = vmatpush.msrb.mxu3 %v1502_v22  ;;  %v1760_v19 = vld [vmem:[#allocation8 + $0x1648] sm:$0xff]  ;;  %v1910_v49 = vld [vmem:[#allocation8 + $0x1af8] sm:$0xff] }
 0x279   : > { %2915 = vmatpush.msra.mxu0 %v1598_v23  ;;  %2885 = vmatpush.msrb.mxu2 %v1346_v27  ;;  %v3109_v20 = vld [vmem:[%s9567_s15 + $0x1e0] sm:$0xff]  ;;  %v3090_v21 = vld [vmem:[%s9567_s15 + $0x148] sm:$0xff]  ;;  %v1904_v22 = vld [vmem:[#allocation8 + $0x1ac8] sm:$0xff] }
 0x27a   : > { %2942 = vmatpush.msra.mxu1 %v1652_v11  ;;  %2896 = vmatpush.msrb.mxu3 %v1496_v33  ;;  %v1754_v30 = vld [vmem:[#allocation8 + $0x1618] sm:$0xff]  ;;  %v1748_v27 = vld [vmem:[#allocation8 + $0x15e8] sm:$0xff] }
 0x27b   : > { %2916 = vmatpush.msra.mxu0 %v1592_v31  ;;  %2886 = vmatpush.msrb.mxu2 %v1340_v34  ;;  %v3105_v23 = vld [vmem:[%s9567_s15 + $0x1c0] sm:$0xff]  ;;  %v3082_v33 = vld [vmem:[%s9567_s15 + $0x108] sm:$0xff]  ;;  %v1892_v31 = vld [vmem:[#allocation8 + $0x1a68] sm:$0xff] }
 0x27c   : > { %2943 = vmatpush.msra.mxu1 %v1646_v36  ;;  %2887 = vmatmul.f32.vlgmr.msrb.gmra.mxu2 %v8394_v8  ;;  %v1796_v8 = vld [vmem:[#allocation8 + $0x1768] sm:$0xff]  ;;  %v1898_v11 = vld [vmem:[#allocation8 + $0x1a98] sm:$0xff] }
 0x27d   : > { %2897 = vmatpush.msrb.mxu3 %v1490_v38  ;;  %2917 = vmatpush.msra.mxu0 %v1586_v39  ;;  %v3101_v28 = vld [vmem:[%s9567_s15 + $0x1a0] sm:$0xff]  ;;  %v1736_v36 = vld [vmem:[#allocation8 + $0x1588] sm:$0xff]  ;;  %v3078_v38 = vld [vmem:[%s9567_s15 + $0xe8] sm:$0xff] }
 0x27e   : > { %2951 = vmatpush.msra.mxu2 %v1814_v40  ;;  %2944 = vmatpush.msra.mxu1 %v1640_v43  ;;  %v3097_v34 = vld [vmem:[%s9567_s15 + $0x180] sm:$0xff] }
 0x27f   : > { %2898 = vmatpush.msrb.mxu3 %v1484_v14  ;;  %2918 = vmatpush.msra.mxu0 %v1580_v44  ;;  %v1886_v39 = vld [vmem:[#allocation8 + $0x1a38] sm:$0xff]  ;;  %v1880_v44 = vld [vmem:[#allocation8 + $0x1a08] sm:$0xff] }
 0x280   : > { %2952 = vmatpush.msra.mxu2 %v1808_v45  ;;  %2945 = vmatpush.msra.mxu1 %v1634_v46  ;;  %v3093_v40 = vld [vmem:[%s9567_s15 + $0x160] sm:$0xff]  ;;  %v3074_v14 = vld [vmem:[%s9567_s15 + $0xc8] sm:$0xff]  ;;  %v1724_v46 = vld [vmem:[#allocation8 + $0x1528] sm:$0xff] }
 0x281   : > { %2899 = vmatpush.msrb.mxu3 %v1478_v51  ;;  %2919 = vmatpush.msra.mxu0 %v1574_v52  ;;  %v1730_v43 = vld [vmem:[#allocation8 + $0x1558] sm:$0xff] }
 0x282   : > { %2953 = vmatpush.msra.mxu2 %v1802_v57  ;;  %2946 = vmatpush.msra.mxu1 %v1628_v58  ;;  %v3089_v45 = vld [vmem:[%s9567_s15 + $0x140] sm:$0xff]  ;;  %v3070_v51 = vld [vmem:[%s9567_s15 + $0xa8] sm:$0xff]  ;;  %v3111_v58 = vld [vmem:[%s9567_s15 + $0x1f0] sm:$0xff] }
 0x283   : > { %2900 = vmatpush.msrb.mxu3 %v1472_v32  ;;  %2920 = vmatpush.msra.mxu0 %v1568_v60  ;;  %v1874_v52 = vld [vmem:[#allocation8 + $0x19d8] sm:$0xff]  ;;  %v1868_v32 = vld [vmem:[#allocation8 + $0x19a8] sm:$0xff] }
 0x284   : > { %2947 = vmatmul.f32.vlgmr.msra.gmra.mxu1 %v8423_v12  ;;  %2954 = vmatpush.msra.mxu2 %v1796_v8  ;;  %v3102_v12 = vld [vmem:[%s9567_s15 + $0x1a8] sm:$0xff]  ;;  %v3085_v57 = vld [vmem:[%s9567_s15 + $0x120] sm:$0xff] }
 0x285   : > { %2901 = vmatpush.msrb.mxu3 %v1466_v61  ;;  %2921 = vmatpush.msra.mxu0 %v1562_v41  ;;  %v3066_v60 = vld [vmem:[%s9567_s15 + $0x88] sm:$0xff]  ;;  %v3081_v8 = vld [vmem:[%s9567_s15 + $0x100] sm:$0xff]  ;;  %v3107_v61 = vld [vmem:[%s9567_s15 + $0x1d0] sm:$0xff] }
 0x286   : > { %3136 = vmatpush.msrb.mxu1 %v3110_v63  ;;  %2955 = vmatpush.msra.mxu2 %v1790_v7  ;;  %v1862_v41 = vld [vmem:[#allocation8 + $0x1978] sm:$0xff]  ;;  %v3103_v7 = vld [vmem:[%s9567_s15 + $0x1b0] sm:$0xff] }
 0x287   : > { %2902 = vmatpush.msrb.mxu3 %v1460_v0  ;;  %2922 = vmatpush.msra.mxu0 %v1556_v1  ;;  %v3062_v63 = vld [vmem:[%s9567_s15 + $0x68] sm:$0xff]  ;;  %v1856_v0 = vld [vmem:[#allocation8 + $0x1948] sm:$0xff] }
 0x288   : > { %3137 = vmatpush.msrb.mxu1 %v3106_v3  ;;  %2956 = vmatpush.msra.mxu2 %v1784_v4  ;;  %v3058_v1 = vld [vmem:[%s9567_s15 + $0x48] sm:$0xff]  ;;  %v3073_v3 = vld [vmem:[%s9567_s15 + $0xc0] sm:$0xff]  ;;  %v3099_v4 = vld [vmem:[%s9567_s15 + $0x190] sm:$0xff] }
 0x289   : > { %2903 = vmatpush.msrb.mxu3 %v1454_v5  ;;  %2923 = vmatpush.msra.mxu0 %v1550_v2  ;;  %v1850_v5 = vld [vmem:[#allocation8 + $0x1918] sm:$0xff] }
 0x28a   : > { %3138 = vmatpush.msrb.mxu1 %v3102_v12  ;;  %2957 = vmatpush.msra.mxu2 %v1778_v6  ;;  %v3054_v2 = vld [vmem:[%s9567_s15 + $0x28] sm:$0xff]  ;;  %v8629_v12 = vpop.f32.mrf.mxu0  ;;  %v3069_v6 = vld [vmem:[%s9567_s15 + $0xa0] sm:$0xff] }
 0x28b   : > { %2904 = vmatpush.msrb.mxu3 %v1448_v62  ;;  %2924 = vmatpush.msra.mxu0 %v1544_v35  ;;  %v3095_v62 = vld [vmem:[%s9567_s15 + $0x170] sm:$0xff] }
 0x28c   : > { %3139 = vmatpush.msrb.mxu1 %v3098_v9  ;;  %2958 = vmatpush.msra.mxu2 %v1772_v10  ;;  %v1844_v35 = vld [vmem:[#allocation8 + $0x18e8] sm:$0xff]  ;;  %v3050_v9 = vld [vmem:[%s9567_s15 + $0x8] sm:$0xff]  ;;  %v8640_v10 = vpop.f32.mrf.mxu3 }
 0x28d   : > { %2905 = vmatpush.msrb.mxu3 %v1442_v13  ;;  %2925 = vmatpush.msra.mxu0 %v1538_v37  ;;  %v3065_v13 = vld [vmem:[%s9567_s15 + $0x80] sm:$0xff]  ;;  %v3091_v37 = vld [vmem:[%s9567_s15 + $0x150] sm:$0xff] }
 0x28e   : > { %3140 = vmatpush.msrb.mxu1 %v3094_v15  ;;  %2959 = vmatpush.msra.mxu2 %v1766_v16  ;;  %v1838_v15 = vld [vmem:[#allocation8 + $0x18b8] sm:$0xff]  ;;  %v8648_v16 = vpop.f32.mrf.mxu1 }
 0x28f   : > { %2906 = vmatpush.msrb.mxu3 %v1436_v17  ;;  %2926 = vmatpush.msra.mxu0 %v1532_v18  ;;  %v8650_v17 = vpop.f32.mrf.mxu2  ;;  %v3061_v18 = vld [vmem:[%s9567_s15 + $0x60] sm:$0xff] }
 0x290   : > { %2907 = vmatmul.f32.vlgmr.msrb.gmra.mxu3 %v8430_v24  ;;  %2960 = vmatpush.msra.mxu2 %v1760_v19  ;;  %v3086_v24 = vld [vmem:[%s9567_s15 + $0x128] sm:$0xff]  ;;  %v3087_v19 = vld [vmem:[%s9567_s15 + $0x130] sm:$0xff] }
 0x291   : > { %2927 = vmatmul.f32.vlgmr.msra.gmra.mxu0 %v8437_v29  ;;  %2971 = vmatpush.msra.mxu3 %v1910_v49  ;;  %v1742_v29 = vld [vmem:[#allocation8 + $0x15b8] sm:$0xff]  ;;  %v1832_v49 = vld [vmem:[#allocation8 + $0x1888] sm:$0xff] }
 0x292   : > { %3113 = vmatpush.msrb.mxu0 %v3109_v20  ;;  %2961 = vmatpush.msra.mxu2 %v1754_v30  ;;  %v3057_v20 = vld [vmem:[%s9567_s15 + $0x40] sm:$0xff]  ;;  %v3083_v30 = vld [vmem:[%s9567_s15 + $0x110] sm:$0xff] }
 0x293   : > { %3141 = vmatpush.msrb.mxu1 %v3090_v21  ;;  %2972 = vmatpush.msra.mxu3 %v1904_v22  ;;  %v8665_v21 = vld [vmem:[%s8203_s17] sm:$0xff] }
 0x294   : > { %3114 = vmatpush.msrb.mxu0 %v3105_v23  ;;  %2962 = vmatpush.msra.mxu2 %v1748_v27  ;;  %v1826_v22 = vld [vmem:[#allocation8 + $0x1858] sm:$0xff]  ;;  %v8668_v23 = vpop.f32.mrf.mxu0 }
 0x295   : > { %3142 = vmatpush.msrb.mxu1 %v3086_v24  ;;  %2973 = vmatpush.msra.mxu3 %v1898_v11  ;;  %v3053_v27 = vld [vmem:[%s9567_s15 + $0x20] sm:$0xff]  ;;  %v3079_v24 = vld [vmem:[%s9567_s15 + $0xf0] sm:$0xff] }
 0x296   : > { %3115 = vmatpush.msrb.mxu0 %v3101_v28  ;;  %2963 = vmatpush.msra.mxu2 %v1742_v29  ;;  %v1820_v11 = vld [vmem:[#allocation8 + $0x1828] sm:$0xff]  ;;  %v8676_v28 = vpop.f32.mrf.mxu3  ;;  %v3049_v29 = vld [vmem:[%s9567_s15] sm:$0xff] }
 0x297   : > { %3143 = vmatpush.msrb.mxu1 %v3082_v33  ;;  %2974 = vmatpush.msra.mxu3 %v1892_v31  ;;  %v3075_v33 = vld [vmem:[%s9567_s15 + $0xd0] sm:$0xff]  ;;  %v8684_v31 = vpop.f32.mrf.mxu1 }
 0x298   : > { %3116 = vmatpush.msrb.mxu0 %v3097_v34  ;;  %2964 = vmatpush.msra.mxu2 %v1736_v36  ;;  %v8686_v34 = vpop.f32.mrf.mxu2  ;;  %v3112_v36 = vld [vmem:[%s9567_s15 + $0x1f8] sm:$0xff] }
 0x299   : > { %3144 = vmatpush.msrb.mxu1 %v3078_v38  ;;  %2975 = vmatpush.msra.mxu3 %v1886_v39  ;;  %v3071_v38 = vld [vmem:[%s9567_s15 + $0xb0] sm:$0xff]  ;;  %v3108_v39 = vld [vmem:[%s9567_s15 + $0x1d8] sm:$0xff] }
 0x29a   : > { %3117 = vmatpush.msrb.mxu0 %v3093_v40  ;;  %2965 = vmatpush.msra.mxu2 %v1730_v43  ;;  %v3067_v40 = vld [vmem:[%s9567_s15 + $0x90] sm:$0xff] }
 0x29b   : > { %3145 = vmatpush.msrb.mxu1 %v3074_v14  ;;  %2976 = vmatpush.msra.mxu3 %v1880_v44  ;;  %v3104_v14 = vld [vmem:[%s9567_s15 + $0x1b8] sm:$0xff]  ;;  %v8711_v44 = vld [vmem:[%s8203_s17 + $0x8] sm:$0xf] }
 0x29c   : > { %3118 = vmatpush.msrb.mxu0 %v3089_v45  ;;  %2966 = vmatpush.msra.mxu2 %v1724_v46  ;;  %v8702_v43 = vpop.f32.mrf.mxu0  ;;  %v3100_v46 = vld [vmem:[%s9567_s15 + $0x198] sm:$0xff] }
 0x29d   : > { %3146 = vmatpush.msrb.mxu1 %v3070_v51  ;;  %2967 = vmatmul.f32.vlgmr.msra.gmra.mxu2 %v8433_v25  ;;  %v3077_v25 = vld [vmem:[%s9567_s15 + $0xe0] sm:$0xff]  ;;  %v3059_v51 = vld [vmem:[%s9567_s15 + $0x50] sm:$0xff] }
 0x29e   : > { %2977 = vmatpush.msra.mxu3 %v1874_v52  ;;  %3119 = vmatpush.msrb.mxu0 %v3085_v57  ;;  %v8714_v45 = vpop.f32.mrf.mxu3 }
 0x29f   : > { %3159 = vmatpush.msrb.mxu2 %v3111_v58  ;;  %3147 = vmatpush.msrb.mxu1 %v3066_v60  ;;  %v8722_v52 = vpop.f32.mrf.mxu1  ;;  %v3096_v58 = vld [vmem:[%s9567_s15 + $0x178] sm:$0xff] }
 0x2a0   : > { %2978 = vmatpush.msra.mxu3 %v1868_v32  ;;  %3120 = vmatpush.msrb.mxu0 %v3081_v8  ;;  %v8724_v57 = vpop.f32.mrf.mxu2  ;;  %v3055_v32 = vld [vmem:[%s9567_s15 + $0x30] sm:$0xff]  ;;  %v3092_v60 = vld [vmem:[%s9567_s15 + $0x158] sm:$0xff] }
 0x2a1   : > { %3160 = vmatpush.msrb.mxu2 %v3107_v61  ;;  %3148 = vmatpush.msrb.mxu1 %v3062_v63  ;;  %v3051_v8 = vld [vmem:[%s9567_s15 + $0x10] sm:$0xff] }
 0x2a2   : > { %2979 = vmatpush.msra.mxu3 %v1862_v41  ;;  %3121 = vmatpush.msrb.mxu0 %v3077_v25  ;;  %v3088_v41 = vld [vmem:[%s9567_s15 + $0x138] sm:$0xff] }
 0x2a3   : > { %3161 = vmatpush.msrb.mxu2 %v3103_v7  ;;  %3149 = vmatpush.msrb.mxu1 %v3058_v1  ;;  %v3084_v25 = vld [vmem:[%s9567_s15 + $0x118] sm:$0xff] }
 0x2a4   : > { %2980 = vmatpush.msra.mxu3 %v1856_v0  ;;  %3122 = vmatpush.msrb.mxu0 %v3073_v3  ;;  %v8739_v61 = vpop.f32.mrf.mxu0  ;;  %v3080_v1 = vld [vmem:[%s9567_s15 + $0xf8] sm:$0xff] }
 0x2a5   : > { %3162 = vmatpush.msrb.mxu2 %v3099_v4  ;;  %3150 = vmatpush.msrb.mxu1 %v3054_v2  ;;  %v3076_v3 = vld [vmem:[%s9567_s15 + $0xd8] sm:$0xff] }
 0x2a6   : > { %2981 = vmatpush.msra.mxu3 %v1850_v5  ;;  %3123 = vmatpush.msrb.mxu0 %v3069_v6  ;;  %v8744_v63 = vpop.f32.mrf.mxu3  ;;  %v3072_v5 = vld [vmem:[%s9567_s15 + $0xb8] sm:$0xff] }
 0x2a7   : > { %3163 = vmatpush.msrb.mxu2 %v3095_v62  ;;  %3151 = vmatpush.msrb.mxu1 %v3050_v9  ;;  %v8750_v7 = vpop.f32.mrf.mxu1  ;;  %v3068_v6 = vld [vmem:[%s9567_s15 + $0x98] sm:$0xff] }
 0x2a8   : > { %2982 = vmatpush.msra.mxu3 %v1844_v35  ;;  %3124 = vmatpush.msrb.mxu0 %v3065_v13  ;;  %v8752_v0 = vpop.f32.mrf.mxu2  ;;  %v3064_v9 = vld [vmem:[%s9567_s15 + $0x78] sm:$0xff] }
 0x2a9   : > { %3164 = vmatpush.msrb.mxu2 %v3091_v37  ;;  %3152 = vmatmul.f32.vlgmr.msrb.gmra.mxu1 %v8665_v21  ;;  %v3060_v37 = vld [vmem:[%s9567_s15 + $0x58] sm:$0xff] }
 0x2aa   : > { %2983 = vmatpush.msra.mxu3 %v1838_v15  ;;  %3125 = vmatpush.msrb.mxu0 %v3061_v18  ;;  %v3056_v18 = vld [vmem:[%s9567_s15 + $0x38] sm:$0xff] }
 0x2ab   : > { %3165 = vmatpush.msrb.mxu2 %v3087_v19 }
 0x2ac   : > { %2984 = vmatpush.msra.mxu3 %v1832_v49  ;;  %3126 = vmatpush.msrb.mxu0 %v3057_v20  ;;  %v8760_v4 = vpop.f32.mrf.mxu0  ;;  %v3052_v49 = vld [vmem:[%s9567_s15 + $0x18] sm:$0xff] }
 0x2ad   : > { %3166 = vmatpush.msrb.mxu2 %v3083_v30 }
 0x2ae   : > { %2985 = vmatpush.msra.mxu3 %v1826_v22  ;;  %3127 = vmatpush.msrb.mxu0 %v3053_v27  ;;  %v2668_v2 = vpop.f32.mrf.mxu3 }
 0x2af   : > { %3167 = vmatpush.msrb.mxu2 %v3079_v24  ;;  %v8769_v62 = vpop.f32.mrf.mxu1 }
 0x2b0   : > { %2986 = vmatpush.msra.mxu3 %v1820_v11  ;;  %3128 = vmatpush.msrb.mxu0 %v3049_v29  ;;  %v2648_v35 = vpop.f32.mrf.mxu2  ;;  %v8784_v29 = vld [vmem:[#allocation10 + $0x8] sm:$0xf] }
 0x2b1   : > { %3168 = vmatpush.msrb.mxu2 %v3075_v33  ;;  %2987 = vmatmul.f32.vlgmr.msra.gmra.mxu3 %v8443_v59  ;;  %v3063_v59 = vld [vmem:[%s9567_s15 + $0x70] sm:$0xff]  ;;  %v2669_v13 = vadd.f32 %v2668_v2, %v2648_v35  ;;  %v3422_v2 = vld [vmem:[#allocation13 + $0x2a0] sm:$0xff] }
 0x2b2   : > { %3129 = vmatmul.f32.vlgmr.msrb.gmra.mxu0 %v8665_v21  ;;  %3182 = vmatpush.msrb.mxu3 %v3112_v36  ;;  %v3476_v35 = vld [vmem:[#allocation13 + $0x450] sm:$0xff] }
 0x2b3   : > { %3169 = vmatpush.msrb.mxu2 %v3071_v38  ;;  %3155 = vmatmul.f32.gmra.mxu1 %v8711_v44  ;;  %v2999_v38 = vperm.slane %v8784_v29, 0 }
 0x2b4   : > { %3183 = vmatpush.msrb.mxu3 %v3108_v39  ;;  %v2688_v15 = vpop.f32.mrf.mxu0  ;;  %v3023_v39 = vperm.slane %v8784_v29, 1 }
 0x2b5   : > { %3170 = vmatpush.msrb.mxu2 %v3067_v40  ;;  %v2689_v19 = vadd.f32 %v2688_v15, %v2669_v13  ;;  %v3419_v13 = vld [vmem:[#allocation13 + $0x288] sm:$0xff]  ;;  %v3368_v15 = vld [vmem:[#allocation13 + $0xf0] sm:$0xff] }
 0x2b6   : > { %3184 = vmatpush.msrb.mxu3 %v3104_v14 }
 0x2b7   : > { %3171 = vmatpush.msrb.mxu2 %v3063_v59  ;;  %v2708_v20 = vpop.f32.mrf.mxu1  ;;  %v3011_v59 = vperm.slane %v2999_v38, 0  ;;  %v3464_v38 = vld [vmem:[#allocation13 + $0x3f0] sm:$0xff] }
 0x2b8   : > { %3185 = vmatpush.msrb.mxu3 %v3100_v46  ;;  %v2709_v22 = vadd.f32 %v2708_v20, %v2689_v19  ;;  %v3365_v19 = vld [vmem:[#allocation13 + $0xd8] sm:$0xff]  ;;  %v3362_v20 = vld [vmem:[#allocation13 + $0xc0] sm:$0xff] }
 0x2b9   : > { %3172 = vmatpush.msrb.mxu2 %v3059_v51 }
 0x2ba   : > { %3132 = vmatmul.f32.gmra.mxu0 %v8711_v44  ;;  %3186 = vmatpush.msrb.mxu3 %v3096_v58  ;;  %v3035_v58 = vperm.slane %v3023_v39, 1  ;;  %v3353_v39 = vld [vmem:[#allocation13 + $0x78] sm:$0xff] }
 0x2bb   : > { %3173 = vmatpush.msrb.mxu2 %v3055_v32  ;;  %v2728_v30 = vpop.f32.mrf.mxu2 }
 0x2bc   : > { %3187 = vmatpush.msrb.mxu3 %v3092_v60  ;;  %v2729_v24 = vadd.f32 %v2728_v30, %v2709_v22  ;;  %v3410_v30 = vld [vmem:[#allocation13 + $0x240] sm:$0xff] }
 0x2bd   : > { %3174 = vmatpush.msrb.mxu2 %v3051_v8  ;;  %v3383_v8 = vld [vmem:[#allocation13 + $0x168] sm:$0xff]  ;;  %v3470_v22 = vld [vmem:[#allocation13 + $0x420] sm:$0xff] }
 0x2be   : > { %3175 = vmatmul.f32.vlgmr.msrb.gmra.mxu2 %v8665_v21  ;;  %3188 = vmatpush.msrb.mxu3 %v3088_v41  ;;  %v3431_v41 = vld [vmem:[#allocation13 + $0x2e8] sm:$0xff] }
 0x2bf   : > { %v2788_v40 = vpop.f32.mrf.mxu1  ;;  %3846 = vmatpush.msra.mxu0 %v3383_v8  ;;  %3869 = vmatpush.msra.mxu1 %v3431_v41  ;;  %v3344_v8 = vld [vmem:[#allocation13 + $0x30] sm:$0xff] }
 0x2c0   : > { %3189 = vmatpush.msrb.mxu3 %v3084_v25  ;;  %v3380_v25 = vld [vmem:[#allocation13 + $0x150] sm:$0xff] }
 0x2c1   : > { %3847 = vmatpush.msra.mxu0 %v3380_v25  ;;  %v3392_v41 = vld [vmem:[#allocation13 + $0x1b0] sm:$0xff] }
 0x2c2   : > { %3190 = vmatpush.msrb.mxu3 %v3080_v1  ;;  %v3428_v1 = vld [vmem:[#allocation13 + $0x2d0] sm:$0xff] }
 0x2c3   : > { %3870 = vmatpush.msra.mxu1 %v3428_v1  ;;  %v3452_v25 = vld [vmem:[#allocation13 + $0x390] sm:$0xff]  ;;  %v3341_v1 = vld [vmem:[#allocation13 + $0x18] sm:$0xff] }
 0x2c4   : > { %3191 = vmatpush.msrb.mxu3 %v3076_v3  ;;  %v3425_v3 = vld [vmem:[#allocation13 + $0x2b8] sm:$0xff] }
 0x2c5   : > { %3871 = vmatpush.msra.mxu1 %v3425_v3  ;;  %v3449_v3 = vld [vmem:[#allocation13 + $0x378] sm:$0xff] }
 0x2c6   : > { %3178 = vmatmul.f32.gmra.mxu2 %v8711_v44  ;;  %3192 = vmatpush.msrb.mxu3 %v3072_v5  ;;  %v3374_v5 = vld [vmem:[#allocation13 + $0x120] sm:$0xff] }
 0x2c7   : > { %3872 = vmatpush.msra.mxu1 %v3422_v2  ;;  %v3338_v2 = vld [vmem:[#allocation13] sm:$0xff] }
 0x2c8   : > { %3193 = vmatpush.msrb.mxu3 %v3068_v6  ;;  %v3479_v6 = vld [vmem:[#allocation13 + $0x468] sm:$0xff] }
 0x2c9   : > { %3892 = vmatpush.msra.mxu2 %v3479_v6  ;;  %3873 = vmatpush.msra.mxu1 %v3419_v13  ;;  %v3386_v6 = vld [vmem:[#allocation13 + $0x180] sm:$0xff] }
 0x2ca   : > { %3194 = vmatpush.msrb.mxu3 %v3064_v9  ;;  %v3371_v9 = vld [vmem:[#allocation13 + $0x108] sm:$0xff] }
 0x2cb   : > { %v2768_v33 = vpop.f32.mrf.mxu0  ;;  %3893 = vmatpush.msra.mxu2 %v3476_v35  ;;  %v3446_v35 = vld [vmem:[#allocation13 + $0x360] sm:$0xff] }
 0x2cc   : > { %3195 = vmatpush.msrb.mxu3 %v3060_v37  ;;  %v3473_v37 = vld [vmem:[#allocation13 + $0x438] sm:$0xff] }
 0x2cd   : > { %3894 = vmatpush.msra.mxu2 %v3473_v37 }
 0x2ce   : > { %3196 = vmatpush.msrb.mxu3 %v3056_v18  ;;  %v3416_v18 = vld [vmem:[#allocation13 + $0x270] sm:$0xff] }
 0x2cf   : > { %3874 = vmatpush.msra.mxu1 %v3416_v18  ;;  %3895 = vmatpush.msra.mxu2 %v3470_v22 }
 0x2d0   : > { %3197 = vmatpush.msrb.mxu3 %v3052_v49  ;;  %v2748_v27 = vpop.f32.mrf.mxu3  ;;  %v3413_v49 = vld [vmem:[#allocation13 + $0x258] sm:$0xff] }
 0x2d1   : > { %3198 = vmatmul.f32.vlgmr.msrb.gmra.mxu3 %v8665_v21  ;;  %v2749_v11 = vadd.f32 %v2748_v27, %v2729_v24  ;;  %3875 = vmatpush.msra.mxu1 %v3413_v49  ;;  %v3359_v27 = vld [vmem:[#allocation13 + $0xa8] sm:$0xff] }
 0x2d2   : > { %v3407_v24 = vld [vmem:[#allocation13 + $0x228] sm:$0xff] }
 0x2d3   : > { %v2769_v36 = vadd.f32 %v2768_v33, %v2749_v11  ;;  %3876 = vmatpush.msra.mxu1 %v3410_v30  ;;  %v3467_v11 = vld [vmem:[#allocation13 + $0x408] sm:$0xff]  ;;  %v3356_v33 = vld [vmem:[#allocation13 + $0x90] sm:$0xff]  ;;  %v684_v30 = vadd.s32 %v8348_v42, %v8258_v55 }
 0x2d4   : > { %3896 = vmatpush.msra.mxu2 %v3467_v11  ;;  %v3616_v55 = vld [vmem:[#allocation13 + $0x8b0] sm:$0xff] }
 0x2d5   : > { %v2789_v14 = vadd.f32 %v2788_v40, %v2769_v36  ;;  %3877 = vmatpush.msra.mxu1 %v3407_v24  ;;  %v3404_v36 = vld [vmem:[#allocation13 + $0x210] sm:$0xff]  ;;  %v3401_v40 = vld [vmem:[#allocation13 + $0x1f8] sm:$0xff]  ;;  %vm686_vm15 = vcmp.ge.s32.totalorder %v684_v30, 0  ;;  %vm688_vm2 = vcmp.lt.s32.totalorder %v684_v30, 16 }
 0x2d6   : > { %3897 = vmatpush.msra.mxu2 %v3464_v38  ;;  %vm8808_vm3 = vmand %vm686_vm15, %vm688_vm2 }
 0x2d7   : > { %3878 = vmatpush.msra.mxu1 %v3404_v36 }
 0x2d9   : > { %3201 = vmatmul.f32.gmra.mxu3 %v8711_v44  ;;  %v3377_v44 = vld [vmem:[#allocation13 + $0x138] sm:$0xff]  ;;  %3879 = vmatpush.msra.mxu1 %v3401_v40 }
 0x2da   : > { %3848 = vmatpush.msra.mxu0 %v3377_v44  ;;  %v3389_v44 = vld [vmem:[#allocation13 + $0x198] sm:$0xff] }
 0x2dc   : > { %3849 = vmatpush.msra.mxu0 %v3374_v5  ;;  %v8792_v5 = vld [vmem:[#allocation11] sm:$0xff] }
 0x2dd   : > { %v2808_v46 = vpop.f32.mrf.mxu2  ;;  %v3208_v37 = vperm.slane %v8792_v5, 2  ;;  %v3228_v18 = vperm.slane %v8792_v5, 3  ;;  %v3227_v38 = vperm.slane %v8792_v5, 1  ;;  %v3229_v30 = vperm.slane %v8792_v5, 5 }
 0x2de   : > { %v2809_v51 = vadd.f32 %v2808_v46, %v2789_v14  ;;  %3850 = vmatpush.msra.mxu0 %v3371_v9  ;;  %v3461_v14 = vld [vmem:[#allocation13 + $0x3d8] sm:$0xff]  ;;  %v3350_v46 = vld [vmem:[#allocation13 + $0x60] sm:$0xff] }
 0x2df   : > { %3898 = vmatpush.msra.mxu2 %v3461_v14  ;;  %v3216_v49 = vperm.slane %v3208_v37, 0  ;;  %v3236_v22 = vperm.slane %v3228_v18, 1  ;;  %v3235_v42 = vperm.slane %v3227_v38, 1  ;;  %v3209_v37 = vperm.slane %v8792_v5, 4 }
 0x2e0   : > { %v3017_v21 = vmul.f32 %v3011_v59, %v2809_v51  ;;  %3851 = vmatpush.msra.mxu0 %v3368_v15  ;;  %v8790_v59 = vpop.f32.mrf.mxu1  ;;  %v3398_v51 = vld [vmem:[#allocation13 + $0x1e0] sm:$0xff]  ;;  %v3443_v15 = vld [vmem:[#allocation13 + $0x348] sm:$0xff]  ;;  %v2309_v18 = vadd.f32 %v8648_v16, %v8629_v12  ;;  %v3237_v38 = vperm.slane %v3229_v30, 1 }
 0x2e1   : > { %3880 = vmatpush.msra.mxu1 %v3398_v51 }
 0x2e2   : > { %v3041_v32 = vadd.f32 %v3035_v58, %v3017_v21  ;;  %3852 = vmatpush.msra.mxu0 %v3365_v19  ;;  %v3458_v58 = vld [vmem:[#allocation13 + $0x3c0] sm:$0xff]  ;;  %v3347_v21 = vld [vmem:[#allocation13 + $0x48] sm:$0xff]  ;;  %v3440_v19 = vld [vmem:[#allocation13 + $0x330] sm:$0xff] }
 0x2e3   : > { %3899 = vmatpush.msra.mxu2 %v3458_v58 }
 0x2e4   : > { %v3047_v60 = vmax.f32 %v3041_v32, 0.0  ;;  %3853 = vmatpush.msra.mxu0 %v3362_v20  ;;  %v3395_v32 = vld [vmem:[#allocation13 + $0x1c8] sm:$0xff]  ;;  %v3437_v20 = vld [vmem:[#allocation13 + $0x318] sm:$0xff] }
 0x2e5   : > { %3881 = vmatpush.msra.mxu1 %v3395_v32 }
 0x2e6   : > { %6827 = vrot.lane.b32.xlu2 %v3047_v60, %s7885_s16  ;;  %3854 = vmatpush.msra.mxu0 %v3359_v27  ;;  %v3455_v60 = vld [vmem:[#allocation13 + $0x3a8] sm:$0xff]  ;;  %v3434_v27 = vld [vmem:[#allocation13 + $0x300] sm:$0xff] }
 0x2e7   : > { %3900 = vmatpush.msra.mxu2 %v3455_v60  ;;  %3882 = vmatpush.msra.mxu1 %v3392_v41 }
 0x2e8   : > { %3855 = vmatpush.msra.mxu0 %v3356_v33  ;;  %v3207_v33 = vperm.slane %v8792_v5, 0 }
 0x2e9   : > { %3901 = vmatpush.msra.mxu2 %v3452_v25  ;;  %3883 = vmatpush.msra.mxu1 %v3389_v44  ;;  %v3517_v25 = vld [vmem:[#allocation13 + $0x598] sm:$0xff] }
 0x2ea   : > { %3856 = vmatpush.msra.mxu0 %v3353_v39  ;;  %v3215_v40 = vperm.slane %v3207_v33, 0  ;;  %v3217_v33 = vperm.slane %v3209_v37, 0 }
 0x2eb   : > { %3902 = vmatpush.msra.mxu2 %v3449_v3  ;;  %3884 = vmatpush.msra.mxu1 %v3386_v6 }
 0x2ec   : > { %3857 = vmatpush.msra.mxu0 %v3350_v46 }
 0x2ed   : > { %v8794_v9 = vpop.f32.mrf.mxu0  ;;  %3903 = vmatpush.msra.mxu2 %v3446_v35 }
 0x2ee   : > { %3858 = vmatpush.msra.mxu0 %v3347_v21 }
 0x2ef   : > { %3904 = vmatpush.msra.mxu2 %v3443_v15 }
 0x2f0   : > { %3859 = vmatpush.msra.mxu0 %v3344_v8 }
 0x2f1   : > { %3905 = vmatpush.msra.mxu2 %v3440_v19 }
 0x2f2   : > { %3860 = vmatpush.msra.mxu0 %v3341_v1 }
 0x2f3   : > { %3906 = vmatpush.msra.mxu2 %v3437_v20 }
 0x2f4   : > { %3861 = vmatpush.msra.mxu0 %v3338_v2 }
 0x2f5   : > { %3907 = vmatpush.msra.mxu2 %v3434_v27  ;;  %v2828_v27 = vpop.f32.mrf.mxu3 }
 0x2ff   : > { %v2888_v58 = vpop.f32.mrf.mxu2 }
 0x301   : > { %v8796_v13 = vpop.f32.mrf.mxu1 }
 0x30e   : > { %v8802_v24 = vpop.f32.mrf.mxu0 }
 0x320   : > { %v8841_v6 = vpop.f32.mrf.mxu2 }
 0x326   : > { %v3153_v11 = vpop.f32.mrf.mxu1 }
 0x327   : > { %v3220_v36 = vmul.f32 %v3216_v49, %v3153_v11 }
 0x329   : > { %v3240_v39 = vadd.f32 %v3236_v22, %v3220_v36 }
 0x32b   : > { %v8806_v14 = vmax.f32 %v3240_v39, 0.0 }
 0x32d   : > { %7154 = vmatmul.msk.f32.vlgmr.msra.gmra.mxu1 %vm8808_vm3, %v8806_v14  ;;  %v8831_v48 = vsel %vm8808_vm3, %v8806_v14, 0.0 }
 0x32e   : > { %v3278_v19 = vrot.slane %v8831_v48, 1 }
 0x32f   : > { %v3130_v46 = vpop.f32.mrf.mxu0 }
 0x330   : > { %v3219_v51 = vmul.f32 %v3215_v40, %v3130_v46  ;;  %v3156_v21 = vpop.f32.mrf.mxu1 }
 0x331   : > { %v3224_v60 = vmul.f32 %v3216_v49, %v3156_v21  ;;  %v2849_v21 = vadd.f32 %v8794_v9, %v2828_v27 }
 0x332   : > { %v3239_v32 = vadd.f32 %v3235_v42, %v3219_v51 }
 0x333   : > { %v3244_v41 = vadd.f32 %v3236_v22, %v3224_v60  ;;  %v2329_v22 = vadd.f32 %v8650_v17, %v2309_v18  ;;  %v8884_v18 = vld [vmem:[#allocation10] sm:$0xff] }
 0x334   : > { %v8817_v8 = vmax.f32 %v3239_v32, 0.0 }
 0x335   : > { %v8823_v1 = vmax.f32 %v3244_v41, 0.0  ;;  %v2349_v12 = vadd.f32 %v8640_v10, %v2329_v22  ;;  %v2908_v10 = vpop.f32.mrf.mxu3 }
 0x336   : > { %7152 = vmatmul.msk.f32.vlgmr.msra.gmra.mxu0 %vm8808_vm3, %v8817_v8  ;;  %v8847_v15 = vsel %vm8808_vm3, %v8817_v8, 0.0 }
 0x337   : > { %v3133_v44 = vpop.f32.mrf.mxu0  ;;  %v8836_v2 = vsel %vm8819_vm6, %v8823_v1, 0.0  ;;  %7155 = vmatmul.msk.f32.gmra.mxu1 %vm8819_vm6, %v8823_v1  ;;  %v3275_v11 = vrot.slane %v8847_v15, 1  ;;  %v2369_v51 = vadd.f32 %v8668_v23, %v2349_v12 }
 0x338   : > { %v3223_v3 = vmul.f32 %v3215_v40, %v3133_v44  ;;  %v3279_v49 = vrot.slane %v8836_v2, 1  ;;  %v2869_v44 = vadd.f32 %v8790_v59, %v2849_v21 }
 0x339   : > { %v2389_v41 = vadd.f32 %v8684_v31, %v2369_v51  ;;  %v3000_v51 = vperm.slane %v8784_v29, 2 }
 0x33a   : > { %v3243_v35 = vadd.f32 %v3235_v42, %v3223_v3  ;;  %v3280_v17 = vsel %vm894_vm0, %v3278_v19, %v3279_v49  ;;  %v2889_v23 = vadd.f32 %v2888_v58, %v2869_v44  ;;  %v2997_v19 = vperm.slane %v8884_v18, 4 }
 0x33b   : > { %v2409_v3 = vadd.f32 %v8686_v34, %v2389_v41  ;;  %v3210_v34 = vperm.slane %v8792_v5, 6 }
 0x33c   : > { %v8853_v20 = vmax.f32 %v3243_v35, 0.0  ;;  %v2909_v30 = vadd.f32 %v2908_v10, %v2889_v23  ;;  %v2489_v10 = vadd.f32 %v8724_v57, %v8722_v52 }
 0x33d   : > { %v2429_v9 = vadd.f32 %v8676_v28, %v2409_v3  ;;  %v2988_v59 = vpop.f32.mrf.mxu3 }
 0x33e   : > { %v8861_v36 = vsel %vm8819_vm6, %v8853_v20, 0.0  ;;  %7153 = vmatmul.msk.f32.gmra.mxu0 %vm8819_vm6, %v8853_v20  ;;  %v2929_v12 = vadd.f32 %v8802_v24, %v2909_v30 }
 0x33f   : > { %v3276_v16 = vrot.slane %v8861_v36, 1  ;;  %v2449_v58 = vadd.f32 %v8702_v43, %v2429_v9  ;;  %v3230_v43 = vperm.slane %v8792_v5, 7 }
 0x341   : > { %v3176_v39 = vpop.f32.mrf.mxu2  ;;  %v3277_v40 = vsel %vm894_vm0, %v3275_v11, %v3276_v16  ;;  %v3009_v11 = vperm.slane %v2997_v19, 0  ;;  %v3238_v3 = vperm.slane %v3230_v43, 1  ;;  %v3527_v19 = vld [vmem:[#allocation13 + $0x5e8] sm:$0xff] }
 0x342   : > { %v3221_v42 = vmul.f32 %v3217_v33, %v3176_v39  ;;  %v7391_v46 = vpack.i.bf16 %v3280_v17, %v3277_v40  ;;  %v3218_v39 = vperm.slane %v3210_v34, 0  ;;  %3915 = vmatpush.msra.mxu3 %v3527_v19  ;;  %v3575_v34 = vld [vmem:[#allocation13 + $0x768] sm:$0xff]  ;;  %v3608_v19 = vld [vmem:[#allocation13 + $0x870] sm:$0xff] }
 0x343   : > { %v3015_v40 = vmul.f32 %v3009_v11, %v2449_v58  ;;  %3938 = vmatpush.msrb.mxu0 %v3575_v34  ;;  %v3572_v11 = vld [vmem:[#allocation13 + $0x750] sm:$0xff] }
 0x344   : > { %v3241_v32 = vadd.f32 %v3237_v38, %v3221_v42  ;;  %7392 = vrot.lane.b32.xlu0 %v7391_v46, %s7885_s16  ;;  %v2949_v46 = vadd.f32 %v8796_v13, %v2929_v12  ;;  %v3024_v13 = vperm.slane %v8784_v29, 3  ;;  %v3518_v29 = vld [vmem:[#allocation13 + $0x5a0] sm:$0xff]  ;;  %v3500_v34 = vld [vmem:[#allocation13 + $0x510] sm:$0xff] }
 0x345   : > { %3939 = vmatpush.msrb.mxu0 %v3572_v11  ;;  %v3602_v11 = vld [vmem:[#allocation13 + $0x840] sm:$0xff] }
 0x346   : > { %v8875_v60 = vmax.f32 %v3241_v32, 0.0  ;;  %v2969_v41 = vadd.f32 %v8841_v6, %v2949_v46  ;;  %v3036_v6 = vperm.slane %v3024_v13, 1  ;;  %v3617_v46 = vld [vmem:[#allocation13 + $0x8b8] sm:$0xff]  ;;  %v3506_v13 = vld [vmem:[#allocation13 + $0x540] sm:$0xff] }
 0x348   : > { %7156 = vmatmul.msk.f32.vlgmr.msra.gmra.mxu2 %vm8808_vm3, %v8875_v60  ;;  %v8890_v31 = vsel %vm8808_vm3, %v8875_v60, 0.0  ;;  %v2989_v23 = vadd.f32 %v2988_v59, %v2969_v41 }
 0x349   : > { %v3179_v35 = vpop.f32.mrf.mxu2  ;;  %v3281_v28 = vrot.slane %v8890_v31, 1 }
 0x34a   : > { %v3225_v37 = vmul.f32 %v3217_v33, %v3179_v35  ;;  %v3021_v33 = vperm.slane %v8884_v18, 5  ;;  %v2509_v35 = vadd.f32 %v8714_v45, %v2489_v10  ;;  %v3563_v10 = vld [vmem:[#allocation13 + $0x708] sm:$0xff] }
 0x34c   : > { %v3245_v22 = vadd.f32 %v3237_v38, %v3225_v37  ;;  %v3033_v24 = vperm.slane %v3021_v33, 1  ;;  %v3012_v37 = vperm.slane %v3000_v51, 0  ;;  %v2529_v30 = vadd.f32 %v8739_v61, %v2509_v35  ;;  %v3623_v33 = vld [vmem:[#allocation13 + $0x8e8] sm:$0xff] }
 0x34d   : > { %3961 = vmatpush.msrb.mxu1 %v3623_v33  ;;  %v3494_v33 = vld [vmem:[#allocation13 + $0x4e0] sm:$0xff] }
 0x34e   : > { %v8892_v27 = vmax.f32 %v3245_v22, 0.0  ;;  %v3039_v5 = vadd.f32 %v3033_v24, %v3015_v40  ;;  %v3018_v52 = vmul.f32 %v3012_v37, %v2989_v23  ;;  %v3521_v22 = vld [vmem:[#allocation13 + $0x5b8] sm:$0xff]  ;;  %v2549_v61 = vadd.f32 %v8750_v7, %v2529_v30  ;;  %v3515_v40 = vld [vmem:[#allocation13 + $0x588] sm:$0xff]  ;;  %v3620_v24 = vld [vmem:[#allocation13 + $0x8d0] sm:$0xff] }
 0x34f   : > { %3962 = vmatpush.msrb.mxu1 %v3620_v24  ;;  %v3614_v7 = vld [vmem:[#allocation13 + $0x8a0] sm:$0xff]  ;;  %v3611_v37 = vld [vmem:[#allocation13 + $0x888] sm:$0xff] }
 0x350   : > { %7157 = vmatmul.msk.f32.gmra.mxu2 %vm8819_vm6, %v8892_v27  ;;  %v8905_v17 = vsel %vm8819_vm6, %v8892_v27, 0.0  ;;  %v3045_v57 = vmax.f32 %v3039_v5, 0.0  ;;  %v3042_v43 = vadd.f32 %v3036_v6, %v3018_v52  ;;  %v3509_v5 = vld [vmem:[#allocation13 + $0x558] sm:$0xff]  ;;  %v2998_v52 = vperm.slane %v8884_v18, 6  ;;  %v3554_v6 = vld [vmem:[#allocation13 + $0x6c0] sm:$0xff]  ;;  %v3491_v24 = vld [vmem:[#allocation13 + $0x4c8] sm:$0xff] }
 0x351   : > { %v3282_v38 = vrot.slane %v8905_v17, 1  ;;  %3963 = vmatpush.msrb.mxu1 %v3617_v46  ;;  %v3593_v46 = vld [vmem:[#allocation13 + $0x7f8] sm:$0xff] }
 0x353   : > { %v3283_v42 = vsel %vm894_vm0, %v3281_v28, %v3282_v38  ;;  %v3569_v28 = vld [vmem:[#allocation13 + $0x738] sm:$0xff]  ;;  %3964 = vmatpush.msrb.mxu1 %v3614_v7 }
 0x354   : > { %v7396_v21 = vpack.i.bf16 %v3283_v42, %v3276_v16  ;;  %v3199_v32 = vpop.f32.mrf.mxu3  ;;  %v3524_v16 = vld [vmem:[#allocation13 + $0x5d0] sm:$0xff]  ;;  %v3566_v42 = vld [vmem:[#allocation13 + $0x720] sm:$0xff]  ;;  %3940 = vmatpush.msrb.mxu0 %v3569_v28  ;;  %v3599_v28 = vld [vmem:[#allocation13 + $0x828] sm:$0xff] }
 0x355   : > { %v3222_v44 = vmul.f32 %v3218_v39, %v3199_v32  ;;  %3916 = vmatpush.msra.mxu3 %v3524_v16  ;;  %v3512_v32 = vld [vmem:[#allocation13 + $0x570] sm:$0xff]  ;;  %3965 = vmatpush.msrb.mxu1 %v3611_v37  ;;  %v3665_v7 = vld [vmem:[#allocation13 + $0xa38] sm:$0xff] }
 0x356   : > { %7397 = vrot.lane.b32.xlu0 %v7396_v21, %s7885_s16  ;;  %3941 = vmatpush.msrb.mxu0 %v3566_v42 }
 0x357   : > { %v3242_v9 = vadd.f32 %v3238_v3, %v3222_v44  ;;  %3917 = vmatpush.msra.mxu3 %v3521_v22  ;;  %v3605_v22 = vld [vmem:[#allocation13 + $0x858] sm:$0xff]  ;;  %3966 = vmatpush.msrb.mxu1 %v3608_v19  ;;  %v3767_v19 = vld [vmem:[#allocation13 + $0xd68] sm:$0xff] }
 0x358   : > { %3942 = vmatpush.msrb.mxu0 %v3563_v10  ;;  %v3590_v10 = vld [vmem:[#allocation13 + $0x7e0] sm:$0xff] }
 0x359   : > { %v3250_v45 = vmax.f32 %v3242_v9, 0.0  ;;  %3918 = vmatpush.msra.mxu3 %v3518_v29  ;;  %v3557_v9 = vld [vmem:[#allocation13 + $0x6d8] sm:$0xff]  ;;  %v3548_v29 = vld [vmem:[#allocation13 + $0x690] sm:$0xff]  ;;  %3967 = vmatpush.msrb.mxu1 %v3605_v22 }
 0x35a   : > { %v3761_v22 = vld [vmem:[#allocation13 + $0xd38] sm:$0xff] }
 0x35b   : > { %v8926_v51 = vsel %vm8808_vm3, %v3250_v45, 0.0  ;;  %3919 = vmatpush.msra.mxu3 %v3515_v40  ;;  %v3010_v45 = vperm.slane %v2998_v52, 0  ;;  %3968 = vmatpush.msrb.mxu1 %v3602_v11  ;;  %v3764_v52 = vld [vmem:[#allocation13 + $0xd50] sm:$0xff]  ;;  %v3758_v11 = vld [vmem:[#allocation13 + $0xd20] sm:$0xff] }
 0x35c   : > { %v3202_v58 = vpop.f32.mrf.mxu3  ;;  %v3284_v35 = vrot.slane %v8926_v51, 1 }
 0x35d   : > { %v3226_v59 = vmul.f32 %v3218_v39, %v3202_v58  ;;  %v2569_v39 = vadd.f32 %v8752_v0, %v2549_v61  ;;  %v3560_v0 = vld [vmem:[#allocation13 + $0x6f0] sm:$0xff]  ;;  %3920 = vmatpush.msra.mxu3 %v3512_v32  ;;  %v3551_v58 = vld [vmem:[#allocation13 + $0x6a8] sm:$0xff]  ;;  %v3545_v61 = vld [vmem:[#allocation13 + $0x678] sm:$0xff]  ;;  %3969 = vmatpush.msrb.mxu1 %v3599_v28 }
 0x35e   : > { %6823 = vrot.lane.b32.xlu0 %v3045_v57, %s7885_s16  ;;  %3943 = vmatpush.msrb.mxu0 %v3560_v0  ;;  %v3503_v57 = vld [vmem:[#allocation13 + $0x528] sm:$0xff]  ;;  %v3482_v0 = vld [vmem:[#allocation13 + $0x480] sm:$0xff]  ;;  %v3752_v28 = vld [vmem:[#allocation13 + $0xcf0] sm:$0xff] }
 0x35f   : > { %v3246_v12 = vadd.f32 %v3238_v3, %v3226_v59  ;;  %v2589_v41 = vadd.f32 %v8744_v63, %v2569_v39  ;;  %v3048_v3 = vmax.f32 %v3042_v43, 0.0  ;;  %3921 = vmatpush.msra.mxu3 %v3509_v5  ;;  %v3497_v59 = vld [vmem:[#allocation13 + $0x4f8] sm:$0xff]  ;;  %v3671_v43 = vld [vmem:[#allocation13 + $0xa68] sm:$0xff]  ;;  %v3668_v39 = vld [vmem:[#allocation13 + $0xa50] sm:$0xff] }
 0x360   : > { %3944 = vmatpush.msrb.mxu0 %v3557_v9  ;;  %3984 = vmatpush.msrb.mxu2 %v3671_v43  ;;  %v3539_v32 = vld [vmem:[#allocation13 + $0x648] sm:$0xff]  ;;  %v3584_v9 = vld [vmem:[#allocation13 + $0x7b0] sm:$0xff] }
 0x361   : > { %v3254_v21 = vmax.f32 %v3246_v12, 0.0  ;;  %v2609_v16 = vadd.f32 %v8760_v4, %v2589_v41  ;;  %3922 = vmatpush.msra.mxu3 %v3506_v13  ;;  %v3596_v12 = vld [vmem:[#allocation13 + $0x810] sm:$0xff]  ;;  %v3485_v41 = vld [vmem:[#allocation13 + $0x498] sm:$0xff]  ;;  %v3587_v5 = vld [vmem:[#allocation13 + $0x7c8] sm:$0xff] }
 0x362   : > { %3945 = vmatpush.msrb.mxu0 %v3554_v6  ;;  %3970 = vmatpush.msrb.mxu1 %v3596_v12  ;;  %v3530_v13 = vld [vmem:[#allocation13 + $0x600] sm:$0xff]  ;;  %v3695_v12 = vld [vmem:[#allocation13 + $0xb28] sm:$0xff]  ;;  %v3692_v43 = vld [vmem:[#allocation13 + $0xb10] sm:$0xff] }
 0x363   : > { %v8931_v44 = vsel %vm8819_vm6, %v3254_v21, 0.0  ;;  %3923 = vmatpush.msra.mxu3 %v3503_v57  ;;  %v2629_v4 = vadd.f32 %v8769_v62, %v2609_v16  ;;  %v3488_v21 = vld [vmem:[#allocation13 + $0x4b0] sm:$0xff]  ;;  %3985 = vmatpush.msrb.mxu2 %v3668_v39  ;;  %v3581_v16 = vld [vmem:[#allocation13 + $0x798] sm:$0xff]  ;;  %v3578_v57 = vld [vmem:[#allocation13 + $0x780] sm:$0xff] }
 0x364   : > { %v3285_v23 = vrot.slane %v8931_v44, 1  ;;  %3946 = vmatpush.msrb.mxu0 %v3551_v58  ;;  %3971 = vmatpush.msrb.mxu1 %v3593_v46  ;;  %v3710_v6 = vld [vmem:[#allocation13 + $0xba0] sm:$0xff]  ;;  %v3707_v58 = vld [vmem:[#allocation13 + $0xb88] sm:$0xff]  ;;  %v3677_v46 = vld [vmem:[#allocation13 + $0xa98] sm:$0xff] }
 0x365   : > { %3924 = vmatpush.msra.mxu3 %v3500_v34  ;;  %v3016_v62 = vmul.f32 %v3010_v45, %v2629_v4  ;;  %3986 = vmatpush.msrb.mxu2 %v3665_v7  ;;  %v3815_v34 = vld [vmem:[#allocation13 + $0xee8] sm:$0xff]  ;;  %v3812_v4 = vld [vmem:[#allocation13 + $0xed0] sm:$0xff]  ;;  %v3746_v39 = vld [vmem:[#allocation13 + $0xcc0] sm:$0xff] }
 0x366   : > { %6829 = vrot.lane.b32.xlu0 %v3048_v3, %s7885_s16  ;;  %v3286_v63 = vsel %vm894_vm0, %v3284_v35, %v3285_v23  ;;  %3947 = vmatpush.msrb.mxu0 %v3548_v29  ;;  %v7406_v40 = vpack.i.bf16 %v3285_v23, %v3282_v38  ;;  %v3536_v3 = vld [vmem:[#allocation13 + $0x630] sm:$0xff]  ;;  %v3533_v35 = vld [vmem:[#allocation13 + $0x618] sm:$0xff]  ;;  %v3719_v23 = vld [vmem:[#allocation13 + $0xbe8] sm:$0xff] }
 0x367   : > { %v7401_v30 = vpack.i.bf16 %v3279_v49, %v3286_v63  ;;  %v3022_v49 = vperm.slane %v8884_v18, 7  ;;  %3925 = vmatpush.msra.mxu3 %v3497_v59  ;;  %v3542_v18 = vld [vmem:[#allocation13 + $0x660] sm:$0xff]  ;;  %3972 = vmatpush.msrb.mxu1 %v3590_v10  ;;  %v3716_v63 = vld [vmem:[#allocation13 + $0xbd0] sm:$0xff]  ;;  %v3809_v59 = vld [vmem:[#allocation13 + $0xeb8] sm:$0xff] }
 0x368   : > { %3948 = vmatpush.msrb.mxu0 %v3545_v61  ;;  %v3704_v45 = vld [vmem:[#allocation13 + $0xb70] sm:$0xff]  ;;  %v3701_v29 = vld [vmem:[#allocation13 + $0xb58] sm:$0xff]  ;;  %v3674_v10 = vld [vmem:[#allocation13 + $0xa80] sm:$0xff] }
 0x369   : > { %7402 = vrot.lane.b32.xlu1 %v7401_v30, %s7885_s16  ;;  %v3034_v42 = vperm.slane %v3022_v49, 1  ;;  %3926 = vmatpush.msra.mxu3 %v3494_v33  ;;  %v3713_v30 = vld [vmem:[#allocation13 + $0xbb8] sm:$0xff]  ;;  %v3755_v49 = vld [vmem:[#allocation13 + $0xd08] sm:$0xff]  ;;  %v3698_v33 = vld [vmem:[#allocation13 + $0xb40] sm:$0xff] }
 0x36a   : > { %3949 = vmatpush.msrb.mxu0 %v3542_v18  ;;  %3973 = vmatpush.msrb.mxu1 %v3587_v5  ;;  %v3749_v61 = vld [vmem:[#allocation13 + $0xcd8] sm:$0xff]  ;;  %v3662_v18 = vld [vmem:[#allocation13 + $0xa20] sm:$0xff]  ;;  %v3743_v7 = vld [vmem:[#allocation13 + $0xca8] sm:$0xff] }
 0x36b   : > { %3927 = vmatpush.msra.mxu3 %v3491_v24  ;;  %v3040_v38 = vadd.f32 %v3034_v42, %v3016_v62  ;;  %v3686_v62 = vld [vmem:[#allocation13 + $0xae0] sm:$0xff]  ;;  %v3683_v42 = vld [vmem:[#allocation13 + $0xac8] sm:$0xff]  ;;  %v3680_v24 = vld [vmem:[#allocation13 + $0xab0] sm:$0xff]  ;;  %3987 = vmatpush.msrb.mxu2 %v3662_v18 }
 0x36c   : > { %3950 = vmatpush.msrb.mxu0 %v3539_v32  ;;  %3974 = vmatpush.msrb.mxu1 %v3584_v9  ;;  %v3659_v32 = vld [vmem:[#allocation13 + $0xa08] sm:$0xff]  ;;  %v3800_v5 = vld [vmem:[#allocation13 + $0xe70] sm:$0xff]  ;;  %v3794_v9 = vld [vmem:[#allocation13 + $0xe40] sm:$0xff] }
 0x36d   : > { %3928 = vmatpush.msra.mxu3 %v3488_v21  ;;  %v3046_v37 = vmax.f32 %v3040_v38, 0.0  ;;  %v3806_v21 = vld [vmem:[#allocation13 + $0xea0] sm:$0xff]  ;;  %v3803_v38 = vld [vmem:[#allocation13 + $0xe88] sm:$0xff]  ;;  %3988 = vmatpush.msrb.mxu2 %v3659_v32  ;;  %v3480_v32 = vld [vmem:[#allocation13 + $0x470] sm:$0xff] }
 0x36e   : > { %3951 = vmatpush.msrb.mxu0 %v3536_v3  ;;  %3975 = vmatpush.msrb.mxu1 %v3581_v16  ;;  %v3740_v3 = vld [vmem:[#allocation13 + $0xc90] sm:$0xff]  ;;  %v3791_v16 = vld [vmem:[#allocation13 + $0xe28] sm:$0xff] }
 0x36f   : > { %3929 = vmatpush.msra.mxu3 %v3485_v41  ;;  %v3656_v41 = vld [vmem:[#allocation13 + $0x9f0] sm:$0xff] }
 0x370   : > { %3952 = vmatpush.msrb.mxu0 %v3533_v35  ;;  %3976 = vmatpush.msrb.mxu1 %v3578_v57  ;;  %v3737_v35 = vld [vmem:[#allocation13 + $0xc78] sm:$0xff]  ;;  %v3788_v57 = vld [vmem:[#allocation13 + $0xe10] sm:$0xff] }
 0x371   : > { %7407 = vrot.lane.b32.xlu1 %v7406_v40, %s7885_s16  ;;  %3930 = vmatpush.msra.mxu3 %v3482_v0  ;;  %v3689_v40 = vld [vmem:[#allocation13 + $0xaf8] sm:$0xff] }
 0x372   : > { %3953 = vmatpush.msrb.mxu0 %v3530_v13  ;;  %4053 = vmatpush.msra.mxu1 %v3815_v34  ;;  %v3653_v0 = vld [vmem:[#allocation13 + $0x9d8] sm:$0xff]  ;;  %v3734_v13 = vld [vmem:[#allocation13 + $0xc60] sm:$0xff] }
 0x373   : > { %4007 = vmatpush.msrb.mxu3 %v3719_v23  ;;  %3989 = vmatpush.msrb.mxu2 %v3656_v41  ;;  %v3797_v23 = vld [vmem:[#allocation13 + $0xe58] sm:$0xff] }
 0x374   : > { %4030 = vmatpush.msra.mxu0 %v3767_v19  ;;  %4054 = vmatpush.msra.mxu1 %v3812_v4  ;;  %v3731_v19 = vld [vmem:[#allocation13 + $0xc48] sm:$0xff]  ;;  %v3785_v34 = vld [vmem:[#allocation13 + $0xdf8] sm:$0xff]  ;;  %v3782_v4 = vld [vmem:[#allocation13 + $0xde0] sm:$0xff] }
 0x375   : > { %4008 = vmatpush.msrb.mxu3 %v3716_v63  ;;  %3990 = vmatpush.msrb.mxu2 %v3653_v0  ;;  %v3647_v63 = vld [vmem:[#allocation13 + $0x9a8] sm:$0xff]  ;;  %v3477_v41 = vld [vmem:[#allocation13 + $0x458] sm:$0xff]  ;;  %v3474_v0 = vld [vmem:[#allocation13 + $0x440] sm:$0xff] }
 0x376   : > { %4031 = vmatpush.msra.mxu0 %v3764_v52  ;;  %4055 = vmatpush.msra.mxu1 %v3809_v59  ;;  %v3728_v52 = vld [vmem:[#allocation13 + $0xc30] sm:$0xff] }
 0x377   : > { %4009 = vmatpush.msrb.mxu3 %v3713_v30  ;;  %v3644_v30 = vld [vmem:[#allocation13 + $0x990] sm:$0xff] }
 0x378   : > { %4032 = vmatpush.msra.mxu0 %v3761_v22  ;;  %4056 = vmatpush.msra.mxu1 %v3806_v21  ;;  %v3725_v22 = vld [vmem:[#allocation13 + $0xc18] sm:$0xff]  ;;  %v3632_v59 = vld [vmem:[#allocation13 + $0x930] sm:$0xff] }
 0x379   : > { %6825 = vrot.lane.b32.xlu1 %v3046_v37, %s7885_s16  ;;  %4010 = vmatpush.msrb.mxu3 %v3710_v6  ;;  %v3650_v37 = vld [vmem:[#allocation13 + $0x9c0] sm:$0xff]  ;;  %v3641_v6 = vld [vmem:[#allocation13 + $0x978] sm:$0xff]  ;;  %v3384_v21 = vld [vmem:[#allocation13 + $0x170] sm:$0xff] }
 0x37a   : > { %4033 = vmatpush.msra.mxu0 %v3758_v11  ;;  %4057 = vmatpush.msra.mxu1 %v3803_v38  ;;  %v3722_v11 = vld [vmem:[#allocation13 + $0xc00] sm:$0xff]  ;;  %v3381_v38 = vld [vmem:[#allocation13 + $0x158] sm:$0xff] }
 0x37b   : > { %4011 = vmatpush.msrb.mxu3 %v3707_v58  ;;  %3991 = vmatpush.msrb.mxu2 %v3650_v37  ;;  %v3638_v58 = vld [vmem:[#allocation13 + $0x960] sm:$0xff]  ;;  %v3471_v37 = vld [vmem:[#allocation13 + $0x428] sm:$0xff] }
 0x37c   : > { %4034 = vmatpush.msra.mxu0 %v3755_v49  ;;  %4058 = vmatpush.msra.mxu1 %v3800_v5  ;;  %v3779_v49 = vld [vmem:[#allocation13 + $0xdc8] sm:$0xff]  ;;  %v3378_v5 = vld [vmem:[#allocation13 + $0x140] sm:$0xff] }
 0x37d   : > { %4012 = vmatpush.msrb.mxu3 %v3704_v45  ;;  %3992 = vmatpush.msrb.mxu2 %v3647_v63  ;;  %v3635_v45 = vld [vmem:[#allocation13 + $0x948] sm:$0xff]  ;;  %v3468_v63 = vld [vmem:[#allocation13 + $0x410] sm:$0xff] }
 0x37e   : > { %4035 = vmatpush.msra.mxu0 %v3752_v28  ;;  %4059 = vmatpush.msra.mxu1 %v3797_v23  ;;  %v3629_v28 = vld [vmem:[#allocation13 + $0x918] sm:$0xff]  ;;  %v3375_v23 = vld [vmem:[#allocation13 + $0x128] sm:$0xff] }
 0x37f   : > { %4013 = vmatpush.msrb.mxu3 %v3701_v29  ;;  %3993 = vmatpush.msrb.mxu2 %v3644_v30  ;;  %v3776_v29 = vld [vmem:[#allocation13 + $0xdb0] sm:$0xff]  ;;  %v3366_v30 = vld [vmem:[#allocation13 + $0xe0] sm:$0xff] }
 0x380   : > { %4036 = vmatpush.msra.mxu0 %v3749_v61  ;;  %4060 = vmatpush.msra.mxu1 %v3794_v9  ;;  %v3626_v61 = vld [vmem:[#allocation13 + $0x900] sm:$0xff]  ;;  %v3372_v9 = vld [vmem:[#allocation13 + $0x110] sm:$0xff] }
 0x381   : > { %4014 = vmatpush.msrb.mxu3 %v3698_v33  ;;  %3994 = vmatpush.msrb.mxu2 %v3641_v6  ;;  %v3773_v33 = vld [vmem:[#allocation13 + $0xd98] sm:$0xff]  ;;  %v3459_v6 = vld [vmem:[#allocation13 + $0x3c8] sm:$0xff] }
 0x382   : > { %4037 = vmatpush.msra.mxu0 %v3746_v39  ;;  %4061 = vmatpush.msra.mxu1 %v3791_v16  ;;  %v3827_v39 = vld [vmem:[#allocation13 + $0xf48] sm:$0xff]  ;;  %v3465_v16 = vld [vmem:[#allocation13 + $0x3f8] sm:$0xff] }
 0x383   : > { %4015 = vmatpush.msrb.mxu3 %v3695_v12  ;;  %3995 = vmatpush.msrb.mxu2 %v3638_v58  ;;  %v3770_v12 = vld [vmem:[#allocation13 + $0xd80] sm:$0xff]  ;;  %v3456_v58 = vld [vmem:[#allocation13 + $0x3b0] sm:$0xff] }
 0x384   : > { %4038 = vmatpush.msra.mxu0 %v3743_v7  ;;  %4062 = vmatpush.msra.mxu1 %v3788_v57  ;;  %v3363_v57 = vld [vmem:[#allocation13 + $0xc8] sm:$0xff] }
 0x385   : > { %4016 = vmatpush.msrb.mxu3 %v3692_v43  ;;  %3996 = vmatpush.msrb.mxu2 %v3635_v45  ;;  %v3839_v43 = vld [vmem:[#allocation13 + $0xfa8] sm:$0xff]  ;;  %v3357_v45 = vld [vmem:[#allocation13 + $0x98] sm:$0xff] }
 0x386   : > { %4039 = vmatpush.msra.mxu0 %v3740_v3  ;;  %4063 = vmatpush.msra.mxu1 %v3785_v34  ;;  %v3824_v3 = vld [vmem:[#allocation13 + $0xf30] sm:$0xff] }
 0x387   : > { %4017 = vmatpush.msrb.mxu3 %v3689_v40  ;;  %3997 = vmatpush.msrb.mxu2 %v3632_v59  ;;  %v3836_v40 = vld [vmem:[#allocation13 + $0xf90] sm:$0xff] }
 0x388   : > { %4040 = vmatpush.msra.mxu0 %v3737_v35  ;;  %4064 = vmatpush.msra.mxu1 %v3782_v4  ;;  %v3821_v35 = vld [vmem:[#allocation13 + $0xf18] sm:$0xff]  ;;  %v3360_v34 = vld [vmem:[#allocation13 + $0xb0] sm:$0xff] }
 0x389   : > { %4018 = vmatpush.msrb.mxu3 %v3686_v62  ;;  %3998 = vmatpush.msrb.mxu2 %v3629_v28  ;;  %v3833_v62 = vld [vmem:[#allocation13 + $0xf78] sm:$0xff] }
 0x38a   : > { %4041 = vmatpush.msra.mxu0 %v3734_v13  ;;  %4065 = vmatpush.msra.mxu1 %v3779_v49  ;;  %v3818_v13 = vld [vmem:[#allocation13 + $0xf00] sm:$0xff]  ;;  %v3528_v49 = vld [vmem:[#allocation13 + $0x5f0] sm:$0xff]  ;;  %v3453_v28 = vld [vmem:[#allocation13 + $0x398] sm:$0xff] }
 0x38b   : > { %4019 = vmatpush.msrb.mxu3 %v3683_v42  ;;  %3999 = vmatpush.msrb.mxu2 %v3626_v61  ;;  %v3830_v42 = vld [vmem:[#allocation13 + $0xf60] sm:$0xff]  ;;  %v3525_v61 = vld [vmem:[#allocation13 + $0x5d8] sm:$0xff] }
 0x38c   : > { %4042 = vmatpush.msra.mxu0 %v3731_v19  ;;  %4066 = vmatpush.msra.mxu1 %v3776_v29  ;;  %v3369_v19 = vld [vmem:[#allocation13 + $0xf8] sm:$0xff] }
 0x38d   : > { %4020 = vmatpush.msrb.mxu3 %v3680_v24  ;;  %4084 = vmatpush.msra.mxu2 %v3839_v43  ;;  %v3351_v43 = vld [vmem:[#allocation13 + $0x68] sm:$0xff] }
 0x38e   : > { %4043 = vmatpush.msra.mxu0 %v3728_v52  ;;  %4067 = vmatpush.msra.mxu1 %v3773_v33  ;;  %v3462_v52 = vld [vmem:[#allocation13 + $0x3e0] sm:$0xff] }
 0x38f   : > { %4021 = vmatpush.msrb.mxu3 %v3677_v46  ;;  %4085 = vmatpush.msra.mxu2 %v3836_v40  ;;  %v3354_v33 = vld [vmem:[#allocation13 + $0x80] sm:$0xff] }
 0x390   : > { %4044 = vmatpush.msra.mxu0 %v3725_v22  ;;  %4068 = vmatpush.msra.mxu1 %v3770_v12  ;;  %v3450_v12 = vld [vmem:[#allocation13 + $0x380] sm:$0xff] }
 0x391   : > { %4022 = vmatpush.msrb.mxu3 %v3674_v10  ;;  %4086 = vmatpush.msra.mxu2 %v3833_v62  ;;  %v3522_v40 = vld [vmem:[#allocation13 + $0x5c0] sm:$0xff]  ;;  %v8975_v62 = vrot.slane %v8861_v36, 2  ;;  %v3345_v36 = vld [vmem:[#allocation13 + $0x38] sm:$0xff] }
 0x392   : > { %4045 = vmatpush.msra.mxu0 %v3722_v11 }
 0x393   : > { %4087 = vmatpush.msra.mxu2 %v3830_v42  ;;  %v3318_v42 = vrot.slane %v8847_v15, 2 }
 0x395   : > { %4088 = vmatpush.msra.mxu2 %v3827_v39  ;;  %v3519_v39 = vld [vmem:[#allocation13 + $0x5a8] sm:$0xff]  ;;  %v8986_v15 = vsel %vm752_vm1, %v3318_v42, %v8975_v62  ;;  %v3426_v42 = vld [vmem:[#allocation13 + $0x2c0] sm:$0xff] }
 0x397   : > { %4089 = vmatpush.msra.mxu2 %v3824_v3  ;;  %v3342_v3 = vld [vmem:[#allocation13 + $0x20] sm:$0xff] }
 0x399   : > { %4090 = vmatpush.msra.mxu2 %v3821_v35  ;;  %v3510_v35 = vld [vmem:[#allocation13 + $0x560] sm:$0xff] }
 0x39b   : > { %4091 = vmatpush.msra.mxu2 %v3818_v13  ;;  %v8989_v13 = vpop.permute.xlu2 %6827 }
 0x3b6   : > { %v7393_v24 = vpop.permute.xlu0 %7392 }
 0x3b7   : > { %v7395_v18 = vunpack.i.h.bf16 %v7393_v24  ;;  %v7394_v46 = vunpack.i.l.bf16 %v7393_v24  ;;  %v3447_v24 = vld [vmem:[#allocation13 + $0x368] sm:$0xff] }
 0x3b9   : > { %v8950_v10 = vsel %vm3303_vm14, %v8926_v51, %v7394_v46  ;;  %v8953_v7 = vsel %vm3303_vm14, %v7394_v46, %v7395_v18  ;;  %v3348_v46 = vld [vmem:[#allocation13 + $0x50] sm:$0xff] }
 0x3ba   : > { %3931 = vmatmul.f32.vlgmr.msra.gmra.mxu3 %v8950_v10  ;;  %3954 = vmatmul.f32.vlgmr.msrb.gmra.mxu0 %v8953_v7 }
 0x3bb   : > { %4099 = vmatpush.msra.mxu3 %v3384_v21  ;;  %4145 = vmatpush.msrb.mxu0 %v3480_v32  ;;  %v3444_v32 = vld [vmem:[#allocation13 + $0x350] sm:$0xff] }
 0x3bd   : > { %4100 = vmatpush.msra.mxu3 %v3381_v38  ;;  %4146 = vmatpush.msrb.mxu0 %v3477_v41  ;;  %v3516_v38 = vld [vmem:[#allocation13 + $0x590] sm:$0xff]  ;;  %v3441_v41 = vld [vmem:[#allocation13 + $0x338] sm:$0xff] }
 0x3bf   : > { %4101 = vmatpush.msra.mxu3 %v3378_v5  ;;  %4147 = vmatpush.msrb.mxu0 %v3474_v0  ;;  %v3513_v5 = vld [vmem:[#allocation13 + $0x578] sm:$0xff]  ;;  %v3339_v0 = vld [vmem:[#allocation13 + $0x8] sm:$0xff] }
 0x3c1   : > { %4102 = vmatpush.msra.mxu3 %v3375_v23  ;;  %4148 = vmatpush.msrb.mxu0 %v3471_v37  ;;  %v3576_v23 = vld [vmem:[#allocation13 + $0x770] sm:$0xff]  ;;  %v3435_v37 = vld [vmem:[#allocation13 + $0x308] sm:$0xff] }
 0x3c3   : > { %4103 = vmatpush.msra.mxu3 %v3372_v9  ;;  %4149 = vmatpush.msrb.mxu0 %v3468_v63  ;;  %v3507_v63 = vld [vmem:[#allocation13 + $0x548] sm:$0xff] }
 0x3c5   : > { %4104 = vmatpush.msra.mxu3 %v3369_v19  ;;  %4150 = vmatpush.msrb.mxu0 %v3465_v16  ;;  %v3573_v16 = vld [vmem:[#allocation13 + $0x758] sm:$0xff] }
 0x3c7   : > { %4105 = vmatpush.msra.mxu3 %v3366_v30  ;;  %4151 = vmatpush.msrb.mxu0 %v3462_v52  ;;  %v3504_v30 = vld [vmem:[#allocation13 + $0x530] sm:$0xff]  ;;  %v3570_v52 = vld [vmem:[#allocation13 + $0x740] sm:$0xff] }
 0x3c8   : > { %v8957_v22 = vpop.permute.xlu0 %7397 }
 0x3c9   : > { %4106 = vmatpush.msra.mxu3 %v3363_v57  ;;  %v7400_v11 = vunpack.i.h.bf16 %v8957_v22  ;;  %v7399_v4 = vunpack.i.l.bf16 %v8957_v22  ;;  %4152 = vmatpush.msrb.mxu0 %v3459_v6  ;;  %v3501_v6 = vld [vmem:[#allocation13 + $0x518] sm:$0xff]  ;;  %v3492_v22 = vld [vmem:[#allocation13 + $0x4d0] sm:$0xff] }
 0x3cb   : > { %4107 = vmatpush.msra.mxu3 %v3360_v34  ;;  %v8965_v59 = vsel %vm3303_vm14, %v8931_v44, %v7399_v4  ;;  %v8970_v29 = vsel %vm3303_vm14, %v7395_v18, %v7400_v11  ;;  %4153 = vmatpush.msrb.mxu0 %v3456_v58 }
 0x3cc   : > { %3934 = vmatmul.f32.gmra.mxu3 %v8965_v59  ;;  %3977 = vmatmul.f32.vlgmr.msrb.gmra.mxu1 %v8970_v29 }
 0x3cd   : > { %4108 = vmatpush.msra.mxu3 %v3357_v45  ;;  %4168 = vmatpush.msrb.mxu1 %v3528_v49  ;;  %v3432_v45 = vld [vmem:[#allocation13 + $0x2f0] sm:$0xff]  ;;  %v3567_v49 = vld [vmem:[#allocation13 + $0x728] sm:$0xff] }
 0x3ce   : > { %4154 = vmatpush.msrb.mxu0 %v3453_v28 }
 0x3cf   : > { %4109 = vmatpush.msra.mxu3 %v3354_v33  ;;  %4169 = vmatpush.msrb.mxu1 %v3525_v61  ;;  %v3498_v61 = vld [vmem:[#allocation13 + $0x500] sm:$0xff] }
 0x3d0   : > { %v8978_v18 = vpop.permute.xlu0 %6823  ;;  %4155 = vmatpush.msrb.mxu0 %v3450_v12  ;;  %v3429_v12 = vld [vmem:[#allocation13 + $0x2d8] sm:$0xff] }
 0x3d1   : > { %4110 = vmatpush.msra.mxu3 %v3351_v43  ;;  %v6832_v21 = vsel %vm3303_vm14, %v8531_v26, %v8978_v18  ;;  %4170 = vmatpush.msrb.mxu1 %v3522_v40  ;;  %v3438_v26 = vld [vmem:[#allocation13 + $0x320] sm:$0xff]  ;;  %v3564_v43 = vld [vmem:[#allocation13 + $0x710] sm:$0xff]  ;;  %v3495_v40 = vld [vmem:[#allocation13 + $0x4e8] sm:$0xff] }
 0x3d2   : > { %6889 = vst [vmem:[%s8363_s24 + $0x20] sm:$0xff] %v6832_v21  ;;  %4156 = vmatpush.msrb.mxu0 %v3447_v24  ;;  %v3561_v24 = vld [vmem:[#allocation13 + $0x6f8] sm:$0xff]  ;;  %v3321_v21 = vrot.slane %v8831_v48, 2  ;;  %v3672_v48 = vld [vmem:[#allocation13 + $0xa70] sm:$0xff] }
 0x3d3   : > { %4111 = vmatpush.msra.mxu3 %v3348_v46  ;;  %4171 = vmatpush.msrb.mxu1 %v3519_v39  ;;  %v3423_v46 = vld [vmem:[#allocation13 + $0x2a8] sm:$0xff]  ;;  %v3558_v39 = vld [vmem:[#allocation13 + $0x6e0] sm:$0xff] }
 0x3d4   : > { %4023 = vmatmul.f32.vlgmr.msrb.gmra.mxu3 %v8986_v15  ;;  %4157 = vmatpush.msrb.mxu0 %v3444_v32 }
 0x3d5   : > { %4112 = vmatpush.msra.mxu3 %v3345_v36  ;;  %4172 = vmatpush.msrb.mxu1 %v3516_v38  ;;  %v3420_v38 = vld [vmem:[#allocation13 + $0x290] sm:$0xff] }
 0x3d6   : > { %4158 = vmatpush.msrb.mxu0 %v3441_v41 }
 0x3d7   : > { %4113 = vmatpush.msra.mxu3 %v3342_v3  ;;  %4173 = vmatpush.msrb.mxu1 %v3513_v5  ;;  %v3555_v3 = vld [vmem:[#allocation13 + $0x6c8] sm:$0xff] }
 0x3d8   : > { %v8991_v9 = vpop.permute.xlu0 %6829  ;;  %4159 = vmatpush.msrb.mxu0 %v3438_v26  ;;  %v3417_v26 = vld [vmem:[#allocation13 + $0x278] sm:$0xff] }
 0x3d9   : > { %4114 = vmatpush.msra.mxu3 %v3339_v0  ;;  %v6835_v19 = vsel %vm3303_vm14, %v8989_v13, %v8991_v9  ;;  %4174 = vmatpush.msrb.mxu1 %v3510_v35  ;;  %v3489_v0 = vld [vmem:[#allocation13 + $0x4b8] sm:$0xff]  ;;  %v3552_v35 = vld [vmem:[#allocation13 + $0x6b0] sm:$0xff] }
 0x3da   : > { %6892 = vst [vmem:[%s8363_s24 + $0x38] sm:$0xff] %v6835_v19  ;;  %4160 = vmatpush.msrb.mxu0 %v3435_v37  ;;  %v3414_v37 = vld [vmem:[#allocation13 + $0x260] sm:$0xff]  ;;  %v3549_v19 = vld [vmem:[#allocation13 + $0x698] sm:$0xff] }
 0x3db   : > { %4191 = vmatpush.msrb.mxu3 %v3576_v23  ;;  %4175 = vmatpush.msrb.mxu1 %v3507_v63  ;;  %v7403_v57 = vpop.permute.xlu1 %7402  ;;  %v3669_v23 = vld [vmem:[#allocation13 + $0xa58] sm:$0xff]  ;;  %v3486_v63 = vld [vmem:[#allocation13 + $0x4a0] sm:$0xff] }
 0x3dc   : > { %v7405_v34 = vunpack.i.h.bf16 %v7403_v57  ;;  %v7404_v58 = vunpack.i.l.bf16 %v7403_v57  ;;  %4026 = vmatmul.f32.gmra.mxu3 %v8975_v62  ;;  %v3324_v57 = vrot.slane %v8890_v31, 2  ;;  %v3483_v31 = vld [vmem:[#allocation13 + $0x488] sm:$0xff] }
 0x3dd   : > { %4192 = vmatpush.msrb.mxu3 %v3573_v16  ;;  %4176 = vmatpush.msrb.mxu1 %v3504_v30  ;;  %v3666_v16 = vld [vmem:[#allocation13 + $0xa40] sm:$0xff] }
 0x3de   : > { %v9001_v28 = vsel %vm3303_vm14, %v7399_v4, %v7405_v34  ;;  %v9006_v33 = vsel %vm3303_vm14, %v7400_v11, %v7404_v58  ;;  %v9011_v11 = vrot.slane %v8836_v2, 2 }
 0x3df   : > { %4193 = vmatpush.msrb.mxu3 %v3570_v52  ;;  %4177 = vmatpush.msrb.mxu1 %v3501_v6  ;;  %v3411_v52 = vld [vmem:[#allocation13 + $0x248] sm:$0xff]  ;;  %v9032_v6 = vrot.slane %v8931_v44, 2  ;;  %v3327_v44 = vrot.slane %v8926_v51, 2 }
 0x3e0   : > { %3957 = vmatmul.f32.gmra.mxu0 %v9001_v28  ;;  %4000 = vmatmul.f32.vlgmr.msrb.gmra.mxu2 %v9006_v33  ;;  %v9027_v5 = vsel %vm752_vm1, %v3321_v21, %v9011_v11  ;;  %v3714_v21 = vld [vmem:[#allocation13 + $0xbc0] sm:$0xff] }
 0x3e1   : > { %4122 = vmatpush.msrb.mxu2 %v3432_v45  ;;  %4194 = vmatpush.msrb.mxu3 %v3567_v49  ;;  %v3546_v45 = vld [vmem:[#allocation13 + $0x680] sm:$0xff]  ;;  %v3663_v49 = vld [vmem:[#allocation13 + $0xa28] sm:$0xff]  ;;  %v9054_v51 = vsel %vm752_vm1, %v3327_v44, %v9032_v6 }
 0x3e2   : > { %4178 = vmatpush.msrb.mxu1 %v3498_v61  ;;  %v9039_v61 = vrot.slane %v8905_v17, 2  ;;  %v3759_v44 = vld [vmem:[#allocation13 + $0xd28] sm:$0xff] }
 0x3e3   : > { %4123 = vmatpush.msrb.mxu2 %v3429_v12  ;;  %4195 = vmatpush.msrb.mxu3 %v3564_v43  ;;  %v7408_v4 = vpop.permute.xlu1 %7407  ;;  %v3660_v12 = vld [vmem:[#allocation13 + $0xa10] sm:$0xff] }
 0x3e4   : > { %4179 = vmatpush.msrb.mxu1 %v3495_v40  ;;  %v7410_v32 = vunpack.i.h.bf16 %v7408_v4  ;;  %v7409_v36 = vunpack.i.l.bf16 %v7408_v4  ;;  %7160 = vmatmul.msk.f32.vlgmr.msra.gmra.mxu3 %vm8808_vm3, %v8817_v8  ;;  %v9050_v17 = vsel %vm752_vm1, %v3324_v57, %v9039_v61  ;;  %v3720_v43 = vld [vmem:[#allocation13 + $0xbf0] sm:$0xff]  ;;  %v3405_v40 = vld [vmem:[#allocation13 + $0x218] sm:$0xff]  ;;  %v3402_v4 = vld [vmem:[#allocation13 + $0x200] sm:$0xff] }
 0x3e5   : > { %4124 = vmatpush.msrb.mxu2 %v3426_v42  ;;  %4196 = vmatpush.msrb.mxu3 %v3561_v24  ;;  %v3540_v42 = vld [vmem:[#allocation13 + $0x650] sm:$0xff]  ;;  %v3657_v24 = vld [vmem:[#allocation13 + $0x9f8] sm:$0xff]  ;;  %v3702_v57 = vld [vmem:[#allocation13 + $0xb60] sm:$0xff] }
 0x3e6   : > { %4180 = vmatpush.msrb.mxu1 %v3492_v22  ;;  %v9018_v2 = vsel %vm3303_vm14, %v7405_v34, %v7409_v36  ;;  %v9021_v41 = vsel %vm3303_vm14, %v7409_v36, %v7410_v32  ;;  %v3717_v22 = vld [vmem:[#allocation13 + $0xbd8] sm:$0xff]  ;;  %v3399_v32 = vld [vmem:[#allocation13 + $0x1e8] sm:$0xff]  ;;  %v3534_v36 = vld [vmem:[#allocation13 + $0x620] sm:$0xff] }
 0x3e7   : > { %4125 = vmatpush.msrb.mxu2 %v3423_v46  ;;  %4197 = vmatpush.msrb.mxu3 %v3558_v39  ;;  %v3537_v46 = vld [vmem:[#allocation13 + $0x638] sm:$0xff]  ;;  %v3654_v39 = vld [vmem:[#allocation13 + $0x9e0] sm:$0xff] }
 0x3e8   : > { %3980 = vmatmul.f32.gmra.mxu1 %v9018_v2  ;;  %4003 = vmatmul.f32.gmra.mxu2 %v9021_v41 }
 0x3e9   : > { %4046 = vmatmul.f32.vlgmr.msra.gmra.mxu0 %v9027_v5  ;;  %4126 = vmatpush.msrb.mxu2 %v3420_v38  ;;  %v3651_v38 = vld [vmem:[#allocation13 + $0x9c8] sm:$0xff] }
 0x3ea   : > { %4198 = vmatpush.msrb.mxu3 %v3555_v3  ;;  %4237 = vmatpush.msra.mxu0 %v3672_v48  ;;  %v3711_v3 = vld [vmem:[#allocation13 + $0xba8] sm:$0xff]  ;;  %v3396_v48 = vld [vmem:[#allocation13 + $0x1d0] sm:$0xff] }
 0x3eb   : > { %4127 = vmatpush.msrb.mxu2 %v3417_v26  ;;  %4181 = vmatpush.msrb.mxu1 %v3489_v0  ;;  %v6826_v30 = vpop.permute.xlu1 %6825  ;;  %v3531_v26 = vld [vmem:[#allocation13 + $0x608] sm:$0xff]  ;;  %v3648_v0 = vld [vmem:[#allocation13 + $0x9b0] sm:$0xff] }
 0x3ec   : > { %4199 = vmatpush.msrb.mxu3 %v3552_v35  ;;  %4238 = vmatpush.msra.mxu0 %v3669_v23  ;;  %v6833_v34 = vsel %vm3303_vm14, %v8978_v18, %v6826_v30  ;;  %v6834_v58 = vsel %vm3303_vm14, %v6826_v30, %v8989_v13  ;;  %v3408_v18 = vld [vmem:[#allocation13 + $0x230] sm:$0xff]  ;;  %v3543_v13 = vld [vmem:[#allocation13 + $0x668] sm:$0xff]  ;;  %v3390_v30 = vld [vmem:[#allocation13 + $0x1a0] sm:$0xff] }
 0x3ed   : > { %4128 = vmatpush.msrb.mxu2 %v3414_v37  ;;  %4182 = vmatpush.msrb.mxu1 %v3486_v63  ;;  %6890 = vst [vmem:[%s8363_s24 + $0x28] sm:$0xff] %v6833_v34  ;;  %v3708_v35 = vld [vmem:[#allocation13 + $0xb90] sm:$0xff]  ;;  %v3393_v37 = vld [vmem:[#allocation13 + $0x1b8] sm:$0xff]  ;;  %v3762_v34 = vld [vmem:[#allocation13 + $0xd40] sm:$0xff] }
 0x3ee   : > { %4200 = vmatpush.msrb.mxu3 %v3549_v19  ;;  %4239 = vmatpush.msra.mxu0 %v3666_v16  ;;  %6891 = vst [vmem:[%s8363_s24 + $0x30] sm:$0xff] %v6834_v58  ;;  %v3768_v23 = vld [vmem:[#allocation13 + $0xd70] sm:$0xff]  ;;  %v3645_v63 = vld [vmem:[#allocation13 + $0x998] sm:$0xff]  ;;  %v3387_v58 = vld [vmem:[#allocation13 + $0x188] sm:$0xff] }
 0x3ef   : > { %7161 = vmatmul.msk.f32.gmra.mxu3 %vm8819_vm6, %v8853_v20  ;;  %4129 = vmatpush.msrb.mxu2 %v3411_v52  ;;  %v3705_v19 = vld [vmem:[#allocation13 + $0xb78] sm:$0xff]  ;;  %v3642_v52 = vld [vmem:[#allocation13 + $0x980] sm:$0xff] }
 0x3f0   : > { %4201 = vmatpush.msrb.mxu3 %v3546_v45  ;;  %4240 = vmatpush.msra.mxu0 %v3663_v49  ;;  %v3765_v16 = vld [vmem:[#allocation13 + $0xd58] sm:$0xff]  ;;  %v3639_v45 = vld [vmem:[#allocation13 + $0x968] sm:$0xff] }
 0x3f1   : > { %4183 = vmatpush.msrb.mxu1 %v3483_v31  ;;  %4049 = vmatmul.f32.gmra.mxu0 %v9011_v11  ;;  %v3699_v49 = vld [vmem:[#allocation13 + $0xb48] sm:$0xff]  ;;  %v3624_v31 = vld [vmem:[#allocation13 + $0x8f0] sm:$0xff] }
 0x3f2   : > { %4069 = vmatmul.f32.vlgmr.msra.gmra.mxu1 %v9050_v17  ;;  %7158 = vmatmul.msk.f32.vlgmr.msra.gmra.mxu2 %vm3303_vm14, %v9054_v51 }
 0x3f3   : > { %4130 = vmatpush.msrb.mxu2 %v3408_v18  ;;  %4202 = vmatpush.msrb.mxu3 %v3543_v13  ;;  %v3636_v18 = vld [vmem:[#allocation13 + $0x950] sm:$0xff] }
 0x3f4   : > { %4241 = vmatpush.msra.mxu0 %v3660_v12  ;;  %4260 = vmatpush.msra.mxu1 %v3720_v43  ;;  %v3696_v13 = vld [vmem:[#allocation13 + $0xb30] sm:$0xff]  ;;  %v3621_v12 = vld [vmem:[#allocation13 + $0x8d8] sm:$0xff] }
 0x3f5   : > { %4131 = vmatpush.msrb.mxu2 %v3405_v40  ;;  %4203 = vmatpush.msrb.mxu3 %v3540_v42  ;;  %v3756_v43 = vld [vmem:[#allocation13 + $0xd10] sm:$0xff]  ;;  %v3633_v40 = vld [vmem:[#allocation13 + $0x938] sm:$0xff] }
 0x3f6   : > { %4242 = vmatpush.msra.mxu0 %v3657_v24  ;;  %4261 = vmatpush.msra.mxu1 %v3717_v22  ;;  %v3693_v42 = vld [vmem:[#allocation13 + $0xb18] sm:$0xff]  ;;  %v3618_v24 = vld [vmem:[#allocation13 + $0x8c0] sm:$0xff] }
 0x3f7   : > { %4132 = vmatpush.msrb.mxu2 %v3402_v4  ;;  %4204 = vmatpush.msrb.mxu3 %v3537_v46  ;;  %v3753_v22 = vld [vmem:[#allocation13 + $0xcf8] sm:$0xff]  ;;  %v3630_v4 = vld [vmem:[#allocation13 + $0x920] sm:$0xff] }
 0x3f8   : > { %4243 = vmatpush.msra.mxu0 %v3654_v39  ;;  %4262 = vmatpush.msra.mxu1 %v3714_v21  ;;  %v3690_v46 = vld [vmem:[#allocation13 + $0xb00] sm:$0xff]  ;;  %v3615_v39 = vld [vmem:[#allocation13 + $0x8a8] sm:$0xff] }
 0x3f9   : > { %4133 = vmatpush.msrb.mxu2 %v3399_v32  ;;  %4205 = vmatpush.msrb.mxu3 %v3534_v36  ;;  %v3750_v21 = vld [vmem:[#allocation13 + $0xce0] sm:$0xff]  ;;  %v3627_v32 = vld [vmem:[#allocation13 + $0x908] sm:$0xff] }
 0x3fa   : > { %4244 = vmatpush.msra.mxu0 %v3651_v38  ;;  %4263 = vmatpush.msra.mxu1 %v3711_v3  ;;  %v3687_v36 = vld [vmem:[#allocation13 + $0xae8] sm:$0xff]  ;;  %v3612_v38 = vld [vmem:[#allocation13 + $0x890] sm:$0xff] }
 0x3fb   : > { %4072 = vmatmul.f32.gmra.mxu1 %v9039_v61  ;;  %7159 = vmatmul.msk.f32.gmra.mxu2 %vm3303_vm14, %v9032_v6  ;;  %v3747_v3 = vld [vmem:[#allocation13 + $0xcc8] sm:$0xff] }
 0x3fc   : > { %4134 = vmatpush.msrb.mxu2 %v3396_v48  ;;  %7164 = vmatmul.msk.f32.vlgmr.msrb.gmra.mxu0 %vm8808_vm3, %v8875_v60  ;;  %v3840_v48 = vld [vmem:[#allocation13 + $0xfb0] sm:$0xff] }
 0x3fd   : > { %4206 = vmatpush.msrb.mxu3 %v3531_v26  ;;  %4245 = vmatpush.msra.mxu0 %v3648_v0  ;;  %v3684_v26 = vld [vmem:[#allocation13 + $0xad0] sm:$0xff]  ;;  %v3609_v0 = vld [vmem:[#allocation13 + $0x878] sm:$0xff] }
 0x3fe   : > { %4264 = vmatpush.msra.mxu1 %v3708_v35  ;;  %4207 = vmatmul.f32.vlgmr.msrb.gmra.mxu3 %v8953_v7  ;;  %v3744_v35 = vld [vmem:[#allocation13 + $0xcb0] sm:$0xff] }
 0x3ff   : > { %4283 = vmatpush.msra.mxu3 %v3768_v23  ;;  %4135 = vmatpush.msrb.mxu2 %v3393_v37  ;;  %v3837_v23 = vld [vmem:[#allocation13 + $0xf98] sm:$0xff] }
 0x400   : > { %4246 = vmatpush.msra.mxu0 %v3645_v63  ;;  %4265 = vmatpush.msra.mxu1 %v3705_v19  ;;  %v3681_v37 = vld [vmem:[#allocation13 + $0xab8] sm:$0xff]  ;;  %v3606_v63 = vld [vmem:[#allocation13 + $0x860] sm:$0xff] }
 0x401   : > { %4284 = vmatpush.msra.mxu3 %v3765_v16  ;;  %4136 = vmatpush.msrb.mxu2 %v3390_v30  ;;  %v3741_v19 = vld [vmem:[#allocation13 + $0xc98] sm:$0xff]  ;;  %v3834_v16 = vld [vmem:[#allocation13 + $0xf80] sm:$0xff] }
 0x402   : > { %4247 = vmatpush.msra.mxu0 %v3642_v52  ;;  %4266 = vmatpush.msra.mxu1 %v3702_v57  ;;  %v3678_v30 = vld [vmem:[#allocation13 + $0xaa0] sm:$0xff]  ;;  %v3603_v52 = vld [vmem:[#allocation13 + $0x848] sm:$0xff] }
 0x403   : > { %4285 = vmatpush.msra.mxu3 %v3762_v34  ;;  %4137 = vmatpush.msrb.mxu2 %v3387_v58  ;;  %v3738_v57 = vld [vmem:[#allocation13 + $0xc80] sm:$0xff]  ;;  %v3831_v34 = vld [vmem:[#allocation13 + $0xf68] sm:$0xff] }
 0x404   : > { %4248 = vmatpush.msra.mxu0 %v3639_v45  ;;  %4267 = vmatpush.msra.mxu1 %v3699_v49  ;;  %v3675_v58 = vld [vmem:[#allocation13 + $0xa88] sm:$0xff]  ;;  %v3600_v45 = vld [vmem:[#allocation13 + $0x830] sm:$0xff] }
 0x405   : > { %4214 = vmatpush.msra.mxu2 %v3624_v31  ;;  %4286 = vmatpush.msra.mxu3 %v3759_v44  ;;  %v3735_v49 = vld [vmem:[#allocation13 + $0xc68] sm:$0xff]  ;;  %v3828_v31 = vld [vmem:[#allocation13 + $0xf50] sm:$0xff]  ;;  %v3385_v44 = vld [vmem:[#allocation13 + $0x178] sm:$0xff] }
 0x406   : > { %7162 = vmatmul.msk.f32.vlgmr.msrb.gmra.mxu2 %vm8808_vm3, %v8806_v14  ;;  %7165 = vmatmul.msk.f32.gmra.mxu0 %vm8819_vm6, %v8892_v27 }
 0x407   : > { %4184 = vmatmul.f32.vlgmr.msrb.gmra.mxu1 %v8950_v10  ;;  %4249 = vmatpush.msra.mxu0 %v3636_v18  ;;  %v3597_v18 = vld [vmem:[#allocation13 + $0x818] sm:$0xff] }
 0x408   : > { %4268 = vmatpush.msra.mxu1 %v3696_v13  ;;  %4210 = vmatmul.f32.gmra.mxu3 %v9001_v28  ;;  %v3732_v13 = vld [vmem:[#allocation13 + $0xc50] sm:$0xff] }
 0x409   : > { %4215 = vmatpush.msra.mxu2 %v3621_v12  ;;  %4287 = vmatpush.msra.mxu3 %v3756_v43  ;;  %v3825_v12 = vld [vmem:[#allocation13 + $0xf38] sm:$0xff]  ;;  %v3382_v43 = vld [vmem:[#allocation13 + $0x160] sm:$0xff] }
 0x40a   : > { %4250 = vmatpush.msra.mxu0 %v3633_v40  ;;  %4269 = vmatpush.msra.mxu1 %v3693_v42  ;;  %v3594_v40 = vld [vmem:[#allocation13 + $0x800] sm:$0xff]  ;;  %v3729_v42 = vld [vmem:[#allocation13 + $0xc38] sm:$0xff] }
 0x40b   : > { %4216 = vmatpush.msra.mxu2 %v3618_v24  ;;  %4288 = vmatpush.msra.mxu3 %v3753_v22  ;;  %v3822_v24 = vld [vmem:[#allocation13 + $0xf20] sm:$0xff]  ;;  %v3379_v22 = vld [vmem:[#allocation13 + $0x148] sm:$0xff] }
 0x40c   : > { %4251 = vmatpush.msra.mxu0 %v3630_v4  ;;  %4270 = vmatpush.msra.mxu1 %v3690_v46  ;;  %v3591_v4 = vld [vmem:[#allocation13 + $0x7e8] sm:$0xff]  ;;  %v3726_v46 = vld [vmem:[#allocation13 + $0xc20] sm:$0xff] }
 0x40d   : > { %4217 = vmatpush.msra.mxu2 %v3615_v39  ;;  %4289 = vmatpush.msra.mxu3 %v3750_v21  ;;  %v3819_v39 = vld [vmem:[#allocation13 + $0xf08] sm:$0xff]  ;;  %v3376_v21 = vld [vmem:[#allocation13 + $0x130] sm:$0xff] }
 0x40e   : > { %4252 = vmatpush.msra.mxu0 %v3627_v32  ;;  %4271 = vmatpush.msra.mxu1 %v3687_v36  ;;  %v3481_v32 = vld [vmem:[#allocation13 + $0x478] sm:$0xff]  ;;  %v3588_v36 = vld [vmem:[#allocation13 + $0x7d0] sm:$0xff] }
 0x40f   : > { %4218 = vmatpush.msra.mxu2 %v3612_v38  ;;  %4290 = vmatpush.msra.mxu3 %v3747_v3  ;;  %v3723_v38 = vld [vmem:[#allocation13 + $0xc08] sm:$0xff]  ;;  %v3373_v3 = vld [vmem:[#allocation13 + $0x118] sm:$0xff] }
 0x410   : > { %4337 = vmatpush.msrb.mxu0 %v3840_v48  ;;  %7163 = vmatmul.msk.f32.gmra.mxu2 %vm8819_vm6, %v8823_v1  ;;  %v3433_v48 = vld [vmem:[#allocation13 + $0x2f8] sm:$0xff] }
 0x411   : > { %4187 = vmatmul.f32.gmra.mxu1 %v8965_v59  ;;  %4253 = vmatmul.f32.vlgmr.msra.gmra.mxu0 %v9006_v33 }
 0x412   : > { %4272 = vmatpush.msra.mxu1 %v3684_v26  ;;  %4219 = vmatpush.msra.mxu2 %v3609_v0  ;;  %v3478_v26 = vld [vmem:[#allocation13 + $0x460] sm:$0xff]  ;;  %v3585_v0 = vld [vmem:[#allocation13 + $0x7b8] sm:$0xff] }
 0x413   : > { %4291 = vmatpush.msra.mxu3 %v3744_v35  ;;  %4338 = vmatpush.msrb.mxu0 %v3837_v23  ;;  %v3370_v35 = vld [vmem:[#allocation13 + $0x100] sm:$0xff] }
 0x414   : > { %4273 = vmatpush.msra.mxu1 %v3681_v37  ;;  %4220 = vmatpush.msra.mxu2 %v3606_v63  ;;  %v3430_v23 = vld [vmem:[#allocation13 + $0x2e0] sm:$0xff]  ;;  %v3475_v37 = vld [vmem:[#allocation13 + $0x448] sm:$0xff] }
 0x415   : > { %4292 = vmatpush.msra.mxu3 %v3741_v19  ;;  %4339 = vmatpush.msrb.mxu0 %v3834_v16  ;;  %v3582_v63 = vld [vmem:[#allocation13 + $0x7a0] sm:$0xff]  ;;  %v3367_v19 = vld [vmem:[#allocation13 + $0xe8] sm:$0xff] }
 0x416   : > { %4274 = vmatpush.msra.mxu1 %v3678_v30  ;;  %4221 = vmatpush.msra.mxu2 %v3603_v52  ;;  %v3427_v16 = vld [vmem:[#allocation13 + $0x2c8] sm:$0xff]  ;;  %v3472_v30 = vld [vmem:[#allocation13 + $0x430] sm:$0xff] }
 0x417   : > { %4293 = vmatpush.msra.mxu3 %v3738_v57  ;;  %4340 = vmatpush.msrb.mxu0 %v3831_v34  ;;  %v3579_v52 = vld [vmem:[#allocation13 + $0x788] sm:$0xff]  ;;  %v3364_v57 = vld [vmem:[#allocation13 + $0xd0] sm:$0xff] }
 0x418   : > { %4275 = vmatpush.msra.mxu1 %v3675_v58  ;;  %4222 = vmatpush.msra.mxu2 %v3600_v45  ;;  %v3424_v34 = vld [vmem:[#allocation13 + $0x2b0] sm:$0xff]  ;;  %v3469_v45 = vld [vmem:[#allocation13 + $0x418] sm:$0xff] }
 0x419   : > { %4294 = vmatpush.msra.mxu3 %v3735_v49  ;;  %4341 = vmatpush.msrb.mxu0 %v3828_v31  ;;  %v3816_v58 = vld [vmem:[#allocation13 + $0xef0] sm:$0xff]  ;;  %v3361_v49 = vld [vmem:[#allocation13 + $0xb8] sm:$0xff] }
 0x41a   : > { %4352 = vmatpush.msrb.mxu1 %v3385_v44  ;;  %4256 = vmatmul.f32.gmra.mxu0 %v9021_v41  ;;  %v3813_v31 = vld [vmem:[#allocation13 + $0xed8] sm:$0xff] }
 0x41b   : > { %4276 = vmatmul.f32.vlgmr.msra.gmra.mxu1 %v8986_v15  ;;  %4223 = vmatpush.msra.mxu2 %v3597_v18  ;;  %v3421_v44 = vld [vmem:[#allocation13 + $0x298] sm:$0xff]  ;;  %v3466_v18 = vld [vmem:[#allocation13 + $0x400] sm:$0xff] }
 0x41c   : > { %4295 = vmatpush.msra.mxu3 %v3732_v13  ;;  %4342 = vmatpush.msrb.mxu0 %v3825_v12  ;;  %v3358_v13 = vld [vmem:[#allocation13 + $0xa0] sm:$0xff] }
 0x41d   : > { %4353 = vmatpush.msrb.mxu1 %v3382_v43  ;;  %4224 = vmatpush.msra.mxu2 %v3594_v40  ;;  %v3810_v12 = vld [vmem:[#allocation13 + $0xec0] sm:$0xff]  ;;  %v3463_v40 = vld [vmem:[#allocation13 + $0x3e8] sm:$0xff] }
 0x41e   : > { %4296 = vmatpush.msra.mxu3 %v3729_v42  ;;  %4343 = vmatpush.msrb.mxu0 %v3822_v24  ;;  %v3418_v43 = vld [vmem:[#allocation13 + $0x280] sm:$0xff]  ;;  %v3355_v42 = vld [vmem:[#allocation13 + $0x88] sm:$0xff] }
 0x41f   : > { %4354 = vmatpush.msrb.mxu1 %v3379_v22  ;;  %4225 = vmatpush.msra.mxu2 %v3591_v4  ;;  %v3807_v24 = vld [vmem:[#allocation13 + $0xea8] sm:$0xff]  ;;  %v3460_v4 = vld [vmem:[#allocation13 + $0x3d0] sm:$0xff] }
 0x420   : > { %4297 = vmatpush.msra.mxu3 %v3726_v46  ;;  %4344 = vmatpush.msrb.mxu0 %v3819_v39  ;;  %v3415_v22 = vld [vmem:[#allocation13 + $0x268] sm:$0xff]  ;;  %v3352_v46 = vld [vmem:[#allocation13 + $0x70] sm:$0xff] }
 0x421   : > { %4355 = vmatpush.msrb.mxu1 %v3376_v21  ;;  %4226 = vmatpush.msra.mxu2 %v3588_v36  ;;  %v3804_v39 = vld [vmem:[#allocation13 + $0xe90] sm:$0xff]  ;;  %v3349_v36 = vld [vmem:[#allocation13 + $0x58] sm:$0xff] }
 0x422   : > { %4398 = vmatpush.msra.mxu0 %v3481_v32  ;;  %4298 = vmatpush.msra.mxu3 %v3723_v38  ;;  %v3412_v21 = vld [vmem:[#allocation13 + $0x250] sm:$0xff]  ;;  %v3457_v32 = vld [vmem:[#allocation13 + $0x3b8] sm:$0xff] }
 0x423   : > { %4356 = vmatpush.msrb.mxu1 %v3373_v3  ;;  %4299 = vmatmul.f32.vlgmr.msra.gmra.mxu3 %v9027_v5  ;;  %v3801_v38 = vld [vmem:[#allocation13 + $0xe78] sm:$0xff] }
 0x424   : > { %4279 = vmatmul.f32.gmra.mxu1 %v8975_v62  ;;  %7166 = vmatmul.msk.f32.vlgmr.msrb.gmra.mxu0 %vm3303_vm14, %v9054_v51  ;;  %v3409_v3 = vld [vmem:[#allocation13 + $0x238] sm:$0xff] }
 0x425   : > { %4375 = vmatpush.msrb.mxu3 %v3433_v48  ;;  %4399 = vmatpush.msra.mxu0 %v3478_v26  ;;  %v3454_v48 = vld [vmem:[#allocation13 + $0x3a0] sm:$0xff] }
 0x426   : > { %4227 = vmatpush.msra.mxu2 %v3585_v0  ;;  %4357 = vmatpush.msrb.mxu1 %v3370_v35  ;;  %v3346_v26 = vld [vmem:[#allocation13 + $0x40] sm:$0xff] }
 0x427   : > { %4376 = vmatpush.msrb.mxu3 %v3430_v23  ;;  %4400 = vmatpush.msra.mxu0 %v3475_v37  ;;  %v3798_v0 = vld [vmem:[#allocation13 + $0xe60] sm:$0xff]  ;;  %v3451_v23 = vld [vmem:[#allocation13 + $0x388] sm:$0xff] }
 0x428   : > { %4228 = vmatpush.msra.mxu2 %v3582_v63  ;;  %4358 = vmatpush.msrb.mxu1 %v3367_v19  ;;  %v3406_v35 = vld [vmem:[#allocation13 + $0x220] sm:$0xff]  ;;  %v3343_v37 = vld [vmem:[#allocation13 + $0x28] sm:$0xff] }
 0x429   : > { %4377 = vmatpush.msrb.mxu3 %v3427_v16  ;;  %4401 = vmatpush.msra.mxu0 %v3472_v30  ;;  %v3795_v63 = vld [vmem:[#allocation13 + $0xe48] sm:$0xff]  ;;  %v3448_v16 = vld [vmem:[#allocation13 + $0x370] sm:$0xff] }
 0x42a   : > { %4229 = vmatpush.msra.mxu2 %v3579_v52  ;;  %4359 = vmatpush.msrb.mxu1 %v3364_v57  ;;  %v3403_v19 = vld [vmem:[#allocation13 + $0x208] sm:$0xff]  ;;  %v3340_v30 = vld [vmem:[#allocation13 + $0x10] sm:$0xff] }
 0x42b   : > { %4230 = vmatmul.f32.vlgmr.msra.gmra.mxu2 %v8970_v29  ;;  %4378 = vmatpush.msrb.mxu3 %v3424_v34  ;;  %v3792_v52 = vld [vmem:[#allocation13 + $0xe30] sm:$0xff]  ;;  %v3445_v34 = vld [vmem:[#allocation13 + $0x358] sm:$0xff] }
 0x42c   : > { %4306 = vmatpush.msrb.mxu2 %v3816_v58  ;;  %4402 = vmatpush.msra.mxu0 %v3469_v45  ;;  %v3400_v57 = vld [vmem:[#allocation13 + $0x1f0] sm:$0xff]  ;;  %v3577_v58 = vld [vmem:[#allocation13 + $0x778] sm:$0xff] }
 0x42d   : > { %4360 = vmatpush.msrb.mxu1 %v3361_v49  ;;  %4302 = vmatmul.f32.gmra.mxu3 %v9011_v11  ;;  %v3789_v45 = vld [vmem:[#allocation13 + $0xe18] sm:$0xff] }
 0x42e   : > { %4307 = vmatpush.msrb.mxu2 %v3813_v31  ;;  %7167 = vmatmul.msk.f32.gmra.mxu0 %vm3303_vm14, %v9032_v6  ;;  %v3397_v49 = vld [vmem:[#allocation13 + $0x1d8] sm:$0xff]  ;;  %v3442_v31 = vld [vmem:[#allocation13 + $0x340] sm:$0xff] }
 0x42f   : > { %4379 = vmatpush.msrb.mxu3 %v3421_v44  ;;  %4403 = vmatpush.msra.mxu0 %v3466_v18  ;;  %v3574_v44 = vld [vmem:[#allocation13 + $0x760] sm:$0xff] }
 0x430   : > { %4361 = vmatpush.msrb.mxu1 %v3358_v13  ;;  %4308 = vmatpush.msrb.mxu2 %v3810_v12  ;;  %v3786_v18 = vld [vmem:[#allocation13 + $0xe00] sm:$0xff]  ;;  %v3439_v12 = vld [vmem:[#allocation13 + $0x328] sm:$0xff] }
 0x431   : > { %4380 = vmatpush.msrb.mxu3 %v3418_v43  ;;  %4404 = vmatpush.msra.mxu0 %v3463_v40  ;;  %v3394_v13 = vld [vmem:[#allocation13 + $0x1c0] sm:$0xff]  ;;  %v3571_v43 = vld [vmem:[#allocation13 + $0x748] sm:$0xff] }
 0x432   : > { %4362 = vmatpush.msrb.mxu1 %v3355_v42  ;;  %4309 = vmatpush.msrb.mxu2 %v3807_v24  ;;  %v3783_v40 = vld [vmem:[#allocation13 + $0xde8] sm:$0xff]  ;;  %v3436_v24 = vld [vmem:[#allocation13 + $0x310] sm:$0xff] }
 0x433   : > { %4381 = vmatpush.msrb.mxu3 %v3415_v22  ;;  %4405 = vmatpush.msra.mxu0 %v3460_v4  ;;  %v3391_v42 = vld [vmem:[#allocation13 + $0x1a8] sm:$0xff]  ;;  %v3673_v22 = vld [vmem:[#allocation13 + $0xa78] sm:$0xff]  ;;  %v3780_v4 = vld [vmem:[#allocation13 + $0xdd0] sm:$0xff] }
 0x434   : > { %4363 = vmatpush.msrb.mxu1 %v3352_v46  ;;  %4233 = vmatmul.f32.gmra.mxu2 %v9018_v2  ;;  %v3388_v46 = vld [vmem:[#allocation13 + $0x190] sm:$0xff] }
 0x435   : > { %4310 = vmatpush.msrb.mxu2 %v3804_v39  ;;  %4382 = vmatpush.msrb.mxu3 %v3412_v21  ;;  %v3565_v39 = vld [vmem:[#allocation13 + $0x718] sm:$0xff] }
 0x436   : > { %4406 = vmatpush.msra.mxu0 %v3457_v32  ;;  %4364 = vmatpush.msrb.mxu1 %v3349_v36  ;;  %v3625_v21 = vld [vmem:[#allocation13 + $0x8f8] sm:$0xff]  ;;  %v3670_v32 = vld [vmem:[#allocation13 + $0xa60] sm:$0xff] }
 0x437   : > { %4311 = vmatpush.msrb.mxu2 %v3801_v38  ;;  %4383 = vmatpush.msrb.mxu3 %v3409_v3  ;;  %v3777_v36 = vld [vmem:[#allocation13 + $0xdb8] sm:$0xff]  ;;  %v3562_v38 = vld [vmem:[#allocation13 + $0x700] sm:$0xff] }
 0x438   : > { %4407 = vmatpush.msra.mxu0 %v3454_v48  ;;  %4365 = vmatpush.msrb.mxu1 %v3346_v26  ;;  %v3622_v3 = vld [vmem:[#allocation13 + $0x8e0] sm:$0xff]  ;;  %v3667_v48 = vld [vmem:[#allocation13 + $0xa48] sm:$0xff] }
 0x439   : > { %4312 = vmatpush.msrb.mxu2 %v3798_v0  ;;  %4384 = vmatpush.msrb.mxu3 %v3406_v35  ;;  %v3559_v26 = vld [vmem:[#allocation13 + $0x6e8] sm:$0xff]  ;;  %v3664_v35 = vld [vmem:[#allocation13 + $0xa30] sm:$0xff] }
 0x43a   : > { %4408 = vmatpush.msra.mxu0 %v3451_v23  ;;  %4366 = vmatpush.msrb.mxu1 %v3343_v37  ;;  %v3619_v0 = vld [vmem:[#allocation13 + $0x8c8] sm:$0xff]  ;;  %v3556_v23 = vld [vmem:[#allocation13 + $0x6d0] sm:$0xff]  ;;  %v9102_v37 = vpop.f32.mrf.mxu0 }
 0x43b   : > { %4313 = vmatpush.msrb.mxu2 %v3795_v63  ;;  %4385 = vmatpush.msrb.mxu3 %v3403_v19  ;;  %v9104_v63 = vpop.f32.mrf.mxu1  ;;  %v3661_v19 = vld [vmem:[#allocation13 + $0xa18] sm:$0xff] }
 0x43c   : > { %4409 = vmatpush.msra.mxu0 %v3448_v16  ;;  %4367 = vmatpush.msrb.mxu1 %v3340_v30  ;;  %v3553_v16 = vld [vmem:[#allocation13 + $0x6b8] sm:$0xff]  ;;  %v3526_v30 = vld [vmem:[#allocation13 + $0x5e0] sm:$0xff] }
 0x43d   : > { %4314 = vmatpush.msrb.mxu2 %v3792_v52  ;;  %7168 = vmatmul.msk.f32.vlgmr.msrb.gmra.mxu1 %vm8808_vm3, %v8817_v8  ;;  %v3568_v8 = vld [vmem:[#allocation13 + $0x730] sm:$0xff]  ;;  %v3613_v52 = vld [vmem:[#allocation13 + $0x898] sm:$0xff] }
 0x43e   : > { %4386 = vmatpush.msrb.mxu3 %v3400_v57  ;;  %4410 = vmatpush.msra.mxu0 %v3445_v34  ;;  %v3658_v57 = vld [vmem:[#allocation13 + $0xa00] sm:$0xff]  ;;  %v9110_v34 = vpop.f32.mrf.mxu2 }
 0x43f   : > { %4444 = vmatpush.msra.mxu1 %v3577_v58  ;;  %4315 = vmatpush.msrb.mxu2 %v3789_v45  ;;  %v3550_v58 = vld [vmem:[#allocation13 + $0x6a0] sm:$0xff]  ;;  %v3523_v45 = vld [vmem:[#allocation13 + $0x5c8] sm:$0xff] }
 0x440   : > { %4387 = vmatpush.msrb.mxu3 %v3397_v49  ;;  %4411 = vmatpush.msra.mxu0 %v3442_v31  ;;  %v3610_v49 = vld [vmem:[#allocation13 + $0x880] sm:$0xff]  ;;  %v3655_v31 = vld [vmem:[#allocation13 + $0x9e8] sm:$0xff] }
 0x441   : > { %4445 = vmatpush.msra.mxu1 %v3574_v44  ;;  %4316 = vmatpush.msrb.mxu2 %v3786_v18  ;;  %v3520_v44 = vld [vmem:[#allocation13 + $0x5b0] sm:$0xff]  ;;  %v3607_v18 = vld [vmem:[#allocation13 + $0x868] sm:$0xff] }
 0x442   : > { %4388 = vmatpush.msrb.mxu3 %v3394_v13  ;;  %4412 = vmatpush.msra.mxu0 %v3439_v12  ;;  %v3652_v13 = vld [vmem:[#allocation13 + $0x9d0] sm:$0xff] }
 0x443   : > { %4446 = vmatpush.msra.mxu1 %v3571_v43  ;;  %4317 = vmatpush.msrb.mxu2 %v3783_v40  ;;  %v3544_v12 = vld [vmem:[#allocation13 + $0x670] sm:$0xff]  ;;  %v9115_v43 = vpop.f32.mrf.mxu0  ;;  %v9117_v40 = vpop.f32.mrf.mxu1 }
 0x444   : > { %4389 = vmatpush.msrb.mxu3 %v3391_v42  ;;  %4413 = vmatpush.msra.mxu0 %v3436_v24  ;;  %v3649_v42 = vld [vmem:[#allocation13 + $0x9b8] sm:$0xff] }
 0x445   : > { %4447 = vmatpush.msra.mxu1 %v3568_v8  ;;  %7172 = vmatmul.msk.f32.vlgmr.msra.gmra.mxu0 %vm8808_vm3, %v8875_v60  ;;  %v3774_v60 = vld [vmem:[#allocation13 + $0xda0] sm:$0xff]  ;;  %v3541_v24 = vld [vmem:[#allocation13 + $0x658] sm:$0xff] }
 0x446   : > { %4490 = vmatpush.msrb.mxu0 %v3673_v22  ;;  %4318 = vmatpush.msrb.mxu2 %v3780_v4  ;;  %v3514_v8 = vld [vmem:[#allocation13 + $0x580] sm:$0xff]  ;;  %v3601_v22 = vld [vmem:[#allocation13 + $0x838] sm:$0xff] }
 0x447   : > { %7169 = vmatmul.msk.f32.gmra.mxu1 %vm8819_vm6, %v8853_v20  ;;  %4390 = vmatpush.msrb.mxu3 %v3388_v46  ;;  %v3771_v20 = vld [vmem:[#allocation13 + $0xd88] sm:$0xff]  ;;  %v3646_v4 = vld [vmem:[#allocation13 + $0x9a0] sm:$0xff] }
 0x448   : > { %4448 = vmatpush.msra.mxu1 %v3565_v39  ;;  %7170 = vmatmul.msk.f32.vlgmr.msrb.gmra.mxu3 %vm8808_vm3, %v8806_v14  ;;  %v3529_v14 = vld [vmem:[#allocation13 + $0x5f8] sm:$0xff]  ;;  %v3538_v46 = vld [vmem:[#allocation13 + $0x640] sm:$0xff]  ;;  %v3932_v39 = vpop.f32.mrf.mxu3 }
 0x449   : > { %4467 = vmatpush.msra.mxu3 %v3625_v21  ;;  %4491 = vmatpush.msrb.mxu0 %v3670_v32  ;;  %v3511_v21 = vld [vmem:[#allocation13 + $0x568] sm:$0xff]  ;;  %v3598_v32 = vld [vmem:[#allocation13 + $0x820] sm:$0xff] }
 0x44a   : > { %4319 = vmatpush.msrb.mxu2 %v3777_v36  ;;  %4449 = vmatpush.msra.mxu1 %v3562_v38  ;;  %v9120_v36 = vpop.f32.mrf.mxu2  ;;  %v3643_v38 = vld [vmem:[#allocation13 + $0x988] sm:$0xff] }
 0x44b   : > { %4468 = vmatpush.msra.mxu3 %v3622_v3  ;;  %4492 = vmatpush.msrb.mxu0 %v3667_v48  ;;  %v3535_v3 = vld [vmem:[#allocation13 + $0x628] sm:$0xff]  ;;  %v3508_v48 = vld [vmem:[#allocation13 + $0x550] sm:$0xff] }
 0x44c   : > { %4320 = vmatpush.msrb.mxu2 %v3774_v60  ;;  %4450 = vmatpush.msra.mxu1 %v3559_v26  ;;  %v3595_v60 = vld [vmem:[#allocation13 + $0x808] sm:$0xff]  ;;  %v3640_v26 = vld [vmem:[#allocation13 + $0x970] sm:$0xff] }
 0x44d   : > { %4469 = vmatpush.msra.mxu3 %v3619_v0  ;;  %4493 = vmatpush.msrb.mxu0 %v3664_v35  ;;  %v3532_v0 = vld [vmem:[#allocation13 + $0x610] sm:$0xff]  ;;  %v3887_v35 = vadd.f32 %v9104_v63, %v9102_v37  ;;  %v3634_v37 = vld [vmem:[#allocation13 + $0x940] sm:$0xff] }
 0x44e   : > { %4321 = vmatpush.msrb.mxu2 %v3771_v20  ;;  %4451 = vmatpush.msra.mxu1 %v3556_v23  ;;  %v3955_v20 = vpop.f32.mrf.mxu0  ;;  %v3978_v23 = vpop.f32.mrf.mxu1 }
 0x44f   : > { %4322 = vmatmul.f32.vlgmr.msrb.gmra.mxu2 %v9050_v17  ;;  %7173 = vmatmul.msk.f32.gmra.mxu0 %vm8819_vm6, %v8892_v27  ;;  %v3547_v27 = vld [vmem:[#allocation13 + $0x688] sm:$0xff] }
 0x450   : > { %4421 = vmatpush.msra.mxu2 %v3529_v14  ;;  %4470 = vmatpush.msra.mxu3 %v3616_v55  ;;  %v3505_v14 = vld [vmem:[#allocation13 + $0x538] sm:$0xff]  ;;  %v3592_v55 = vld [vmem:[#allocation13 + $0x7f0] sm:$0xff] }
 0x451   : > { %4494 = vmatpush.msrb.mxu0 %v3661_v19  ;;  %4452 = vmatpush.msra.mxu1 %v3553_v16  ;;  %v3637_v19 = vld [vmem:[#allocation13 + $0x958] sm:$0xff]  ;;  %v3910_v16 = vadd.f32 %v9110_v34, %v3887_v35  ;;  %v3835_v35 = vld [vmem:[#allocation13 + $0xf88] sm:$0xff] }
 0x452   : > { %7171 = vmatmul.msk.f32.gmra.mxu3 %vm8819_vm6, %v8823_v1  ;;  %4422 = vmatpush.msra.mxu2 %v3526_v30  ;;  %v3604_v1 = vld [vmem:[#allocation13 + $0x850] sm:$0xff]  ;;  %v3769_v30 = vld [vmem:[#allocation13 + $0xd78] sm:$0xff] }
 0x453   : > { %4471 = vmatpush.msra.mxu3 %v3613_v52  ;;  %4495 = vmatpush.msrb.mxu0 %v3658_v57  ;;  %v3502_v52 = vld [vmem:[#allocation13 + $0x520] sm:$0xff]  ;;  %v3589_v57 = vld [vmem:[#allocation13 + $0x7d8] sm:$0xff]  ;;  %v3933_v63 = vadd.f32 %v3932_v39, %v3910_v16 }
 0x454   : > { %4453 = vmatpush.msra.mxu1 %v3550_v58  ;;  %4423 = vmatpush.msra.mxu2 %v3523_v45  ;;  %v3766_v58 = vld [vmem:[#allocation13 + $0xd60] sm:$0xff]  ;;  %v3935_v45 = vpop.f32.mrf.mxu3  ;;  %v3841_v39 = vld [vmem:[#allocation13 + $0xfb8] sm:$0xff] }
 0x455   : > { %4472 = vmatpush.msra.mxu3 %v3610_v49  ;;  %4496 = vmatpush.msrb.mxu0 %v3655_v31  ;;  %v3499_v49 = vld [vmem:[#allocation13 + $0x508] sm:$0xff]  ;;  %v3586_v31 = vld [vmem:[#allocation13 + $0x7c0] sm:$0xff] }
 0x456   : > { %4454 = vmatpush.msra.mxu1 %v3547_v27  ;;  %4424 = vmatpush.msra.mxu2 %v3520_v44  ;;  %v3631_v27 = vld [vmem:[#allocation13 + $0x928] sm:$0xff] }
 0x457   : > { %4473 = vmatpush.msra.mxu3 %v3607_v18  ;;  %4497 = vmatpush.msrb.mxu0 %v3652_v13  ;;  %v3763_v44 = vld [vmem:[#allocation13 + $0xd48] sm:$0xff]  ;;  %v3496_v18 = vld [vmem:[#allocation13 + $0x4f0] sm:$0xff] }
 0x458   : > { %4455 = vmatpush.msra.mxu1 %v3544_v12  ;;  %4325 = vmatmul.f32.gmra.mxu2 %v9039_v61  ;;  %v3628_v13 = vld [vmem:[#allocation13 + $0x910] sm:$0xff]  ;;  %v3956_v12 = vadd.f32 %v3955_v20, %v3933_v63  ;;  %v3811_v20 = vld [vmem:[#allocation13 + $0xec8] sm:$0xff] }
 0x459   : > { %4425 = vmatpush.msra.mxu2 %v3517_v25  ;;  %4474 = vmatpush.msra.mxu3 %v3604_v1  ;;  %v3760_v25 = vld [vmem:[#allocation13 + $0xd30] sm:$0xff] }
 0x45a   : > { %4498 = vmatpush.msrb.mxu0 %v3649_v42  ;;  %4456 = vmatpush.msra.mxu1 %v3541_v24  ;;  %v3493_v24 = vld [vmem:[#allocation13 + $0x4d8] sm:$0xff] }
 0x45b   : > { %4426 = vmatpush.msra.mxu2 %v3514_v8  ;;  %4475 = vmatpush.msra.mxu3 %v3601_v22  ;;  %v3979_v8 = vadd.f32 %v3978_v23, %v3956_v12  ;;  %v3580_v22 = vld [vmem:[#allocation13 + $0x790] sm:$0xff] }
 0x45c   : > { %4499 = vmatpush.msrb.mxu0 %v3646_v4  ;;  %4457 = vmatpush.msra.mxu1 %v3538_v46  ;;  %v3757_v4 = vld [vmem:[#allocation13 + $0xd18] sm:$0xff]  ;;  %v3890_v46 = vadd.f32 %v9117_v40, %v9115_v43  ;;  %v4024_v43 = vpop.f32.mrf.mxu3  ;;  %v3814_v40 = vld [vmem:[#allocation13 + $0xee0] sm:$0xff] }
 0x45d   : > { %4427 = vmatpush.msra.mxu2 %v3511_v21  ;;  %4476 = vmatpush.msra.mxu3 %v3598_v32  ;;  %v3958_v1 = vpop.f32.mrf.mxu0  ;;  %v3817_v21 = vld [vmem:[#allocation13 + $0xef8] sm:$0xff]  ;;  %v3490_v32 = vld [vmem:[#allocation13 + $0x4c0] sm:$0xff] }
 0x45e   : > { %4500 = vmatpush.msrb.mxu0 %v3643_v38  ;;  %4458 = vmatpush.msra.mxu1 %v3535_v3  ;;  %v3913_v3 = vadd.f32 %v9120_v36, %v3890_v46  ;;  %v3484_v36 = vld [vmem:[#allocation13 + $0x490] sm:$0xff]  ;;  %v3799_v46 = vld [vmem:[#allocation13 + $0xe68] sm:$0xff] }
 0x45f   : > { %4428 = vmatpush.msra.mxu2 %v3508_v48  ;;  %4477 = vmatpush.msra.mxu3 %v3595_v60  ;;  %v3754_v48 = vld [vmem:[#allocation13 + $0xd00] sm:$0xff] }
 0x460   : > { %4501 = vmatpush.msrb.mxu0 %v3640_v26  ;;  %4459 = vmatpush.msra.mxu1 %v3532_v0  ;;  %v3838_v60 = vld [vmem:[#allocation13 + $0xfa0] sm:$0xff]  ;;  %v3936_v0 = vadd.f32 %v3935_v45, %v3913_v3  ;;  %v3829_v45 = vld [vmem:[#allocation13 + $0xf58] sm:$0xff]  ;;  %v3796_v3 = vld [vmem:[#allocation13 + $0xe50] sm:$0xff] }
 0x461   : > { %4429 = vmatpush.msra.mxu2 %v3505_v14  ;;  %4460 = vmatmul.f32.vlgmr.msra.gmra.mxu1 %v8953_v7  ;;  %v3583_v7 = vld [vmem:[#allocation13 + $0x7a8] sm:$0xff]  ;;  %v9132_v14 = vld [vmem:[#allocation14] sm:$0x3f] }
 0x462   : > { %4478 = vmatpush.msra.mxu3 %v3592_v55  ;;  %4502 = vmatpush.msrb.mxu0 %v3637_v19  ;;  %v3748_v55 = vld [vmem:[#allocation13 + $0xcd0] sm:$0xff]  ;;  %v4607_v63 = vperm.slane %v9132_v14, 0 }
 0x463   : > { %4536 = vmatpush.msrb.mxu1 %v3769_v30  ;;  %4430 = vmatpush.msra.mxu2 %v3502_v52  ;;  %v4001_v34 = vpop.f32.mrf.mxu2  ;;  %v3832_v19 = vld [vmem:[#allocation13 + $0xf70] sm:$0xff]  ;;  %v3721_v52 = vld [vmem:[#allocation13 + $0xbf8] sm:$0xff] }
 0x464   : > { %4479 = vmatpush.msra.mxu3 %v3589_v57  ;;  %4503 = vmatpush.msrb.mxu0 %v3634_v37  ;;  %v4002_v38 = vadd.f32 %v4001_v34, %v3979_v8  ;;  %v3808_v57 = vld [vmem:[#allocation13 + $0xeb0] sm:$0xff]  ;;  %v3805_v34 = vld [vmem:[#allocation13 + $0xe98] sm:$0xff]  ;;  %v3823_v8 = vld [vmem:[#allocation13 + $0xf28] sm:$0xff] }
 0x465   : > { %4537 = vmatpush.msrb.mxu1 %v3766_v58  ;;  %4431 = vmatpush.msra.mxu2 %v3499_v49  ;;  %v3981_v42 = vpop.f32.mrf.mxu1  ;;  %v3745_v58 = vld [vmem:[#allocation13 + $0xcb8] sm:$0xff] }
 0x466   : > { %4480 = vmatpush.msra.mxu3 %v3586_v31  ;;  %4504 = vmatpush.msrb.mxu0 %v3631_v27  ;;  %v4025_v23 = vadd.f32 %v4024_v43, %v4002_v38  ;;  %v4047_v16 = vpop.f32.mrf.mxu0  ;;  %v3718_v31 = vld [vmem:[#allocation13 + $0xbe0] sm:$0xff] }
 0x467   : > { %4538 = vmatpush.msrb.mxu1 %v3763_v44  ;;  %4432 = vmatpush.msra.mxu2 %v3496_v18  ;;  %v3742_v44 = vld [vmem:[#allocation13 + $0xca0] sm:$0xff] }
 0x468   : > { %4481 = vmatpush.msra.mxu3 %v3583_v7  ;;  %4505 = vmatpush.msrb.mxu0 %v3628_v13  ;;  %v4048_v49 = vadd.f32 %v4047_v16, %v4025_v23  ;;  %v3826_v7 = vld [vmem:[#allocation13 + $0xf40] sm:$0xff]  ;;  %v3715_v13 = vld [vmem:[#allocation13 + $0xbc8] sm:$0xff]  ;;  %v3724_v16 = vld [vmem:[#allocation13 + $0xc10] sm:$0xff] }
 0x469   : > { %4539 = vmatpush.msrb.mxu1 %v3760_v25  ;;  %4506 = vmatmul.f32.vlgmr.msrb.gmra.mxu0 %v9006_v33  ;;  %v3487_v33 = vld [vmem:[#allocation13 + $0x4a8] sm:$0xff]  ;;  %v4613_v25 = vperm.slane %v4607_v63, 0  ;;  %v3694_v63 = vld [vmem:[#allocation13 + $0xb20] sm:$0xff] }
 0x46a   : > { %4433 = vmatpush.msra.mxu2 %v3493_v24  ;;  %4463 = vmatmul.f32.gmra.mxu1 %v9001_v28  ;;  %v3751_v28 = vld [vmem:[#allocation13 + $0xce8] sm:$0xff] }
 0x46b   : > { %4482 = vmatpush.msra.mxu3 %v3580_v22  ;;  %4540 = vmatpush.msrb.mxu1 %v3757_v4  ;;  %v4004_v26 = vpop.f32.mrf.mxu2  ;;  %v3712_v22 = vld [vmem:[#allocation13 + $0xbb0] sm:$0xff] }
 0x46c   : > { %4590 = vmatpush.msra.mxu0 %v3841_v39  ;;  %4483 = vmatmul.f32.vlgmr.msra.gmra.mxu3 %v8970_v29  ;;  %v3959_v29 = vadd.f32 %v3958_v1, %v3936_v0  ;;  %v4622_v1 = vperm.slane %v9132_v14, 1  ;;  %v3736_v39 = vld [vmem:[#allocation13 + $0xc70] sm:$0xff]  ;;  %v3730_v0 = vld [vmem:[#allocation13 + $0xc40] sm:$0xff] }
 0x46d   : > { %4559 = vmatpush.msrb.mxu3 %v3817_v21  ;;  %4434 = vmatpush.msra.mxu2 %v3490_v32  ;;  %v3820_v21 = vld [vmem:[#allocation13 + $0xf10] sm:$0xff] }
 0x46e   : > { %4541 = vmatpush.msrb.mxu1 %v3754_v48  ;;  %4591 = vmatpush.msra.mxu0 %v3838_v60  ;;  %v3982_v37 = vadd.f32 %v3981_v42, %v3959_v29  ;;  %v3739_v42 = vld [vmem:[#allocation13 + $0xc88] sm:$0xff]  ;;  %v4628_v38 = vperm.slane %v4622_v1, 1  ;;  %v4050_v48 = vpop.f32.mrf.mxu0  ;;  %v5057_v1 = vld [vmem:[#allocation16 + $0xbd0] sm:$0xff] }
 0x46f   : > { %4560 = vmatpush.msrb.mxu3 %v3814_v40  ;;  %4435 = vmatpush.msra.mxu2 %v3487_v33  ;;  %v4070_v30 = vpop.f32.mrf.mxu1  ;;  %v3706_v40 = vld [vmem:[#allocation13 + $0xb80] sm:$0xff]  ;;  %v3793_v33 = vld [vmem:[#allocation13 + $0xe38] sm:$0xff]  ;;  %v3787_v29 = vld [vmem:[#allocation13 + $0xe08] sm:$0xff] }
 0x470   : > { %4542 = vmatpush.msrb.mxu1 %v3751_v28  ;;  %4592 = vmatpush.msra.mxu0 %v3835_v35  ;;  %v4005_v27 = vadd.f32 %v4004_v26, %v3982_v37  ;;  %v4071_v18 = vadd.f32 %v4070_v30, %v4048_v49  ;;  %v3733_v26 = vld [vmem:[#allocation13 + $0xc58] sm:$0xff] }
 0x471   : > { %4561 = vmatpush.msrb.mxu3 %v3811_v20  ;;  %4436 = vmatpush.msra.mxu2 %v3484_v36  ;;  %v3703_v20 = vld [vmem:[#allocation13 + $0xb68] sm:$0xff]  ;;  %v3790_v36 = vld [vmem:[#allocation13 + $0xe20] sm:$0xff] }
 0x472   : > { %4543 = vmatpush.msrb.mxu1 %v3748_v55  ;;  %4593 = vmatpush.msra.mxu0 %v3832_v19  ;;  %v3727_v55 = vld [vmem:[#allocation13 + $0xc28] sm:$0xff] }
 0x473   : > { %4437 = vmatmul.f32.vlgmr.msra.gmra.mxu2 %v8950_v10  ;;  %4509 = vmatmul.f32.gmra.mxu0 %v9021_v41  ;;  %v4027_v10 = vpop.f32.mrf.mxu3  ;;  %v3802_v41 = vld [vmem:[#allocation13 + $0xe80] sm:$0xff] }
 0x474   : > { %4513 = vmatpush.msrb.mxu2 %v3721_v52  ;;  %4562 = vmatpush.msrb.mxu3 %v3808_v57  ;;  %v4028_v4 = vadd.f32 %v4027_v10, %v4005_v27  ;;  %v3697_v57 = vld [vmem:[#allocation13 + $0xb38] sm:$0xff]  ;;  %v3778_v27 = vld [vmem:[#allocation13 + $0xdc0] sm:$0xff]  ;;  %v3679_v10 = vld [vmem:[#allocation13 + $0xaa8] sm:$0xff] }
 0x475   : > { %4544 = vmatpush.msrb.mxu1 %v3745_v58  ;;  %4594 = vmatpush.msra.mxu0 %v3829_v45  ;;  %v4093_v12 = vpop.f32.mrf.mxu2  ;;  %v3781_v58 = vld [vmem:[#allocation13 + $0xdd8] sm:$0xff] }
 0x476   : > { %4486 = vmatmul.f32.gmra.mxu3 %v9018_v2  ;;  %4514 = vmatpush.msrb.mxu2 %v3718_v31  ;;  %v4094_v24 = vadd.f32 %v4093_v12, %v4071_v18  ;;  %v3709_v2 = vld [vmem:[#allocation13 + $0xb98] sm:$0xff]  ;;  %v4051_v43 = vadd.f32 %v4050_v48, %v4028_v4  ;;  %v3691_v31 = vld [vmem:[#allocation13 + $0xb08] sm:$0xff] }
 0x477   : > { %4563 = vmatpush.msrb.mxu3 %v3805_v34  ;;  %4545 = vmatpush.msrb.mxu1 %v3742_v44  ;;  %v4763_v4 = vld [vmem:[#allocation16 + $0x2a0] sm:$0xff]  ;;  %v4853_v48 = vld [vmem:[#allocation16 + $0x570] sm:$0xff] }
 0x478   : > { %4595 = vmatpush.msra.mxu0 %v3826_v7  ;;  %4515 = vmatpush.msrb.mxu2 %v3715_v13  ;;  %v4616_v32 = vmul.f32 %v4613_v25, %v4094_v24  ;;  %v4073_v60 = vpop.f32.mrf.mxu1  ;;  %v3775_v7 = vld [vmem:[#allocation13 + $0xda8] sm:$0xff]  ;;  %v3685_v13 = vld [vmem:[#allocation13 + $0xad8] sm:$0xff] }
 0x479   : > { %4564 = vmatpush.msrb.mxu3 %v3802_v41  ;;  %4546 = vmatpush.msrb.mxu1 %v3739_v42  ;;  %v4074_v35 = vadd.f32 %v4073_v60, %v4051_v43  ;;  %v5051_v41 = vld [vmem:[#allocation16 + $0xba0] sm:$0xff]  ;;  %v3676_v42 = vld [vmem:[#allocation13 + $0xa90] sm:$0xff] }
 0x47a   : > { %4596 = vmatpush.msra.mxu0 %v3823_v8  ;;  %4516 = vmatpush.msrb.mxu2 %v3712_v22  ;;  %v4631_v28 = vadd.f32 %v4628_v38, %v4616_v32  ;;  %v5045_v24 = vld [vmem:[#allocation16 + $0xb70] sm:$0xff]  ;;  %v5039_v22 = vld [vmem:[#allocation16 + $0xb40] sm:$0xff] }
 0x47b   : > { %4565 = vmatpush.msrb.mxu3 %v3799_v46  ;;  %4547 = vmatpush.msrb.mxu1 %v3736_v39  ;;  %v4769_v8 = vld [vmem:[#allocation16 + $0x2d0] sm:$0xff]  ;;  %v4751_v39 = vld [vmem:[#allocation16 + $0x240] sm:$0xff] }
 0x47c   : > { %4597 = vmatpush.msra.mxu0 %v3820_v21  ;;  %4440 = vmatmul.f32.gmra.mxu2 %v8965_v59  ;;  %v3700_v59 = vld [vmem:[#allocation13 + $0xb50] sm:$0xff]  ;;  %v9142_v30 = vmax.f32 %v4631_v28, 0.0  ;;  %v4727_v43 = vld [vmem:[#allocation16 + $0x180] sm:$0xff] }
 0x47d   : > { %4517 = vmatpush.msrb.mxu2 %v3709_v2  ;;  %4566 = vmatpush.msrb.mxu3 %v3796_v3  ;;  %v4757_v46 = vld [vmem:[#allocation16 + $0x270] sm:$0xff]  ;;  %v4859_v2 = vld [vmem:[#allocation16 + $0x5a0] sm:$0xff] }
 0x47e   : > { %7174 = vmatmul.msk.f32.vlgmr.msra.gmra.mxu0 %vm3303_vm14, %v9054_v51  ;;  %4548 = vmatpush.msrb.mxu1 %v3733_v26  ;;  %v4096_v23 = vpop.f32.mrf.mxu2  ;;  %v3784_v51 = vld [vmem:[#allocation13 + $0xdf0] sm:$0xff]  ;;  %v9148_v49 = vsel %vm8367_vm10, %v9142_v30, 0.0  ;;  %v5015_v3 = vld [vmem:[#allocation16 + $0xa80] sm:$0xff] }
 0x47f   : > { %4518 = vmatpush.msrb.mxu2 %v3706_v40  ;;  %4567 = vmatpush.msrb.mxu3 %v3793_v33  ;;  %v4097_v19 = vadd.f32 %v4096_v23, %v4074_v35  ;;  %v4667_v18 = vrot.slane %v9148_v49, 2  ;;  %v5021_v21 = vld [vmem:[#allocation16 + $0xab0] sm:$0xff]  ;;  %v5003_v26 = vld [vmem:[#allocation16 + $0xa20] sm:$0xff] }
 0x480   : > { %4549 = vmatpush.msrb.mxu1 %v3730_v0  ;;  %v4745_v32 = vld [vmem:[#allocation16 + $0x210] sm:$0xff]  ;;  %v4847_v0 = vld [vmem:[#allocation16 + $0x540] sm:$0xff] }
 0x481   : > { %4519 = vmatpush.msrb.mxu2 %v3703_v20  ;;  %4568 = vmatpush.msrb.mxu3 %v3790_v36  ;;  %v4619_v52 = vmul.f32 %v4613_v25, %v4097_v19  ;;  %v3682_v25 = vld [vmem:[#allocation13 + $0xac0] sm:$0xff]  ;;  %v4733_v60 = vld [vmem:[#allocation16 + $0x1b0] sm:$0xff] }
 0x482   : > { %4550 = vmatpush.msrb.mxu1 %v3727_v55  ;;  %v4997_v40 = vld [vmem:[#allocation16 + $0x9f0] sm:$0xff]  ;;  %v4991_v28 = vld [vmem:[#allocation16 + $0x9c0] sm:$0xff] }
 0x483   : > { %4520 = vmatpush.msrb.mxu2 %v3700_v59  ;;  %4569 = vmatpush.msrb.mxu3 %v3787_v29  ;;  %v4634_v37 = vadd.f32 %v4628_v38, %v4619_v52  ;;  %v4865_v38 = vld [vmem:[#allocation16 + $0x5d0] sm:$0xff]  ;;  %v4835_v20 = vld [vmem:[#allocation16 + $0x4e0] sm:$0xff] }
 0x484   : > { %4551 = vmatpush.msrb.mxu1 %v3724_v16  ;;  %5563 = vmatpush.msrb.mxu0 %v4865_v38  ;;  %v4721_v33 = vld [vmem:[#allocation16 + $0x150] sm:$0xff]  ;;  %v4979_v19 = vld [vmem:[#allocation16 + $0x960] sm:$0xff] }
 0x485   : > { %4521 = vmatpush.msrb.mxu2 %v3697_v57  ;;  %4552 = vmatmul.f32.vlgmr.msrb.gmra.mxu1 %v9027_v5  ;;  %v4640_v45 = vmax.f32 %v4634_v37, 0.0  ;;  %v3688_v5 = vld [vmem:[#allocation13 + $0xaf0] sm:$0xff]  ;;  %v4703_v59 = vld [vmem:[#allocation16 + $0xc0] sm:$0xff]  ;;  %v4116_v57 = vpop.f32.mrf.mxu3 }
 0x486   : > { %4570 = vmatpush.msrb.mxu3 %v3784_v51  ;;  %7175 = vmatmul.msk.f32.gmra.mxu0 %vm3303_vm14, %v9032_v6  ;;  %v3772_v6 = vld [vmem:[#allocation13 + $0xd90] sm:$0xff]  ;;  %v4162_v51 = vpop.f32.mrf.mxu0  ;;  %v4967_v37 = vld [vmem:[#allocation16 + $0x900] sm:$0xff] }
 0x487   : > { %4522 = vmatpush.msrb.mxu2 %v3694_v63  ;;  %v9154_v34 = vsel %vm8382_vm13, %v4640_v45, 0.0  ;;  %5564 = vmatpush.msrb.mxu0 %v4859_v2  ;;  %v4841_v35 = vld [vmem:[#allocation16 + $0x510] sm:$0xff]  ;;  %v4655_v63 = vrot.slane %v9148_v49, 1  ;;  %v4823_v45 = vld [vmem:[#allocation16 + $0x480] sm:$0xff] }
 0x488   : > { %4571 = vmatpush.msrb.mxu3 %v3781_v58  ;;  %v4668_v44 = vrot.slane %v9154_v34, 2  ;;  %v4985_v36 = vld [vmem:[#allocation16 + $0x990] sm:$0xff]  ;;  %v4656_v16 = vrot.slane %v9154_v34, 1  ;;  %v4691_v58 = vld [vmem:[#allocation16 + $0x60] sm:$0xff] }
 0x489   : > { %4523 = vmatpush.msrb.mxu2 %v3691_v31  ;;  %5565 = vmatpush.msrb.mxu0 %v4853_v48  ;;  %v4709_v23 = vld [vmem:[#allocation16 + $0xf0] sm:$0xff]  ;;  %v5399_v38 = vld [vmem:[#allocation16 + $0x1680] sm:$0xff] }
 0x48a   : > { %4572 = vmatpush.msrb.mxu3 %v3778_v27  ;;  %v9159_v12 = vsel %vm752_vm1, %v4667_v18, %v4668_v44  ;;  %v4829_v55 = vld [vmem:[#allocation16 + $0x4b0] sm:$0xff]  ;;  %v9169_v44 = vsel %vm894_vm0, %v4655_v63, %v4656_v16  ;;  %v5435_v18 = vld [vmem:[#allocation16 + $0x17a0] sm:$0xff] }
 0x48b   : > { %4524 = vmatpush.msrb.mxu2 %v3688_v5  ;;  %5566 = vmatpush.msrb.mxu0 %v4847_v0  ;;  %v4973_v29 = vld [vmem:[#allocation16 + $0x930] sm:$0xff]  ;;  %v4139_v5 = vpop.f32.mrf.mxu2  ;;  %v4799_v2 = vld [vmem:[#allocation16 + $0x3c0] sm:$0xff] }
 0x48c   : > { %4573 = vmatpush.msrb.mxu3 %v3775_v7  ;;  %v4697_v52 = vld [vmem:[#allocation16 + $0x90] sm:$0xff]  ;;  %v4811_v7 = vld [vmem:[#allocation16 + $0x420] sm:$0xff] }
 0x48d   : > { %4525 = vmatpush.msrb.mxu2 %v3685_v13  ;;  %4555 = vmatmul.f32.gmra.mxu1 %v9011_v11  ;;  %v5033_v11 = vld [vmem:[#allocation16 + $0xb10] sm:$0xff]  ;;  %v4679_v13 = vld [vmem:[#allocation16] sm:$0xff] }
 0x48e   : > { %4574 = vmatpush.msrb.mxu3 %v3772_v6  ;;  %5567 = vmatpush.msrb.mxu0 %v4841_v35  ;;  %v5441_v31 = vld [vmem:[#allocation16 + $0x17d0] sm:$0xff]  ;;  %v5099_v16 = vld [vmem:[#allocation16 + $0xd20] sm:$0xff] }
 0x48f   : > { %4575 = vmatmul.f32.vlgmr.msrb.gmra.mxu3 %v9050_v17  ;;  %4526 = vmatpush.msrb.mxu2 %v3682_v25  ;;  %v5027_v17 = vld [vmem:[#allocation16 + $0xae0] sm:$0xff]  ;;  %v4817_v27 = vld [vmem:[#allocation16 + $0x450] sm:$0xff] }
 0x490   : > { %5603 = vmatpush.msra.mxu3 %v5057_v1  ;;  %5568 = vmatpush.msrb.mxu0 %v4835_v20  ;;  %v4685_v34 = vld [vmem:[#allocation16 + $0x30] sm:$0xff]  ;;  %v5423_v25 = vld [vmem:[#allocation16 + $0x1740] sm:$0xff] }
 0x491   : > { %4527 = vmatpush.msrb.mxu2 %v3679_v10  ;;  %v5429_v49 = vld [vmem:[#allocation16 + $0x1770] sm:$0xff]  ;;  %v5147_v1 = vld [vmem:[#allocation16 + $0xea0] sm:$0xff]  ;;  %v4119_v10 = vpop.f32.mrf.mxu3 }
 0x492   : > { %5604 = vmatpush.msra.mxu3 %v5051_v41  ;;  %5569 = vmatpush.msrb.mxu0 %v4829_v55  ;;  %v5153_v6 = vld [vmem:[#allocation16 + $0xed0] sm:$0xff]  ;;  %v4165_v41 = vpop.f32.mrf.mxu0  ;;  %v5363_v63 = vld [vmem:[#allocation16 + $0x1560] sm:$0xff] }
 0x493   : > { %4528 = vmatpush.msrb.mxu2 %v3676_v42  ;;  %v5417_v42 = vld [vmem:[#allocation16 + $0x1710] sm:$0xff] }
 0x494   : > { %5605 = vmatpush.msra.mxu3 %v5045_v24  ;;  %4529 = vmatmul.f32.vlgmr.msrb.gmra.mxu2 %v8986_v15  ;;  %v4739_v15 = vld [vmem:[#allocation16 + $0x1e0] sm:$0xff]  ;;  %v5141_v24 = vld [vmem:[#allocation16 + $0xe70] sm:$0xff] }
 0x495   : > { %5543 = vmatpush.msra.mxu2 %v4769_v8  ;;  %5570 = vmatpush.msrb.mxu0 %v4823_v45  ;;  %v4185_v8 = vpop.f32.mrf.mxu1  ;;  %v5381_v20 = vld [vmem:[#allocation16 + $0x15f0] sm:$0xff] }
 0x496   : > { %5606 = vmatpush.msra.mxu3 %v5039_v22  ;;  %v4140_v22 = vadd.f32 %v4139_v5, %v4116_v57  ;;  %v5369_v57 = vld [vmem:[#allocation16 + $0x1590] sm:$0xff] }
 0x497   : > { %4578 = vmatmul.f32.gmra.mxu3 %v9039_v61  ;;  %5544 = vmatpush.msra.mxu2 %v4763_v4  ;;  %v5009_v61 = vld [vmem:[#allocation16 + $0xa50] sm:$0xff]  ;;  %v5411_v4 = vld [vmem:[#allocation16 + $0x16e0] sm:$0xff] }
 0x498   : > { %5607 = vmatpush.msra.mxu3 %v5033_v11  ;;  %5571 = vmatpush.msrb.mxu0 %v4817_v27  ;;  %v4142_v11 = vpop.f32.mrf.mxu2  ;;  %v4955_v27 = vld [vmem:[#allocation16 + $0x8a0] sm:$0xff] }
 0x499   : > { %5545 = vmatpush.msra.mxu2 %v4757_v46  ;;  %v5135_v46 = vld [vmem:[#allocation16 + $0xe40] sm:$0xff]  ;;  %v4208_v48 = vpop.f32.mrf.mxu3  ;;  %v4143_v0 = vadd.f32 %v4142_v11, %v4119_v10  ;;  %v5069_v11 = vld [vmem:[#allocation16 + $0xc30] sm:$0xff] }
 0x49a   : > { %5608 = vmatpush.msra.mxu3 %v5027_v17  ;;  %5572 = vmatpush.msrb.mxu0 %v4811_v7  ;;  %v5405_v17 = vld [vmem:[#allocation16 + $0x16b0] sm:$0xff] }
 0x49b   : > { %5546 = vmatpush.msra.mxu2 %v4751_v39  ;;  %v4805_v39 = vld [vmem:[#allocation16 + $0x3f0] sm:$0xff] }
 0x49c   : > { %5609 = vmatpush.msra.mxu3 %v5021_v21  ;;  %4532 = vmatmul.f32.gmra.mxu2 %v8975_v62  ;;  %v4715_v62 = vld [vmem:[#allocation16 + $0x120] sm:$0xff]  ;;  %v5129_v21 = vld [vmem:[#allocation16 + $0xe10] sm:$0xff] }
 0x49d   : > { %5547 = vmatpush.msra.mxu2 %v4745_v32  ;;  %v4163_v32 = vadd.f32 %v4162_v51, %v4140_v22  ;;  %5573 = vmatpush.msrb.mxu0 %v4805_v39  ;;  %v4188_v35 = vpop.f32.mrf.mxu1  ;;  %v5093_v51 = vld [vmem:[#allocation16 + $0xcf0] sm:$0xff]  ;;  %v4950_v39 = vld [vmem:[#allocation16 + $0x878] sm:$0xff] }
 0x49e   : > { %5610 = vmatpush.msra.mxu3 %v5015_v3  ;;  %v5123_v3 = vld [vmem:[#allocation16 + $0xde0] sm:$0xff]  ;;  %v4949_v7 = vld [vmem:[#allocation16 + $0x870] sm:$0xff] }
 0x49f   : > { %5548 = vmatpush.msra.mxu2 %v4739_v15  ;;  %v4793_v15 = vld [vmem:[#allocation16 + $0x390] sm:$0xff]  ;;  %5574 = vmatpush.msrb.mxu0 %v4799_v2  ;;  %v4623_v2 = vperm.slane %v9132_v14, 3 }
 0x4a0   : > { %5611 = vmatpush.msra.mxu3 %v5009_v61  ;;  %v5393_v61 = vld [vmem:[#allocation16 + $0x1650] sm:$0xff] }
 0x4a1   : > { %5549 = vmatpush.msra.mxu2 %v4733_v60  ;;  %v5117_v60 = vld [vmem:[#allocation16 + $0xdb0] sm:$0xff]  ;;  %5575 = vmatpush.msrb.mxu0 %v4793_v15 }
 0x4a2   : > { %5612 = vmatpush.msra.mxu3 %v5003_v26  ;;  %v4787_v26 = vld [vmem:[#allocation16 + $0x360] sm:$0xff]  ;;  %v5249_v15 = vld [vmem:[#allocation16 + $0x11d0] sm:$0xff] }
 0x4a3   : > { %5550 = vmatpush.msra.mxu2 %v4727_v43  ;;  %v4254_v43 = vpop.f32.mrf.mxu0  ;;  %5576 = vmatpush.msrb.mxu0 %v4787_v26  ;;  %v4944_v26 = vld [vmem:[#allocation16 + $0x848] sm:$0xff] }
 0x4a4   : > { %5613 = vmatpush.msra.mxu3 %v4997_v40  ;;  %v4186_v40 = vadd.f32 %v4185_v8, %v4163_v32  ;;  %v4937_v8 = vld [vmem:[#allocation16 + $0x810] sm:$0xff]  ;;  %v4931_v32 = vld [vmem:[#allocation16 + $0x7e0] sm:$0xff] }
 0x4a5   : > { %5551 = vmatpush.msra.mxu2 %v4721_v33  ;;  %v5387_v33 = vld [vmem:[#allocation16 + $0x1620] sm:$0xff] }
 0x4a6   : > { %5614 = vmatpush.msra.mxu3 %v4991_v28  ;;  %v4209_v55 = vadd.f32 %v4208_v48, %v4186_v40  ;;  %v5537_v48 = vld [vmem:[#allocation16 + $0x1ad0] sm:$0xff] }
 0x4a7   : > { %5552 = vmatpush.msra.mxu2 %v4715_v62  ;;  %v5111_v62 = vld [vmem:[#allocation16 + $0xd80] sm:$0xff] }
 0x4a8   : > { %5615 = vmatpush.msra.mxu3 %v4985_v36  ;;  %v4781_v36 = vld [vmem:[#allocation16 + $0x330] sm:$0xff] }
 0x4a9   : > { %5553 = vmatpush.msra.mxu2 %v4709_v23  ;;  %v5105_v23 = vld [vmem:[#allocation16 + $0xd50] sm:$0xff]  ;;  %5577 = vmatpush.msrb.mxu0 %v4781_v36  ;;  %v4629_v36 = vperm.slane %v4623_v2, 1 }
 0x4aa   : > { %5616 = vmatpush.msra.mxu3 %v4979_v19  ;;  %v5375_v19 = vld [vmem:[#allocation16 + $0x15c0] sm:$0xff] }
 0x4ab   : > { %5554 = vmatpush.msra.mxu2 %v4703_v59  ;;  %v4166_v59 = vadd.f32 %v4165_v41, %v4143_v0  ;;  %v4257_v5 = vpop.f32.mrf.mxu0  ;;  %v4962_v41 = vld [vmem:[#allocation16 + $0x8d8] sm:$0xff] }
 0x4ac   : > { %5617 = vmatpush.msra.mxu3 %v4973_v29  ;;  %v4775_v29 = vld [vmem:[#allocation16 + $0x300] sm:$0xff] }
 0x4ad   : > { %5555 = vmatpush.msra.mxu2 %v4697_v52  ;;  %5578 = vmatpush.msrb.mxu0 %v4775_v29  ;;  %v4189_v45 = vadd.f32 %v4188_v35, %v4166_v59  ;;  %v4938_v35 = vld [vmem:[#allocation16 + $0x818] sm:$0xff] }
 0x4ae   : > { %5618 = vmatpush.msra.mxu3 %v4967_v37  ;;  %v4231_v28 = vpop.f32.mrf.mxu2  ;;  %v4211_v37 = vpop.f32.mrf.mxu3  ;;  %v4926_v59 = vld [vmem:[#allocation16 + $0x7b8] sm:$0xff] }
 0x4af   : > { %5619 = vmatmul.f32.vlgmr.msra.gmra.mxu3 %v9169_v44  ;;  %5556 = vmatpush.msra.mxu2 %v4691_v58  ;;  %v4232_v52 = vadd.f32 %v4231_v28, %v4209_v55  ;;  %v4961_v58 = vld [vmem:[#allocation16 + $0x8d0] sm:$0xff]  ;;  %v4212_v10 = vadd.f32 %v4211_v37, %v4189_v45  ;;  %v4919_v28 = vld [vmem:[#allocation16 + $0x780] sm:$0xff]  ;;  %v4932_v55 = vld [vmem:[#allocation16 + $0x7e8] sm:$0xff] }
 0x4b0   : > { %5683 = vmatpush.msrb.mxu3 %v5441_v31  ;;  %v5087_v31 = vld [vmem:[#allocation16 + $0xcc0] sm:$0xff]  ;;  %5583 = vmatpush.msra.mxu1 %v4961_v58 }
 0x4b1   : > { %5557 = vmatpush.msra.mxu2 %v4685_v34  ;;  %v4255_v34 = vadd.f32 %v4254_v43, %v4232_v52  ;;  %5643 = vmatpush.msra.mxu0 %v5249_v15  ;;  %v5243_v43 = vld [vmem:[#allocation16 + $0x11a0] sm:$0xff]  ;;  %v4913_v52 = vld [vmem:[#allocation16 + $0x750] sm:$0xff] }
 0x4b2   : > { %5684 = vmatpush.msrb.mxu3 %v5435_v18  ;;  %v5357_v18 = vld [vmem:[#allocation16 + $0x1530] sm:$0xff]  ;;  %5584 = vmatpush.msra.mxu1 %v4955_v27  ;;  %v5231_v27 = vld [vmem:[#allocation16 + $0x1140] sm:$0xff] }
 0x4b3   : > { %5558 = vmatpush.msra.mxu2 %v4679_v13  ;;  %v4346_v40 = vpop.f32.mrf.mxu0  ;;  %5644 = vmatpush.msra.mxu0 %v5243_v43  ;;  %v4877_v15 = vld [vmem:[#allocation16 + $0x630] sm:$0xff]  ;;  %v4884_v43 = vld [vmem:[#allocation16 + $0x668] sm:$0xff] }
 0x4b4   : > { %7176 = vmatmul.msk.f32.vlgmr.msra.gmra.mxu2 %vm8367_vm10, %v9142_v30  ;;  %5685 = vmatpush.msrb.mxu3 %v5429_v49  ;;  %v5081_v49 = vld [vmem:[#allocation16 + $0xc90] sm:$0xff] }
 0x4b5   : > { %5623 = vmatpush.msrb.mxu2 %v5153_v6  ;;  %v4277_v6 = vpop.f32.mrf.mxu1  ;;  %5585 = vmatpush.msra.mxu1 %v4949_v7  ;;  %v4901_v7 = vld [vmem:[#allocation16 + $0x6f0] sm:$0xff] }
 0x4b6   : > { %5686 = vmatpush.msrb.mxu3 %v5423_v25  ;;  %v5351_v25 = vld [vmem:[#allocation16 + $0x1500] sm:$0xff] }
 0x4b7   : > { %5624 = vmatpush.msrb.mxu2 %v5147_v1  ;;  %v4234_v13 = vpop.f32.mrf.mxu2  ;;  %v4943_v1 = vld [vmem:[#allocation16 + $0x840] sm:$0xff] }
 0x4b8   : > { %5687 = vmatpush.msrb.mxu3 %v5417_v42  ;;  %v5075_v42 = vld [vmem:[#allocation16 + $0xc60] sm:$0xff]  ;;  %v4235_v22 = vadd.f32 %v4234_v13, %v4212_v10  ;;  %5586 = vmatpush.msra.mxu1 %v4943_v1  ;;  %v5225_v13 = vld [vmem:[#allocation16 + $0x1110] sm:$0xff]  ;;  %v4908_v10 = vld [vmem:[#allocation16 + $0x728] sm:$0xff] }
 0x4b9   : > { %5625 = vmatpush.msrb.mxu2 %v5141_v24  ;;  %v4278_v24 = vadd.f32 %v4277_v6, %v4255_v34  ;;  %v5513_v6 = vld [vmem:[#allocation16 + $0x1a10] sm:$0xff] }
 0x4ba   : > { %5688 = vmatpush.msrb.mxu3 %v5411_v4  ;;  %v4956_v4 = vld [vmem:[#allocation16 + $0x8a8] sm:$0xff]  ;;  %5587 = vmatpush.msra.mxu1 %v4937_v8  ;;  %v4902_v8 = vld [vmem:[#allocation16 + $0x6f8] sm:$0xff] }
 0x4bb   : > { %5626 = vmatpush.msrb.mxu2 %v5135_v46  ;;  %v4300_v46 = vpop.f32.mrf.mxu3 }
 0x4bc   : > { %5689 = vmatpush.msrb.mxu3 %v5405_v17  ;;  %v4608_v17 = vperm.slane %v9132_v14, 2  ;;  %5588 = vmatpush.msra.mxu1 %v4931_v32  ;;  %v5495_v32 = vld [vmem:[#allocation16 + $0x1980] sm:$0xff] }
 0x4bd   : > { %5627 = vmatpush.msrb.mxu2 %v5129_v21  ;;  %v5063_v21 = vld [vmem:[#allocation16 + $0xc00] sm:$0xff]  ;;  %v4280_v14 = vpop.f32.mrf.mxu1 }
 0x4be   : > { %5690 = vmatpush.msrb.mxu3 %v5399_v38  ;;  %v4301_v38 = vadd.f32 %v4300_v46, %v4278_v24  ;;  %v4614_v0 = vperm.slane %v4608_v17, 0  ;;  %v4896_v17 = vld [vmem:[#allocation16 + $0x6c8] sm:$0xff] }
 0x4bf   : > { %5628 = vmatpush.msrb.mxu2 %v5123_v3  ;;  %v4925_v3 = vld [vmem:[#allocation16 + $0x7b0] sm:$0xff] }
 0x4c0   : > { %5691 = vmatpush.msrb.mxu3 %v5393_v61  ;;  %v4258_v61 = vadd.f32 %v4257_v5, %v4235_v22  ;;  %5589 = vmatpush.msra.mxu1 %v4925_v3  ;;  %v5519_v5 = vld [vmem:[#allocation16 + $0x1a40] sm:$0xff]  ;;  %v4889_v22 = vld [vmem:[#allocation16 + $0x690] sm:$0xff]  ;;  %v4890_v3 = vld [vmem:[#allocation16 + $0x698] sm:$0xff] }
 0x4c1   : > { %5629 = vmatpush.msrb.mxu2 %v5117_v60 }
 0x4c2   : > { %5692 = vmatpush.msrb.mxu3 %v5387_v33  ;;  %5590 = vmatpush.msra.mxu1 %v4919_v28 }
 0x4c3   : > { %5630 = vmatpush.msrb.mxu2 %v5111_v62  ;;  %v5531_v62 = vld [vmem:[#allocation16 + $0x1aa0] sm:$0xff]  ;;  %v4303_v29 = vpop.f32.mrf.mxu3 }
 0x4c4   : > { %5693 = vmatpush.msrb.mxu3 %v5381_v20  ;;  %5591 = vmatpush.msra.mxu1 %v4913_v52  ;;  %v5183_v52 = vld [vmem:[#allocation16 + $0xfc0] sm:$0xff] }
 0x4c5   : > { %5631 = vmatpush.msrb.mxu2 %v5105_v23  ;;  %v4281_v23 = vadd.f32 %v4280_v14, %v4258_v61  ;;  %v5489_v61 = vld [vmem:[#allocation16 + $0x1950] sm:$0xff]  ;;  %v5483_v14 = vld [vmem:[#allocation16 + $0x1920] sm:$0xff] }
 0x4c6   : > { %5694 = vmatpush.msrb.mxu3 %v5375_v19 }
 0x4c7   : > { %5632 = vmatpush.msrb.mxu2 %v5099_v16  ;;  %v4304_v37 = vadd.f32 %v4303_v29, %v4281_v23  ;;  %v5345_v23 = vld [vmem:[#allocation16 + $0x14d0] sm:$0xff]  ;;  %v5346_v29 = vld [vmem:[#allocation16 + $0x14d8] sm:$0xff] }
 0x4c8   : > { %5695 = vmatpush.msrb.mxu3 %v5369_v57  ;;  %v5237_v57 = vld [vmem:[#allocation16 + $0x1170] sm:$0xff] }
 0x4c9   : > { %5633 = vmatpush.msrb.mxu2 %v5093_v51  ;;  %v5525_v51 = vld [vmem:[#allocation16 + $0x1a70] sm:$0xff]  ;;  %5645 = vmatpush.msra.mxu0 %v5237_v57  ;;  %v5471_v57 = vld [vmem:[#allocation16 + $0x18c0] sm:$0xff] }
 0x4ca   : > { %5696 = vmatpush.msrb.mxu3 %v5363_v63  ;;  %v4920_v63 = vld [vmem:[#allocation16 + $0x788] sm:$0xff] }
 0x4cb   : > { %5634 = vmatpush.msrb.mxu2 %v5087_v31  ;;  %v4907_v31 = vld [vmem:[#allocation16 + $0x720] sm:$0xff]  ;;  %5646 = vmatpush.msra.mxu0 %v5231_v27 }
 0x4cc   : > { %5697 = vmatpush.msrb.mxu3 %v5357_v18  ;;  %v4914_v18 = vld [vmem:[#allocation16 + $0x758] sm:$0xff]  ;;  %5592 = vmatpush.msra.mxu1 %v4907_v31  ;;  %v5327_v27 = vld [vmem:[#allocation16 + $0x1440] sm:$0xff] }
 0x4cd   : > { %5635 = vmatpush.msrb.mxu2 %v5081_v49  ;;  %v4349_v49 = vpop.f32.mrf.mxu0  ;;  %5647 = vmatpush.msra.mxu0 %v5225_v13  ;;  %v5334_v31 = vld [vmem:[#allocation16 + $0x1478] sm:$0xff]  ;;  %v5165_v13 = vld [vmem:[#allocation16 + $0xf30] sm:$0xff] }
 0x4ce   : > { %5698 = vmatpush.msrb.mxu3 %v5351_v25  ;;  %v4895_v25 = vld [vmem:[#allocation16 + $0x6c0] sm:$0xff]  ;;  %5593 = vmatpush.msra.mxu1 %v4901_v7  ;;  %v5321_v7 = vld [vmem:[#allocation16 + $0x1410] sm:$0xff] }
 0x4cf   : > { %5636 = vmatpush.msrb.mxu2 %v5075_v42  ;;  %v5507_v42 = vld [vmem:[#allocation16 + $0x19e0] sm:$0xff] }
 0x4d0   : > { %5763 = vmatpush.msra.mxu3 %v4962_v41  ;;  %v5219_v41 = vld [vmem:[#allocation16 + $0x10e0] sm:$0xff]  ;;  %5594 = vmatpush.msra.mxu1 %v4895_v25  ;;  %v5322_v25 = vld [vmem:[#allocation16 + $0x1418] sm:$0xff] }
 0x4d1   : > { %5637 = vmatpush.msrb.mxu2 %v5069_v11  ;;  %5648 = vmatpush.msra.mxu0 %v5219_v41  ;;  %v5501_v11 = vld [vmem:[#allocation16 + $0x19b0] sm:$0xff]  ;;  %v5447_v41 = vld [vmem:[#allocation16 + $0x1800] sm:$0xff] }
 0x4d2   : > { %5764 = vmatpush.msra.mxu3 %v4956_v4  ;;  %v4323_v60 = vpop.f32.mrf.mxu2  ;;  %v5213_v4 = vld [vmem:[#allocation16 + $0x10b0] sm:$0xff]  ;;  %5595 = vmatpush.msra.mxu1 %v4889_v22 }
 0x4d3   : > { %v4324_v33 = vadd.f32 %v4323_v60, %v4301_v38  ;;  %5638 = vmatpush.msrb.mxu2 %v5063_v21  ;;  %5649 = vmatpush.msra.mxu0 %v5213_v4  ;;  %v5207_v21 = vld [vmem:[#allocation16 + $0x1080] sm:$0xff]  ;;  %v5309_v22 = vld [vmem:[#allocation16 + $0x13b0] sm:$0xff]  ;;  %v4770_v4 = vld [vmem:[#allocation16 + $0x2d8] sm:$0xff] }
 0x4d4   : > { %5765 = vmatpush.msra.mxu3 %v4950_v39  ;;  %v4883_v39 = vld [vmem:[#allocation16 + $0x660] sm:$0xff] }
 0x4d5   : > { %5703 = vmatpush.msra.mxu2 %v5537_v48  ;;  %v4347_v20 = vadd.f32 %v4346_v40, %v4324_v33  ;;  %5596 = vmatpush.msra.mxu1 %v4883_v39  ;;  %v5201_v48 = vld [vmem:[#allocation16 + $0x1050] sm:$0xff]  ;;  %v4871_v60 = vld [vmem:[#allocation16 + $0x600] sm:$0xff]  ;;  %v4764_v39 = vld [vmem:[#allocation16 + $0x2a8] sm:$0xff] }
 0x4d6   : > { %5766 = vmatpush.msra.mxu3 %v4944_v26  ;;  %5650 = vmatpush.msra.mxu0 %v5207_v21  ;;  %v5195_v40 = vld [vmem:[#allocation16 + $0x1020] sm:$0xff]  ;;  %v5052_v21 = vld [vmem:[#allocation16 + $0xba8] sm:$0xff] }
 0x4d7   : > { %5704 = vmatpush.msra.mxu2 %v5531_v62  ;;  %v4617_v19 = vmul.f32 %v4614_v0, %v4347_v20  ;;  %5597 = vmatpush.msra.mxu1 %v4877_v15  ;;  %v5298_v15 = vld [vmem:[#allocation16 + $0x1358] sm:$0xff] }
 0x4d8   : > { %5767 = vmatpush.msra.mxu3 %v4938_v35  ;;  %5651 = vmatpush.msra.mxu0 %v5201_v48  ;;  %v4878_v35 = vld [vmem:[#allocation16 + $0x638] sm:$0xff]  ;;  %v5291_v48 = vld [vmem:[#allocation16 + $0x1320] sm:$0xff] }
 0x4d9   : > { %v4632_v16 = vadd.f32 %v4629_v36, %v4617_v19  ;;  %5705 = vmatpush.msra.mxu2 %v5525_v51  ;;  %5598 = vmatpush.msra.mxu1 %v4871_v60  ;;  %v4872_v19 = vld [vmem:[#allocation16 + $0x608] sm:$0xff] }
 0x4da   : > { %5768 = vmatpush.msra.mxu3 %v4932_v55  ;;  %5652 = vmatpush.msra.mxu0 %v5195_v40  ;;  %v5189_v55 = vld [vmem:[#allocation16 + $0xff0] sm:$0xff]  ;;  %v5340_v51 = vld [vmem:[#allocation16 + $0x14a8] sm:$0xff] }
 0x4db   : > { %v9177_v58 = vmax.f32 %v4632_v16, 0.0  ;;  %v4326_v45 = vpop.f32.mrf.mxu2  ;;  %5706 = vmatpush.msra.mxu2 %v5519_v5  ;;  %v5339_v16 = vld [vmem:[#allocation16 + $0x14a0] sm:$0xff]  ;;  %5663 = vmatpush.msrb.mxu1 %v5345_v23  ;;  %v5040_v60 = vld [vmem:[#allocation16 + $0xb48] sm:$0xff]  ;;  %v5285_v40 = vld [vmem:[#allocation16 + $0x12f0] sm:$0xff] }
 0x4dc   : > { %5769 = vmatpush.msra.mxu3 %v4926_v59  ;;  %v4327_v34 = vadd.f32 %v4326_v45, %v4304_v37  ;;  %v5477_v59 = vld [vmem:[#allocation16 + $0x18f0] sm:$0xff]  ;;  %5653 = vmatpush.msra.mxu0 %v5189_v55  ;;  %v5171_v5 = vld [vmem:[#allocation16 + $0xf60] sm:$0xff]  ;;  %v4740_v23 = vld [vmem:[#allocation16 + $0x1e8] sm:$0xff] }
 0x4dd   : > { %7177 = vmatmul.msk.f32.vlgmr.msrb.gmra.mxu0 %vm8367_vm10, %v9177_v58  ;;  %5707 = vmatpush.msra.mxu2 %v5513_v6  ;;  %v4644_v2 = vsel %vm8367_vm10, %v9177_v58, 0.0  ;;  %v5333_v37 = vld [vmem:[#allocation16 + $0x1470] sm:$0xff]  ;;  %v9195_v6 = vpop.f32.mrf.mxu1  ;;  %v5028_v55 = vld [vmem:[#allocation16 + $0xae8] sm:$0xff] }
 0x4de   : > { %5770 = vmatpush.msra.mxu3 %v4920_v63  ;;  %v4350_v1 = vadd.f32 %v4349_v49, %v4327_v34  ;;  %v4658_v28 = vrot.slane %v4644_v2, 1  ;;  %v4670_v62 = vrot.slane %v4644_v2, 2  ;;  %5664 = vmatpush.msrb.mxu1 %v5339_v16  ;;  %v5177_v63 = vld [vmem:[#allocation16 + $0xf90] sm:$0xff]  ;;  %v5459_v34 = vld [vmem:[#allocation16 + $0x1860] sm:$0xff]  ;;  %v4758_v2 = vld [vmem:[#allocation16 + $0x278] sm:$0xff] }
 0x4df   : > { %5708 = vmatpush.msra.mxu2 %v5507_v42  ;;  %v5465_v45 = vld [vmem:[#allocation16 + $0x1890] sm:$0xff]  ;;  %5654 = vmatpush.msra.mxu0 %v5183_v52  ;;  %v9197_v42 = vpop.f32.mrf.mxu0  ;;  %v5022_v16 = vld [vmem:[#allocation16 + $0xab8] sm:$0xff] }
 0x4e0   : > { %5771 = vmatpush.msra.mxu3 %v4914_v18  ;;  %v4620_v24 = vmul.f32 %v4614_v0, %v4350_v1  ;;  %5665 = vmatpush.msrb.mxu1 %v5333_v37  ;;  %v5328_v18 = vld [vmem:[#allocation16 + $0x1448] sm:$0xff]  ;;  %v5453_v49 = vld [vmem:[#allocation16 + $0x1830] sm:$0xff]  ;;  %v5315_v1 = vld [vmem:[#allocation16 + $0x13e0] sm:$0xff] }
 0x4e1   : > { %5709 = vmatpush.msra.mxu2 %v5501_v11  ;;  %5655 = vmatpush.msra.mxu0 %v5177_v63  ;;  %v5058_v11 = vld [vmem:[#allocation16 + $0xbd8] sm:$0xff]  ;;  %v4728_v37 = vld [vmem:[#allocation16 + $0x188] sm:$0xff] }
 0x4e2   : > { %5772 = vmatpush.msra.mxu3 %v4908_v10  ;;  %v4635_v46 = vadd.f32 %v4629_v36, %v4620_v24  ;;  %5666 = vmatpush.msrb.mxu1 %v5327_v27  ;;  %v5159_v10 = vld [vmem:[#allocation16 + $0xf00] sm:$0xff]  ;;  %v9199_v24 = vpop.f32.mrf.mxu3  ;;  %v5274_v52 = vld [vmem:[#allocation16 + $0x1298] sm:$0xff]  ;;  %v5016_v63 = vld [vmem:[#allocation16 + $0xa88] sm:$0xff] }
 0x4e3   : > { %5710 = vmatpush.msra.mxu2 %v5495_v32  ;;  %5656 = vmatpush.msra.mxu0 %v5171_v5  ;;  %v5304_v32 = vld [vmem:[#allocation16 + $0x1388] sm:$0xff]  ;;  %v5261_v5 = vld [vmem:[#allocation16 + $0x1230] sm:$0xff] }
 0x4e4   : > { %5773 = vmatpush.msra.mxu3 %v4902_v8  ;;  %v4641_v38 = vmax.f32 %v4635_v46, 0.0  ;;  %5667 = vmatpush.msrb.mxu1 %v5321_v7  ;;  %v5316_v8 = vld [vmem:[#allocation16 + $0x13e8] sm:$0xff]  ;;  %v5310_v46 = vld [vmem:[#allocation16 + $0x13b8] sm:$0xff] }
 0x4e5   : > { %5711 = vmatpush.msra.mxu2 %v5489_v61  ;;  %5657 = vmatpush.msra.mxu0 %v5165_v13  ;;  %v4752_v61 = vld [vmem:[#allocation16 + $0x248] sm:$0xff] }
 0x4e6   : > { %5774 = vmatpush.msra.mxu3 %v4896_v17  ;;  %v4647_v26 = vsel %vm8382_vm13, %v4641_v38, 0.0  ;;  %5668 = vmatpush.msrb.mxu1 %v5315_v1  ;;  %v5303_v17 = vld [vmem:[#allocation16 + $0x1380] sm:$0xff]  ;;  %v5297_v38 = vld [vmem:[#allocation16 + $0x1350] sm:$0xff]  ;;  %v5268_v27 = vld [vmem:[#allocation16 + $0x1268] sm:$0xff] }
 0x4e7   : > { %v4659_v33 = vrot.slane %v4647_v26, 1  ;;  %v4671_v0 = vrot.slane %v4647_v26, 2  ;;  %5712 = vmatpush.msra.mxu2 %v5483_v14  ;;  %5658 = vmatpush.msra.mxu0 %v5159_v10  ;;  %v9201_v26 = vpop.f32.mrf.mxu1  ;;  %v5279_v14 = vld [vmem:[#allocation16 + $0x12c0] sm:$0xff]  ;;  %v4716_v1 = vld [vmem:[#allocation16 + $0x128] sm:$0xff] }
 0x4e8   : > { %5775 = vmatpush.msra.mxu3 %v4890_v3  ;;  %5669 = vmatpush.msrb.mxu1 %v5309_v22  ;;  %v5046_v3 = vld [vmem:[#allocation16 + $0xb78] sm:$0xff]  ;;  %v5004_v10 = vld [vmem:[#allocation16 + $0xa28] sm:$0xff] }
 0x4e9   : > { %v9188_v20 = vsel %vm894_vm0, %v4658_v28, %v4659_v33  ;;  %v9191_v36 = vsel %vm752_vm1, %v4670_v62, %v4671_v0  ;;  %5713 = vmatpush.msra.mxu2 %v5477_v59  ;;  %5723 = vmatpush.msrb.mxu0 %v4770_v4  ;;  %v4746_v33 = vld [vmem:[#allocation16 + $0x218] sm:$0xff]  ;;  %v9203_v28 = vpop.f32.mrf.mxu0  ;;  %v5273_v59 = vld [vmem:[#allocation16 + $0x1290] sm:$0xff] }
 0x4ea   : > { %5776 = vmatpush.msra.mxu3 %v4884_v43  ;;  %5639 = vmatmul.f32.vlgmr.msrb.gmra.mxu2 %v9188_v20  ;;  %v5292_v43 = vld [vmem:[#allocation16 + $0x1328] sm:$0xff]  ;;  %v5034_v0 = vld [vmem:[#allocation16 + $0xb18] sm:$0xff]  ;;  %v4395_v62 = vpop.f32.mrf.mxu3 }
 0x4eb   : > { %5699 = vmatmul.f32.vlgmr.msrb.gmra.mxu3 %v9191_v36  ;;  %5714 = vmatpush.msra.mxu2 %v5471_v57  ;;  %v5267_v57 = vld [vmem:[#allocation16 + $0x1260] sm:$0xff]  ;;  %v4998_v22 = vld [vmem:[#allocation16 + $0x9f8] sm:$0xff]  ;;  %v4396_v4 = vadd.f32 %v4395_v62, %v9201_v26 }
 0x4ec   : > { %5777 = vmatpush.msra.mxu3 %v4878_v35  ;;  %5670 = vmatpush.msrb.mxu1 %v5303_v17  ;;  %v5286_v35 = vld [vmem:[#allocation16 + $0x12f8] sm:$0xff] }
 0x4ed   : > { %5715 = vmatpush.msra.mxu2 %v5465_v45  ;;  %5724 = vmatpush.msrb.mxu0 %v4764_v39  ;;  %v4698_v17 = vld [vmem:[#allocation16 + $0x98] sm:$0xff] }
 0x4ee   : > { %5778 = vmatpush.msra.mxu3 %v4872_v19  ;;  %5671 = vmatpush.msrb.mxu1 %v5297_v38  ;;  %v5280_v19 = vld [vmem:[#allocation16 + $0x12c8] sm:$0xff]  ;;  %v4986_v39 = vld [vmem:[#allocation16 + $0x998] sm:$0xff]  ;;  %v4419_v38 = vadd.f32 %v9203_v28, %v4396_v4 }
 0x4ef   : > { %5716 = vmatpush.msra.mxu2 %v5459_v34  ;;  %5725 = vmatpush.msrb.mxu0 %v4758_v2  ;;  %v4461_v45 = vpop.f32.mrf.mxu1  ;;  %v4722_v34 = vld [vmem:[#allocation16 + $0x158] sm:$0xff]  ;;  %v4692_v2 = vld [vmem:[#allocation16 + $0x68] sm:$0xff] }
 0x4f0   : > { %5843 = vmatpush.msrb.mxu3 %v5346_v29  ;;  %5672 = vmatpush.msrb.mxu1 %v5291_v48  ;;  %v4734_v29 = vld [vmem:[#allocation16 + $0x1b8] sm:$0xff] }
 0x4f1   : > { %5717 = vmatpush.msra.mxu2 %v5453_v49  ;;  %5726 = vmatpush.msrb.mxu0 %v4752_v61  ;;  %v4507_v7 = vpop.f32.mrf.mxu0  ;;  %v5262_v49 = vld [vmem:[#allocation16 + $0x1238] sm:$0xff] }
 0x4f2   : > { %5844 = vmatpush.msrb.mxu3 %v5340_v51  ;;  %5673 = vmatpush.msrb.mxu1 %v5285_v40  ;;  %v4393_v51 = vadd.f32 %v9199_v24, %v9195_v6  ;;  %v4484_v13 = vpop.f32.mrf.mxu3  ;;  %v5255_v6 = vld [vmem:[#allocation16 + $0x1200] sm:$0xff]  ;;  %v4686_v26 = vld [vmem:[#allocation16 + $0x38] sm:$0xff]  ;;  %v4680_v40 = vld [vmem:[#allocation16 + $0x8] sm:$0xff] }
 0x4f3   : > { %5718 = vmatpush.msra.mxu2 %v5447_v41  ;;  %5727 = vmatpush.msrb.mxu0 %v4746_v33  ;;  %v5256_v41 = vld [vmem:[#allocation16 + $0x1208] sm:$0xff]  ;;  %v4854_v4 = vld [vmem:[#allocation16 + $0x578] sm:$0xff] }
 0x4f4   : > { %5845 = vmatpush.msrb.mxu3 %v5334_v31  ;;  %5674 = vmatpush.msrb.mxu1 %v5279_v14  ;;  %v4968_v33 = vld [vmem:[#allocation16 + $0x908] sm:$0xff] }
 0x4f5   : > { %5783 = vmatpush.msrb.mxu2 %v5058_v11  ;;  %5728 = vmatpush.msrb.mxu0 %v4740_v23  ;;  %v4704_v11 = vld [vmem:[#allocation16 + $0xc8] sm:$0xff]  ;;  %v7417_v23 = vld [vmem:[#allocation14] sm:$0x3f] }
 0x4f6   : > { %5846 = vmatpush.msrb.mxu3 %v5328_v18  ;;  %5675 = vmatpush.msrb.mxu1 %v5273_v59  ;;  %v4438_v31 = vpop.f32.mrf.mxu2  ;;  %v5010_v18 = vld [vmem:[#allocation16 + $0xa58] sm:$0xff] }
 0x4f7   : > { %5784 = vmatpush.msrb.mxu2 %v5052_v21  ;;  %5729 = vmatpush.msrb.mxu0 %v4734_v29  ;;  %v4464_v21 = vpop.f32.mrf.mxu1  ;;  %v4624_v29 = vperm.slane %v7417_v23, 5 }
 0x4f8   : > { %5847 = vmatpush.msrb.mxu3 %v5322_v25  ;;  %5676 = vmatpush.msrb.mxu1 %v5267_v57  ;;  %v4416_v25 = vadd.f32 %v9197_v42, %v4393_v51 }
 0x4f9   : > { %5785 = vmatpush.msrb.mxu2 %v5046_v3  ;;  %5730 = vmatpush.msrb.mxu0 %v4728_v37  ;;  %v4980_v3 = vld [vmem:[#allocation16 + $0x968] sm:$0xff] }
 0x4fa   : > { %5848 = vmatpush.msrb.mxu3 %v5316_v8  ;;  %5677 = vmatpush.msrb.mxu1 %v5261_v5  ;;  %v4439_v24 = vadd.f32 %v4438_v31, %v4416_v25  ;;  %v4710_v8 = vld [vmem:[#allocation16 + $0xf8] sm:$0xff]  ;;  %v4487_v48 = vpop.f32.mrf.mxu3 }
 0x4fb   : > { %5786 = vmatpush.msrb.mxu2 %v5040_v60  ;;  %5731 = vmatpush.msrb.mxu0 %v4722_v34  ;;  %v4866_v25 = vld [vmem:[#allocation16 + $0x5d8] sm:$0xff] }
 0x4fc   : > { %5849 = vmatpush.msrb.mxu3 %v5310_v46  ;;  %5678 = vmatpush.msrb.mxu1 %v5255_v6  ;;  %v4992_v46 = vld [vmem:[#allocation16 + $0x9c8] sm:$0xff]  ;;  %v4462_v42 = vadd.f32 %v4461_v45, %v4439_v24 }
 0x4fd   : > { %5787 = vmatpush.msrb.mxu2 %v5034_v0  ;;  %5732 = vmatpush.msrb.mxu0 %v4716_v1  ;;  %v4867_v1 = vld [vmem:[#allocation16 + $0x5e0] sm:$0xff]  ;;  %v4860_v24 = vld [vmem:[#allocation16 + $0x5a8] sm:$0xff] }
 0x4fe   : > { %5850 = vmatpush.msrb.mxu3 %v5304_v32  ;;  %v4485_v60 = vadd.f32 %v4484_v13, %v4462_v42  ;;  %v4848_v42 = vld [vmem:[#allocation16 + $0x548] sm:$0xff] }
 0x4ff   : > { %5788 = vmatpush.msrb.mxu2 %v5028_v55  ;;  %5733 = vmatpush.msrb.mxu0 %v4710_v8  ;;  %v4441_v32 = vpop.f32.mrf.mxu2  ;;  %v4609_v55 = vperm.slane %v7417_v23, 4  ;;  %v4861_v8 = vld [vmem:[#allocation16 + $0x5b0] sm:$0xff] }
 0x500   : > { %5851 = vmatpush.msrb.mxu3 %v5298_v15  ;;  %v4510_v15 = vpop.f32.mrf.mxu0  ;;  %v4442_v61 = vadd.f32 %v4441_v32, %v4419_v38  ;;  %v4508_v62 = vadd.f32 %v4507_v7, %v4485_v60  ;;  %v4843_v32 = vld [vmem:[#allocation16 + $0x520] sm:$0xff]  ;;  %v4825_v23 = vld [vmem:[#allocation16 + $0x490] sm:$0xff] }
 0x501   : > { %5789 = vmatpush.msrb.mxu2 %v5022_v16  ;;  %5734 = vmatpush.msrb.mxu0 %v4704_v11  ;;  %v4615_v51 = vperm.slane %v4609_v55, 0  ;;  %v4855_v11 = vld [vmem:[#allocation16 + $0x580] sm:$0xff]  ;;  %v4818_v55 = vld [vmem:[#allocation16 + $0x458] sm:$0xff] }
 0x502   : > { %5852 = vmatpush.msrb.mxu3 %v5292_v43  ;;  %v4974_v43 = vld [vmem:[#allocation16 + $0x938] sm:$0xff]  ;;  %v4465_v0 = vadd.f32 %v4464_v21, %v4442_v61 }
 0x503   : > { %5790 = vmatpush.msrb.mxu2 %v5016_v63  ;;  %5735 = vmatpush.msrb.mxu0 %v4698_v17  ;;  %v4630_v63 = vperm.slane %v4624_v29, 1  ;;  %v4849_v17 = vld [vmem:[#allocation16 + $0x550] sm:$0xff]  ;;  %v4842_v21 = vld [vmem:[#allocation16 + $0x518] sm:$0xff]  ;;  %v4819_v29 = vld [vmem:[#allocation16 + $0x460] sm:$0xff] }
 0x504   : > { %5853 = vmatpush.msrb.mxu3 %v5286_v35  ;;  %v4553_v35 = vpop.f32.mrf.mxu1  ;;  %v4488_v16 = vadd.f32 %v4487_v48, %v4465_v0  ;;  %v5442_v0 = vld [vmem:[#allocation16 + $0x17d8] sm:$0xff] }
 0x505   : > { %5791 = vmatpush.msrb.mxu2 %v5010_v18  ;;  %5736 = vmatpush.msrb.mxu0 %v4692_v2 }
 0x506   : > { %5854 = vmatpush.msrb.mxu3 %v5280_v19  ;;  %v4511_v45 = vadd.f32 %v4510_v15, %v4488_v16  ;;  %v4837_v15 = vld [vmem:[#allocation16 + $0x4f0] sm:$0xff]  ;;  %v4812_v16 = vld [vmem:[#allocation16 + $0x428] sm:$0xff] }
 0x507   : > { %5792 = vmatpush.msrb.mxu2 %v5004_v10  ;;  %5737 = vmatpush.msrb.mxu0 %v4686_v26 }
 0x508   : > { %5855 = vmatpush.msrb.mxu3 %v5274_v52  ;;  %v4599_v52 = vpop.f32.mrf.mxu0 }
 0x509   : > { %5793 = vmatpush.msrb.mxu2 %v4998_v22  ;;  %5738 = vmatpush.msrb.mxu0 %v4680_v40  ;;  %v5154_v40 = vld [vmem:[#allocation16 + $0xed8] sm:$0xff] }
 0x50a   : > { %5856 = vmatpush.msrb.mxu3 %v5268_v27 }
 0x50b   : > { %5794 = vmatpush.msrb.mxu2 %v4992_v46 }
 0x50c   : > { %5857 = vmatpush.msrb.mxu3 %v5262_v49  ;;  %v4556_v34 = vpop.f32.mrf.mxu1 }
 0x50d   : > { %5795 = vmatpush.msrb.mxu2 %v4986_v39 }
 0x50e   : > { %5858 = vmatpush.msrb.mxu3 %v5256_v41 }
 0x50f   : > { %5796 = vmatpush.msrb.mxu2 %v4980_v3  ;;  %v4836_v3 = vld [vmem:[#allocation16 + $0x4e8] sm:$0xff] }
 0x510   : > { %v4602_v10 = vpop.f32.mrf.mxu0 }
 0x511   : > { %5797 = vmatpush.msrb.mxu2 %v4974_v43  ;;  %v4830_v43 = vld [vmem:[#allocation16 + $0x4b8] sm:$0xff] }
 0x512   : > { %v4576_v19 = vpop.f32.mrf.mxu3 }
 0x513   : > { %5798 = vmatpush.msrb.mxu2 %v4968_v33 }
 0x517   : > { %v4530_v28 = vpop.f32.mrf.mxu2 }
 0x518   : > { %v4531_v14 = vadd.f32 %v4530_v28, %v4508_v62  ;;  %v4831_v62 = vld [vmem:[#allocation16 + $0x4c0] sm:$0xff]  ;;  %v5148_v28 = vld [vmem:[#allocation16 + $0xea8] sm:$0xff] }
 0x51a   : > { %v4554_v59 = vadd.f32 %v4553_v35, %v4531_v14  ;;  %v4579_v13 = vpop.f32.mrf.mxu3  ;;  %v4824_v35 = vld [vmem:[#allocation16 + $0x488] sm:$0xff] }
 0x51b   : > { %v5436_v14 = vld [vmem:[#allocation16 + $0x17a8] sm:$0xff] }
 0x51c   : > { %v4577_v57 = vadd.f32 %v4576_v19, %v4554_v59  ;;  %v5142_v19 = vld [vmem:[#allocation16 + $0xe78] sm:$0xff] }
 0x51d   : > { %v5430_v59 = vld [vmem:[#allocation16 + $0x1778] sm:$0xff] }
 0x51e   : > { %v4600_v37 = vadd.f32 %v4599_v52, %v4577_v57  ;;  %v5136_v52 = vld [vmem:[#allocation16 + $0xe48] sm:$0xff] }
 0x51f   : > { %v4533_v31 = vpop.f32.mrf.mxu2  ;;  %v5424_v57 = vld [vmem:[#allocation16 + $0x1748] sm:$0xff] }
 0x520   : > { %v4618_v27 = vmul.f32 %v4615_v51, %v4600_v37  ;;  %v4534_v5 = vadd.f32 %v4533_v31, %v4511_v45  ;;  %v4806_v37 = vld [vmem:[#allocation16 + $0x3f8] sm:$0xff]  ;;  %v4807_v31 = vld [vmem:[#allocation16 + $0x400] sm:$0xff] }
 0x521   : > { %v5418_v45 = vld [vmem:[#allocation16 + $0x1718] sm:$0xff] }
 0x522   : > { %v4633_v18 = vadd.f32 %v4630_v63, %v4618_v27  ;;  %v4557_v7 = vadd.f32 %v4556_v34, %v4534_v5  ;;  %v4800_v27 = vld [vmem:[#allocation16 + $0x3c8] sm:$0xff] }
 0x523   : > { %v5124_v5 = vld [vmem:[#allocation16 + $0xde8] sm:$0xff] }
 0x524   : > { %v9210_v49 = vmax.f32 %v4633_v18, 0.0  ;;  %v4580_v6 = vadd.f32 %v4579_v13, %v4557_v7  ;;  %v5412_v34 = vld [vmem:[#allocation16 + $0x16e8] sm:$0xff]  ;;  %v4801_v18 = vld [vmem:[#allocation16 + $0x3d0] sm:$0xff]  ;;  %v4794_v7 = vld [vmem:[#allocation16 + $0x398] sm:$0xff] }
 0x525   : > { %v5118_v13 = vld [vmem:[#allocation16 + $0xdb8] sm:$0xff] }
 0x526   : > { %v4603_v41 = vadd.f32 %v4602_v10, %v4580_v6  ;;  %7178 = vmatmul.msk.f32.vlgmr.msra.gmra.mxu1 %vm8367_vm10, %v9210_v49  ;;  %7181 = vmatmul.msk.f32.vlgmr.msra.gmra.mxu3 %vm8367_vm10, %v9210_v49  ;;  %v4645_v38 = vsel %vm8367_vm10, %v9210_v49, 0.0  ;;  %v5406_v6 = vld [vmem:[#allocation16 + $0x16b8] sm:$0xff]  ;;  %v5112_v10 = vld [vmem:[#allocation16 + $0xd88] sm:$0xff] }
 0x527   : > { %5743 = vmatpush.msra.mxu1 %v4866_v25  ;;  %5923 = vmatpush.msra.mxu3 %v4867_v1  ;;  %v4661_v48 = vrot.slane %v4645_v38, 1  ;;  %v4673_v60 = vrot.slane %v4645_v38, 2  ;;  %v4795_v25 = vld [vmem:[#allocation16 + $0x3a0] sm:$0xff]  ;;  %v4788_v1 = vld [vmem:[#allocation16 + $0x368] sm:$0xff]  ;;  %v5094_v38 = vld [vmem:[#allocation16 + $0xcf8] sm:$0xff] }
 0x528   : > { %v4621_v22 = vmul.f32 %v4615_v51, %v4603_v41  ;;  %v4813_v51 = vld [vmem:[#allocation16 + $0x430] sm:$0xff]  ;;  %v5400_v41 = vld [vmem:[#allocation16 + $0x1688] sm:$0xff] }
 0x529   : > { %5744 = vmatpush.msra.mxu1 %v4860_v24  ;;  %5924 = vmatpush.msra.mxu3 %v4861_v8  ;;  %v4789_v24 = vld [vmem:[#allocation16 + $0x370] sm:$0xff]  ;;  %v4782_v8 = vld [vmem:[#allocation16 + $0x338] sm:$0xff] }
 0x52a   : > { %v4636_v46 = vadd.f32 %v4630_v63, %v4621_v22  ;;  %v5130_v63 = vld [vmem:[#allocation16 + $0xe18] sm:$0xff] }
 0x52b   : > { %5745 = vmatpush.msra.mxu1 %v4854_v4  ;;  %5925 = vmatpush.msra.mxu3 %v4855_v11  ;;  %v5106_v22 = vld [vmem:[#allocation16 + $0xd58] sm:$0xff]  ;;  %v4783_v11 = vld [vmem:[#allocation16 + $0x340] sm:$0xff] }
 0x52c   : > { %v4642_v39 = vmax.f32 %v4636_v46, 0.0  ;;  %v5394_v4 = vld [vmem:[#allocation16 + $0x1658] sm:$0xff]  ;;  %v4776_v46 = vld [vmem:[#allocation16 + $0x308] sm:$0xff] }
 0x52d   : > { %5746 = vmatpush.msra.mxu1 %v4848_v42  ;;  %5926 = vmatpush.msra.mxu3 %v4849_v17  ;;  %v5100_v42 = vld [vmem:[#allocation16 + $0xd28] sm:$0xff] }
 0x52e   : > { %v4648_v2 = vsel %vm8382_vm13, %v4642_v39, 0.0  ;;  %5679 = vmatmul.f32.vlgmr.msrb.gmra.mxu1 %v9159_v12  ;;  %5859 = vmatmul.f32.vlgmr.msrb.gmra.mxu3 %v9159_v12  ;;  %v5388_v17 = vld [vmem:[#allocation16 + $0x1628] sm:$0xff]  ;;  %v4777_v39 = vld [vmem:[#allocation16 + $0x310] sm:$0xff] }
 0x52f   : > { %5747 = vmatpush.msra.mxu1 %v4842_v21  ;;  %5927 = vmatpush.msra.mxu3 %v4843_v32  ;;  %v4662_v61 = vrot.slane %v4648_v2, 1  ;;  %v4674_v26 = vrot.slane %v4648_v2, 2  ;;  %v5250_v21 = vld [vmem:[#allocation16 + $0x11d8] sm:$0xff]  ;;  %v5251_v32 = vld [vmem:[#allocation16 + $0x11e0] sm:$0xff] }
 0x530   : > { %v5382_v2 = vld [vmem:[#allocation16 + $0x15f8] sm:$0xff] }
 0x531   : > { %5748 = vmatpush.msra.mxu1 %v4836_v3  ;;  %5928 = vmatpush.msra.mxu3 %v4837_v15  ;;  %v9226_v33 = vsel %vm894_vm0, %v4661_v48, %v4662_v61  ;;  %v9229_v53 = vsel %vm752_vm1, %v4673_v60, %v4674_v26  ;;  %v5244_v3 = vld [vmem:[#allocation16 + $0x11a8] sm:$0xff]  ;;  %v5245_v15 = vld [vmem:[#allocation16 + $0x11b0] sm:$0xff]  ;;  %v5238_v60 = vld [vmem:[#allocation16 + $0x1178] sm:$0xff] }
 0x532   : > { %5659 = vmatmul.f32.vlgmr.msra.gmra.mxu0 %v9226_v33  ;;  %5719 = vmatmul.f32.vlgmr.msra.gmra.mxu2 %v9229_v53  ;;  %v5088_v48 = vld [vmem:[#allocation16 + $0xcc8] sm:$0xff]  ;;  %v5239_v26 = vld [vmem:[#allocation16 + $0x1180] sm:$0xff] }
 0x533   : > { %5749 = vmatpush.msra.mxu1 %v4830_v43  ;;  %5803 = vmatpush.msra.mxu0 %v5154_v40  ;;  %v5376_v61 = vld [vmem:[#allocation16 + $0x15c8] sm:$0xff]  ;;  %v5082_v43 = vld [vmem:[#allocation16 + $0xc98] sm:$0xff] }
 0x534   : > { %5863 = vmatpush.msra.mxu2 %v5442_v0  ;;  %5929 = vmatpush.msra.mxu3 %v4831_v62  ;;  %v5370_v40 = vld [vmem:[#allocation16 + $0x1598] sm:$0xff]  ;;  %v5232_v0 = vld [vmem:[#allocation16 + $0x1148] sm:$0xff]  ;;  %v5233_v62 = vld [vmem:[#allocation16 + $0x1150] sm:$0xff] }
 0x535   : > { %5750 = vmatpush.msra.mxu1 %v4824_v35  ;;  %5804 = vmatpush.msra.mxu0 %v5148_v28  ;;  %v5076_v35 = vld [vmem:[#allocation16 + $0xc68] sm:$0xff] }
 0x536   : > { %5864 = vmatpush.msra.mxu2 %v5436_v14  ;;  %5930 = vmatpush.msra.mxu3 %v4825_v23  ;;  %v5364_v28 = vld [vmem:[#allocation16 + $0x1568] sm:$0xff]  ;;  %v5226_v14 = vld [vmem:[#allocation16 + $0x1118] sm:$0xff]  ;;  %v5227_v23 = vld [vmem:[#allocation16 + $0x1120] sm:$0xff] }
 0x537   : > { %5751 = vmatpush.msra.mxu1 %v4818_v55  ;;  %5805 = vmatpush.msra.mxu0 %v5142_v19  ;;  %v5070_v55 = vld [vmem:[#allocation16 + $0xc38] sm:$0xff] }
 0x538   : > { %5865 = vmatpush.msra.mxu2 %v5430_v59  ;;  %5931 = vmatpush.msra.mxu3 %v4819_v29  ;;  %v5358_v19 = vld [vmem:[#allocation16 + $0x1538] sm:$0xff]  ;;  %v5220_v59 = vld [vmem:[#allocation16 + $0x10e8] sm:$0xff]  ;;  %v5221_v29 = vld [vmem:[#allocation16 + $0x10f0] sm:$0xff] }
 0x539   : > { %5752 = vmatpush.msra.mxu1 %v4812_v16  ;;  %5806 = vmatpush.msra.mxu0 %v5136_v52  ;;  %v5064_v16 = vld [vmem:[#allocation16 + $0xc08] sm:$0xff] }
 0x53a   : > { %5866 = vmatpush.msra.mxu2 %v5424_v57  ;;  %5932 = vmatpush.msra.mxu3 %v4813_v51  ;;  %v5352_v52 = vld [vmem:[#allocation16 + $0x1508] sm:$0xff]  ;;  %v5214_v57 = vld [vmem:[#allocation16 + $0x10b8] sm:$0xff] }
 0x53b   : > { %7179 = vmatmul.msk.f32.vlgmr.msrb.gmra.mxu0 %vm8367_vm10, %v9142_v30  ;;  %5753 = vmatpush.msra.mxu1 %v4806_v37  ;;  %v5538_v51 = vld [vmem:[#allocation16 + $0x1ad8] sm:$0xff]  ;;  %v4963_v37 = vld [vmem:[#allocation16 + $0x8e0] sm:$0xff] }
 0x53c   : > { %5799 = vmatmul.f32.vlgmr.msrb.gmra.mxu2 %v9169_v44  ;;  %5807 = vmatpush.msra.mxu0 %v5130_v63  ;;  %v5215_v63 = vld [vmem:[#allocation16 + $0x10c0] sm:$0xff] }
 0x53d   : > { %5867 = vmatpush.msra.mxu2 %v5418_v45  ;;  %5933 = vmatpush.msra.mxu3 %v4807_v31  ;;  %v5208_v45 = vld [vmem:[#allocation16 + $0x1088] sm:$0xff] }
 0x53e   : > { %5754 = vmatpush.msra.mxu1 %v4800_v27  ;;  %5808 = vmatpush.msra.mxu0 %v5124_v5  ;;  %v5532_v31 = vld [vmem:[#allocation16 + $0x1aa8] sm:$0xff]  ;;  %v4957_v27 = vld [vmem:[#allocation16 + $0x8b0] sm:$0xff] }
 0x53f   : > { %5868 = vmatpush.msra.mxu2 %v5412_v34  ;;  %5934 = vmatpush.msra.mxu3 %v4801_v18  ;;  %v5209_v5 = vld [vmem:[#allocation16 + $0x1090] sm:$0xff]  ;;  %v5202_v34 = vld [vmem:[#allocation16 + $0x1058] sm:$0xff] }
 0x540   : > { %5755 = vmatpush.msra.mxu1 %v4794_v7  ;;  %5809 = vmatpush.msra.mxu0 %v5118_v13  ;;  %v5526_v18 = vld [vmem:[#allocation16 + $0x1a78] sm:$0xff]  ;;  %v4951_v7 = vld [vmem:[#allocation16 + $0x880] sm:$0xff] }
 0x541   : > { %5869 = vmatpush.msra.mxu2 %v5406_v6  ;;  %5935 = vmatpush.msra.mxu3 %v4795_v25  ;;  %v5203_v13 = vld [vmem:[#allocation16 + $0x1060] sm:$0xff]  ;;  %v5196_v6 = vld [vmem:[#allocation16 + $0x1028] sm:$0xff] }
 0x542   : > { %5756 = vmatpush.msra.mxu1 %v4788_v1  ;;  %5810 = vmatpush.msra.mxu0 %v5112_v10  ;;  %v5520_v25 = vld [vmem:[#allocation16 + $0x1a48] sm:$0xff]  ;;  %v4945_v1 = vld [vmem:[#allocation16 + $0x850] sm:$0xff] }
 0x543   : > { %5870 = vmatpush.msra.mxu2 %v5400_v41  ;;  %5936 = vmatpush.msra.mxu3 %v4789_v24  ;;  %v5197_v10 = vld [vmem:[#allocation16 + $0x1030] sm:$0xff]  ;;  %v5190_v41 = vld [vmem:[#allocation16 + $0xff8] sm:$0xff] }
 0x544   : > { %5757 = vmatpush.msra.mxu1 %v4782_v8  ;;  %5811 = vmatpush.msra.mxu0 %v5106_v22  ;;  %v5514_v24 = vld [vmem:[#allocation16 + $0x1a18] sm:$0xff]  ;;  %v4939_v8 = vld [vmem:[#allocation16 + $0x820] sm:$0xff] }
 0x545   : > { %5871 = vmatpush.msra.mxu2 %v5394_v4  ;;  %5937 = vmatpush.msra.mxu3 %v4783_v11  ;;  %v5191_v22 = vld [vmem:[#allocation16 + $0x1000] sm:$0xff]  ;;  %v5184_v4 = vld [vmem:[#allocation16 + $0xfc8] sm:$0xff] }
 0x546   : > { %5758 = vmatpush.msra.mxu1 %v4776_v46  ;;  %5812 = vmatpush.msra.mxu0 %v5100_v42  ;;  %v5508_v11 = vld [vmem:[#allocation16 + $0x19e8] sm:$0xff]  ;;  %v4933_v46 = vld [vmem:[#allocation16 + $0x7f0] sm:$0xff] }
 0x547   : > { %5872 = vmatpush.msra.mxu2 %v5388_v17  ;;  %5938 = vmatpush.msra.mxu3 %v4777_v39  ;;  %v5185_v42 = vld [vmem:[#allocation16 + $0xfd0] sm:$0xff]  ;;  %v5178_v17 = vld [vmem:[#allocation16 + $0xf98] sm:$0xff] }
 0x548   : > { %7180 = vmatmul.msk.f32.vlgmr.msra.gmra.mxu1 %vm8367_vm10, %v9177_v58  ;;  %7183 = vmatmul.msk.f32.vlgmr.msra.gmra.mxu3 %vm8367_vm10, %v9177_v58  ;;  %v5502_v39 = vld [vmem:[#allocation16 + $0x19b8] sm:$0xff] }
 0x549   : > { %5823 = vmatpush.msrb.mxu1 %v5250_v21  ;;  %6003 = vmatpush.msrb.mxu3 %v5251_v32  ;;  %v4927_v21 = vld [vmem:[#allocation16 + $0x7c0] sm:$0xff] }
 0x54a   : > { %5813 = vmatpush.msra.mxu0 %v5094_v38  ;;  %5873 = vmatpush.msra.mxu2 %v5382_v2  ;;  %v5179_v32 = vld [vmem:[#allocation16 + $0xfa0] sm:$0xff]  ;;  %v5172_v38 = vld [vmem:[#allocation16 + $0xf68] sm:$0xff] }
 0x54b   : > { %5824 = vmatpush.msrb.mxu1 %v5244_v3  ;;  %6004 = vmatpush.msrb.mxu3 %v5245_v15  ;;  %v5496_v2 = vld [vmem:[#allocation16 + $0x1988] sm:$0xff]  ;;  %v4921_v3 = vld [vmem:[#allocation16 + $0x790] sm:$0xff] }
 0x54c   : > { %5814 = vmatpush.msra.mxu0 %v5088_v48  ;;  %5874 = vmatpush.msra.mxu2 %v5376_v61  ;;  %v5173_v15 = vld [vmem:[#allocation16 + $0xf70] sm:$0xff]  ;;  %v5166_v48 = vld [vmem:[#allocation16 + $0xf38] sm:$0xff] }
 0x54d   : > { %5825 = vmatpush.msrb.mxu1 %v5238_v60  ;;  %6005 = vmatpush.msrb.mxu3 %v5239_v26  ;;  %v5490_v61 = vld [vmem:[#allocation16 + $0x1958] sm:$0xff]  ;;  %v4915_v60 = vld [vmem:[#allocation16 + $0x760] sm:$0xff] }
 0x54e   : > { %5815 = vmatpush.msra.mxu0 %v5082_v43  ;;  %5875 = vmatpush.msra.mxu2 %v5370_v40  ;;  %v5167_v26 = vld [vmem:[#allocation16 + $0xf40] sm:$0xff]  ;;  %v5160_v43 = vld [vmem:[#allocation16 + $0xf08] sm:$0xff] }
 0x54f   : > { %5826 = vmatpush.msrb.mxu1 %v5232_v0  ;;  %6006 = vmatpush.msrb.mxu3 %v5233_v62  ;;  %v5484_v40 = vld [vmem:[#allocation16 + $0x1928] sm:$0xff]  ;;  %v4909_v0 = vld [vmem:[#allocation16 + $0x730] sm:$0xff] }
 0x550   : > { %5816 = vmatpush.msra.mxu0 %v5076_v35  ;;  %5876 = vmatpush.msra.mxu2 %v5364_v28  ;;  %v5161_v62 = vld [vmem:[#allocation16 + $0xf10] sm:$0xff]  ;;  %v4771_v35 = vld [vmem:[#allocation16 + $0x2e0] sm:$0xff]  ;;  %v4772_v28 = vld [vmem:[#allocation16 + $0x2e8] sm:$0xff] }
 0x551   : > { %5827 = vmatpush.msrb.mxu1 %v5226_v14  ;;  %6007 = vmatpush.msrb.mxu3 %v5227_v23  ;;  %v5478_v14 = vld [vmem:[#allocation16 + $0x18f8] sm:$0xff]  ;;  %v4903_v23 = vld [vmem:[#allocation16 + $0x700] sm:$0xff] }
 0x552   : > { %5817 = vmatpush.msra.mxu0 %v5070_v55  ;;  %5877 = vmatpush.msra.mxu2 %v5358_v19  ;;  %v4765_v55 = vld [vmem:[#allocation16 + $0x2b0] sm:$0xff]  ;;  %v4766_v19 = vld [vmem:[#allocation16 + $0x2b8] sm:$0xff] }
 0x553   : > { %5828 = vmatpush.msrb.mxu1 %v5220_v59  ;;  %6008 = vmatpush.msrb.mxu3 %v5221_v29  ;;  %v5472_v59 = vld [vmem:[#allocation16 + $0x18c8] sm:$0xff]  ;;  %v4897_v29 = vld [vmem:[#allocation16 + $0x6d0] sm:$0xff] }
 0x554   : > { %5818 = vmatpush.msra.mxu0 %v5064_v16  ;;  %5878 = vmatpush.msra.mxu2 %v5352_v52  ;;  %v4759_v16 = vld [vmem:[#allocation16 + $0x280] sm:$0xff]  ;;  %v4760_v52 = vld [vmem:[#allocation16 + $0x288] sm:$0xff] }
 0x555   : > { %5819 = vmatmul.f32.vlgmr.msra.gmra.mxu0 %v9188_v20  ;;  %5829 = vmatpush.msrb.mxu1 %v5214_v57  ;;  %v5466_v57 = vld [vmem:[#allocation16 + $0x1898] sm:$0xff] }
 0x556   : > { %5879 = vmatmul.f32.vlgmr.msra.gmra.mxu2 %v9191_v36  ;;  %5883 = vmatpush.msrb.mxu0 %v5538_v51  ;;  %v4891_v51 = vld [vmem:[#allocation16 + $0x6a0] sm:$0xff] }
 0x557   : > { %5943 = vmatpush.msrb.mxu2 %v4963_v37  ;;  %6009 = vmatpush.msrb.mxu3 %v5215_v63  ;;  %v4753_v37 = vld [vmem:[#allocation16 + $0x250] sm:$0xff]  ;;  %v4754_v63 = vld [vmem:[#allocation16 + $0x258] sm:$0xff] }
 0x558   : > { %5830 = vmatpush.msrb.mxu1 %v5208_v45  ;;  %5884 = vmatpush.msrb.mxu0 %v5532_v31  ;;  %v5460_v45 = vld [vmem:[#allocation16 + $0x1868] sm:$0xff]  ;;  %v4885_v31 = vld [vmem:[#allocation16 + $0x670] sm:$0xff] }
 0x559   : > { %5944 = vmatpush.msrb.mxu2 %v4957_v27  ;;  %6010 = vmatpush.msrb.mxu3 %v5209_v5  ;;  %v4747_v27 = vld [vmem:[#allocation16 + $0x220] sm:$0xff]  ;;  %v4748_v5 = vld [vmem:[#allocation16 + $0x228] sm:$0xff] }
 0x55a   : > { %5831 = vmatpush.msrb.mxu1 %v5202_v34  ;;  %5885 = vmatpush.msrb.mxu0 %v5526_v18  ;;  %v5454_v34 = vld [vmem:[#allocation16 + $0x1838] sm:$0xff]  ;;  %v4879_v18 = vld [vmem:[#allocation16 + $0x640] sm:$0xff] }
 0x55b   : > { %5945 = vmatpush.msrb.mxu2 %v4951_v7  ;;  %6011 = vmatpush.msrb.mxu3 %v5203_v13  ;;  %v4741_v7 = vld [vmem:[#allocation16 + $0x1f0] sm:$0xff]  ;;  %v4742_v13 = vld [vmem:[#allocation16 + $0x1f8] sm:$0xff] }
 0x55c   : > { %5832 = vmatpush.msrb.mxu1 %v5196_v6  ;;  %5886 = vmatpush.msrb.mxu0 %v5520_v25  ;;  %v5448_v6 = vld [vmem:[#allocation16 + $0x1808] sm:$0xff]  ;;  %v4873_v25 = vld [vmem:[#allocation16 + $0x610] sm:$0xff] }
 0x55d   : > { %5946 = vmatpush.msrb.mxu2 %v4945_v1  ;;  %6012 = vmatpush.msrb.mxu3 %v5197_v10  ;;  %v4735_v1 = vld [vmem:[#allocation16 + $0x1c0] sm:$0xff] }
 0x55e   : > { %5833 = vmatpush.msrb.mxu1 %v5190_v41  ;;  %5887 = vmatpush.msrb.mxu0 %v5514_v24  ;;  %v5059_v10 = vld [vmem:[#allocation16 + $0xbe0] sm:$0xff]  ;;  %v4736_v24 = vld [vmem:[#allocation16 + $0x1c8] sm:$0xff] }
 0x55f   : > { %5947 = vmatpush.msrb.mxu2 %v4939_v8  ;;  %6013 = vmatpush.msrb.mxu3 %v5191_v22  ;;  %v5347_v41 = vld [vmem:[#allocation16 + $0x14e0] sm:$0xff]  ;;  %v4729_v8 = vld [vmem:[#allocation16 + $0x190] sm:$0xff] }
 0x560   : > { %5834 = vmatpush.msrb.mxu1 %v5184_v4  ;;  %5888 = vmatpush.msrb.mxu0 %v5508_v11  ;;  %v5053_v22 = vld [vmem:[#allocation16 + $0xbb0] sm:$0xff]  ;;  %v4730_v11 = vld [vmem:[#allocation16 + $0x198] sm:$0xff] }
 0x561   : > { %5948 = vmatpush.msrb.mxu2 %v4933_v46  ;;  %6014 = vmatpush.msrb.mxu3 %v5185_v42  ;;  %v5341_v4 = vld [vmem:[#allocation16 + $0x14b0] sm:$0xff]  ;;  %v4723_v46 = vld [vmem:[#allocation16 + $0x160] sm:$0xff] }
 0x562   : > { %5835 = vmatpush.msrb.mxu1 %v5178_v17  ;;  %5889 = vmatpush.msrb.mxu0 %v5502_v39  ;;  %v5047_v42 = vld [vmem:[#allocation16 + $0xb80] sm:$0xff]  ;;  %v4724_v39 = vld [vmem:[#allocation16 + $0x168] sm:$0xff] }
 0x563   : > { %5949 = vmatpush.msrb.mxu2 %v4927_v21  ;;  %6015 = vmatpush.msrb.mxu3 %v5179_v32  ;;  %v5335_v17 = vld [vmem:[#allocation16 + $0x1480] sm:$0xff]  ;;  %v4717_v21 = vld [vmem:[#allocation16 + $0x130] sm:$0xff] }
 0x564   : > { %5836 = vmatpush.msrb.mxu1 %v5172_v38  ;;  %5890 = vmatpush.msrb.mxu0 %v5496_v2  ;;  %v5041_v32 = vld [vmem:[#allocation16 + $0xb50] sm:$0xff]  ;;  %v4718_v2 = vld [vmem:[#allocation16 + $0x138] sm:$0xff] }
 0x565   : > { %5950 = vmatpush.msrb.mxu2 %v4921_v3  ;;  %6016 = vmatpush.msrb.mxu3 %v5173_v15  ;;  %v5329_v38 = vld [vmem:[#allocation16 + $0x1450] sm:$0xff]  ;;  %v4711_v3 = vld [vmem:[#allocation16 + $0x100] sm:$0xff] }
 0x566   : > { %5837 = vmatpush.msrb.mxu1 %v5166_v48  ;;  %5891 = vmatpush.msrb.mxu0 %v5490_v61  ;;  %v5035_v15 = vld [vmem:[#allocation16 + $0xb20] sm:$0xff]  ;;  %v4712_v61 = vld [vmem:[#allocation16 + $0x108] sm:$0xff] }
 0x567   : > { %5951 = vmatpush.msrb.mxu2 %v4915_v60  ;;  %6017 = vmatpush.msrb.mxu3 %v5167_v26  ;;  %v5323_v48 = vld [vmem:[#allocation16 + $0x1420] sm:$0xff]  ;;  %v4705_v60 = vld [vmem:[#allocation16 + $0xd0] sm:$0xff] }
 0x568   : > { %5838 = vmatpush.msrb.mxu1 %v5160_v43  ;;  %5892 = vmatpush.msrb.mxu0 %v5484_v40  ;;  %v5029_v26 = vld [vmem:[#allocation16 + $0xaf0] sm:$0xff]  ;;  %v4706_v40 = vld [vmem:[#allocation16 + $0xd8] sm:$0xff] }
 0x569   : > { %5952 = vmatpush.msrb.mxu2 %v4909_v0  ;;  %6018 = vmatpush.msrb.mxu3 %v5161_v62  ;;  %v5317_v43 = vld [vmem:[#allocation16 + $0x13f0] sm:$0xff]  ;;  %v4699_v0 = vld [vmem:[#allocation16 + $0xa0] sm:$0xff] }
 0x56a   : > { %5839 = vmatmul.f32.vlgmr.msrb.gmra.mxu1 %v9226_v33  ;;  %6019 = vmatmul.f32.vlgmr.msrb.gmra.mxu3 %v9226_v33  ;;  %v5023_v62 = vld [vmem:[#allocation16 + $0xac0] sm:$0xff] }
 0x56b   : > { %5903 = vmatpush.msra.mxu1 %v4771_v35  ;;  %6083 = vmatpush.msra.mxu3 %v4772_v28  ;;  %v5311_v35 = vld [vmem:[#allocation16 + $0x13c0] sm:$0xff]  ;;  %v4700_v28 = vld [vmem:[#allocation16 + $0xa8] sm:$0xff] }
 0x56c   : > { %5893 = vmatpush.msrb.mxu0 %v5478_v14  ;;  %5953 = vmatpush.msrb.mxu2 %v4903_v23  ;;  %v4693_v14 = vld [vmem:[#allocation16 + $0x70] sm:$0xff] }
 0x56d   : > { %5904 = vmatpush.msra.mxu1 %v4765_v55  ;;  %6084 = vmatpush.msra.mxu3 %v4766_v19  ;;  %v5017_v23 = vld [vmem:[#allocation16 + $0xa90] sm:$0xff]  ;;  %v4694_v19 = vld [vmem:[#allocation16 + $0x78] sm:$0xff] }
 0x56e   : > { %5894 = vmatpush.msrb.mxu0 %v5472_v59  ;;  %5954 = vmatpush.msrb.mxu2 %v4897_v29  ;;  %v5305_v55 = vld [vmem:[#allocation16 + $0x1390] sm:$0xff]  ;;  %v4687_v59 = vld [vmem:[#allocation16 + $0x40] sm:$0xff] }
 0x56f   : > { %5905 = vmatpush.msra.mxu1 %v4759_v16  ;;  %6085 = vmatpush.msra.mxu3 %v4760_v52  ;;  %v5011_v29 = vld [vmem:[#allocation16 + $0xa60] sm:$0xff]  ;;  %v4688_v52 = vld [vmem:[#allocation16 + $0x48] sm:$0xff] }
 0x570   : > { %5895 = vmatpush.msrb.mxu0 %v5466_v57  ;;  %5955 = vmatpush.msrb.mxu2 %v4891_v51  ;;  %v5299_v16 = vld [vmem:[#allocation16 + $0x1360] sm:$0xff]  ;;  %v4681_v57 = vld [vmem:[#allocation16 + $0x10] sm:$0xff] }
 0x571   : > { %5906 = vmatpush.msra.mxu1 %v4753_v37  ;;  %6086 = vmatpush.msra.mxu3 %v4754_v63  ;;  %v5005_v51 = vld [vmem:[#allocation16 + $0xa30] sm:$0xff]  ;;  %v4682_v63 = vld [vmem:[#allocation16 + $0x18] sm:$0xff] }
 0x572   : > { %5896 = vmatpush.msrb.mxu0 %v5460_v45  ;;  %5956 = vmatpush.msrb.mxu2 %v4885_v31  ;;  %v5293_v37 = vld [vmem:[#allocation16 + $0x1330] sm:$0xff]  ;;  %v5155_v45 = vld [vmem:[#allocation16 + $0xee0] sm:$0xff]  ;;  %v5156_v31 = vld [vmem:[#allocation16 + $0xee8] sm:$0xff] }
 0x573   : > { %5907 = vmatpush.msra.mxu1 %v4747_v27  ;;  %6087 = vmatpush.msra.mxu3 %v4748_v5  ;;  %v4999_v27 = vld [vmem:[#allocation16 + $0xa00] sm:$0xff] }
 0x574   : > { %5897 = vmatpush.msrb.mxu0 %v5454_v34  ;;  %5957 = vmatpush.msrb.mxu2 %v4879_v18  ;;  %v5287_v5 = vld [vmem:[#allocation16 + $0x1300] sm:$0xff]  ;;  %v5149_v34 = vld [vmem:[#allocation16 + $0xeb0] sm:$0xff]  ;;  %v5150_v18 = vld [vmem:[#allocation16 + $0xeb8] sm:$0xff] }
 0x575   : > { %5908 = vmatpush.msra.mxu1 %v4741_v7  ;;  %6088 = vmatpush.msra.mxu3 %v4742_v13  ;;  %v4993_v7 = vld [vmem:[#allocation16 + $0x9d0] sm:$0xff] }
 0x576   : > { %5898 = vmatpush.msrb.mxu0 %v5448_v6  ;;  %5958 = vmatpush.msrb.mxu2 %v4873_v25  ;;  %v5281_v13 = vld [vmem:[#allocation16 + $0x12d0] sm:$0xff]  ;;  %v5143_v6 = vld [vmem:[#allocation16 + $0xe80] sm:$0xff]  ;;  %v5144_v25 = vld [vmem:[#allocation16 + $0xe88] sm:$0xff] }
 0x577   : > { %5899 = vmatmul.f32.vlgmr.msrb.gmra.mxu0 %v9229_v53  ;;  %5909 = vmatpush.msra.mxu1 %v4735_v1  ;;  %v4987_v1 = vld [vmem:[#allocation16 + $0x9a0] sm:$0xff] }
 0x578   : > { %7184 = vmatmul.msk.f32.vlgmr.msrb.gmra.mxu2 %vm8367_vm10, %v9210_v49  ;;  %5963 = vmatpush.msra.mxu0 %v5059_v10  ;;  %v5275_v10 = vld [vmem:[#allocation16 + $0x12a0] sm:$0xff] }
 0x579   : > { %6023 = vmatpush.msra.mxu2 %v5347_v41  ;;  %6089 = vmatpush.msra.mxu3 %v4736_v24  ;;  %v5137_v41 = vld [vmem:[#allocation16 + $0xe50] sm:$0xff]  ;;  %v5138_v24 = vld [vmem:[#allocation16 + $0xe58] sm:$0xff] }
 0x57a   : > { %5910 = vmatpush.msra.mxu1 %v4729_v8  ;;  %5964 = vmatpush.msra.mxu0 %v5053_v22  ;;  %v4981_v8 = vld [vmem:[#allocation16 + $0x970] sm:$0xff] }
 0x57b   : > { %6024 = vmatpush.msra.mxu2 %v5341_v4  ;;  %6090 = vmatpush.msra.mxu3 %v4730_v11  ;;  %v5269_v22 = vld [vmem:[#allocation16 + $0x1270] sm:$0xff]  ;;  %v5131_v4 = vld [vmem:[#allocation16 + $0xe20] sm:$0xff]  ;;  %v5132_v11 = vld [vmem:[#allocation16 + $0xe28] sm:$0xff] }
 0x57c   : > { %5911 = vmatpush.msra.mxu1 %v4723_v46  ;;  %5965 = vmatpush.msra.mxu0 %v5047_v42  ;;  %v4975_v46 = vld [vmem:[#allocation16 + $0x940] sm:$0xff] }
 0x57d   : > { %6025 = vmatpush.msra.mxu2 %v5335_v17  ;;  %6091 = vmatpush.msra.mxu3 %v4724_v39  ;;  %v5263_v42 = vld [vmem:[#allocation16 + $0x1240] sm:$0xff]  ;;  %v5125_v17 = vld [vmem:[#allocation16 + $0xdf0] sm:$0xff]  ;;  %v5126_v39 = vld [vmem:[#allocation16 + $0xdf8] sm:$0xff] }
 0x57e   : > { %5912 = vmatpush.msra.mxu1 %v4717_v21  ;;  %5966 = vmatpush.msra.mxu0 %v5041_v32  ;;  %v4969_v21 = vld [vmem:[#allocation16 + $0x910] sm:$0xff] }
 0x57f   : > { %6026 = vmatpush.msra.mxu2 %v5329_v38  ;;  %6092 = vmatpush.msra.mxu3 %v4718_v2  ;;  %v5257_v32 = vld [vmem:[#allocation16 + $0x1210] sm:$0xff]  ;;  %v5119_v38 = vld [vmem:[#allocation16 + $0xdc0] sm:$0xff] }
 0x580   : > { %5913 = vmatpush.msra.mxu1 %v4711_v3  ;;  %5967 = vmatpush.msra.mxu0 %v5035_v15  ;;  %v5443_v2 = vld [vmem:[#allocation16 + $0x17e0] sm:$0xff]  ;;  %v4868_v3 = vld [vmem:[#allocation16 + $0x5e8] sm:$0xff] }
 0x581   : > { %6027 = vmatpush.msra.mxu2 %v5323_v48  ;;  %6093 = vmatpush.msra.mxu3 %v4712_v61  ;;  %v5120_v15 = vld [vmem:[#allocation16 + $0xdc8] sm:$0xff]  ;;  %v5113_v48 = vld [vmem:[#allocation16 + $0xd90] sm:$0xff] }
 0x582   : > { %5914 = vmatpush.msra.mxu1 %v4705_v60  ;;  %5968 = vmatpush.msra.mxu0 %v5029_v26  ;;  %v5437_v61 = vld [vmem:[#allocation16 + $0x17b0] sm:$0xff]  ;;  %v4862_v60 = vld [vmem:[#allocation16 + $0x5b8] sm:$0xff] }
 0x583   : > { %6028 = vmatpush.msra.mxu2 %v5317_v43  ;;  %6094 = vmatpush.msra.mxu3 %v4706_v40  ;;  %v5114_v26 = vld [vmem:[#allocation16 + $0xd98] sm:$0xff]  ;;  %v5107_v43 = vld [vmem:[#allocation16 + $0xd60] sm:$0xff] }
 0x584   : > { %5915 = vmatpush.msra.mxu1 %v4699_v0  ;;  %5969 = vmatpush.msra.mxu0 %v5023_v62  ;;  %v5431_v40 = vld [vmem:[#allocation16 + $0x1780] sm:$0xff]  ;;  %v4856_v0 = vld [vmem:[#allocation16 + $0x588] sm:$0xff] }
 0x585   : > { %6029 = vmatpush.msra.mxu2 %v5311_v35  ;;  %6095 = vmatpush.msra.mxu3 %v4700_v28  ;;  %v5108_v62 = vld [vmem:[#allocation16 + $0xd68] sm:$0xff]  ;;  %v5101_v35 = vld [vmem:[#allocation16 + $0xd30] sm:$0xff] }
 0x586   : > { %5916 = vmatpush.msra.mxu1 %v4693_v14  ;;  %5970 = vmatpush.msra.mxu0 %v5017_v23  ;;  %v5425_v28 = vld [vmem:[#allocation16 + $0x1750] sm:$0xff]  ;;  %v4850_v14 = vld [vmem:[#allocation16 + $0x558] sm:$0xff] }
 0x587   : > { %6030 = vmatpush.msra.mxu2 %v5305_v55  ;;  %6096 = vmatpush.msra.mxu3 %v4694_v19  ;;  %v5102_v23 = vld [vmem:[#allocation16 + $0xd38] sm:$0xff]  ;;  %v5095_v55 = vld [vmem:[#allocation16 + $0xd00] sm:$0xff] }
 0x588   : > { %5917 = vmatpush.msra.mxu1 %v4687_v59  ;;  %5971 = vmatpush.msra.mxu0 %v5011_v29  ;;  %v5419_v19 = vld [vmem:[#allocation16 + $0x1720] sm:$0xff]  ;;  %v4844_v59 = vld [vmem:[#allocation16 + $0x528] sm:$0xff] }
 0x589   : > { %6031 = vmatpush.msra.mxu2 %v5299_v16  ;;  %6097 = vmatpush.msra.mxu3 %v4688_v52  ;;  %v5096_v29 = vld [vmem:[#allocation16 + $0xd08] sm:$0xff]  ;;  %v5089_v16 = vld [vmem:[#allocation16 + $0xcd0] sm:$0xff] }
 0x58a   : > { %5918 = vmatpush.msra.mxu1 %v4681_v57  ;;  %5972 = vmatpush.msra.mxu0 %v5005_v51  ;;  %v5413_v52 = vld [vmem:[#allocation16 + $0x16f0] sm:$0xff]  ;;  %v4838_v57 = vld [vmem:[#allocation16 + $0x4f8] sm:$0xff] }
 0x58b   : > { %6032 = vmatpush.msra.mxu2 %v5293_v37  ;;  %6098 = vmatpush.msra.mxu3 %v4682_v63  ;;  %v5090_v51 = vld [vmem:[#allocation16 + $0xcd8] sm:$0xff]  ;;  %v5580_v37 = vpop.f32.mrf.mxu0  ;;  %v5083_v63 = vld [vmem:[#allocation16 + $0xca0] sm:$0xff] }
 0x58c   : > { %7182 = vmatmul.msk.f32.vlgmr.msra.gmra.mxu1 %vm8367_vm10, %v9142_v30  ;;  %7185 = vmatmul.msk.f32.vlgmr.msra.gmra.mxu3 %vm8367_vm10, %v9142_v30 }
 0x58d   : > { %5983 = vmatpush.msrb.mxu1 %v5155_v45  ;;  %6163 = vmatpush.msrb.mxu3 %v5156_v31  ;;  %v5407_v45 = vld [vmem:[#allocation16 + $0x16c0] sm:$0xff]  ;;  %v4832_v31 = vld [vmem:[#allocation16 + $0x4c8] sm:$0xff] }
 0x58e   : > { %5973 = vmatpush.msra.mxu0 %v4999_v27  ;;  %6033 = vmatpush.msra.mxu2 %v5287_v5  ;;  %v5084_v27 = vld [vmem:[#allocation16 + $0xca8] sm:$0xff]  ;;  %v5560_v5 = vpop.f32.mrf.mxu2 }
 0x58f   : > { %5984 = vmatpush.msrb.mxu1 %v5149_v34  ;;  %6164 = vmatpush.msrb.mxu3 %v5150_v18  ;;  %v5077_v34 = vld [vmem:[#allocation16 + $0xc70] sm:$0xff] }
 0x590   : > { %5974 = vmatpush.msra.mxu0 %v4993_v7  ;;  %6034 = vmatpush.msra.mxu2 %v5281_v13  ;;  %v5401_v18 = vld [vmem:[#allocation16 + $0x1690] sm:$0xff]  ;;  %v5581_v13 = vadd.f32 %v5580_v37, %v5560_v5 }
 0x591   : > { %5985 = vmatpush.msrb.mxu1 %v5143_v6  ;;  %6165 = vmatpush.msrb.mxu3 %v5144_v25  ;;  %v4826_v6 = vld [vmem:[#allocation16 + $0x498] sm:$0xff] }
 0x592   : > { %5975 = vmatpush.msra.mxu0 %v4987_v1  ;;  %6035 = vmatpush.msra.mxu2 %v5275_v10  ;;  %v5078_v25 = vld [vmem:[#allocation16 + $0xc78] sm:$0xff]  ;;  %v5071_v1 = vld [vmem:[#allocation16 + $0xc40] sm:$0xff] }
 0x593   : > { %5986 = vmatpush.msrb.mxu1 %v5137_v41  ;;  %6166 = vmatpush.msrb.mxu3 %v5138_v24  ;;  %v5395_v10 = vld [vmem:[#allocation16 + $0x1660] sm:$0xff]  ;;  %v4820_v41 = vld [vmem:[#allocation16 + $0x468] sm:$0xff] }
 0x594   : > { %5976 = vmatpush.msra.mxu0 %v4981_v8  ;;  %6036 = vmatpush.msra.mxu2 %v5269_v22  ;;  %v5072_v24 = vld [vmem:[#allocation16 + $0xc48] sm:$0xff]  ;;  %v5065_v22 = vld [vmem:[#allocation16 + $0xc10] sm:$0xff] }
 0x595   : > { %5987 = vmatpush.msrb.mxu1 %v5131_v4  ;;  %6167 = vmatpush.msrb.mxu3 %v5132_v11  ;;  %v5389_v4 = vld [vmem:[#allocation16 + $0x1630] sm:$0xff]  ;;  %v4814_v11 = vld [vmem:[#allocation16 + $0x438] sm:$0xff] }
 0x596   : > { %5977 = vmatpush.msra.mxu0 %v4975_v46  ;;  %6037 = vmatpush.msra.mxu2 %v5263_v42  ;;  %v5066_v46 = vld [vmem:[#allocation16 + $0xc18] sm:$0xff]  ;;  %v5620_v42 = vpop.f32.mrf.mxu3 }
 0x597   : > { %5988 = vmatpush.msrb.mxu1 %v5125_v17  ;;  %6168 = vmatpush.msrb.mxu3 %v5126_v39  ;;  %v5539_v17 = vld [vmem:[#allocation16 + $0x1ae0] sm:$0xff]  ;;  %v5540_v39 = vld [vmem:[#allocation16 + $0x1ae8] sm:$0xff] }
 0x598   : > { %5978 = vmatpush.msra.mxu0 %v4969_v21  ;;  %6038 = vmatpush.msra.mxu2 %v5257_v32  ;;  %v5383_v32 = vld [vmem:[#allocation16 + $0x1600] sm:$0xff] }
 0x599   : > { %5979 = vmatmul.f32.vlgmr.msra.gmra.mxu0 %v9169_v44  ;;  %5989 = vmatpush.msrb.mxu1 %v5119_v38  ;;  %v4808_v38 = vld [vmem:[#allocation16 + $0x408] sm:$0xff] }
 0x59a   : > { %6039 = vmatmul.f32.vlgmr.msra.gmra.mxu2 %v9159_v12  ;;  %6043 = vmatpush.msrb.mxu0 %v5443_v2  ;;  %v5533_v2 = vld [vmem:[#allocation16 + $0x1ab0] sm:$0xff] }
 0x59b   : > { %6103 = vmatpush.msrb.mxu2 %v4868_v3  ;;  %6169 = vmatpush.msrb.mxu3 %v5120_v15  ;;  %v5534_v3 = vld [vmem:[#allocation16 + $0x1ab8] sm:$0xff]  ;;  %v5640_v15 = vpop.f32.mrf.mxu2 }
 0x59c   : > { %5990 = vmatpush.msrb.mxu1 %v5113_v48  ;;  %6044 = vmatpush.msrb.mxu0 %v5437_v61  ;;  %v5377_v48 = vld [vmem:[#allocation16 + $0x15d0] sm:$0xff]  ;;  %v4802_v61 = vld [vmem:[#allocation16 + $0x3d8] sm:$0xff] }
 0x59d   : > { %6104 = vmatpush.msrb.mxu2 %v4862_v60  ;;  %6170 = vmatpush.msrb.mxu3 %v5114_v26  ;;  %v5527_v26 = vld [vmem:[#allocation16 + $0x1a80] sm:$0xff] }
 0x59e   : > { %5991 = vmatpush.msrb.mxu1 %v5107_v43  ;;  %6045 = vmatpush.msrb.mxu0 %v5431_v40  ;;  %v5528_v43 = vld [vmem:[#allocation16 + $0x1a88] sm:$0xff]  ;;  %v5700_v5 = vpop.f32.mrf.mxu3 }
 0x59f   : > { %6105 = vmatpush.msrb.mxu2 %v4856_v0  ;;  %6171 = vmatpush.msrb.mxu3 %v5108_v62  ;;  %v5371_v0 = vld [vmem:[#allocation16 + $0x15a0] sm:$0xff]  ;;  %v4796_v62 = vld [vmem:[#allocation16 + $0x3a8] sm:$0xff] }
 0x5a0   : > { %5992 = vmatpush.msrb.mxu1 %v5101_v35  ;;  %6046 = vmatpush.msrb.mxu0 %v5425_v28  ;;  %v5521_v35 = vld [vmem:[#allocation16 + $0x1a50] sm:$0xff]  ;;  %v5522_v28 = vld [vmem:[#allocation16 + $0x1a58] sm:$0xff] }
 0x5a1   : > { %6106 = vmatpush.msrb.mxu2 %v4850_v14  ;;  %6172 = vmatpush.msrb.mxu3 %v5102_v23  ;;  %v5365_v23 = vld [vmem:[#allocation16 + $0x1570] sm:$0xff] }
 0x5a2   : > { %5993 = vmatpush.msrb.mxu1 %v5095_v55  ;;  %6047 = vmatpush.msrb.mxu0 %v5419_v19  ;;  %v4790_v55 = vld [vmem:[#allocation16 + $0x378] sm:$0xff]  ;;  %v5515_v19 = vld [vmem:[#allocation16 + $0x1a20] sm:$0xff] }
 0x5a3   : > { %6107 = vmatpush.msrb.mxu2 %v4844_v59  ;;  %6173 = vmatpush.msrb.mxu3 %v5096_v29  ;;  %v5600_v7 = vpop.f32.mrf.mxu1  ;;  %v5516_v59 = vld [vmem:[#allocation16 + $0x1a28] sm:$0xff] }
 0x5a4   : > { %5994 = vmatpush.msrb.mxu1 %v5089_v16  ;;  %6048 = vmatpush.msrb.mxu0 %v5413_v52  ;;  %v5601_v8 = vadd.f32 %v5600_v7, %v5581_v13  ;;  %v5359_v16 = vld [vmem:[#allocation16 + $0x1540] sm:$0xff]  ;;  %v4784_v52 = vld [vmem:[#allocation16 + $0x348] sm:$0xff] }
 0x5a5   : > { %6108 = vmatpush.msrb.mxu2 %v4838_v57  ;;  %6174 = vmatpush.msrb.mxu3 %v5090_v51  ;;  %v5509_v57 = vld [vmem:[#allocation16 + $0x19f0] sm:$0xff]  ;;  %v5510_v51 = vld [vmem:[#allocation16 + $0x19f8] sm:$0xff]  ;;  %v5504_v7 = vld [vmem:[#allocation16 + $0x19c8] sm:$0xff] }
 0x5a6   : > { %5995 = vmatpush.msrb.mxu1 %v5083_v63  ;;  %6049 = vmatpush.msrb.mxu0 %v5407_v45  ;;  %v5621_v21 = vadd.f32 %v5620_v42, %v5601_v8  ;;  %v5353_v63 = vld [vmem:[#allocation16 + $0x1510] sm:$0xff]  ;;  %v4778_v45 = vld [vmem:[#allocation16 + $0x318] sm:$0xff]  ;;  %v5491_v8 = vld [vmem:[#allocation16 + $0x1960] sm:$0xff] }
 0x5a7   : > { %6109 = vmatpush.msrb.mxu2 %v4832_v31  ;;  %6175 = vmatpush.msrb.mxu3 %v5084_v27  ;;  %v9261_v31 = vld [vmem:[#allocation17] sm:$0xff] }
 0x5a8   : > { %5996 = vmatpush.msrb.mxu1 %v5077_v34  ;;  %6050 = vmatpush.msrb.mxu0 %v5401_v18  ;;  %v5641_v40 = vadd.f32 %v5640_v15, %v5621_v21  ;;  %v5503_v27 = vld [vmem:[#allocation16 + $0x19c0] sm:$0xff]  ;;  %v4964_v34 = vld [vmem:[#allocation16 + $0x8e8] sm:$0xff]  ;;  %v4946_v21 = vld [vmem:[#allocation16 + $0x858] sm:$0xff] }
 0x5a9   : > { %6110 = vmatpush.msrb.mxu2 %v4826_v6  ;;  %6176 = vmatpush.msrb.mxu3 %v5078_v25  ;;  %v5252_v18 = vld [vmem:[#allocation16 + $0x11e8] sm:$0xff]  ;;  %v6627_v6 = vperm.slane %v9261_v31, 0  ;;  %v5497_v25 = vld [vmem:[#allocation16 + $0x1990] sm:$0xff] }
 0x5aa   : > { %5997 = vmatpush.msrb.mxu1 %v5071_v1  ;;  %6051 = vmatpush.msrb.mxu0 %v5395_v10  ;;  %v4958_v1 = vld [vmem:[#allocation16 + $0x8b8] sm:$0xff] }
 0x5ab   : > { %6111 = vmatpush.msrb.mxu2 %v4820_v41  ;;  %6177 = vmatpush.msrb.mxu3 %v5072_v24  ;;  %v5680_v29 = vpop.f32.mrf.mxu1  ;;  %v5246_v41 = vld [vmem:[#allocation16 + $0x11b8] sm:$0xff]  ;;  %v6639_v42 = vperm.slane %v6627_v6, 0 }
 0x5ac   : > { %5998 = vmatpush.msrb.mxu1 %v5065_v22  ;;  %6052 = vmatpush.msrb.mxu0 %v5389_v4  ;;  %v5498_v24 = vld [vmem:[#allocation16 + $0x1998] sm:$0xff]  ;;  %v4952_v22 = vld [vmem:[#allocation16 + $0x888] sm:$0xff] }
 0x5ad   : > { %6112 = vmatpush.msrb.mxu2 %v4814_v11  ;;  %6178 = vmatpush.msrb.mxu3 %v5066_v46  ;;  %v5240_v4 = vld [vmem:[#allocation16 + $0x1188] sm:$0xff]  ;;  %v5054_v6 = vld [vmem:[#allocation16 + $0xbb8] sm:$0xff] }
 0x5ae   : > { %5999 = vmatmul.f32.vlgmr.msrb.gmra.mxu1 %v9188_v20  ;;  %6179 = vmatmul.f32.vlgmr.msrb.gmra.mxu3 %v9188_v20  ;;  %v5492_v11 = vld [vmem:[#allocation16 + $0x1968] sm:$0xff] }
 0x5af   : > { %6063 = vmatpush.msra.mxu1 %v5539_v17  ;;  %6243 = vmatpush.msra.mxu3 %v5540_v39  ;;  %v5660_v60 = vpop.f32.mrf.mxu0  ;;  %v6651_v17 = vperm.slane %v9261_v31, 1  ;;  %v5485_v39 = vld [vmem:[#allocation16 + $0x1930] sm:$0xff] }
 0x5b0   : > { %6053 = vmatpush.msrb.mxu0 %v5383_v32  ;;  %6113 = vmatpush.msrb.mxu2 %v4808_v38  ;;  %v5661_v14 = vadd.f32 %v5660_v60, %v5641_v40  ;;  %v5234_v32 = vld [vmem:[#allocation16 + $0x1158] sm:$0xff] }
 0x5b1   : > { %6064 = vmatpush.msra.mxu1 %v5533_v2  ;;  %6244 = vmatpush.msra.mxu3 %v5534_v3  ;;  %v5486_v38 = vld [vmem:[#allocation16 + $0x1938] sm:$0xff]  ;;  %v5479_v2 = vld [vmem:[#allocation16 + $0x1900] sm:$0xff]  ;;  %v4940_v3 = vld [vmem:[#allocation16 + $0x828] sm:$0xff]  ;;  %v6663_v60 = vperm.slane %v6651_v17, 1 }
 0x5b2   : > { %6054 = vmatpush.msrb.mxu0 %v5377_v48  ;;  %6114 = vmatpush.msrb.mxu2 %v4802_v61  ;;  %v5681_v37 = vadd.f32 %v5680_v29, %v5661_v14  ;;  %v5228_v48 = vld [vmem:[#allocation16 + $0x1128] sm:$0xff]  ;;  %v5222_v40 = vld [vmem:[#allocation16 + $0x10f8] sm:$0xff] }
 0x5b3   : > { %6065 = vmatpush.msra.mxu1 %v5527_v26  ;;  %6245 = vmatpush.msra.mxu3 %v5528_v43  ;;  %v5480_v61 = vld [vmem:[#allocation16 + $0x1908] sm:$0xff]  ;;  %v5473_v26 = vld [vmem:[#allocation16 + $0x18d0] sm:$0xff]  ;;  %v4934_v43 = vld [vmem:[#allocation16 + $0x7f8] sm:$0xff] }
 0x5b4   : > { %6055 = vmatpush.msrb.mxu0 %v5371_v0  ;;  %6115 = vmatpush.msrb.mxu2 %v4796_v62  ;;  %v5701_v13 = vadd.f32 %v5700_v5, %v5681_v37  ;;  %v5474_v0 = vld [vmem:[#allocation16 + $0x18d8] sm:$0xff]  ;;  %v5467_v62 = vld [vmem:[#allocation16 + $0x18a0] sm:$0xff]  ;;  %v5468_v14 = vld [vmem:[#allocation16 + $0x18a8] sm:$0xff] }
 0x5b5   : > { %6066 = vmatpush.msra.mxu1 %v5521_v35  ;;  %6246 = vmatpush.msra.mxu3 %v5522_v28  ;;  %v5720_v10 = vpop.f32.mrf.mxu2  ;;  %v4928_v35 = vld [vmem:[#allocation16 + $0x7c8] sm:$0xff]  ;;  %v5462_v29 = vld [vmem:[#allocation16 + $0x1878] sm:$0xff] }
 0x5b6   : > { %6056 = vmatpush.msrb.mxu0 %v5365_v23  ;;  %6116 = vmatpush.msrb.mxu2 %v4790_v55  ;;  %v5721_v46 = vadd.f32 %v5720_v10, %v5701_v13  ;;  %v5216_v28 = vld [vmem:[#allocation16 + $0x10c8] sm:$0xff]  ;;  %v5461_v55 = vld [vmem:[#allocation16 + $0x1870] sm:$0xff]  ;;  %v5450_v5 = vld [vmem:[#allocation16 + $0x1818] sm:$0xff] }
 0x5b7   : > { %6067 = vmatpush.msra.mxu1 %v5515_v19  ;;  %6247 = vmatpush.msra.mxu3 %v5516_v59  ;;  %v4922_v19 = vld [vmem:[#allocation16 + $0x798] sm:$0xff]  ;;  %v5192_v13 = vld [vmem:[#allocation16 + $0x1008] sm:$0xff] }
 0x5b8   : > { %6057 = vmatpush.msrb.mxu0 %v5359_v16  ;;  %6117 = vmatpush.msrb.mxu2 %v4784_v52  ;;  %v6645_v15 = vmul.f32 %v6639_v42, %v5721_v46  ;;  %v5210_v59 = vld [vmem:[#allocation16 + $0x1098] sm:$0xff]  ;;  %v5455_v16 = vld [vmem:[#allocation16 + $0x1840] sm:$0xff]  ;;  %v4916_v52 = vld [vmem:[#allocation16 + $0x768] sm:$0xff] }
 0x5b9   : > { %6068 = vmatpush.msra.mxu1 %v5509_v57  ;;  %6248 = vmatpush.msra.mxu3 %v5510_v51  ;;  %v5204_v57 = vld [vmem:[#allocation16 + $0x1068] sm:$0xff]  ;;  %v5186_v10 = vld [vmem:[#allocation16 + $0xfd8] sm:$0xff] }
 0x5ba   : > { %6058 = vmatpush.msrb.mxu0 %v5353_v63  ;;  %6118 = vmatpush.msrb.mxu2 %v4778_v45  ;;  %v6669_v23 = vadd.f32 %v6663_v60, %v6645_v15  ;;  %v5456_v51 = vld [vmem:[#allocation16 + $0x1848] sm:$0xff]  ;;  %v5449_v63 = vld [vmem:[#allocation16 + $0x1810] sm:$0xff]  ;;  %v4910_v45 = vld [vmem:[#allocation16 + $0x738] sm:$0xff] }
 0x5bb   : > { %6059 = vmatmul.f32.vlgmr.msrb.gmra.mxu0 %v9191_v36  ;;  %6069 = vmatpush.msra.mxu1 %v5503_v27  ;;  %v5198_v27 = vld [vmem:[#allocation16 + $0x1038] sm:$0xff]  ;;  %v5036_v17 = vld [vmem:[#allocation16 + $0xb28] sm:$0xff]  ;;  %v4773_v60 = vld [vmem:[#allocation16 + $0x2f0] sm:$0xff] }
 0x5bc   : > { %7186 = vmatmul.msk.f32.vlgmr.msrb.gmra.mxu2 %vm8367_vm10, %v9177_v58  ;;  %6123 = vmatpush.msra.mxu0 %v4964_v34  ;;  %v6675_v37 = vmax.f32 %v6669_v23, 0.0  ;;  %v5060_v34 = vld [vmem:[#allocation16 + $0xbe8] sm:$0xff]  ;;  %v4886_v46 = vld [vmem:[#allocation16 + $0x678] sm:$0xff]  ;;  %v5013_v23 = vld [vmem:[#allocation16 + $0xa70] sm:$0xff] }
 0x5bd   : > { %6183 = vmatpush.msra.mxu2 %v5252_v18  ;;  %6249 = vmatpush.msra.mxu3 %v5504_v7  ;;  %v5061_v18 = vld [vmem:[#allocation16 + $0xbf0] sm:$0xff]  ;;  %v4904_v7 = vld [vmem:[#allocation16 + $0x708] sm:$0xff]  ;;  %v5174_v42 = vld [vmem:[#allocation16 + $0xf78] sm:$0xff] }
 0x5be   : > { %6070 = vmatpush.msra.mxu1 %v5497_v25  ;;  %6124 = vmatpush.msra.mxu0 %v4958_v1  ;;  %v5055_v25 = vld [vmem:[#allocation16 + $0xbc0] sm:$0xff]  ;;  %v4898_v1 = vld [vmem:[#allocation16 + $0x6d8] sm:$0xff] }
 0x5bf   : > { %6184 = vmatpush.msra.mxu2 %v5246_v41  ;;  %6250 = vmatpush.msra.mxu3 %v5498_v24  ;;  %v5048_v41 = vld [vmem:[#allocation16 + $0xb88] sm:$0xff]  ;;  %v5049_v24 = vld [vmem:[#allocation16 + $0xb90] sm:$0xff]  ;;  %v5162_v15 = vld [vmem:[#allocation16 + $0xf18] sm:$0xff] }
 0x5c0   : > { %6071 = vmatpush.msra.mxu1 %v5491_v8  ;;  %6125 = vmatpush.msra.mxu0 %v4952_v22  ;;  %v4892_v8 = vld [vmem:[#allocation16 + $0x6a8] sm:$0xff] }
 0x5c1   : > { %6185 = vmatpush.msra.mxu2 %v5240_v4  ;;  %6251 = vmatpush.msra.mxu3 %v5492_v11  ;;  %v5180_v22 = vld [vmem:[#allocation16 + $0xfa8] sm:$0xff]  ;;  %v5042_v4 = vld [vmem:[#allocation16 + $0xb58] sm:$0xff]  ;;  %v5043_v11 = vld [vmem:[#allocation16 + $0xb60] sm:$0xff] }
 0x5c2   : > { %6072 = vmatpush.msra.mxu1 %v5485_v39  ;;  %6126 = vmatpush.msra.mxu0 %v4946_v21  ;;  %v5037_v39 = vld [vmem:[#allocation16 + $0xb30] sm:$0xff]  ;;  %v4880_v21 = vld [vmem:[#allocation16 + $0x648] sm:$0xff] }
 0x5c3   : > { %6186 = vmatpush.msra.mxu2 %v5234_v32  ;;  %6252 = vmatpush.msra.mxu3 %v5486_v38  ;;  %v5168_v32 = vld [vmem:[#allocation16 + $0xf48] sm:$0xff]  ;;  %v5030_v38 = vld [vmem:[#allocation16 + $0xaf8] sm:$0xff] }
 0x5c4   : > { %6073 = vmatpush.msra.mxu1 %v5479_v2  ;;  %6127 = vmatpush.msra.mxu0 %v4940_v3  ;;  %v5031_v2 = vld [vmem:[#allocation16 + $0xb00] sm:$0xff]  ;;  %v4874_v3 = vld [vmem:[#allocation16 + $0x618] sm:$0xff] }
 0x5c5   : > { %6187 = vmatpush.msra.mxu2 %v5228_v48  ;;  %6253 = vmatpush.msra.mxu3 %v5480_v61  ;;  %v5024_v48 = vld [vmem:[#allocation16 + $0xac8] sm:$0xff] }
 0x5c6   : > { %6074 = vmatpush.msra.mxu1 %v5473_v26  ;;  %6128 = vmatpush.msra.mxu0 %v4934_v43  ;;  %v5348_v61 = vld [vmem:[#allocation16 + $0x14e8] sm:$0xff]  ;;  %v5025_v26 = vld [vmem:[#allocation16 + $0xad0] sm:$0xff]  ;;  %v5018_v43 = vld [vmem:[#allocation16 + $0xa98] sm:$0xff] }
 0x5c7   : > { %6188 = vmatpush.msra.mxu2 %v5222_v40  ;;  %6254 = vmatpush.msra.mxu3 %v5474_v0  ;;  %v5342_v40 = vld [vmem:[#allocation16 + $0x14b8] sm:$0xff]  ;;  %v4767_v0 = vld [vmem:[#allocation16 + $0x2c0] sm:$0xff] }
 0x5c8   : > { %6075 = vmatpush.msra.mxu1 %v5467_v62  ;;  %6129 = vmatpush.msra.mxu0 %v4928_v35  ;;  %v5019_v62 = vld [vmem:[#allocation16 + $0xaa0] sm:$0xff]  ;;  %v5012_v35 = vld [vmem:[#allocation16 + $0xa68] sm:$0xff] }
 0x5c9   : > { %6189 = vmatpush.msra.mxu2 %v5216_v28  ;;  %6255 = vmatpush.msra.mxu3 %v5468_v14  ;;  %v5336_v28 = vld [vmem:[#allocation16 + $0x1488] sm:$0xff]  ;;  %v4761_v14 = vld [vmem:[#allocation16 + $0x290] sm:$0xff] }
 0x5ca   : > { %6076 = vmatpush.msra.mxu1 %v5461_v55  ;;  %6130 = vmatpush.msra.mxu0 %v4922_v19  ;;  %v5006_v55 = vld [vmem:[#allocation16 + $0xa38] sm:$0xff] }
 0x5cb   : > { %6190 = vmatpush.msra.mxu2 %v5210_v59  ;;  %6256 = vmatpush.msra.mxu3 %v5462_v29  ;;  %v5330_v19 = vld [vmem:[#allocation16 + $0x1458] sm:$0xff]  ;;  %v4755_v59 = vld [vmem:[#allocation16 + $0x260] sm:$0xff]  ;;  %v5760_v29 = vpop.f32.mrf.mxu1 }
 0x5cc   : > { %6077 = vmatpush.msra.mxu1 %v5455_v16  ;;  %6131 = vmatpush.msra.mxu0 %v4916_v52  ;;  %v5007_v16 = vld [vmem:[#allocation16 + $0xa40] sm:$0xff]  ;;  %v5000_v52 = vld [vmem:[#allocation16 + $0xa08] sm:$0xff] }
 0x5cd   : > { %6191 = vmatpush.msra.mxu2 %v5204_v57  ;;  %6257 = vmatpush.msra.mxu3 %v5456_v51  ;;  %v5324_v57 = vld [vmem:[#allocation16 + $0x1428] sm:$0xff]  ;;  %v4749_v51 = vld [vmem:[#allocation16 + $0x230] sm:$0xff] }
 0x5ce   : > { %6849 = vrot.lane.b32.xlu1 %v6675_v37, %s7885_s16  ;;  %6078 = vmatpush.msra.mxu1 %v5449_v63  ;;  %v5740_v37 = vpop.f32.mrf.mxu0  ;;  %v5001_v63 = vld [vmem:[#allocation16 + $0xa10] sm:$0xff] }
 0x5cf   : > { %6132 = vmatpush.msra.mxu0 %v4910_v45  ;;  %6192 = vmatpush.msra.mxu2 %v5198_v27  ;;  %v4994_v45 = vld [vmem:[#allocation16 + $0x9d8] sm:$0xff]  ;;  %v5761_v27 = vadd.f32 %v5760_v29, %v5740_v37  ;;  %v4701_v29 = vld [vmem:[#allocation16 + $0xb0] sm:$0xff]  ;;  %v5420_v37 = vld [vmem:[#allocation16 + $0x1728] sm:$0xff] }
 0x5d0   : > { %6258 = vmatpush.msra.mxu3 %v5450_v5  ;;  %6079 = vmatmul.f32.vlgmr.msra.gmra.mxu1 %v9229_v53  ;;  %v5318_v5 = vld [vmem:[#allocation16 + $0x13f8] sm:$0xff] }
 0x5d1   : > { %6143 = vmatpush.msrb.mxu1 %v5060_v34  ;;  %6259 = vmatmul.f32.vlgmr.msra.gmra.mxu3 %v9229_v53  ;;  %v4743_v34 = vld [vmem:[#allocation16 + $0x200] sm:$0xff] }
 0x5d2   : > { %6323 = vmatpush.msrb.mxu3 %v5061_v18  ;;  %6133 = vmatpush.msra.mxu0 %v4904_v7  ;;  %v4995_v18 = vld [vmem:[#allocation16 + $0x9e0] sm:$0xff]  ;;  %v4988_v7 = vld [vmem:[#allocation16 + $0x9a8] sm:$0xff] }
 0x5d3   : > { %6193 = vmatpush.msra.mxu2 %v5192_v13  ;;  %6144 = vmatpush.msrb.mxu1 %v5054_v6  ;;  %v5312_v13 = vld [vmem:[#allocation16 + $0x13c8] sm:$0xff]  ;;  %v4737_v6 = vld [vmem:[#allocation16 + $0x1d0] sm:$0xff] }
 0x5d4   : > { %6324 = vmatpush.msrb.mxu3 %v5055_v25  ;;  %6134 = vmatpush.msra.mxu0 %v4898_v1  ;;  %v5780_v25 = vpop.f32.mrf.mxu3  ;;  %v4989_v1 = vld [vmem:[#allocation16 + $0x9b0] sm:$0xff] }
 0x5d5   : > { %6194 = vmatpush.msra.mxu2 %v5186_v10  ;;  %6145 = vmatpush.msrb.mxu1 %v5048_v41  ;;  %v4982_v10 = vld [vmem:[#allocation16 + $0x978] sm:$0xff]  ;;  %v5781_v41 = vadd.f32 %v5780_v25, %v5761_v27  ;;  %v5421_v27 = vld [vmem:[#allocation16 + $0x1730] sm:$0xff] }
 0x5d6   : > { %6325 = vmatpush.msrb.mxu3 %v5049_v24  ;;  %6135 = vmatpush.msra.mxu0 %v4892_v8  ;;  %v5306_v24 = vld [vmem:[#allocation16 + $0x1398] sm:$0xff]  ;;  %v4731_v8 = vld [vmem:[#allocation16 + $0x1a0] sm:$0xff] }
 0x5d7   : > { %6195 = vmatpush.msra.mxu2 %v5180_v22  ;;  %6146 = vmatpush.msrb.mxu1 %v5042_v4  ;;  %v4983_v22 = vld [vmem:[#allocation16 + $0x980] sm:$0xff]  ;;  %v4976_v4 = vld [vmem:[#allocation16 + $0x948] sm:$0xff]  ;;  %v5258_v25 = vld [vmem:[#allocation16 + $0x1218] sm:$0xff] }
 0x5d8   : > { %6326 = vmatpush.msrb.mxu3 %v5043_v11  ;;  %6136 = vmatpush.msra.mxu0 %v4886_v46  ;;  %v5300_v11 = vld [vmem:[#allocation16 + $0x1368] sm:$0xff]  ;;  %v4725_v46 = vld [vmem:[#allocation16 + $0x170] sm:$0xff] }
 0x5d9   : > { %6196 = vmatpush.msra.mxu2 %v5174_v42  ;;  %6147 = vmatpush.msrb.mxu1 %v5036_v17  ;;  %v5800_v42 = vpop.f32.mrf.mxu2  ;;  %v5820_v17 = vpop.f32.mrf.mxu0 }
 0x5da   : > { %6327 = vmatpush.msrb.mxu3 %v5037_v39  ;;  %6137 = vmatpush.msra.mxu0 %v4880_v21  ;;  %v4977_v39 = vld [vmem:[#allocation16 + $0x950] sm:$0xff]  ;;  %v4970_v21 = vld [vmem:[#allocation16 + $0x918] sm:$0xff] }
 0x5db   : > { %6197 = vmatpush.msra.mxu2 %v5168_v32  ;;  %6148 = vmatpush.msrb.mxu1 %v5030_v38  ;;  %v5801_v32 = vadd.f32 %v5800_v42, %v5781_v41  ;;  %v5294_v38 = vld [vmem:[#allocation16 + $0x1338] sm:$0xff] }
 0x5dc   : > { %6328 = vmatpush.msrb.mxu3 %v5031_v2  ;;  %6138 = vmatpush.msra.mxu0 %v4874_v3  ;;  %v4719_v2 = vld [vmem:[#allocation16 + $0x140] sm:$0xff] }
 0x5dd   : > { %6198 = vmatpush.msra.mxu2 %v5162_v15  ;;  %7187 = vmatmul.msk.f32.vlgmr.msra.gmra.mxu0 %vm8367_vm10, %v9210_v49  ;;  %v4971_v3 = vld [vmem:[#allocation16 + $0x920] sm:$0xff] }
 0x5de   : > { %6149 = vmatpush.msrb.mxu1 %v5024_v48  ;;  %6199 = vmatmul.f32.vlgmr.msra.gmra.mxu2 %v9226_v33  ;;  %v5821_v48 = vadd.f32 %v5820_v17, %v5801_v32  ;;  %v4863_v17 = vld [vmem:[#allocation16 + $0x5c0] sm:$0xff]  ;;  %v5396_v32 = vld [vmem:[#allocation16 + $0x1668] sm:$0xff] }
 0x5df   : > { %6203 = vmatpush.msrb.mxu0 %v5348_v61  ;;  %6263 = vmatpush.msrb.mxu2 %v4773_v60  ;;  %v5444_v61 = vld [vmem:[#allocation16 + $0x17e8] sm:$0xff]  ;;  %v5445_v60 = vld [vmem:[#allocation16 + $0x17f0] sm:$0xff] }
 0x5e0   : > { %6329 = vmatpush.msrb.mxu3 %v5025_v26  ;;  %6150 = vmatpush.msrb.mxu1 %v5018_v43  ;;  %v5288_v26 = vld [vmem:[#allocation16 + $0x1308] sm:$0xff] }
 0x5e1   : > { %6204 = vmatpush.msrb.mxu0 %v5342_v40  ;;  %6264 = vmatpush.msrb.mxu2 %v4767_v0  ;;  %v4713_v40 = vld [vmem:[#allocation16 + $0x110] sm:$0xff]  ;;  %v5438_v0 = vld [vmem:[#allocation16 + $0x17b8] sm:$0xff] }
 0x5e2   : > { %6330 = vmatpush.msrb.mxu3 %v5019_v62  ;;  %6151 = vmatpush.msrb.mxu1 %v5012_v35  ;;  %v5439_v62 = vld [vmem:[#allocation16 + $0x17c0] sm:$0xff]  ;;  %v5282_v35 = vld [vmem:[#allocation16 + $0x12d8] sm:$0xff] }
 0x5e3   : > { %6205 = vmatpush.msrb.mxu0 %v5336_v28  ;;  %6265 = vmatpush.msrb.mxu2 %v4761_v14  ;;  %v4707_v28 = vld [vmem:[#allocation16 + $0xe0] sm:$0xff]  ;;  %v5432_v14 = vld [vmem:[#allocation16 + $0x1788] sm:$0xff] }
 0x5e4   : > { %6331 = vmatpush.msrb.mxu3 %v5013_v23  ;;  %6152 = vmatpush.msrb.mxu1 %v5006_v55  ;;  %v5860_v23 = vpop.f32.mrf.mxu3  ;;  %v5433_v55 = vld [vmem:[#allocation16 + $0x1790] sm:$0xff] }
 0x5e5   : > { %6206 = vmatpush.msrb.mxu0 %v5330_v19  ;;  %6266 = vmatpush.msrb.mxu2 %v4755_v59  ;;  %v5276_v19 = vld [vmem:[#allocation16 + $0x12a8] sm:$0xff] }
 0x5e6   : > { %6332 = vmatpush.msrb.mxu3 %v5007_v16  ;;  %6153 = vmatpush.msrb.mxu1 %v5000_v52  ;;  %v5426_v16 = vld [vmem:[#allocation16 + $0x1758] sm:$0xff]  ;;  %v5427_v52 = vld [vmem:[#allocation16 + $0x1760] sm:$0xff] }
 0x5e7   : > { %6207 = vmatpush.msrb.mxu0 %v5324_v57  ;;  %6267 = vmatpush.msrb.mxu2 %v4749_v51  ;;  %v5840_v15 = vpop.f32.mrf.mxu1  ;;  %v5270_v57 = vld [vmem:[#allocation16 + $0x1278] sm:$0xff]  ;;  %v4695_v51 = vld [vmem:[#allocation16 + $0x80] sm:$0xff] }
 0x5e8   : > { %6333 = vmatpush.msrb.mxu3 %v5001_v63  ;;  %6154 = vmatpush.msrb.mxu1 %v4994_v45  ;;  %v5841_v43 = vadd.f32 %v5840_v15, %v5821_v48  ;;  %v6628_v63 = vperm.slane %v9261_v31, 2  ;;  %v5880_v45 = vpop.f32.mrf.mxu2  ;;  %v5390_v15 = vld [vmem:[#allocation16 + $0x1638] sm:$0xff]  ;;  %v4851_v48 = vld [vmem:[#allocation16 + $0x560] sm:$0xff] }
 0x5e9   : > { %6208 = vmatpush.msrb.mxu0 %v5318_v5  ;;  %6268 = vmatpush.msrb.mxu2 %v4743_v34  ;;  %v5264_v5 = vld [vmem:[#allocation16 + $0x1248] sm:$0xff] }
 0x5ea   : > { %6334 = vmatpush.msrb.mxu3 %v4995_v18  ;;  %6155 = vmatpush.msrb.mxu1 %v4988_v7  ;;  %v5861_v59 = vadd.f32 %v5860_v23, %v5841_v43  ;;  %v4689_v18 = vld [vmem:[#allocation16 + $0x50] sm:$0xff]  ;;  %v5414_v7 = vld [vmem:[#allocation16 + $0x16f8] sm:$0xff]  ;;  %v6640_v41 = vperm.slane %v6628_v63, 0  ;;  %v5384_v43 = vld [vmem:[#allocation16 + $0x1608] sm:$0xff] }
 0x5eb   : > { %6209 = vmatpush.msrb.mxu0 %v5312_v13  ;;  %6269 = vmatpush.msrb.mxu2 %v4737_v6  ;;  %v5415_v6 = vld [vmem:[#allocation16 + $0x1700] sm:$0xff]  ;;  %v5360_v63 = vld [vmem:[#allocation16 + $0x1548] sm:$0xff] }
 0x5ec   : > { %6335 = vmatpush.msrb.mxu3 %v4989_v1  ;;  %6156 = vmatpush.msrb.mxu1 %v4982_v10  ;;  %v5881_v13 = vadd.f32 %v5880_v45, %v5861_v59  ;;  %v4683_v1 = vld [vmem:[#allocation16 + $0x20] sm:$0xff]  ;;  %v4833_v59 = vld [vmem:[#allocation16 + $0x4d0] sm:$0xff] }
 0x5ed   : > { %6210 = vmatpush.msrb.mxu0 %v5306_v24  ;;  %6270 = vmatpush.msrb.mxu2 %v4731_v8  ;;  %v6652_v24 = vperm.slane %v9261_v31, 3  ;;  %v5408_v8 = vld [vmem:[#allocation16 + $0x16c8] sm:$0xff]  ;;  %v5151_v31 = vld [vmem:[#allocation16 + $0xec0] sm:$0xff]  ;;  %v4821_v45 = vld [vmem:[#allocation16 + $0x470] sm:$0xff] }
 0x5ee   : > { %6336 = vmatpush.msrb.mxu3 %v4983_v22  ;;  %6157 = vmatpush.msrb.mxu1 %v4976_v4  ;;  %v4869_v22 = vld [vmem:[#allocation16 + $0x5f0] sm:$0xff] }
 0x5ef   : > { %6211 = vmatpush.msrb.mxu0 %v5300_v11  ;;  %6271 = vmatpush.msrb.mxu2 %v4725_v46  ;;  %v5157_v4 = vld [vmem:[#allocation16 + $0xef0] sm:$0xff]  ;;  %v5402_v46 = vld [vmem:[#allocation16 + $0x1698] sm:$0xff] }
 0x5f0   : > { %6337 = vmatpush.msrb.mxu3 %v4977_v39  ;;  %6158 = vmatpush.msrb.mxu1 %v4970_v21  ;;  %v5409_v11 = vld [vmem:[#allocation16 + $0x16d0] sm:$0xff]  ;;  %v6664_v39 = vperm.slane %v6652_v24, 1  ;;  %v5403_v21 = vld [vmem:[#allocation16 + $0x16a0] sm:$0xff]  ;;  %v4960_v24 = vld [vmem:[#allocation16 + $0x8c8] sm:$0xff] }
 0x5f1   : > { %6212 = vmatpush.msrb.mxu0 %v5294_v38  ;;  %6272 = vmatpush.msrb.mxu2 %v4719_v2  ;;  %v4857_v38 = vld [vmem:[#allocation16 + $0x590] sm:$0xff] }
 0x5f2   : > { %6338 = vmatpush.msrb.mxu3 %v4971_v3  ;;  %6159 = vmatmul.f32.vlgmr.msrb.gmra.mxu1 %v9169_v44  ;;  %v5145_v2 = vld [vmem:[#allocation16 + $0xe90] sm:$0xff] }
 0x5f3   : > { %6223 = vmatpush.msra.mxu1 %v5444_v61  ;;  %6339 = vmatmul.f32.vlgmr.msrb.gmra.mxu3 %v9169_v44  ;;  %v5397_v3 = vld [vmem:[#allocation16 + $0x1670] sm:$0xff]  ;;  %v5139_v61 = vld [vmem:[#allocation16 + $0xe60] sm:$0xff] }
 0x5f4   : > { %6403 = vmatpush.msra.mxu3 %v5445_v60  ;;  %6213 = vmatpush.msrb.mxu0 %v5288_v26  ;;  %v5900_v34 = vpop.f32.mrf.mxu0  ;;  %v5391_v26 = vld [vmem:[#allocation16 + $0x1640] sm:$0xff] }
 0x5f5   : > { %6273 = vmatpush.msrb.mxu2 %v4713_v40  ;;  %6224 = vmatpush.msra.mxu1 %v5438_v0  ;;  %v5901_v10 = vadd.f32 %v5900_v34, %v5881_v13  ;;  %v4845_v40 = vld [vmem:[#allocation16 + $0x530] sm:$0xff]  ;;  %v5354_v34 = vld [vmem:[#allocation16 + $0x1518] sm:$0xff]  ;;  %v5355_v13 = vld [vmem:[#allocation16 + $0x1520] sm:$0xff] }
 0x5f6   : > { %6404 = vmatpush.msra.mxu3 %v5439_v62  ;;  %6214 = vmatpush.msrb.mxu0 %v5282_v35  ;;  %v5133_v0 = vld [vmem:[#allocation16 + $0xe30] sm:$0xff]  ;;  %v5378_v35 = vld [vmem:[#allocation16 + $0x15d8] sm:$0xff] }
 0x5f7   : > { %6274 = vmatpush.msrb.mxu2 %v4707_v28  ;;  %6225 = vmatpush.msra.mxu1 %v5432_v14  ;;  %v6646_v42 = vmul.f32 %v6640_v41, %v5901_v10  ;;  %v5385_v62 = vld [vmem:[#allocation16 + $0x1610] sm:$0xff]  ;;  %v4839_v28 = vld [vmem:[#allocation16 + $0x500] sm:$0xff] }
 0x5f8   : > { %6405 = vmatpush.msra.mxu3 %v5433_v55  ;;  %6215 = vmatpush.msrb.mxu0 %v5276_v19  ;;  %v5127_v14 = vld [vmem:[#allocation16 + $0xe00] sm:$0xff]  ;;  %v5372_v19 = vld [vmem:[#allocation16 + $0x15a8] sm:$0xff]  ;;  %v5097_v10 = vld [vmem:[#allocation16 + $0xd10] sm:$0xff] }
 0x5f9   : > { %6275 = vmatpush.msrb.mxu2 %v4701_v29  ;;  %6226 = vmatpush.msra.mxu1 %v5426_v16  ;;  %v6670_v60 = vadd.f32 %v6664_v39, %v6646_v42  ;;  %v5379_v55 = vld [vmem:[#allocation16 + $0x15e0] sm:$0xff]  ;;  %v5121_v29 = vld [vmem:[#allocation16 + $0xdd0] sm:$0xff] }
 0x5fa   : > { %6406 = vmatpush.msra.mxu3 %v5427_v52  ;;  %6216 = vmatpush.msrb.mxu0 %v5270_v57  ;;  %v5373_v16 = vld [vmem:[#allocation16 + $0x15b0] sm:$0xff]  ;;  %v5366_v52 = vld [vmem:[#allocation16 + $0x1578] sm:$0xff]  ;;  %v4827_v57 = vld [vmem:[#allocation16 + $0x4a0] sm:$0xff] }
 0x5fb   : > { %6276 = vmatpush.msrb.mxu2 %v4695_v51  ;;  %6227 = vmatpush.msra.mxu1 %v5420_v37  ;;  %v6676_v23 = vmax.f32 %v6670_v60, 0.0  ;;  %v5115_v51 = vld [vmem:[#allocation16 + $0xda0] sm:$0xff]  ;;  %v5085_v42 = vld [vmem:[#allocation16 + $0xcb0] sm:$0xff] }
 0x5fc   : > { %6407 = vmatpush.msra.mxu3 %v5421_v27  ;;  %6217 = vmatpush.msrb.mxu0 %v5264_v5  ;;  %v5367_v37 = vld [vmem:[#allocation16 + $0x1580] sm:$0xff]  ;;  %v5109_v27 = vld [vmem:[#allocation16 + $0xd70] sm:$0xff] }
 0x5fd   : > { %6277 = vmatpush.msrb.mxu2 %v4689_v18  ;;  %6228 = vmatpush.msra.mxu1 %v5414_v7  ;;  %v5361_v5 = vld [vmem:[#allocation16 + $0x1550] sm:$0xff]  ;;  %v4815_v18 = vld [vmem:[#allocation16 + $0x440] sm:$0xff] }
 0x5fe   : > { %6408 = vmatpush.msra.mxu3 %v5415_v6  ;;  %6218 = vmatpush.msrb.mxu0 %v5258_v25  ;;  %v5103_v7 = vld [vmem:[#allocation16 + $0xd40] sm:$0xff]  ;;  %v4965_v6 = vld [vmem:[#allocation16 + $0x8f0] sm:$0xff]  ;;  %v4966_v25 = vld [vmem:[#allocation16 + $0x8f8] sm:$0xff] }
 0x5ff   : > { %6278 = vmatpush.msrb.mxu2 %v4683_v1  ;;  %6219 = vmatmul.f32.vlgmr.msrb.gmra.mxu0 %v9159_v12  ;;  %v4809_v1 = vld [vmem:[#allocation16 + $0x410] sm:$0xff]  ;;  %v4959_v41 = vld [vmem:[#allocation16 + $0x8c0] sm:$0xff] }
 0x600   : > { %6229 = vmatpush.msra.mxu1 %v5408_v8  ;;  %7188 = vmatmul.msk.f32.vlgmr.msrb.gmra.mxu2 %vm8367_vm10, %v9142_v30  ;;  %v4803_v8 = vld [vmem:[#allocation16 + $0x3e0] sm:$0xff] }
 0x601   : > { %6283 = vmatpush.msra.mxu0 %v4869_v22  ;;  %6343 = vmatpush.msra.mxu2 %v5157_v4  ;;  %v5091_v22 = vld [vmem:[#allocation16 + $0xce0] sm:$0xff]  ;;  %v4953_v4 = vld [vmem:[#allocation16 + $0x890] sm:$0xff] }
 0x602   : > { %6409 = vmatpush.msra.mxu3 %v5409_v11  ;;  %6230 = vmatpush.msra.mxu1 %v5402_v46  ;;  %v4954_v11 = vld [vmem:[#allocation16 + $0x898] sm:$0xff]  ;;  %v4797_v46 = vld [vmem:[#allocation16 + $0x3b0] sm:$0xff]  ;;  %v4791_v39 = vld [vmem:[#allocation16 + $0x380] sm:$0xff] }
 0x603   : > { %6284 = vmatpush.msra.mxu0 %v4863_v17  ;;  %6344 = vmatpush.msra.mxu2 %v5151_v31  ;;  %v4947_v17 = vld [vmem:[#allocation16 + $0x860] sm:$0xff]  ;;  %v4948_v31 = vld [vmem:[#allocation16 + $0x868] sm:$0xff] }
 0x604   : > { %6410 = vmatpush.msra.mxu3 %v5403_v21  ;;  %6231 = vmatpush.msra.mxu1 %v5396_v32  ;;  %v5079_v21 = vld [vmem:[#allocation16 + $0xc80] sm:$0xff]  ;;  %v4941_v32 = vld [vmem:[#allocation16 + $0x830] sm:$0xff] }
 0x605   : > { %6285 = vmatpush.msra.mxu0 %v4857_v38  ;;  %6345 = vmatpush.msra.mxu2 %v5145_v2  ;;  %v4942_v38 = vld [vmem:[#allocation16 + $0x838] sm:$0xff]  ;;  %v4785_v2 = vld [vmem:[#allocation16 + $0x350] sm:$0xff]  ;;  %v5067_v60 = vld [vmem:[#allocation16 + $0xc20] sm:$0xff] }
 0x606   : > { %6411 = vmatpush.msra.mxu3 %v5397_v3  ;;  %6232 = vmatpush.msra.mxu1 %v5390_v15  ;;  %v5073_v3 = vld [vmem:[#allocation16 + $0xc50] sm:$0xff]  ;;  %v4935_v15 = vld [vmem:[#allocation16 + $0x800] sm:$0xff] }
 0x607   : > { %6286 = vmatpush.msra.mxu0 %v4851_v48  ;;  %6346 = vmatpush.msra.mxu2 %v5139_v61  ;;  %v4936_v48 = vld [vmem:[#allocation16 + $0x808] sm:$0xff]  ;;  %v4779_v61 = vld [vmem:[#allocation16 + $0x320] sm:$0xff] }
 0x608   : > { %6412 = vmatpush.msra.mxu3 %v5391_v26  ;;  %6233 = vmatpush.msra.mxu1 %v5384_v43  ;;  %v4929_v26 = vld [vmem:[#allocation16 + $0x7d0] sm:$0xff] }
 0x609   : > { %6287 = vmatpush.msra.mxu0 %v4845_v40  ;;  %6347 = vmatpush.msra.mxu2 %v5133_v0  ;;  %v5253_v43 = vld [vmem:[#allocation16 + $0x11f0] sm:$0xff]  ;;  %v4930_v0 = vld [vmem:[#allocation16 + $0x7d8] sm:$0xff] }
 0x60a   : > { %6413 = vmatpush.msra.mxu3 %v5385_v62  ;;  %6234 = vmatpush.msra.mxu1 %v5378_v35  ;;  %v5541_v40 = vld [vmem:[#allocation16 + $0x1af0] sm:$0xff]  ;;  %v4923_v62 = vld [vmem:[#allocation16 + $0x7a0] sm:$0xff] }
 0x60b   : > { %6288 = vmatpush.msra.mxu0 %v4839_v28  ;;  %6348 = vmatpush.msra.mxu2 %v5127_v14  ;;  %v5247_v35 = vld [vmem:[#allocation16 + $0x11c0] sm:$0xff]  ;;  %v4924_v14 = vld [vmem:[#allocation16 + $0x7a8] sm:$0xff] }
 0x60c   : > { %6414 = vmatpush.msra.mxu3 %v5379_v55  ;;  %6851 = vrot.lane.b32.xlu2 %v6676_v23, %s7885_s16  ;;  %v5535_v28 = vld [vmem:[#allocation16 + $0x1ac0] sm:$0xff]  ;;  %v4917_v23 = vld [vmem:[#allocation16 + $0x770] sm:$0xff] }
 0x60d   : > { %6235 = vmatpush.msra.mxu1 %v5372_v19  ;;  %6289 = vmatpush.msra.mxu0 %v4833_v59  ;;  %v5241_v55 = vld [vmem:[#allocation16 + $0x1190] sm:$0xff]  ;;  %v4918_v59 = vld [vmem:[#allocation16 + $0x778] sm:$0xff] }
 0x60e   : > { %6349 = vmatpush.msra.mxu2 %v5121_v29  ;;  %6415 = vmatpush.msra.mxu3 %v5373_v16  ;;  %v5529_v19 = vld [vmem:[#allocation16 + $0x1a90] sm:$0xff]  ;;  %v4911_v29 = vld [vmem:[#allocation16 + $0x740] sm:$0xff] }
 0x60f   : > { %6236 = vmatpush.msra.mxu1 %v5366_v52  ;;  %6290 = vmatpush.msra.mxu0 %v4827_v57  ;;  %v5235_v16 = vld [vmem:[#allocation16 + $0x1160] sm:$0xff]  ;;  %v4912_v57 = vld [vmem:[#allocation16 + $0x748] sm:$0xff] }
 0x610   : > { %6350 = vmatpush.msra.mxu2 %v5115_v51  ;;  %6416 = vmatpush.msra.mxu3 %v5367_v37  ;;  %v5523_v52 = vld [vmem:[#allocation16 + $0x1a60] sm:$0xff]  ;;  %v4905_v51 = vld [vmem:[#allocation16 + $0x710] sm:$0xff] }
 0x611   : > { %6237 = vmatpush.msra.mxu1 %v5360_v63  ;;  %6291 = vmatpush.msra.mxu0 %v4821_v45  ;;  %v5229_v37 = vld [vmem:[#allocation16 + $0x1130] sm:$0xff]  ;;  %v4906_v45 = vld [vmem:[#allocation16 + $0x718] sm:$0xff] }
 0x612   : > { %6351 = vmatpush.msra.mxu2 %v5109_v27  ;;  %6417 = vmatpush.msra.mxu3 %v5361_v5  ;;  %v5517_v63 = vld [vmem:[#allocation16 + $0x1a30] sm:$0xff]  ;;  %v4899_v27 = vld [vmem:[#allocation16 + $0x6e0] sm:$0xff] }
 0x613   : > { %6238 = vmatpush.msra.mxu1 %v5354_v34  ;;  %6292 = vmatpush.msra.mxu0 %v4815_v18  ;;  %v5223_v5 = vld [vmem:[#allocation16 + $0x1100] sm:$0xff]  ;;  %v4900_v18 = vld [vmem:[#allocation16 + $0x6e8] sm:$0xff] }
 0x614   : > { %6352 = vmatpush.msra.mxu2 %v5103_v7  ;;  %6418 = vmatpush.msra.mxu3 %v5355_v13  ;;  %v5511_v34 = vld [vmem:[#allocation16 + $0x1a00] sm:$0xff]  ;;  %v4893_v7 = vld [vmem:[#allocation16 + $0x6b0] sm:$0xff] }
 0x615   : > { %6239 = vmatmul.f32.vlgmr.msra.gmra.mxu1 %v9191_v36  ;;  %6419 = vmatmul.f32.vlgmr.msra.gmra.mxu3 %v9191_v36  ;;  %v5217_v13 = vld [vmem:[#allocation16 + $0x10d0] sm:$0xff] }
 0x616   : > { %6303 = vmatpush.msrb.mxu1 %v4965_v6  ;;  %6483 = vmatpush.msrb.mxu3 %v4966_v25  ;;  %v5505_v6 = vld [vmem:[#allocation16 + $0x19d0] sm:$0xff]  ;;  %v4894_v25 = vld [vmem:[#allocation16 + $0x6b8] sm:$0xff] }
 0x617   : > { %6293 = vmatpush.msra.mxu0 %v4809_v1  ;;  %6353 = vmatpush.msra.mxu2 %v5097_v10  ;;  %v4887_v1 = vld [vmem:[#allocation16 + $0x680] sm:$0xff] }
 0x618   : > { %6304 = vmatpush.msrb.mxu1 %v4959_v41  ;;  %6484 = vmatpush.msrb.mxu3 %v4960_v24  ;;  %v5211_v10 = vld [vmem:[#allocation16 + $0x10a0] sm:$0xff]  ;;  %v4888_v24 = vld [vmem:[#allocation16 + $0x688] sm:$0xff] }
 0x619   : > { %6294 = vmatpush.msra.mxu0 %v4803_v8  ;;  %6354 = vmatpush.msra.mxu2 %v5091_v22  ;;  %v5499_v41 = vld [vmem:[#allocation16 + $0x19a0] sm:$0xff]  ;;  %v4881_v8 = vld [vmem:[#allocation16 + $0x650] sm:$0xff] }
 0x61a   : > { %6305 = vmatpush.msrb.mxu1 %v4953_v4  ;;  %6485 = vmatpush.msrb.mxu3 %v4954_v11  ;;  %v5205_v22 = vld [vmem:[#allocation16 + $0x1070] sm:$0xff]  ;;  %v4882_v11 = vld [vmem:[#allocation16 + $0x658] sm:$0xff] }
 0x61b   : > { %6295 = vmatpush.msra.mxu0 %v4797_v46  ;;  %6355 = vmatpush.msra.mxu2 %v5085_v42  ;;  %v5493_v4 = vld [vmem:[#allocation16 + $0x1970] sm:$0xff]  ;;  %v4875_v46 = vld [vmem:[#allocation16 + $0x620] sm:$0xff] }
 0x61c   : > { %6306 = vmatpush.msrb.mxu1 %v4947_v17  ;;  %6486 = vmatpush.msrb.mxu3 %v4948_v31  ;;  %v5199_v42 = vld [vmem:[#allocation16 + $0x1040] sm:$0xff]  ;;  %v4876_v31 = vld [vmem:[#allocation16 + $0x628] sm:$0xff] }
 0x61d   : > { %6296 = vmatpush.msra.mxu0 %v4791_v39  ;;  %6356 = vmatpush.msra.mxu2 %v5079_v21  ;;  %v5487_v17 = vld [vmem:[#allocation16 + $0x1940] sm:$0xff]  ;;  %v5349_v39 = vld [vmem:[#allocation16 + $0x14f0] sm:$0xff]  ;;  %v5350_v21 = vld [vmem:[#allocation16 + $0x14f8] sm:$0xff] }
 0x61e   : > { %6307 = vmatpush.msrb.mxu1 %v4941_v32  ;;  %6487 = vmatpush.msrb.mxu3 %v4942_v38  ;;  %v5193_v32 = vld [vmem:[#allocation16 + $0x1010] sm:$0xff] }
 0x61f   : > { %6297 = vmatpush.msra.mxu0 %v4785_v2  ;;  %6357 = vmatpush.msra.mxu2 %v5073_v3  ;;  %v5481_v38 = vld [vmem:[#allocation16 + $0x1910] sm:$0xff]  ;;  %v5920_v2 = vpop.f32.mrf.mxu1  ;;  %v5343_v3 = vld [vmem:[#allocation16 + $0x14c0] sm:$0xff] }
 0x620   : > { %6308 = vmatpush.msrb.mxu1 %v4935_v15  ;;  %6488 = vmatpush.msrb.mxu3 %v4936_v48  ;;  %v5344_v15 = vld [vmem:[#allocation16 + $0x14c8] sm:$0xff]  ;;  %v5187_v48 = vld [vmem:[#allocation16 + $0xfe0] sm:$0xff] }
 0x621   : > { %6298 = vmatpush.msra.mxu0 %v4779_v61  ;;  %6358 = vmatpush.msra.mxu2 %v5067_v60  ;;  %v5475_v61 = vld [vmem:[#allocation16 + $0x18e0] sm:$0xff]  ;;  %v5940_v60 = vpop.f32.mrf.mxu3 }
 0x622   : > { %7189 = vmatmul.msk.f32.vlgmr.msra.gmra.mxu0 %vm8367_vm10, %v9177_v58  ;;  %6309 = vmatpush.msrb.mxu1 %v4929_v26  ;;  %v5337_v26 = vld [vmem:[#allocation16 + $0x1490] sm:$0xff] }
 0x623   : > { %6359 = vmatmul.f32.vlgmr.msra.gmra.mxu2 %v9188_v20  ;;  %6363 = vmatpush.msrb.mxu0 %v5253_v43  ;;  %v5338_v43 = vld [vmem:[#allocation16 + $0x1498] sm:$0xff] }
 0x624   : > { %6423 = vmatpush.msrb.mxu2 %v5541_v40  ;;  %6489 = vmatpush.msrb.mxu3 %v4930_v0  ;;  %v5941_v40 = vadd.f32 %v5940_v60, %v5920_v2  ;;  %v5181_v0 = vld [vmem:[#allocation16 + $0xfb0] sm:$0xff]  ;;  %v5296_v2 = vld [vmem:[#allocation16 + $0x1348] sm:$0xff]  ;;  %v5290_v60 = vld [vmem:[#allocation16 + $0x1318] sm:$0xff] }
 0x625   : > { %6310 = vmatpush.msrb.mxu1 %v4923_v62  ;;  %6364 = vmatpush.msrb.mxu0 %v5247_v35  ;;  %v5469_v62 = vld [vmem:[#allocation16 + $0x18b0] sm:$0xff]  ;;  %v5331_v35 = vld [vmem:[#allocation16 + $0x1460] sm:$0xff] }
 0x626   : > { %6424 = vmatpush.msrb.mxu2 %v5535_v28  ;;  %6490 = vmatpush.msrb.mxu3 %v4924_v14  ;;  %v5175_v28 = vld [vmem:[#allocation16 + $0xf80] sm:$0xff] }
 0x627   : > { %6311 = vmatpush.msrb.mxu1 %v4917_v23  ;;  %6365 = vmatpush.msrb.mxu0 %v5241_v55  ;;  %v5463_v14 = vld [vmem:[#allocation16 + $0x1880] sm:$0xff]  ;;  %v5960_v23 = vpop.f32.mrf.mxu2  ;;  %v5980_v55 = vpop.f32.mrf.mxu0 }
 0x628   : > { %6425 = vmatpush.msrb.mxu2 %v5529_v19  ;;  %6491 = vmatpush.msrb.mxu3 %v4918_v59  ;;  %v5325_v19 = vld [vmem:[#allocation16 + $0x1430] sm:$0xff]  ;;  %v5326_v59 = vld [vmem:[#allocation16 + $0x1438] sm:$0xff] }
 0x629   : > { %6312 = vmatpush.msrb.mxu1 %v4911_v29  ;;  %6366 = vmatpush.msrb.mxu0 %v5235_v16  ;;  %v5961_v29 = vadd.f32 %v5960_v23, %v5941_v40  ;;  %v5169_v16 = vld [vmem:[#allocation16 + $0xf50] sm:$0xff]  ;;  %v5283_v40 = vld [vmem:[#allocation16 + $0x12e0] sm:$0xff]  ;;  %v4738_v23 = vld [vmem:[#allocation16 + $0x1d8] sm:$0xff] }
 0x62a   : > { %6426 = vmatpush.msrb.mxu2 %v5523_v52  ;;  %6492 = vmatpush.msrb.mxu3 %v4912_v57  ;;  %v5457_v52 = vld [vmem:[#allocation16 + $0x1850] sm:$0xff] }
 0x62b   : > { %6313 = vmatpush.msrb.mxu1 %v4905_v51  ;;  %6367 = vmatpush.msrb.mxu0 %v5229_v37  ;;  %v6000_v57 = vpop.f32.mrf.mxu1  ;;  %v5319_v51 = vld [vmem:[#allocation16 + $0x1400] sm:$0xff]  ;;  %v5320_v37 = vld [vmem:[#allocation16 + $0x1408] sm:$0xff] }
 0x62c   : > { %6427 = vmatpush.msrb.mxu2 %v5517_v63  ;;  %6493 = vmatpush.msrb.mxu3 %v4906_v45  ;;  %v5981_v63 = vadd.f32 %v5980_v55, %v5961_v29  ;;  %v5163_v45 = vld [vmem:[#allocation16 + $0xf20] sm:$0xff] }
 0x62d   : > { %6314 = vmatpush.msrb.mxu1 %v4899_v27  ;;  %6368 = vmatpush.msrb.mxu0 %v5223_v5  ;;  %v5451_v27 = vld [vmem:[#allocation16 + $0x1820] sm:$0xff] }
 0x62e   : > { %6428 = vmatpush.msrb.mxu2 %v5511_v34  ;;  %6494 = vmatpush.msrb.mxu3 %v4900_v18  ;;  %v5313_v34 = vld [vmem:[#allocation16 + $0x13d0] sm:$0xff] }
 0x62f   : > { %6315 = vmatpush.msrb.mxu1 %v4893_v7  ;;  %6369 = vmatpush.msrb.mxu0 %v5217_v13  ;;  %v6001_v7 = vadd.f32 %v6000_v57, %v5981_v63  ;;  %v4774_v13 = vld [vmem:[#allocation16 + $0x2f8] sm:$0xff]  ;;  %v5265_v63 = vld [vmem:[#allocation16 + $0x1250] sm:$0xff] }
 0x630   : > { %6429 = vmatpush.msrb.mxu2 %v5505_v6  ;;  %6495 = vmatpush.msrb.mxu3 %v4894_v25  ;;  %v5062_v6 = vld [vmem:[#allocation16 + $0xbf8] sm:$0xff] }
 0x631   : > { %6316 = vmatpush.msrb.mxu1 %v4887_v1  ;;  %6370 = vmatpush.msrb.mxu0 %v5211_v10  ;;  %v5314_v25 = vld [vmem:[#allocation16 + $0x13d8] sm:$0xff]  ;;  %v5307_v1 = vld [vmem:[#allocation16 + $0x13a0] sm:$0xff]  ;;  %v4768_v10 = vld [vmem:[#allocation16 + $0x2c8] sm:$0xff] }
 0x632   : > { %6430 = vmatpush.msrb.mxu2 %v5499_v41  ;;  %6496 = vmatpush.msrb.mxu3 %v4888_v24  ;;  %v6020_v41 = vpop.f32.mrf.mxu3  ;;  %v5056_v24 = vld [vmem:[#allocation16 + $0xbc8] sm:$0xff] }
 0x633   : > { %6317 = vmatpush.msrb.mxu1 %v4881_v8  ;;  %6371 = vmatpush.msrb.mxu0 %v5205_v22  ;;  %v6021_v8 = vadd.f32 %v6020_v41, %v6001_v7  ;;  %v5301_v22 = vld [vmem:[#allocation16 + $0x1370] sm:$0xff]  ;;  %v5259_v7 = vld [vmem:[#allocation16 + $0x1220] sm:$0xff] }
 0x634   : > { %6431 = vmatpush.msrb.mxu2 %v5493_v4  ;;  %6497 = vmatpush.msrb.mxu3 %v4882_v11  ;;  %v4762_v4 = vld [vmem:[#allocation16 + $0x298] sm:$0xff] }
 0x635   : > { %6318 = vmatpush.msrb.mxu1 %v4875_v46  ;;  %6372 = vmatpush.msrb.mxu0 %v5199_v42  ;;  %v5050_v11 = vld [vmem:[#allocation16 + $0xb98] sm:$0xff]  ;;  %v5295_v42 = vld [vmem:[#allocation16 + $0x1340] sm:$0xff] }
 0x636   : > { %6432 = vmatpush.msrb.mxu2 %v5487_v17  ;;  %6498 = vmatpush.msrb.mxu3 %v4876_v31  ;;  %v5302_v46 = vld [vmem:[#allocation16 + $0x1378] sm:$0xff]  ;;  %v4756_v17 = vld [vmem:[#allocation16 + $0x268] sm:$0xff]  ;;  %v9305_v31 = vld [vmem:[#allocation17] sm:$0xff] }
 0x637   : > { %7190 = vmatmul.msk.f32.vlgmr.msrb.gmra.mxu1 %vm8367_vm10, %v9210_v49  ;;  %7193 = vmatmul.msk.f32.vlgmr.msrb.gmra.mxu3 %vm8367_vm10, %v9210_v49  ;;  %v5332_v49 = vld [vmem:[#allocation16 + $0x1468] sm:$0xff] }
 0x638   : > { %6383 = vmatpush.msra.mxu1 %v5349_v39  ;;  %6563 = vmatpush.msra.mxu3 %v5350_v21  ;;  %v6629_v39 = vperm.slane %v9305_v31, 4  ;;  %v6040_v21 = vpop.f32.mrf.mxu2 }
 0x639   : > { %6373 = vmatpush.msrb.mxu0 %v5193_v32  ;;  %6433 = vmatpush.msrb.mxu2 %v5481_v38  ;;  %v6060_v32 = vpop.f32.mrf.mxu0  ;;  %v5044_v38 = vld [vmem:[#allocation16 + $0xb68] sm:$0xff] }
 0x63a   : > { %6384 = vmatpush.msra.mxu1 %v5343_v3  ;;  %6564 = vmatpush.msra.mxu3 %v5344_v15  ;;  %v6041_v3 = vadd.f32 %v6040_v21, %v6021_v8  ;;  %v5289_v15 = vld [vmem:[#allocation16 + $0x1310] sm:$0xff]  ;;  %v4708_v8 = vld [vmem:[#allocation16 + $0xe8] sm:$0xff]  ;;  %v4690_v21 = vld [vmem:[#allocation16 + $0x58] sm:$0xff] }
 0x63b   : > { %6374 = vmatpush.msrb.mxu0 %v5187_v48  ;;  %6434 = vmatpush.msrb.mxu2 %v5475_v61  ;;  %v4750_v48 = vld [vmem:[#allocation16 + $0x238] sm:$0xff] }
 0x63c   : > { %6385 = vmatpush.msra.mxu1 %v5337_v26  ;;  %6565 = vmatpush.msra.mxu3 %v5338_v43  ;;  %v5038_v61 = vld [vmem:[#allocation16 + $0xb38] sm:$0xff]  ;;  %v6653_v26 = vperm.slane %v9305_v31, 5  ;;  %v6061_v43 = vadd.f32 %v6060_v32, %v6041_v3  ;;  %v4972_v3 = vld [vmem:[#allocation16 + $0x928] sm:$0xff] }
 0x63d   : > { %6375 = vmatpush.msrb.mxu0 %v5181_v0  ;;  %6435 = vmatpush.msrb.mxu2 %v5469_v62  ;;  %v4744_v0 = vld [vmem:[#allocation16 + $0x208] sm:$0xff]  ;;  %v6641_v62 = vperm.slane %v6629_v39, 0  ;;  %v4978_v32 = vld [vmem:[#allocation16 + $0x958] sm:$0xff] }
 0x63e   : > { %6386 = vmatpush.msra.mxu1 %v5331_v35  ;;  %6566 = vmatpush.msra.mxu3 %v5332_v49  ;;  %v5032_v35 = vld [vmem:[#allocation16 + $0xb08] sm:$0xff]  ;;  %v6665_v29 = vperm.slane %v6653_v26, 1 }
 0x63f   : > { %6376 = vmatpush.msrb.mxu0 %v5175_v28  ;;  %6436 = vmatpush.msrb.mxu2 %v5463_v14  ;;  %v5284_v49 = vld [vmem:[#allocation16 + $0x12e8] sm:$0xff]  ;;  %v5277_v14 = vld [vmem:[#allocation16 + $0x12b0] sm:$0xff] }
 0x640   : > { %6387 = vmatpush.msra.mxu1 %v5325_v19  ;;  %6567 = vmatpush.msra.mxu3 %v5326_v59  ;;  %v9297_v5 = vpop.permute.xlu1 %6849  ;;  %v5026_v19 = vld [vmem:[#allocation16 + $0xad8] sm:$0xff]  ;;  %v4984_v39 = vld [vmem:[#allocation16 + $0x988] sm:$0xff] }
 0x641   : > { %6377 = vmatpush.msrb.mxu0 %v5169_v16  ;;  %6437 = vmatpush.msrb.mxu2 %v5457_v52  ;;  %v6883_v18 = vsel %vm3303_vm14, %v8991_v9, %v9297_v5  ;;  %v5308_v9 = vld [vmem:[#allocation16 + $0x13a8] sm:$0xff]  ;;  %v5278_v59 = vld [vmem:[#allocation16 + $0x12b8] sm:$0xff]  ;;  %v5271_v16 = vld [vmem:[#allocation16 + $0x1280] sm:$0xff] }
 0x642   : > { %6388 = vmatpush.msra.mxu1 %v5319_v51  ;;  %6568 = vmatpush.msra.mxu3 %v5320_v37  ;;  %6893 = vst [vmem:[%s8363_s24 + $0x40] sm:$0xff] %v6883_v18  ;;  %v4732_v52 = vld [vmem:[#allocation16 + $0x1a8] sm:$0xff] }
 0x643   : > { %6378 = vmatpush.msrb.mxu0 %v5163_v45  ;;  %6438 = vmatpush.msrb.mxu2 %v5451_v27  ;;  %v5020_v51 = vld [vmem:[#allocation16 + $0xaa8] sm:$0xff]  ;;  %v4726_v45 = vld [vmem:[#allocation16 + $0x178] sm:$0xff] }
 0x644   : > { %6379 = vmatmul.f32.vlgmr.msrb.gmra.mxu0 %v9226_v33  ;;  %6389 = vmatpush.msra.mxu1 %v5313_v34  ;;  %v5272_v37 = vld [vmem:[#allocation16 + $0x1288] sm:$0xff]  ;;  %v5014_v27 = vld [vmem:[#allocation16 + $0xa78] sm:$0xff] }
 0x645   : > { %6439 = vmatmul.f32.vlgmr.msrb.gmra.mxu2 %v9229_v53  ;;  %6443 = vmatpush.msra.mxu0 %v4774_v13  ;;  %v5266_v34 = vld [vmem:[#allocation16 + $0x1258] sm:$0xff]  ;;  %v4720_v13 = vld [vmem:[#allocation16 + $0x148] sm:$0xff] }
 0x646   : > { %6503 = vmatpush.msra.mxu2 %v5062_v6  ;;  %6569 = vmatpush.msra.mxu3 %v5314_v25  ;;  %v5008_v6 = vld [vmem:[#allocation16 + $0xa48] sm:$0xff] }
 0x647   : > { %6390 = vmatpush.msra.mxu1 %v5307_v1  ;;  %6444 = vmatpush.msra.mxu0 %v4768_v10  ;;  %v5260_v25 = vld [vmem:[#allocation16 + $0x1228] sm:$0xff]  ;;  %v4870_v1 = vld [vmem:[#allocation16 + $0x5f8] sm:$0xff] }
 0x648   : > { %6504 = vmatpush.msra.mxu2 %v5056_v24  ;;  %6570 = vmatpush.msra.mxu3 %v5308_v9  ;;  %v4714_v10 = vld [vmem:[#allocation16 + $0x118] sm:$0xff]  ;;  %v4864_v9 = vld [vmem:[#allocation16 + $0x5c8] sm:$0xff] }
 0x649   : > { %6391 = vmatpush.msra.mxu1 %v5301_v22  ;;  %6445 = vmatpush.msra.mxu0 %v4762_v4  ;;  %v5002_v24 = vld [vmem:[#allocation16 + $0xa18] sm:$0xff]  ;;  %v4996_v22 = vld [vmem:[#allocation16 + $0x9e8] sm:$0xff] }
 0x64a   : > { %6505 = vmatpush.msra.mxu2 %v5050_v11  ;;  %6571 = vmatpush.msra.mxu3 %v5302_v46  ;;  %v4858_v4 = vld [vmem:[#allocation16 + $0x598] sm:$0xff]  ;;  %v5152_v26 = vld [vmem:[#allocation16 + $0xec8] sm:$0xff] }
 0x64b   : > { %6392 = vmatpush.msra.mxu1 %v5295_v42  ;;  %6446 = vmatpush.msra.mxu0 %v4756_v17  ;;  %v4702_v11 = vld [vmem:[#allocation16 + $0xb8] sm:$0xff]  ;;  %v4852_v42 = vld [vmem:[#allocation16 + $0x568] sm:$0xff] }
 0x64c   : > { %6506 = vmatpush.msra.mxu2 %v5044_v38  ;;  %6572 = vmatpush.msra.mxu3 %v5296_v2  ;;  %v4990_v46 = vld [vmem:[#allocation16 + $0x9b8] sm:$0xff]  ;;  %v4696_v17 = vld [vmem:[#allocation16 + $0x88] sm:$0xff] }
 0x64d   : > { %6393 = vmatpush.msra.mxu1 %v5289_v15  ;;  %6447 = vmatpush.msra.mxu0 %v4750_v48  ;;  %v6080_v28 = vpop.f32.mrf.mxu1  ;;  %v4840_v38 = vld [vmem:[#allocation16 + $0x508] sm:$0xff]  ;;  %v4834_v15 = vld [vmem:[#allocation16 + $0x4d8] sm:$0xff] }
 0x64e   : > { %6507 = vmatpush.msra.mxu2 %v5038_v61  ;;  %6573 = vmatpush.msra.mxu3 %v5290_v60  ;;  %v6081_v55 = vadd.f32 %v6080_v28, %v6061_v43  ;;  %v4684_v2 = vld [vmem:[#allocation16 + $0x28] sm:$0xff]  ;;  %v5158_v48 = vld [vmem:[#allocation16 + $0xef8] sm:$0xff] }
 0x64f   : > { %6394 = vmatpush.msra.mxu1 %v5283_v40  ;;  %6448 = vmatpush.msra.mxu0 %v4744_v0  ;;  %v5446_v61 = vld [vmem:[#allocation16 + $0x17f8] sm:$0xff]  ;;  %v4828_v60 = vld [vmem:[#allocation16 + $0x4a8] sm:$0xff] }
 0x650   : > { %6508 = vmatpush.msra.mxu2 %v5032_v35  ;;  %6574 = vmatpush.msra.mxu3 %v5284_v49  ;;  %v6647_v57 = vmul.f32 %v6641_v62, %v6081_v55  ;;  %v5440_v43 = vld [vmem:[#allocation16 + $0x17c8] sm:$0xff]  ;;  %v4822_v0 = vld [vmem:[#allocation16 + $0x478] sm:$0xff] }
 0x651   : > { %6395 = vmatpush.msra.mxu1 %v5277_v14  ;;  %6449 = vmatpush.msra.mxu0 %v4738_v23  ;;  %v5146_v35 = vld [vmem:[#allocation16 + $0xe98] sm:$0xff]  ;;  %v5428_v28 = vld [vmem:[#allocation16 + $0x1768] sm:$0xff] }
 0x652   : > { %6509 = vmatpush.msra.mxu2 %v5026_v19  ;;  %6575 = vmatpush.msra.mxu3 %v5278_v59  ;;  %v6671_v18 = vadd.f32 %v6665_v29, %v6647_v57  ;;  %v5434_v49 = vld [vmem:[#allocation16 + $0x1798] sm:$0xff]  ;;  %v4804_v19 = vld [vmem:[#allocation16 + $0x3e8] sm:$0xff] }
 0x653   : > { %6396 = vmatpush.msra.mxu1 %v5271_v16  ;;  %6450 = vmatpush.msra.mxu0 %v4732_v52  ;;  %v4810_v14 = vld [vmem:[#allocation16 + $0x418] sm:$0xff]  ;;  %v5416_v59 = vld [vmem:[#allocation16 + $0x1708] sm:$0xff] }
 0x654   : > { %6510 = vmatpush.msra.mxu2 %v5020_v51  ;;  %6576 = vmatpush.msra.mxu3 %v5272_v37  ;;  %v6677_v41 = vmax.f32 %v6671_v18, 0.0  ;;  %v5134_v23 = vld [vmem:[#allocation16 + $0xe38] sm:$0xff]  ;;  %v4792_v57 = vld [vmem:[#allocation16 + $0x388] sm:$0xff] }
 0x655   : > { %6397 = vmatpush.msra.mxu1 %v5265_v63  ;;  %6451 = vmatpush.msra.mxu0 %v4726_v45  ;;  %v5422_v55 = vld [vmem:[#allocation16 + $0x1738] sm:$0xff]  ;;  %v5116_v51 = vld [vmem:[#allocation16 + $0xda8] sm:$0xff] }
 0x656   : > { %6511 = vmatpush.msra.mxu2 %v5014_v27  ;;  %6577 = vmatpush.msra.mxu3 %v5266_v34  ;;  %v4798_v29 = vld [vmem:[#allocation16 + $0x3b8] sm:$0xff]  ;;  %v5404_v37 = vld [vmem:[#allocation16 + $0x16a8] sm:$0xff] }
 0x657   : > { %6398 = vmatpush.msra.mxu1 %v5259_v7  ;;  %6452 = vmatpush.msra.mxu0 %v4720_v13  ;;  %v5122_v16 = vld [vmem:[#allocation16 + $0xdd8] sm:$0xff]  ;;  %v4780_v34 = vld [vmem:[#allocation16 + $0x328] sm:$0xff] }
 0x658   : > { %6512 = vmatpush.msra.mxu2 %v5008_v6  ;;  %6578 = vmatpush.msra.mxu3 %v5260_v25  ;;  %v5410_v52 = vld [vmem:[#allocation16 + $0x16d8] sm:$0xff]  ;;  %v5104_v18 = vld [vmem:[#allocation16 + $0xd48] sm:$0xff] }
 0x659   : > { %6399 = vmatmul.f32.vlgmr.msra.gmra.mxu1 %v9159_v12  ;;  %6579 = vmatmul.f32.vlgmr.msra.gmra.mxu3 %v9159_v12  ;;  %v4846_v12 = vld [vmem:[#allocation16 + $0x538] sm:$0xff]  ;;  %v5392_v7 = vld [vmem:[#allocation16 + $0x1648] sm:$0xff] }
 0x65a   : > { %6463 = vmatpush.msrb.mxu1 %v4870_v1  ;;  %6453 = vmatpush.msra.mxu0 %v4714_v10  ;;  %v4786_v63 = vld [vmem:[#allocation16 + $0x358] sm:$0xff]  ;;  %v5248_v1 = vld [vmem:[#allocation16 + $0x11c8] sm:$0xff] }
 0x65b   : > { %6513 = vmatpush.msra.mxu2 %v5002_v24  ;;  %6853 = vrot.lane.b32.xlu0 %v6677_v41, %s7885_s16  ;;  %v5110_v45 = vld [vmem:[#allocation16 + $0xd78] sm:$0xff]  ;;  %v5092_v10 = vld [vmem:[#allocation16 + $0xce8] sm:$0xff] }
 0x65c   : > { %6464 = vmatpush.msrb.mxu1 %v4864_v9  ;;  %6454 = vmatpush.msra.mxu0 %v4708_v8  ;;  %v5398_v27 = vld [vmem:[#allocation16 + $0x1678] sm:$0xff]  ;;  %v5380_v41 = vld [vmem:[#allocation16 + $0x15e8] sm:$0xff] }
 0x65d   : > { %6514 = vmatpush.msra.mxu2 %v4996_v22  ;;  %v5254_v13 = vld [vmem:[#allocation16 + $0x11f8] sm:$0xff]  ;;  %v5236_v22 = vld [vmem:[#allocation16 + $0x1168] sm:$0xff] }
 0x65e   : > { %6465 = vmatpush.msrb.mxu1 %v4858_v4  ;;  %6455 = vmatpush.msra.mxu0 %v4702_v11  ;;  %v5098_v6 = vld [vmem:[#allocation16 + $0xd18] sm:$0xff]  ;;  %v5080_v4 = vld [vmem:[#allocation16 + $0xc88] sm:$0xff] }
 0x65f   : > { %6515 = vmatpush.msra.mxu2 %v4990_v46  ;;  %v5386_v25 = vld [vmem:[#allocation16 + $0x1618] sm:$0xff]  ;;  %v5368_v11 = vld [vmem:[#allocation16 + $0x1588] sm:$0xff]  ;;  %v6120_v46 = vpop.f32.mrf.mxu2 }
 0x660   : > { %6466 = vmatpush.msrb.mxu1 %v4852_v42  ;;  %6456 = vmatpush.msra.mxu0 %v4696_v17  ;;  %v5242_v24 = vld [vmem:[#allocation16 + $0x1198] sm:$0xff]  ;;  %v6100_v17 = vpop.f32.mrf.mxu3 }
 0x661   : > { %6516 = vmatpush.msra.mxu2 %v4984_v39  ;;  %v5086_v9 = vld [vmem:[#allocation16 + $0xcb8] sm:$0xff]  ;;  %v6140_v39 = vpop.f32.mrf.mxu0 }
 0x662   : > { %6467 = vmatpush.msrb.mxu1 %v4846_v12  ;;  %6457 = vmatpush.msra.mxu0 %v4690_v21  ;;  %v5374_v8 = vld [vmem:[#allocation16 + $0x15b8] sm:$0xff]  ;;  %v5224_v12 = vld [vmem:[#allocation16 + $0x1108] sm:$0xff] }
 0x663   : > { %6517 = vmatpush.msra.mxu2 %v4978_v32  ;;  %v5362_v42 = vld [vmem:[#allocation16 + $0x1558] sm:$0xff]  ;;  %v5068_v21 = vld [vmem:[#allocation16 + $0xc28] sm:$0xff]  ;;  %v6121_v32 = vadd.f32 %v6120_v46, %v6100_v17 }
 0x664   : > { %6468 = vmatpush.msrb.mxu1 %v4840_v38  ;;  %6458 = vmatpush.msra.mxu0 %v4684_v2  ;;  %v5356_v38 = vld [vmem:[#allocation16 + $0x1528] sm:$0xff] }
 0x665   : > { %6518 = vmatpush.msra.mxu2 %v4972_v3  ;;  %7191 = vmatmul.msk.f32.vlgmr.msra.gmra.mxu0 %vm8367_vm10, %v9142_v30  ;;  %v4816_v30 = vld [vmem:[#allocation16 + $0x448] sm:$0xff]  ;;  %v5218_v3 = vld [vmem:[#allocation16 + $0x10d8] sm:$0xff] }
 0x666   : > { %6469 = vmatpush.msrb.mxu1 %v4834_v15  ;;  %6519 = vmatmul.f32.vlgmr.msra.gmra.mxu2 %v9169_v44  ;;  %v9316_v40 = vpop.permute.xlu2 %6851  ;;  %v5140_v44 = vld [vmem:[#allocation16 + $0xe68] sm:$0xff]  ;;  %v6141_v15 = vadd.f32 %v6140_v39, %v6121_v32  ;;  %v6730_v39 = vld [vmem:[%s9573_s28 + $0x78] sm:$0xff]  ;;  %v6739_v32 = vld [vmem:[%s9573_s28 + $0xc0] sm:$0xff] }
 0x667   : > { %6523 = vmatpush.msrb.mxu0 %v5158_v48  ;;  %6583 = vmatpush.msrb.mxu2 %v5446_v61  ;;  %v6861_v62 = vsel %vm3303_vm14, %v9297_v5, %v9316_v40  ;;  %v5128_v5 = vld [vmem:[#allocation16 + $0xe08] sm:$0xff]  ;;  %v5542_v48 = vld [vmem:[#allocation16 + $0x1af8] sm:$0xff] }
 0x668   : > { %6470 = vmatpush.msrb.mxu1 %v4828_v60  ;;  %6894 = vst [vmem:[%s8363_s24 + $0x48] sm:$0xff] %v6861_v62  ;;  %v5212_v61 = vld [vmem:[#allocation16 + $0x10a8] sm:$0xff]  ;;  %v6180_v62 = vpop.f32.mrf.mxu3 }
 0x669   : > { %6524 = vmatpush.msrb.mxu0 %v5152_v26  ;;  %6584 = vmatpush.msrb.mxu2 %v5440_v43  ;;  %v5536_v26 = vld [vmem:[#allocation16 + $0x1ac8] sm:$0xff]  ;;  %v5206_v43 = vld [vmem:[#allocation16 + $0x1078] sm:$0xff] }
 0x66a   : > { %6471 = vmatpush.msrb.mxu1 %v4822_v0  ;;  %v5530_v0 = vld [vmem:[#allocation16 + $0x1a98] sm:$0xff] }
 0x66b   : > { %6525 = vmatpush.msrb.mxu0 %v5146_v35  ;;  %6585 = vmatpush.msrb.mxu2 %v5434_v49  ;;  %v5200_v35 = vld [vmem:[#allocation16 + $0x1048] sm:$0xff] }
 0x66c   : > { %6472 = vmatpush.msrb.mxu1 %v4816_v30  ;;  %v5524_v30 = vld [vmem:[#allocation16 + $0x1a68] sm:$0xff] }
 0x66d   : > { %6526 = vmatpush.msrb.mxu0 %v5140_v44  ;;  %6586 = vmatpush.msrb.mxu2 %v5428_v28  ;;  %v5194_v44 = vld [vmem:[#allocation16 + $0x1018] sm:$0xff] }
 0x66e   : > { %6473 = vmatpush.msrb.mxu1 %v4810_v14  ;;  %v5518_v28 = vld [vmem:[#allocation16 + $0x1a38] sm:$0xff] }
 0x66f   : > { %6527 = vmatpush.msrb.mxu0 %v5134_v23  ;;  %6587 = vmatpush.msrb.mxu2 %v5422_v55  ;;  %v6160_v2 = vpop.f32.mrf.mxu1  ;;  %v5188_v23 = vld [vmem:[#allocation16 + $0xfe8] sm:$0xff] }
 0x670   : > { %6474 = vmatpush.msrb.mxu1 %v4804_v19  ;;  %v6161_v60 = vadd.f32 %v6160_v2, %v6141_v15  ;;  %v6744_v55 = vld [vmem:[%s9573_s28 + $0xe8] sm:$0xff]  ;;  %v6726_v2 = vld [vmem:[%s9573_s28 + $0x58] sm:$0xff] }
 0x671   : > { %6528 = vmatpush.msrb.mxu0 %v5128_v5  ;;  %6588 = vmatpush.msrb.mxu2 %v5416_v59  ;;  %v5512_v5 = vld [vmem:[#allocation16 + $0x1a08] sm:$0xff]  ;;  %v6630_v59 = vperm.slane %v9305_v31, 6  ;;  %v5458_v15 = vld [vmem:[#allocation16 + $0x1858] sm:$0xff] }
 0x672   : > { %6475 = vmatpush.msrb.mxu1 %v4798_v29  ;;  %v6181_v49 = vadd.f32 %v6180_v62, %v6161_v60  ;;  %v5182_v29 = vld [vmem:[#allocation16 + $0xfb8] sm:$0xff]  ;;  %v5452_v60 = vld [vmem:[#allocation16 + $0x1828] sm:$0xff] }
 0x673   : > { %6529 = vmatpush.msrb.mxu0 %v5122_v16  ;;  %6589 = vmatpush.msrb.mxu2 %v5410_v52  ;;  %v6742_v16 = vld [vmem:[%s9573_s28 + $0xd8] sm:$0xff]  ;;  %v6731_v62 = vld [vmem:[%s9573_s28 + $0x80] sm:$0xff] }
 0x674   : > { %6476 = vmatpush.msrb.mxu1 %v4792_v57  ;;  %v5506_v57 = vld [vmem:[#allocation16 + $0x19d8] sm:$0xff] }
 0x675   : > { %6530 = vmatpush.msrb.mxu0 %v5116_v51  ;;  %6590 = vmatpush.msrb.mxu2 %v5404_v37  ;;  %v6654_v51 = vperm.slane %v9305_v31, 7  ;;  %v5176_v37 = vld [vmem:[#allocation16 + $0xf88] sm:$0xff]  ;;  %v6738_v31 = vld [vmem:[%s9573_s28 + $0xb8] sm:$0xff] }
 0x676   : > { %6477 = vmatpush.msrb.mxu1 %v4786_v63 }
 0x677   : > { %6531 = vmatpush.msrb.mxu0 %v5110_v45  ;;  %6591 = vmatpush.msrb.mxu2 %v5398_v27  ;;  %v6740_v45 = vld [vmem:[%s9573_s28 + $0xc8] sm:$0xff] }
 0x678   : > { %6478 = vmatpush.msrb.mxu1 %v4780_v34  ;;  %v5500_v27 = vld [vmem:[#allocation16 + $0x19a8] sm:$0xff] }
 0x679   : > { %6532 = vmatpush.msrb.mxu0 %v5104_v18  ;;  %6592 = vmatpush.msrb.mxu2 %v5392_v7  ;;  %v6642_v18 = vperm.slane %v6630_v59, 0  ;;  %v6260_v7 = vpop.f32.mrf.mxu3 }
 0x67a   : > { %7192 = vmatmul.msk.f32.vlgmr.msrb.gmra.mxu1 %vm8367_vm10, %v9177_v58  ;;  %v5074_v58 = vld [vmem:[#allocation16 + $0xc58] sm:$0xff] }
 0x67b   : > { %6543 = vmatpush.msra.mxu1 %v5254_v13  ;;  %6533 = vmatpush.msrb.mxu0 %v5098_v6  ;;  %v5170_v13 = vld [vmem:[#allocation16 + $0xf58] sm:$0xff]  ;;  %v6749_v6 = vrot.slane %v8313_v54, 1  ;;  %v6745_v54 = vld [vmem:[%s9573_s28 + $0xf0] sm:$0xff] }
 0x67c   : > { %6593 = vmatpush.msrb.mxu2 %v5386_v25  ;;  %v6220_v14 = vpop.f32.mrf.mxu0  ;;  %v5494_v25 = vld [vmem:[#allocation16 + $0x1978] sm:$0xff] }
 0x67d   : > { %6544 = vmatpush.msra.mxu1 %v5248_v1  ;;  %6534 = vmatpush.msrb.mxu0 %v5092_v10  ;;  %v6666_v10 = vperm.slane %v6654_v51, 1 }
 0x67e   : > { %6594 = vmatpush.msrb.mxu2 %v5380_v41  ;;  %v6714_v41 = vmul.f32 %v8306_v50, %v8260_v56  ;;  %v6734_v56 = vld [vmem:[%s9573_s28 + $0x98] sm:$0xff] }
 0x67f   : > { %6545 = vmatpush.msra.mxu1 %v5242_v24  ;;  %6535 = vmatpush.msrb.mxu0 %v5086_v9  ;;  %v5164_v24 = vld [vmem:[#allocation16 + $0xf28] sm:$0xff]  ;;  %v5482_v50 = vld [vmem:[#allocation16 + $0x1918] sm:$0xff] }
 0x680   : > { %6595 = vmatpush.msrb.mxu2 %v5374_v8  ;;  %v6736_v9 = vld [vmem:[%s9573_s28 + $0xa8] sm:$0xff] }
 0x681   : > { %6546 = vmatpush.msra.mxu1 %v5236_v22  ;;  %6536 = vmatpush.msrb.mxu0 %v5080_v4  ;;  %v5488_v8 = vld [vmem:[#allocation16 + $0x1948] sm:$0xff]  ;;  %v6750_v4 = vrot.slane %v6714_v41, 1 }
 0x682   : > { %6596 = vmatpush.msrb.mxu2 %v5368_v11 }
 0x683   : > { %6547 = vmatpush.msra.mxu1 %v5230_v47  ;;  %6537 = vmatpush.msrb.mxu0 %v5074_v58  ;;  %v9357_v46 = vsel %vm894_vm0, %v6749_v6, %v6750_v4  ;;  %v6743_v47 = vld [vmem:[%s9573_s28 + $0xe0] sm:$0xff]  ;;  %v6732_v58 = vld [vmem:[%s9573_s28 + $0x88] sm:$0xff] }
 0x684   : > { %6597 = vmatpush.msrb.mxu2 %v5362_v42  ;;  %v5476_v42 = vld [vmem:[#allocation16 + $0x18e8] sm:$0xff] }
 0x685   : > { %6548 = vmatpush.msra.mxu1 %v5224_v12  ;;  %6538 = vmatpush.msrb.mxu0 %v5068_v21  ;;  %v5470_v12 = vld [vmem:[#allocation16 + $0x18b8] sm:$0xff]  ;;  %v6728_v21 = vld [vmem:[%s9573_s28 + $0x68] sm:$0xff] }
 0x686   : > { %6598 = vmatpush.msrb.mxu2 %v5356_v38  ;;  %6539 = vmatmul.f32.vlgmr.msrb.gmra.mxu0 %v9188_v20  ;;  %v6746_v20 = vld [vmem:[%s9572_s19 + $0xf8] sm:$0xff]  ;;  %v5464_v38 = vld [vmem:[#allocation16 + $0x1888] sm:$0xff]  ;;  %s6919_s19 = sshll.u32 %s6915_s7, 4  ;;  %s6920_s19 = int_to_ptr.hbm [resolvable:$true] %s6919_s19 }
 0x687   : > { %6549 = vmatpush.msra.mxu1 %v5218_v3  ;;  %6599 = vmatmul.f32.vlgmr.msrb.gmra.mxu2 %v9191_v36  ;;  %v6200_v36 = vpop.f32.mrf.mxu2  ;;  %v6737_v3 = vld [vmem:[%s9573_s28 + $0xb0] sm:$0xff]  ;;  %s7763_s22 = sshra.s32 %s6920_s19, 4  ;;  %s7764_s22 = int_to_ptr.hbm [resolvable:$true] %s7763_s22 }
 0x688   : > { %6603 = vmatpush.msra.mxu0 %v5542_v48  ;;  %6773 = vmatpush.msrb.mxu3 %v6746_v20  ;;  %v6201_v19 = vadd.f32 %v6200_v36, %v6181_v49  ;;  %v6724_v48 = vld [vmem:[%s9573_s28 + $0x48] sm:$0xff]  ;;  %v6729_v49 = vld [vmem:[%s9573_s28 + $0x70] sm:$0xff]  ;;  %v6723_v20 = vld [vmem:[%s9573_s28 + $0x40] sm:$0xff]  ;;  %s7765_s13 = scalar_lea.hbm %s7764_s22, 128  ;;  %p7770_p6 = scmp.lt.s32.totalorder %s7764_s22, %s9574_s27 }
 0x689   : > { %6550 = vmatpush.msra.mxu1 %v5212_v61  ;;  %v6735_v61 = vld [vmem:[%s9573_s28 + $0xa0] sm:$0xff]  ;;  %p7766_p2 = scmp.ne.s32.totalorder %s7764_s22, %s7765_s13  ;;  %p7771_p7 = scmp.lt.s32.totalorder %s7769_s25, %s7765_s13 }
 0x68a   : > { %6604 = vmatpush.msra.mxu0 %v5536_v26  ;;  %6774 = vmatpush.msrb.mxu3 %v6744_v55  ;;  %v6221_v52 = vadd.f32 %v6220_v14, %v6201_v19  ;;  %v6722_v26 = vld [vmem:[%s9573_s28 + $0x38] sm:$0xff]  ;;  %v6719_v36 = vld [vmem:[%s9573_s28 + $0x20] sm:$0xff]  ;;  %v6717_v14 = vld [vmem:[%s9573_s28 + $0x10] sm:$0xff] }
 0x68b   : > { %6551 = vmatpush.msra.mxu1 %v5206_v43  ;;  %v6733_v43 = vld [vmem:[%s9573_s28 + $0x90] sm:$0xff]  ;;  %p7767_p4 = pnand %p7766_p2, %p8018_p3  ;;  %p7772_p9 = por %p7771_p7, %p7770_p6 }
 0x68c   : > { %6605 = vmatpush.msra.mxu0 %v5530_v0  ;;  %6775 = vmatpush.msrb.mxu3 %v6742_v16  ;;  %v6720_v0 = vld [vmem:[%s9573_s28 + $0x28] sm:$0xff] }
 0x68d   : > { %6552 = vmatpush.msra.mxu1 %v5200_v35  ;;  %v6718_v35 = vld [vmem:[%s9573_s28 + $0x18] sm:$0xff]  ;;  %p7768_p5 = pneg %p7767_p4 }
 0x68e   : > { %6606 = vmatpush.msra.mxu0 %v5524_v30  ;;  %6776 = vmatpush.msrb.mxu3 %v6740_v45  ;;  %v6716_v30 = vld [vmem:[%s9573_s28 + $0x8] sm:$0xff] }
 0x68f   : > { %6553 = vmatpush.msra.mxu1 %v5194_v44  ;;  %v6727_v44 = vld [vmem:[%s9573_s28 + $0x60] sm:$0xff]  ;;  %v6280_v19 = vpop.f32.mrf.mxu2  ;;  %v6624_v45 = vld [vmem:[#allocation17 + $0x8] sm:$0xf]  ;;  %p7773_p10 = pnand %p7772_p9, %p7768_p5 }
 0x690   : > { %6607 = vmatpush.msra.mxu0 %v5518_v28  ;;  %6777 = vmatpush.msrb.mxu3 %v6738_v31  ;;  %v6721_v28 = vld [vmem:[%s9573_s28 + $0x30] sm:$0xff]  ;;  %v6655_v31 = vperm.slane %v6624_v45, 1 }
 0x691   : > { %6554 = vmatpush.msra.mxu1 %v5188_v23  ;;  %v6715_v23 = vld [vmem:[%s9573_s28] sm:$0xff] }
 0x692   : > { %6608 = vmatpush.msra.mxu0 %v5512_v5  ;;  %v6240_v63 = vpop.f32.mrf.mxu1  ;;  %6778 = vmatpush.msrb.mxu3 %v6736_v9 }
 0x693   : > { %6555 = vmatpush.msra.mxu1 %v5182_v29  ;;  %v6241_v34 = vadd.f32 %v6240_v63, %v6221_v52  ;;  %v6340_v52 = vpop.f32.mrf.mxu3 }
 0x694   : > { %6609 = vmatpush.msra.mxu0 %v5506_v57  ;;  %6779 = vmatpush.msrb.mxu3 %v6734_v56 }
 0x695   : > { %6556 = vmatpush.msra.mxu1 %v5176_v37  ;;  %v6261_v1 = vadd.f32 %v6260_v7, %v6241_v34 }
 0x696   : > { %6610 = vmatpush.msra.mxu0 %v5500_v27  ;;  %6780 = vmatpush.msrb.mxu3 %v6732_v58 }
 0x697   : > { %6557 = vmatpush.msra.mxu1 %v5170_v13  ;;  %v6648_v22 = vmul.f32 %v6642_v18, %v6261_v1  ;;  %v6631_v18 = vperm.slane %v6624_v45, 0 }
 0x698   : > { %6611 = vmatpush.msra.mxu0 %v5494_v25  ;;  %6781 = vmatpush.msrb.mxu3 %v6730_v39 }
 0x699   : > { %6558 = vmatpush.msra.mxu1 %v5164_v24  ;;  %v6672_v11 = vadd.f32 %v6666_v10, %v6648_v22  ;;  %v6643_v1 = vperm.slane %v6631_v18, 0  ;;  %v6667_v24 = vperm.slane %v6655_v31, 1 }
 0x69a   : > { %6612 = vmatpush.msra.mxu0 %v5488_v8  ;;  %6559 = vmatmul.f32.vlgmr.msra.gmra.mxu1 %v9226_v33  ;;  %v6741_v33 = vld [vmem:[%s9573_s28 + $0xd0] sm:$0xff] }
 0x69b   : > { %6753 = vmatpush.msrb.mxu1 %v6745_v54  ;;  %v6678_v17 = vmax.f32 %v6672_v11, 0.0  ;;  %6782 = vmatpush.msrb.mxu3 %v6728_v21  ;;  %v6420_v6 = vpop.f32.mrf.mxu3 }
 0x69c   : > { %6613 = vmatpush.msra.mxu0 %v5482_v50 }
 0x69d   : > { %6754 = vmatpush.msrb.mxu1 %v6743_v47  ;;  %6855 = vrot.lane.b32.xlu1 %v6678_v17, %s7885_s16 }
 0x69e   : > { %6614 = vmatpush.msra.mxu0 %v5476_v42  ;;  %6783 = vmatpush.msrb.mxu3 %v6726_v2 }
 0x69f   : > { %6755 = vmatpush.msrb.mxu1 %v6741_v33  ;;  %v6300_v55 = vpop.f32.mrf.mxu0 }
 0x6a0   : > { %6615 = vmatpush.msra.mxu0 %v5470_v12  ;;  %6784 = vmatpush.msrb.mxu3 %v6724_v48  ;;  %v6301_v59 = vadd.f32 %v6300_v55, %v6280_v19 }
 0x6a1   : > { %6756 = vmatpush.msrb.mxu1 %v6739_v32  ;;  %v6632_v32 = vperm.slane %v6624_v45, 2 }
 0x6a2   : > { %6616 = vmatpush.msra.mxu0 %v5464_v38  ;;  %6785 = vmatpush.msrb.mxu3 %v6722_v26  ;;  %v6656_v38 = vperm.slane %v6624_v45, 3 }
 0x6a3   : > { %6757 = vmatpush.msrb.mxu1 %v6737_v3 }
 0x6a4   : > { %6617 = vmatpush.msra.mxu0 %v5458_v15  ;;  %6786 = vmatpush.msrb.mxu3 %v6720_v0  ;;  %v6644_v15 = vperm.slane %v6632_v32, 0 }
 0x6a5   : > { %6758 = vmatpush.msrb.mxu1 %v6735_v61 }
 0x6a6   : > { %6618 = vmatpush.msra.mxu0 %v5452_v60  ;;  %6787 = vmatpush.msrb.mxu3 %v6718_v35  ;;  %v6360_v37 = vpop.f32.mrf.mxu2  ;;  %v6668_v60 = vperm.slane %v6656_v38, 1 }
 0x6a7   : > { %6619 = vmatmul.f32.vlgmr.msra.gmra.mxu0 %v9229_v53  ;;  %6759 = vmatpush.msrb.mxu1 %v6733_v43  ;;  %v6725_v53 = vld [vmem:[%s9573_s28 + $0x50] sm:$0xff] }
 0x6a8   : > { %6788 = vmatpush.msrb.mxu3 %v6716_v30  ;;  %v6793_v43 = vld [vmem:[#allocation19] sm:$0xf] }
 0x6a9   : > { %6760 = vmatpush.msrb.mxu1 %v6731_v62  ;;  %6789 = vmatmul.f32.vlgmr.msrb.gmra.mxu3 %v9357_v46  ;;  %v6796_v62 = vperm.slane %v6793_v43, 2 }
 0x6ab   : > { %6761 = vmatpush.msrb.mxu1 %v6729_v49  ;;  %v6804_v49 = vperm.slane %v6793_v43, 3  ;;  %v6800_v30 = vperm.slane %v6796_v62, 0 }
 0x6ad   : > { %6762 = vmatpush.msrb.mxu1 %v6727_v44  ;;  %v6808_v44 = vperm.slane %v6804_v49, 1 }
 0x6af   : > { %6763 = vmatpush.msrb.mxu1 %v6725_v53  ;;  %v6795_v53 = vperm.slane %v6793_v43, 0 }
 0x6b1   : > { %6764 = vmatpush.msrb.mxu1 %v6723_v20 }
 0x6b3   : > { %6765 = vmatpush.msrb.mxu1 %v6721_v28 }
 0x6b4   : > { %v6320_v5 = vpop.f32.mrf.mxu1 }
 0x6b5   : > { %6766 = vmatpush.msrb.mxu1 %v6719_v36  ;;  %v6321_v29 = vadd.f32 %v6320_v5, %v6301_v59  ;;  %v6803_v36 = vperm.slane %v6793_v43, 1 }
 0x6b7   : > { %6767 = vmatpush.msrb.mxu1 %v6717_v14  ;;  %v6341_v51 = vadd.f32 %v6340_v52, %v6321_v29  ;;  %v6807_v19 = vperm.slane %v6803_v36, 1 }
 0x6b9   : > { %6768 = vmatpush.msrb.mxu1 %v6715_v23  ;;  %v6361_v27 = vadd.f32 %v6360_v37, %v6341_v51  ;;  %v6799_v23 = vperm.slane %v6795_v53, 0 }
 0x6ba   : > { %6769 = vmatmul.f32.vlgmr.msrb.gmra.mxu1 %v9357_v46  ;;  %v6500_v11 = vpop.f32.mrf.mxu3 }
 0x6c1   : > { %v6380_v63 = vpop.f32.mrf.mxu0 }
 0x6c2   : > { %v6381_v34 = vadd.f32 %v6380_v63, %v6361_v27 }
 0x6c8   : > { %v6440_v10 = vpop.f32.mrf.mxu2 }
 0x6cd   : > { %v6854_v16 = vpop.permute.xlu0 %6853 }
 0x6ce   : > { %v6862_v57 = vsel %vm3303_vm14, %v9316_v40, %v6854_v16 }
 0x6cf   : > { %6895 = vst [vmem:[%s8363_s24 + $0x50] sm:$0xff] %v6862_v57 }
 0x6d6   : > { %v6400_v7 = vpop.f32.mrf.mxu1 }
 0x6d7   : > { %v6401_v13 = vadd.f32 %v6400_v7, %v6381_v34 }
 0x6d9   : > { %v6421_v25 = vadd.f32 %v6420_v6, %v6401_v13 }
 0x6db   : > { %v6441_v41 = vadd.f32 %v6440_v10, %v6421_v25 }
 0x6dc   : > { %v6580_v12 = vpop.f32.mrf.mxu3 }
 0x6dd   : > { %v6649_v9 = vmul.f32 %v6643_v1, %v6441_v41 }
 0x6df   : > { %v6673_v40 = vadd.f32 %v6667_v24, %v6649_v9 }
 0x6e1   : > { %v6679_v8 = vmax.f32 %v6673_v40, 0.0 }
 0x6e2   : > { %v6460_v4 = vpop.f32.mrf.mxu0 }
 0x6e3   : > { %6857 = vrot.lane.b32.xlu2 %v6679_v8, %s7885_s16 }
 0x6e9   : > { %v6520_v47 = vpop.f32.mrf.mxu2 }
 0x6f7   : > { %v6480_v22 = vpop.f32.mrf.mxu1 }
 0x6f8   : > { %v6481_v54 = vadd.f32 %v6480_v22, %v6460_v4 }
 0x6fa   : > { %v6501_v46 = vadd.f32 %v6500_v11, %v6481_v54 }
 0x6fc   : > { %v6521_v42 = vadd.f32 %v6520_v47, %v6501_v46 }
 0x703   : > { %v6540_v58 = vpop.f32.mrf.mxu0 }
 0x704   : > { %v6541_v39 = vadd.f32 %v6540_v58, %v6521_v42 }
 0x70a   : > { %v6600_v2 = vpop.f32.mrf.mxu2 }
 0x70f   : > { %v6856_v56 = vpop.permute.xlu1 %6855 }
 0x710   : > { %v6863_v50 = vsel %vm3303_vm14, %v6854_v16, %v6856_v56 }
 0x711   : > { %6896 = vst [vmem:[%s8363_s24 + $0x58] sm:$0xff] %v6863_v50 }
 0x717   : > { %v6560_v17 = vpop.f32.mrf.mxu1 }
 0x718   : > { %v6561_v33 = vadd.f32 %v6560_v17, %v6541_v39 }
 0x71a   : > { %v6581_v21 = vadd.f32 %v6580_v12, %v6561_v33 }
 0x71c   : > { %v6601_v3 = vadd.f32 %v6600_v2, %v6581_v21 }
 0x724   : > { %v6620_v48 = vpop.f32.mrf.mxu0 }
 0x725   : > { %v6621_v61 = vadd.f32 %v6620_v48, %v6601_v3 }
 0x727   : > { %v6650_v26 = vmul.f32 %v6644_v15, %v6621_v61 }
 0x729   : > { %v6674_v0 = vadd.f32 %v6668_v60, %v6650_v26 }
 0x72b   : > { %v6680_v35 = vmax.f32 %v6674_v0, 0.0 }
 0x72c   : > { %v6790_v20 = vpop.f32.mrf.mxu3 }
 0x72d   : > { %6859 = vrot.lane.b32.xlu0 %v6680_v35, %s7885_s16  ;;  %v6802_v28 = vmul.f32 %v6800_v30, %v6790_v20 }
 0x72f   : > { %v6810_v14 = vadd.f32 %v6808_v44, %v6802_v28 }
 0x731   : > { %v6812_v55 = vmax.f32 %v6810_v14, 0.0 }
 0x733   : > { %6877 = vrot.lane.b32.xlu2 %v6812_v55, %s7885_s16 }
 0x737   : > { %v6770_v5 = vpop.f32.mrf.mxu1 }
 0x738   : > { %v6801_v59 = vmul.f32 %v6799_v23, %v6770_v5 }
 0x73a   : > { %v6809_v29 = vadd.f32 %v6807_v19, %v6801_v59 }
 0x73c   : > { %v6811_v16 = vmax.f32 %v6809_v29, 0.0 }
 0x73d   : > { %v6858_v52 = vpop.permute.xlu2 %6857 }
 0x73e   : > { %6875 = vrot.lane.b32.xlu1 %v6811_v16, %s7885_s16  ;;  %v6864_v57 = vsel %vm3303_vm14, %v6856_v56, %v6858_v52  ;;  %s6917_s16 = sshll.u32 %s8363_s24, 4  ;;  %s6918_s16 = int_to_ptr.vmem [resolvable:$true] %s6917_s16 }
 0x73f   : > { %6897 = vst [vmem:[%s8363_s24 + $0x60] sm:$0xff] %v6864_v57 }
 0x78d   : > { %v6878_v63 = vpop.permute.xlu2 %6877 }
 0x79f   : > { %v6860_v51 = vpop.permute.xlu0 %6859 }
 0x7a0   : > { %v6865_v37 = vsel %vm3303_vm14, %v6858_v52, %v6860_v51 }
 0x7a1   : > { %6898 = vst [vmem:[%s8363_s24 + $0x68] sm:$0xff] %v6865_v37 }
 0x7b0   : > { %v6876_v45 = vpop.permute.xlu1 %6875 }
 0x7b1   : > { %v6884_v27 = vsel %vm3303_vm14, %v6860_v51, %v6876_v45  ;;  %v6879_v34 = vsel %vm3303_vm14, %v6876_v45, %v6878_v63 }
 0x7b2   : > { %6899 = vst [vmem:[%s8363_s24 + $0x70] sm:$0xff] %v6884_v27 }
 0x7b3   : > { %6900 = vst [vmem:[%s8363_s24 + $0x78] sm:$0xff] %v6879_v34 }
 0x7b4   : > { %7776 = shalt.err (!%p7773_p10)
}
 0x7b5   : > { %7247 = dma.vmem_to_hbm [thread:$0]  (%p8018_p3), %s6918_s16, 2048, %s6920_s19, %s6902_s21  }
 0x7b6 PF: > { %s9576_s26 = sld [smem:[#allocation33_spill]] }
 0x7b7   : > { %s9577_s23 = sld [smem:[#allocation28_spill]] }
 0x7bc   : > { %p7309_p11 = scmp.ge.s32.totalorder %s9576_s26, 2 }
 0x7bd   : > { %s6931_s29 = sand.u32 1, %s9577_s23  }
 0x7be   : > { %p7284_p12 = pnand %p7309_p11, %p8027_p8  ;;  %s6932_s17 = scalar_lea.sflag [#allocation4], %s6931_s29 }
 0x7c0   : > { %p7285_p13 = pneg %p7284_p12 }
 0x7c2   : > { %7834 = dma.done.wait (%p7285_p13), %s6932_s17, 2048  }
 0x7c3   : > { %7836 = vsyncadd (%p7285_p13), %s6932_s17, 4294965248  ;;  %s34_s25 = sadd.s32 1, %s9576_s26   ;;  %s9579_s18 = sld [smem:[#allocation29_spill]] }
 0x7c4   : > { %p31_p0 = scmp.ge.s32.totalorder %s34_s25, 6   ;;  %s9580_s19 = sld [smem:[#allocation30_spill]] }
 0x7c5   : > { %s9581_s20 = sld [smem:[#allocation38_spill]] }
 0x7c6   : > { %s9582_s21 = sld [smem:[#allocation31_spill]]  ;;  %33 = sbr.rel (!%p31_p0) target bundleno = 17 (0x11), region = 161 }
 0x7c7   : > { %s9583_s22 = sld [smem:[#allocation32_spill]] }
 0x7c8   : > { %s9584_s23 = sld [smem:[#allocation34_spill]] }
 0x7c9   : > { %s9585_s24 = sld [smem:[#allocation36_spill]] }
 0x7cb   :  { %6938 = vsyncpa [#allocation3], 1 }
 0x7cc   :  { %6940 = vsyncpa [#allocation3 + $0x1], 1 }
 0x7cd   :  { %6941 = vsyncpa [#allocation6], 1 }
 0x7ce   :  { %6942 = vsyncpa [#allocation9], 1 }
 0x7cf   :  { %6943 = vsyncpa [#allocation12], 1 }
 0x7d0   :  { %6944 = vsyncpa [#allocation15], 1 }
 0x7d1   :  { %6945 = vsyncpa [#allocation18], 1 }
 0x7d2   :  { %6946 = vsyncpa [#allocation4], 1 }
 0x7d3   :  { %6948 = vsyncpa [#allocation4 + $0x1], 1 }

</bundles_post_ra>
